<compile_context>
chip_gen: v5e
topology: v5e:2x2
jax: 0.10.0
libtpu: 0.0.40
codegen_flags: <defaults>
</compile_context>

<pallas_src>
import math
from functools import partial

import jax
import jax.numpy as jnp
from jax.experimental import pallas as pl
from jax.experimental.pallas import tpu as pltpu

BN_EPS = 1e-5
_VMEM_LIMIT = 32 * 1024 * 1024  # explicit scoped-VMEM cap (safe on v5e/v6e/v7x)


def _pick_tile(dim, candidates):
    """Largest candidate dividing `dim`; falls back to the full extent
    (a block dim equal to the full array dim is always legal)."""
    for c in candidates:
        if dim % c == 0:
            return c
    return dim


def _cparams(sems):
    return pltpu.CompilerParams(dimension_semantics=sems,
                                vmem_limit_bytes=_VMEM_LIMIT)


# ---------------------------------------------------------------------------
# Kernel 1: 1x1-conv matmul (whole K per step) + per-block BN partial stats.
#           Optional prologue: x <- relu(x*scale + shift)  (fuses previous BN).
# ---------------------------------------------------------------------------
def _mm_stats_kernel(x_ref, w_ref, y_ref, s_ref, q_ref):
    y = jnp.dot(x_ref[...], w_ref[...], preferred_element_type=jnp.float32)
    y_ref[...] = y.astype(y_ref.dtype)
    s_ref[...] = jnp.sum(y, axis=0, keepdims=True)
    q_ref[...] = jnp.sum(y * y, axis=0, keepdims=True)


def _mm_pro_stats_kernel(x_ref, sc_ref, sh_ref, w_ref, y_ref, s_ref, q_ref):
    xf = jnp.maximum(x_ref[...].astype(jnp.float32) * sc_ref[...] + sh_ref[...], 0.0)
    y = jnp.dot(xf.astype(jnp.bfloat16), w_ref[...],
                preferred_element_type=jnp.float32)
    y_ref[...] = y.astype(y_ref.dtype)
    s_ref[...] = jnp.sum(y, axis=0, keepdims=True)
    q_ref[...] = jnp.sum(y * y, axis=0, keepdims=True)


def matmul_bn_stats(x, w, scale=None, shift=None):
    """y = [relu(x*scale+shift)] @ w, bf16 operands / f32 accumulation.
    Returns (y bf16 (M,N), partial sums (gm,1,N) f32, partial sumsqs (gm,1,N) f32)."""
    M, K = x.shape
    N = w.shape[1]
    TM = _pick_tile(M, (512, 256, 128, 64, 32, 16, 8))
    TN = _pick_tile(N, (256, 128))
    gm, gn = M // TM, N // TN

    x_spec = pl.BlockSpec((TM, K), lambda i, j: (i, 0))
    w_spec = pl.BlockSpec((K, TN), lambda i, j: (0, j))
    y_spec = pl.BlockSpec((TM, TN), lambda i, j: (i, j))
    st_spec = pl.BlockSpec((None, 1, TN), lambda i, j: (i, 0, j))
    vec_spec = pl.BlockSpec((1, K), lambda i, j: (0, 0))

    if scale is None:
        kernel, in_specs, args = _mm_stats_kernel, [x_spec, w_spec], (x, w)
    else:
        kernel = _mm_pro_stats_kernel
        in_specs = [x_spec, vec_spec, vec_spec, w_spec]
        args = (x, scale, shift, w)

    return pl.pallas_call(
        kernel,
        out_shape=(jax.ShapeDtypeStruct((M, N), jnp.bfloat16),
                   jax.ShapeDtypeStruct((gm, 1, N), jnp.float32),
                   jax.ShapeDtypeStruct((gm, 1, N), jnp.float32)),
        grid_spec=pltpu.PrefetchScalarGridSpec(
            num_scalar_prefetch=0, grid=(gm, gn),
            in_specs=in_specs,
            out_specs=[y_spec, st_spec, st_spec]),
        compiler_params=_cparams(("parallel", "parallel")),
    )(*args)


# ---------------------------------------------------------------------------
# Kernel 2: stride-1 3x3 "grouped" conv with dense block-diagonal per-tap
#           weights.  One image per grid step: 9 shifted slices of the padded
#           VMEM tile -> 9 MXU matmuls into an f32 VMEM accumulator.  BN stats
#           fused into the epilogue; output stays lane-dense (H*W, Cout) bf16.
# ---------------------------------------------------------------------------
def _conv3x3_bn_stats_kernel(fp_ref, w_ref, y_ref, s_ref, q_ref, acc_ref, *, H, W):
    c = fp_ref.shape[-1]
    acc_ref[...] = jnp.zeros_like(acc_ref)
    for t in range(9):
        ti, tj = divmod(t, 3)
        xt = fp_ref[ti:ti + H, tj:tj + W, :].reshape(H * W, c)
        acc_ref[...] += jnp.dot(xt, w_ref[t], preferred_element_type=jnp.float32)
    acc = acc_ref[...]
    y_ref[...] = acc.astype(y_ref.dtype)
    s_ref[...] = jnp.sum(acc, axis=0, keepdims=True)
    q_ref[...] = jnp.sum(acc * acc, axis=0, keepdims=True)


def conv3x3_bn_stats(fp, w):
    """fp: (N, H+2, W+2, C) zero-padded bf16 activation, w: (9, C, Cout) bf16.
    Returns (y (N, H*W, Cout) bf16, per-image sums (N,1,Cout), sumsqs (N,1,Cout))."""
    n, hp, wp_, c = fp.shape
    H, W = hp - 2, wp_ - 2
    cout = w.shape[-1]
    kernel = partial(_conv3x3_bn_stats_kernel, H=H, W=W)
    return pl.pallas_call(
        kernel,
        out_shape=(jax.ShapeDtypeStruct((n, H * W, cout), jnp.bfloat16),
                   jax.ShapeDtypeStruct((n, 1, cout), jnp.float32),
                   jax.ShapeDtypeStruct((n, 1, cout), jnp.float32)),
        grid_spec=pltpu.PrefetchScalarGridSpec(
            num_scalar_prefetch=0, grid=(n,),
            in_specs=[pl.BlockSpec((None, hp, wp_, c), lambda b: (b, 0, 0, 0)),
                      pl.BlockSpec((9, c, cout), lambda b: (0, 0, 0))],
            out_specs=[pl.BlockSpec((None, H * W, cout), lambda b: (b, 0, 0)),
                       pl.BlockSpec((None, 1, cout), lambda b: (b, 0, 0)),
                       pl.BlockSpec((None, 1, cout), lambda b: (b, 0, 0))],
            scratch_shapes=[pltpu.VMEM((H * W, cout), jnp.float32)]),
        compiler_params=_cparams(("parallel",)),
    )(fp, w)


# ---------------------------------------------------------------------------
# Kernel 3: BN apply (scale/shift) + optional ReLU, bf16 output (c2 input path)
# ---------------------------------------------------------------------------
def _scale_shift_act_kernel(y_ref, sc_ref, sh_ref, o_ref, *, relu):
    v = y_ref[...].astype(jnp.float32) * sc_ref[...] + sh_ref[...]
    if relu:
        v = jnp.maximum(v, 0.0)
    o_ref[...] = v.astype(o_ref.dtype)


def scale_shift_act(y, scale, shift, *, relu, out_dtype):
    M, C = y.shape
    TM = _pick_tile(M, (1024, 512, 256, 128, 64, 32, 16, 8))
    row = pl.BlockSpec((TM, C), lambda i: (i, 0))
    vec = pl.BlockSpec((1, C), lambda i: (0, 0))
    return pl.pallas_call(
        partial(_scale_shift_act_kernel, relu=relu),
        out_shape=jax.ShapeDtypeStruct((M, C), out_dtype),
        grid_spec=pltpu.PrefetchScalarGridSpec(
            num_scalar_prefetch=0, grid=(M // TM,),
            in_specs=[row, vec, vec], out_specs=row),
        compiler_params=_cparams(("parallel",)),
    )(y, scale, shift)


# ---------------------------------------------------------------------------
# Kernel 4: final fused  relu( bn(y3) + bn(yp) )   or   relu( bn(y3) + x )
# ---------------------------------------------------------------------------
def _final_ds_kernel(y3_ref, sc3_ref, sh3_ref, yp_ref, scp_ref, shp_ref, o_ref):
    f = y3_ref[...].astype(jnp.float32) * sc3_ref[...] + sh3_ref[...]
    s = yp_ref[...].astype(jnp.float32) * scp_ref[...] + shp_ref[...]
    o_ref[...] = jnp.maximum(f + s, 0.0)


def _final_id_kernel(y3_ref, sc3_ref, sh3_ref, r_ref, o_ref):
    f = y3_ref[...].astype(jnp.float32) * sc3_ref[...] + sh3_ref[...]
    o_ref[...] = jnp.maximum(f + r_ref[...].astype(jnp.float32), 0.0)


def final_bn_add_relu(y3, sc3, sh3, yp=None, scp=None, shp=None, residual=None):
    M, C = y3.shape
    TM = _pick_tile(M, (1024, 512, 256, 128, 64, 32, 16, 8))
    row = pl.BlockSpec((TM, C), lambda i: (i, 0))
    vec = pl.BlockSpec((1, C), lambda i: (0, 0))
    if yp is not None:
        kernel = _final_ds_kernel
        in_specs = [row, vec, vec, row, vec, vec]
        args = (y3, sc3, sh3, yp, scp, shp)
    else:
        kernel = _final_id_kernel
        in_specs = [row, vec, vec, row]
        args = (y3, sc3, sh3, residual)
    return pl.pallas_call(
        kernel,
        out_shape=jax.ShapeDtypeStruct((M, C), jnp.float32),
        grid_spec=pltpu.PrefetchScalarGridSpec(
            num_scalar_prefetch=0, grid=(M // TM,),
            in_specs=in_specs, out_specs=row),
        compiler_params=_cparams(("parallel",)),
    )(*args)


# ---------------------------------------------------------------------------
# Glue: BN scale/shift folding from partial stats, stride-2 im2col fallback
# ---------------------------------------------------------------------------
def _bn_affine(s_parts, q_parts, m_rows, gamma, beta):
    # TODO(synk): single-pass E[y^2]-E[y]^2 can cancel for trained, non-zero-mean
    # weights; use shifted/Welford accumulation for production.
    n = s_parts.shape[-1]
    s = jnp.sum(s_parts.reshape(-1, n), axis=0, keepdims=True)
    q = jnp.sum(q_parts.reshape(-1, n), axis=0, keepdims=True)
    mean = s / m_rows
    var = jnp.maximum(q / m_rows - mean * mean, 0.0)
    inv = jax.lax.rsqrt(var + BN_EPS)
    scale = gamma[None, :] * inv
    shift = beta[None, :] - mean * scale
    return scale, shift


def _im2col(f_nhwc, stride):
    n, h, w, c = f_nhwc.shape
    fp = jnp.pad(f_nhwc, ((0, 0), (1, 1), (1, 1), (0, 0)))
    ho = (h + 2 - 3) // stride + 1
    wo = (w + 2 - 3) // stride + 1
    taps = [fp[:, ti:ti + stride * (ho - 1) + 1:stride,
               tj:tj + stride * (wo - 1) + 1:stride, :]
            for ti in range(3) for tj in range(3)]
    xcol = jnp.concatenate(taps, axis=-1).reshape(n * ho * wo, 9 * c)
    return xcol, ho, wo


# ---------------------------------------------------------------------------
# ResidualBlock forward (Pallas path)
# ---------------------------------------------------------------------------
def _forward(params, x_nchw, cfg):
    stride, downsample = cfg['stride'], cfg['downsample']
    # TODO(synk): when chaining blocks, keep activations in NHWC/(M,C) between
    # blocks and do the NCHW<->NHWC conversion once at network entry/exit.
    x = jnp.transpose(x_nchw, (0, 2, 3, 1)).astype(jnp.float32)       # NCHW->NHWC
    n, h, w, cin = x.shape
    x_bf = x.astype(jnp.bfloat16)
    m1 = n * h * w

    # ---- c1: 1x1 conv + fused BN stats (apply deferred) ----------------------
    y1, s1, q1 = matmul_bn_stats(x_bf.reshape(m1, cin), params['c1_w'])
    res_c = y1.shape[1]
    sc1, sh1 = _bn_affine(s1, q1, m1, params['c1_g'], params['c1_b'])

    # ---- c2: 3x3 grouped conv via dense block-diagonal per-tap weights -------
    f1 = scale_shift_act(y1, sc1, sh1, relu=True, out_dtype=jnp.bfloat16)
    if stride == 1:
        fp = jnp.pad(f1.reshape(n, h, w, res_c), ((0, 0), (1, 1), (1, 1), (0, 0)))
        ho, wo = h, w
        m2 = n * ho * wo
        y2, s2, q2 = conv3x3_bn_stats(fp, params['c2_w'])
        y2 = y2.reshape(m2, res_c)
    else:
        # TODO(synk): stride-2 path still materializes the 9-tap im2col in XLA.
        xcol, ho, wo = _im2col(f1.reshape(n, h, w, res_c), stride)
        m2 = n * ho * wo
        y2, s2, q2 = matmul_bn_stats(xcol, params['c2_w'].reshape(9 * res_c, res_c))
    sc2, sh2 = _bn_affine(s2, q2, m2, params['c2_g'], params['c2_b'])

    # ---- c3: BN+ReLU of c2 fused into the matmul prologue --------------------
    y3, s3, q3 = matmul_bn_stats(y2, params['c3_w'], scale=sc2, shift=sh2)
    out_c = y3.shape[1]
    sc3, sh3 = _bn_affine(s3, q3, m2, params['c3_g'], params['c3_b'])

    # ---- shortcut + fused final BN apply(s) + add + ReLU ----------------------
    if downsample:
        xs = x_bf[:, ::stride, ::stride, :].reshape(m2, cin)
        yp, sp, qp = matmul_bn_stats(xs, params['p_w'])
        scp, shp = _bn_affine(sp, qp, m2, params['p_g'], params['p_b'])
        out = final_bn_add_relu(y3, sc3, sh3, yp=yp, scp=scp, shp=shp)
    else:
        assert cin == out_c and stride == 1, \
            "identity shortcut requires in_channels == out_channels and stride 1"
        out = final_bn_add_relu(y3, sc3, sh3, residual=x.reshape(m2, cin))

    return out.reshape(n, ho, wo, out_c).transpose(0, 3, 1, 2)        # back to NCHW


# ---------------------------------------------------------------------------
# Pure-XLA reference (same math / same dtype cut points) for validation
# ---------------------------------------------------------------------------
def _reference(params, x_nchw, cfg):
    P = jax.lax.Precision.HIGHEST
    stride, downsample, groups = cfg['stride'], cfg['downsample'], cfg['groups']
    x = jnp.transpose(x_nchw, (0, 2, 3, 1)).astype(jnp.float32)
    n, h, w, cin = x.shape
    x_bf = x.astype(jnp.bfloat16)
    m1 = n * h * w

    def bn(y, gamma, beta):
        mean = jnp.mean(y, axis=0, keepdims=True)
        var = jnp.maximum(jnp.mean(y * y, axis=0, keepdims=True) - mean * mean, 0.0)
        inv = jax.lax.rsqrt(var + BN_EPS)
        scale = gamma[None, :] * inv
        return scale, beta[None, :] - mean * scale

    y1 = jnp.dot(x_bf.reshape(m1, cin), params['c1_w'],
                 preferred_element_type=jnp.float32, precision=P)
    res_c = y1.shape[1]
    sc1, sh1 = bn(y1, params['c1_g'], params['c1_b'])
    f1 = jnp.maximum(y1.astype(jnp.bfloat16).astype(jnp.float32) * sc1 + sh1, 0.0)
    f1 = f1.astype(jnp.bfloat16).reshape(n, h, w, res_c)

    w2 = jnp.transpose(params['c2_w_grouped'], (2, 3, 1, 0)).astype(jnp.bfloat16)
    y2 = jax.lax.conv_general_dilated(
        f1, w2, window_strides=(stride, stride), padding=((1, 1), (1, 1)),
        dimension_numbers=('NHWC', 'HWIO', 'NHWC'),
        feature_group_count=groups, preferred_element_type=jnp.float32, precision=P)
    ho, wo = y2.shape[1], y2.shape[2]
    m2 = n * ho * wo
    y2 = y2.reshape(m2, res_c)
    sc2, sh2 = bn(y2, params['c2_g'], params['c2_b'])
    f2 = jnp.maximum(y2.astype(jnp.bfloat16).astype(jnp.float32) * sc2 + sh2, 0.0)

    y3 = jnp.dot(f2.astype(jnp.bfloat16), params['c3_w'],
                 preferred_element_type=jnp.float32, precision=P)
    out_c = y3.shape[1]
    sc3, sh3 = bn(y3, params['c3_g'], params['c3_b'])
    f3 = y3.astype(jnp.bfloat16).astype(jnp.float32) * sc3 + sh3

    if downsample:
        xs = x_bf[:, ::stride, ::stride, :].reshape(m2, cin)
        yp = jnp.dot(xs, params['p_w'], preferred_element_type=jnp.float32, precision=P)
        scp, shp = bn(yp, params['p_g'], params['p_b'])
        res = yp.astype(jnp.bfloat16).astype(jnp.float32) * scp + shp
    else:
        res = x.reshape(m2, cin)

    out = jnp.maximum(f3 + res, 0.0)
    return out.reshape(n, ho, wo, out_c).transpose(0, 3, 1, 2)


# ---------------------------------------------------------------------------
# Parameter construction (matches PyTorch module layout / init semantics)
# ---------------------------------------------------------------------------
def make_residual_block(key, in_channels, out_channels, stride,
                        first=False, cardinality=32):
    downsample = (stride == 2) or first
    res_c = out_channels // 2
    assert res_c % cardinality == 0
    cin_g = res_c // cardinality
    cout_g = res_c // cardinality
    k1, k2, k3, k4 = jax.random.split(key, 4)

    def kaiming(k, shape, fan_in):
        return jax.random.normal(k, shape, jnp.float32) * math.sqrt(2.0 / fan_in)

    params = {
        'c1_w': kaiming(k1, (in_channels, res_c), in_channels).astype(jnp.bfloat16),
        'c1_g': jnp.ones((res_c,), jnp.float32),
        'c1_b': jnp.zeros((res_c,), jnp.float32),
        'c2_g': jnp.ones((res_c,), jnp.float32),
        'c2_b': jnp.zeros((res_c,), jnp.float32),
        'c3_w': kaiming(k3, (res_c, out_channels), res_c).astype(jnp.bfloat16),
        'c3_g': jnp.ones((out_channels,), jnp.float32),
        'c3_b': jnp.zeros((out_channels,), jnp.float32),
    }
    # Grouped 3x3 weight in PyTorch OIHW (res_c, cin_g, 3, 3) layout.
    w2 = kaiming(k2, (res_c, cin_g, 3, 3), cin_g * 9)
    params['c2_w_grouped'] = w2                       # kept for the XLA reference
    # Dense block-diagonal per-tap weight (9, res_c, res_c), bf16.
    w2g = w2.reshape(cardinality, cout_g, cin_g, 3, 3)
    eye = jnp.eye(cardinality, dtype=w2.dtype)
    dense = jnp.einsum('gocij,gh->ijgcho', w2g, eye)  # (3,3,G,cin_g,G,cout_g)
    params['c2_w'] = dense.reshape(9, res_c, res_c).astype(jnp.bfloat16)

    if downsample:
        params['p_w'] = kaiming(k4, (in_channels, out_channels),
                                in_channels).astype(jnp.bfloat16)
        params['p_g'] = jnp.ones((out_channels,), jnp.float32)
        params['p_b'] = jnp.zeros((out_channels,), jnp.float32)

    cfg = dict(stride=stride, groups=cardinality, downsample=downsample)
    return params, partial(_forward, cfg=cfg), partial(_reference, cfg=cfg)


# ---------------------------------------------------------------------------
if __name__ == "__main__":
    key = jax.random.PRNGKey(0)
    kp, kx = jax.random.split(key)

    # ResNeXt-50 first residual block: 64 -> 256 channels, stride 1, first=True,
    # cardinality 32 (res_channels = 128, 4 in/out channels per group).
    params, forward, reference = make_residual_block(
        kp, in_channels=64, out_channels=256, stride=1, first=True, cardinality=32)

    x = jax.random.normal(kx, (2, 64, 16, 16), jnp.float32)   # NCHW like PyTorch

    out = jax.block_until_ready(jax.jit(forward)(params, x))
    ref = jax.block_until_ready(jax.jit(reference)(params, x))

    assert out.shape == (2, 256, 16, 16), out.shape
    assert bool(jnp.all(jnp.isfinite(out)))
    assert bool(jnp.all(out >= 0.0))                          # final ReLU
    max_err = float(jnp.max(jnp.abs(out - ref)))
    assert max_err < 5e-2, f"mismatch vs XLA reference: {max_err}"
    print("KERNEL_OK")
</pallas_src>

<mosaic_0001>
module attributes {stable_mosaic.version = 11 : i64} {
  func.func @_scale_shift_act_kernel(%arg0: i32, %arg1: memref<512x128xbf16, #tpu.memory_space<vmem>>, %arg2: memref<1x128xf32, #tpu.memory_space<vmem>>, %arg3: memref<1x128xf32, #tpu.memory_space<vmem>>, %arg4: memref<512x128xbf16, #tpu.memory_space<vmem>>) attributes {dimension_semantics = [#tpu.dimension_semantics<parallel>], iteration_bounds = array<i64: 1>, scalar_prefetch = 0 : i64, scratch_operands = 0 : i64, tpu.core_type = #tpu.core_type<tc>, window_params = [{transform_indices = @transform_0, window_bounds = array<i64: 512, 128>}, {pipeline_mode = #tpu.pipeline_mode<synchronous>, transform_indices = @transform_1, window_bounds = array<i64: 1, 128>}, {pipeline_mode = #tpu.pipeline_mode<synchronous>, transform_indices = @transform_2, window_bounds = array<i64: 1, 128>}, {transform_indices = @transform_3, window_bounds = array<i64: 512, 128>}]} {
    %c0 = arith.constant 0 : index
    %c0_0 = arith.constant 0 : index
    %0 = vector.load %arg1[%c0, %c0_0] : memref<512x128xbf16, #tpu.memory_space<vmem>>, vector<512x128xbf16>
    %1 = arith.extf %0 : vector<512x128xbf16> to vector<512x128xf32>
    %c0_1 = arith.constant 0 : index
    %c0_2 = arith.constant 0 : index
    %2 = vector.load %arg2[%c0_1, %c0_2] : memref<1x128xf32, #tpu.memory_space<vmem>>, vector<1x128xf32>
    %3 = vector.broadcast %2 : vector<1x128xf32> to vector<512x128xf32>
    %4 = arith.mulf %1, %3 : vector<512x128xf32>
    %c0_3 = arith.constant 0 : index
    %c0_4 = arith.constant 0 : index
    %5 = vector.load %arg3[%c0_3, %c0_4] : memref<1x128xf32, #tpu.memory_space<vmem>>, vector<1x128xf32>
    %6 = vector.broadcast %5 : vector<1x128xf32> to vector<512x128xf32>
    %7 = arith.addf %4, %6 : vector<512x128xf32>
    %cst = arith.constant 0.000000e+00 : f32
    %8 = vector.broadcast %cst : f32 to vector<512x128xf32>
    %9 = arith.maximumf %7, %8 : vector<512x128xf32>
    %10 = arith.truncf %9 : vector<512x128xf32> to vector<512x128xbf16>
    %c0_5 = arith.constant 0 : index
    %c0_6 = arith.constant 0 : index
    %11 = vector.load %arg4[%c0_5, %c0_6] : memref<512x128xbf16, #tpu.memory_space<vmem>>, vector<512x128xbf16>
    tpu.vector_store %arg4[%c0_5, %c0_6], %10 {strides = array<i32>} : memref<512x128xbf16, #tpu.memory_space<vmem>>, vector<512x128xbf16>,
    return
  }
  func.func @transform_0(%arg0: i32) -> (i32, i32) {
    %c0_i32 = arith.constant 0 : i32
    %c0_i32_0 = arith.constant 0 : i32
    return %arg0, %c0_i32 : i32, i32
  }
  func.func @transform_1(%arg0: i32) -> (i32, i32) {
    %c0_i32 = arith.constant 0 : i32
    %c0_i32_0 = arith.constant 0 : i32
    %c0_i32_1 = arith.constant 0 : i32
    return %c0_i32, %c0_i32_0 : i32, i32
  }
  func.func @transform_2(%arg0: i32) -> (i32, i32) {
    %c0_i32 = arith.constant 0 : i32
    %c0_i32_0 = arith.constant 0 : i32
    %c0_i32_1 = arith.constant 0 : i32
    return %c0_i32, %c0_i32_0 : i32, i32
  }
  func.func @transform_3(%arg0: i32) -> (i32, i32) {
    %c0_i32 = arith.constant 0 : i32
    %c0_i32_0 = arith.constant 0 : i32
    return %arg0, %c0_i32 : i32, i32
  }
}

module attributes {stable_mosaic.version = 11 : i64} {
  func.func @_mm_stats_kernel(%arg0: i32, %arg1: i32, %arg2: memref<512x64xbf16, #tpu.memory_space<vmem>>, %arg3: memref<64x128xbf16, #tpu.memory_space<vmem>>, %arg4: memref<512x128xbf16, #tpu.memory_space<vmem>>, %arg5: memref<1x1x128xf32, #tpu.memory_space<vmem>>, %arg6: memref<1x1x128xf32, #tpu.memory_space<vmem>>) attributes {dimension_semantics = [#tpu.dimension_semantics<parallel>, #tpu.dimension_semantics<parallel>], iteration_bounds = array<i64: 1, 1>, scalar_prefetch = 0 : i64, scratch_operands = 0 : i64, tpu.core_type = #tpu.core_type<tc>, window_params = [{transform_indices = @transform_0, window_bounds = array<i64: 512, 64>}, {transform_indices = @transform_1, window_bounds = array<i64: 64, 128>}, {transform_indices = @transform_2, window_bounds = array<i64: 512, 128>}, {transform_indices = @transform_3, window_bounds = array<i64: 1, 1, 128>}, {transform_indices = @transform_4, window_bounds = array<i64: 1, 1, 128>}]} {
    %c0 = arith.constant 0 : index
    %c0_0 = arith.constant 0 : index
    %0 = vector.load %arg2[%c0, %c0_0] : memref<512x64xbf16, #tpu.memory_space<vmem>>, vector<512x64xbf16>
    %c0_1 = arith.constant 0 : index
    %c0_2 = arith.constant 0 : index
    %1 = vector.load %arg3[%c0_1, %c0_2] : memref<64x128xbf16, #tpu.memory_space<vmem>>, vector<64x128xbf16>
    %cst = arith.constant dense<0.000000e+00> : vector<512x128xf32>
    %2 = tpu.matmul %0, %1, %cst {dimension_numbers = #tpu.dot_dimension_numbers<[1], [0], [0], [1], [0, 0, 1, 1], [], []>} : vector<512x64xbf16>, vector<64x128xbf16>, vector<512x128xf32> -> vector<512x128xf32>
    %3 = arith.truncf %2 : vector<512x128xf32> to vector<512x128xbf16>
    %c0_3 = arith.constant 0 : index
    %c0_4 = arith.constant 0 : index
    %4 = vector.load %arg4[%c0_3, %c0_4] : memref<512x128xbf16, #tpu.memory_space<vmem>>, vector<512x128xbf16>
    tpu.vector_store %arg4[%c0_3, %c0_4], %3 {strides = array<i32>} : memref<512x128xbf16, #tpu.memory_space<vmem>>, vector<512x128xbf16>,
    %cst_5 = arith.constant dense<0.000000e+00> : vector<128xf32>
    %5 = vector.multi_reduction <add>, %2, %cst_5 [0] : vector<512x128xf32> to vector<128xf32>
    %6 = vector.shape_cast %5 : vector<128xf32> to vector<1x128xf32>
    %c0_6 = arith.constant 0 : index
    %c0_7 = arith.constant 0 : index
    %c0_8 = arith.constant 0 : index
    %7 = vector.load %arg5[%c0_6, %c0_7, %c0_8] : memref<1x1x128xf32, #tpu.memory_space<vmem>>, vector<1x1x128xf32>
    %8 = vector.shape_cast %7 : vector<1x1x128xf32> to vector<1x128xf32>
    %9 = vector.shape_cast %6 : vector<1x128xf32> to vector<1x1x128xf32>
    tpu.vector_store %arg5[%c0_6, %c0_7, %c0_8], %9 {strides = array<i32>} : memref<1x1x128xf32, #tpu.memory_space<vmem>>, vector<1x1x128xf32>,
    %10 = arith.mulf %2, %2 : vector<512x128xf32>
    %cst_9 = arith.constant dense<0.000000e+00> : vector<128xf32>
    %11 = vector.multi_reduction <add>, %10, %cst_9 [0] : vector<512x128xf32> to vector<128xf32>
    %12 = vector.shape_cast %11 : vector<128xf32> to vector<1x128xf32>
    %c0_10 = arith.constant 0 : index
    %c0_11 = arith.constant 0 : index
    %c0_12 = arith.constant 0 : index
    %13 = vector.load %arg6[%c0_10, %c0_11, %c0_12] : memref<1x1x128xf32, #tpu.memory_space<vmem>>, vector<1x1x128xf32>
    %14 = vector.shape_cast %13 : vector<1x1x128xf32> to vector<1x128xf32>
    %15 = vector.shape_cast %12 : vector<1x128xf32> to vector<1x1x128xf32>
    tpu.vector_store %arg6[%c0_10, %c0_11, %c0_12], %15 {strides = array<i32>} : memref<1x1x128xf32, #tpu.memory_space<vmem>>, vector<1x1x128xf32>,
    return
  }
  func.func @transform_0(%arg0: i32, %arg1: i32) -> (i32, i32) {
    %c0_i32 = arith.constant 0 : i32
    %c0_i32_0 = arith.constant 0 : i32
    return %arg0, %c0_i32 : i32, i32
  }
  func.func @transform_1(%arg0: i32, %arg1: i32) -> (i32, i32) {
    %c0_i32 = arith.constant 0 : i32
    %c0_i32_0 = arith.constant 0 : i32
    return %c0_i32, %arg1 : i32, i32
  }
  func.func @transform_2(%arg0: i32, %arg1: i32) -> (i32, i32) {
    %c0_i32 = arith.constant 0 : i32
    return %arg0, %arg1 : i32, i32
  }
  func.func @transform_3(%arg0: i32, %arg1: i32) -> (i32, i32, i32) {
    %c0_i32 = arith.constant 0 : i32
    %c0_i32_0 = arith.constant 0 : i32
    return %arg0, %c0_i32, %arg1 : i32, i32, i32
  }
  func.func @transform_4(%arg0: i32, %arg1: i32) -> (i32, i32, i32) {
    %c0_i32 = arith.constant 0 : i32
    %c0_i32_0 = arith.constant 0 : i32
    return %arg0, %c0_i32, %arg1 : i32, i32, i32
  }
}

module attributes {stable_mosaic.version = 11 : i64} {
  func.func @_conv3x3_bn_stats_kernel(%arg0: i32, %arg1: memref<1x18x18x128xbf16, #tpu.memory_space<vmem>>, %arg2: memref<9x128x128xbf16, #tpu.memory_space<vmem>>, %arg3: memref<1x256x128xbf16, #tpu.memory_space<vmem>>, %arg4: memref<1x1x128xf32, #tpu.memory_space<vmem>>, %arg5: memref<1x1x128xf32, #tpu.memory_space<vmem>>, %arg6: memref<256x128xf32, #tpu.memory_space<vmem>>) attributes {dimension_semantics = [#tpu.dimension_semantics<parallel>], iteration_bounds = array<i64: 2>, scalar_prefetch = 0 : i64, scratch_operands = 1 : i64, tpu.core_type = #tpu.core_type<tc>, window_params = [{transform_indices = @transform_0, window_bounds = array<i64: 1, 18, 18, 128>}, {pipeline_mode = #tpu.pipeline_mode<synchronous>, transform_indices = @transform_1, window_bounds = array<i64: 9, 128, 128>}, {transform_indices = @transform_2, window_bounds = array<i64: 1, 256, 128>}, {transform_indices = @transform_3, window_bounds = array<i64: 1, 1, 128>}, {transform_indices = @transform_4, window_bounds = array<i64: 1, 1, 128>}]} {
    %cst = arith.constant 0.000000e+00 : f32
    %0 = vector.broadcast %cst : f32 to vector<256x128xf32>
    %c0 = arith.constant 0 : index
    %c0_0 = arith.constant 0 : index
    %1 = vector.load %arg6[%c0, %c0_0] : memref<256x128xf32, #tpu.memory_space<vmem>>, vector<256x128xf32>
    tpu.vector_store %arg6[%c0, %c0_0], %0 {strides = array<i32>} : memref<256x128xf32, #tpu.memory_space<vmem>>, vector<256x128xf32>,
    %c0_1 = arith.constant 0 : index
    %c0_2 = arith.constant 0 : index
    %c0_3 = arith.constant 0 : index
    %c0_4 = arith.constant 0 : index
    %2 = vector.load %arg1[%c0_1, %c0_2, %c0_3, %c0_4] : memref<1x18x18x128xbf16, #tpu.memory_space<vmem>>, vector<1x16x16x128xbf16>
    %3 = vector.shape_cast %2 : vector<1x16x16x128xbf16> to vector<16x16x128xbf16>
    %4 = vector.shape_cast %3 : vector<16x16x128xbf16> to vector<256x128xbf16>
    %c0_5 = arith.constant 0 : index
    %c0_6 = arith.constant 0 : index
    %5 = vector.load %arg6[%c0_5, %c0_6] : memref<256x128xf32, #tpu.memory_space<vmem>>, vector<256x128xf32>
    %c0_7 = arith.constant 0 : index
    %c0_8 = arith.constant 0 : index
    %c0_9 = arith.constant 0 : index
    %6 = vector.load %arg2[%c0_7, %c0_8, %c0_9] : memref<9x128x128xbf16, #tpu.memory_space<vmem>>, vector<1x128x128xbf16>
    %7 = vector.shape_cast %6 : vector<1x128x128xbf16> to vector<128x128xbf16>
    %cst_10 = arith.constant dense<0.000000e+00> : vector<256x128xf32>
    %8 = tpu.matmul %4, %7, %cst_10 {dimension_numbers = #tpu.dot_dimension_numbers<[1], [0], [0], [1], [0, 0, 1, 1], [], []>} : vector<256x128xbf16>, vector<128x128xbf16>, vector<256x128xf32> -> vector<256x128xf32>
    %9 = arith.addf %5, %8 : vector<256x128xf32>
    %c0_11 = arith.constant 0 : index
    %c0_12 = arith.constant 0 : index
    %10 = vector.load %arg6[%c0_11, %c0_12] : memref<256x128xf32, #tpu.memory_space<vmem>>, vector<256x128xf32>
    tpu.vector_store %arg6[%c0_11, %c0_12], %9 {strides = array<i32>} : memref<256x128xf32, #tpu.memory_space<vmem>>, vector<256x128xf32>,
    %c0_13 = arith.constant 0 : index
    %c0_14 = arith.constant 0 : index
    %c1 = arith.constant 1 : index
    %c0_15 = arith.constant 0 : index
    %11 = vector.load %arg1[%c0_13, %c0_14, %c1, %c0_15] : memref<1x18x18x128xbf16, #tpu.memory_space<vmem>>, vector<1x16x16x128xbf16>
    %12 = vector.shape_cast %11 : vector<1x16x16x128xbf16> to vector<16x16x128xbf16>
    %13 = vector.shape_cast %12 : vector<16x16x128xbf16> to vector<256x128xbf16>
    %c0_16 = arith.constant 0 : index
    %c0_17 = arith.constant 0 : index
    %14 = vector.load %arg6[%c0_16, %c0_17] : memref<256x128xf32, #tpu.memory_space<vmem>>, vector<256x128xf32>
    %c1_18 = arith.constant 1 : index
    %c0_19 = arith.constant 0 : index
    %c0_20 = arith.constant 0 : index
    %15 = vector.load %arg2[%c1_18, %c0_19, %c0_20] : memref<9x128x128xbf16, #tpu.memory_space<vmem>>, vector<1x128x128xbf16>
    %16 = vector.shape_cast %15 : vector<1x128x128xbf16> to vector<128x128xbf16>
    %cst_21 = arith.constant dense<0.000000e+00> : vector<256x128xf32>
    %17 = tpu.matmul %13, %16, %cst_21 {dimension_numbers = #tpu.dot_dimension_numbers<[1], [0], [0], [1], [0, 0, 1, 1], [], []>} : vector<256x128xbf16>, vector<128x128xbf16>, vector<256x128xf32> -> vector<256x128xf32>
    %18 = arith.addf %14, %17 : vector<256x128xf32>
    %c0_22 = arith.constant 0 : index
    %c0_23 = arith.constant 0 : index
    %19 = vector.load %arg6[%c0_22, %c0_23] : memref<256x128xf32, #tpu.memory_space<vmem>>, vector<256x128xf32>
    tpu.vector_store %arg6[%c0_22, %c0_23], %18 {strides = array<i32>} : memref<256x128xf32, #tpu.memory_space<vmem>>, vector<256x128xf32>,
    %c0_24 = arith.constant 0 : index
    %c0_25 = arith.constant 0 : index
    %c2 = arith.constant 2 : index
    %c0_26 = arith.constant 0 : index
    %20 = vector.load %arg1[%c0_24, %c0_25, %c2, %c0_26] : memref<1x18x18x128xbf16, #tpu.memory_space<vmem>>, vector<1x16x16x128xbf16>
    %21 = vector.shape_cast %20 : vector<1x16x16x128xbf16> to vector<16x16x128xbf16>
    %22 = vector.shape_cast %21 : vector<16x16x128xbf16> to vector<256x128xbf16>
    %c0_27 = arith.constant 0 : index
    %c0_28 = arith.constant 0 : index
    %23 = vector.load %arg6[%c0_27, %c0_28] : memref<256x128xf32, #tpu.memory_space<vmem>>, vector<256x128xf32>
    %c2_29 = arith.constant 2 : index
    %c0_30 = arith.constant 0 : index
    %c0_31 = arith.constant 0 : index
    %24 = vector.load %arg2[%c2_29, %c0_30, %c0_31] : memref<9x128x128xbf16, #tpu.memory_space<vmem>>, vector<1x128x128xbf16>
    %25 = vector.shape_cast %24 : vector<1x128x128xbf16> to vector<128x128xbf16>
    %cst_32 = arith.constant dense<0.000000e+00> : vector<256x128xf32>
    %26 = tpu.matmul %22, %25, %cst_32 {dimension_numbers = #tpu.dot_dimension_numbers<[1], [0], [0], [1], [0, 0, 1, 1], [], []>} : vector<256x128xbf16>, vector<128x128xbf16>, vector<256x128xf32> -> vector<256x128xf32>
    %27 = arith.addf %23, %26 : vector<256x128xf32>
    %c0_33 = arith.constant 0 : index
    %c0_34 = arith.constant 0 : index
    %28 = vector.load %arg6[%c0_33, %c0_34] : memref<256x128xf32, #tpu.memory_space<vmem>>, vector<256x128xf32>
    tpu.vector_store %arg6[%c0_33, %c0_34], %27 {strides = array<i32>} : memref<256x128xf32, #tpu.memory_space<vmem>>, vector<256x128xf32>,
    %c0_35 = arith.constant 0 : index
    %c1_36 = arith.constant 1 : index
    %c0_37 = arith.constant 0 : index
    %c0_38 = arith.constant 0 : index
    %29 = vector.load %arg1[%c0_35, %c1_36, %c0_37, %c0_38] : memref<1x18x18x128xbf16, #tpu.memory_space<vmem>>, vector<1x16x16x128xbf16>
    %30 = vector.shape_cast %29 : vector<1x16x16x128xbf16> to vector<16x16x128xbf16>
    %31 = vector.shape_cast %30 : vector<16x16x128xbf16> to vector<256x128xbf16>
    %c0_39 = arith.constant 0 : index
    %c0_40 = arith.constant 0 : index
    %32 = vector.load %arg6[%c0_39, %c0_40] : memref<256x128xf32, #tpu.memory_space<vmem>>, vector<256x128xf32>
    %c3 = arith.constant 3 : index
    %c0_41 = arith.constant 0 : index
    %c0_42 = arith.constant 0 : index
    %33 = vector.load %arg2[%c3, %c0_41, %c0_42] : memref<9x128x128xbf16, #tpu.memory_space<vmem>>, vector<1x128x128xbf16>
    %34 = vector.shape_cast %33 : vector<1x128x128xbf16> to vector<128x128xbf16>
    %cst_43 = arith.constant dense<0.000000e+00> : vector<256x128xf32>
    %35 = tpu.matmul %31, %34, %cst_43 {dimension_numbers = #tpu.dot_dimension_numbers<[1], [0], [0], [1], [0, 0, 1, 1], [], []>} : vector<256x128xbf16>, vector<128x128xbf16>, vector<256x128xf32> -> vector<256x128xf32>
    %36 = arith.addf %32, %35 : vector<256x128xf32>
    %c0_44 = arith.constant 0 : index
    %c0_45 = arith.constant 0 : index
    %37 = vector.load %arg6[%c0_44, %c0_45] : memref<256x128xf32, #tpu.memory_space<vmem>>, vector<256x128xf32>
    tpu.vector_store %arg6[%c0_44, %c0_45], %36 {strides = array<i32>} : memref<256x128xf32, #tpu.memory_space<vmem>>, vector<256x128xf32>,
    %c0_46 = arith.constant 0 : index
    %c1_47 = arith.constant 1 : index
    %c1_48 = arith.constant 1 : index
    %c0_49 = arith.constant 0 : index
    %38 = vector.load %arg1[%c0_46, %c1_47, %c1_48, %c0_49] : memref<1x18x18x128xbf16, #tpu.memory_space<vmem>>, vector<1x16x16x128xbf16>
    %39 = vector.shape_cast %38 : vector<1x16x16x128xbf16> to vector<16x16x128xbf16>
    %40 = vector.shape_cast %39 : vector<16x16x128xbf16> to vector<256x128xbf16>
    %c0_50 = arith.constant 0 : index
    %c0_51 = arith.constant 0 : index
    %41 = vector.load %arg6[%c0_50, %c0_51] : memref<256x128xf32, #tpu.memory_space<vmem>>, vector<256x128xf32>
    %c4 = arith.constant 4 : index
    %c0_52 = arith.constant 0 : index
    %c0_53 = arith.constant 0 : index
    %42 = vector.load %arg2[%c4, %c0_52, %c0_53] : memref<9x128x128xbf16, #tpu.memory_space<vmem>>, vector<1x128x128xbf16>
    %43 = vector.shape_cast %42 : vector<1x128x128xbf16> to vector<128x128xbf16>
    %cst_54 = arith.constant dense<0.000000e+00> : vector<256x128xf32>
    %44 = tpu.matmul %40, %43, %cst_54 {dimension_numbers = #tpu.dot_dimension_numbers<[1], [0], [0], [1], [0, 0, 1, 1], [], []>} : vector<256x128xbf16>, vector<128x128xbf16>, vector<256x128xf32> -> vector<256x128xf32>
    %45 = arith.addf %41, %44 : vector<256x128xf32>
    %c0_55 = arith.constant 0 : index
    %c0_56 = arith.constant 0 : index
    %46 = vector.load %arg6[%c0_55, %c0_56] : memref<256x128xf32, #tpu.memory_space<vmem>>, vector<256x128xf32>
    tpu.vector_store %arg6[%c0_55, %c0_56], %45 {strides = array<i32>} : memref<256x128xf32, #tpu.memory_space<vmem>>, vector<256x128xf32>,
    %c0_57 = arith.constant 0 : index
    %c1_58 = arith.constant 1 : index
    %c2_59 = arith.constant 2 : index
    %c0_60 = arith.constant 0 : index
    %47 = vector.load %arg1[%c0_57, %c1_58, %c2_59, %c0_60] : memref<1x18x18x128xbf16, #tpu.memory_space<vmem>>, vector<1x16x16x128xbf16>
    %48 = vector.shape_cast %47 : vector<1x16x16x128xbf16> to vector<16x16x128xbf16>
    %49 = vector.shape_cast %48 : vector<16x16x128xbf16> to vector<256x128xbf16>
    %c0_61 = arith.constant 0 : index
    %c0_62 = arith.constant 0 : index
    %50 = vector.load %arg6[%c0_61, %c0_62] : memref<256x128xf32, #tpu.memory_space<vmem>>, vector<256x128xf32>
    %c5 = arith.constant 5 : index
    %c0_63 = arith.constant 0 : index
    %c0_64 = arith.constant 0 : index
    %51 = vector.load %arg2[%c5, %c0_63, %c0_64] : memref<9x128x128xbf16, #tpu.memory_space<vmem>>, vector<1x128x128xbf16>
    %52 = vector.shape_cast %51 : vector<1x128x128xbf16> to vector<128x128xbf16>
    %cst_65 = arith.constant dense<0.000000e+00> : vector<256x128xf32>
    %53 = tpu.matmul %49, %52, %cst_65 {dimension_numbers = #tpu.dot_dimension_numbers<[1], [0], [0], [1], [0, 0, 1, 1], [], []>} : vector<256x128xbf16>, vector<128x128xbf16>, vector<256x128xf32> -> vector<256x128xf32>
    %54 = arith.addf %50, %53 : vector<256x128xf32>
    %c0_66 = arith.constant 0 : index
    %c0_67 = arith.constant 0 : index
    %55 = vector.load %arg6[%c0_66, %c0_67] : memref<256x128xf32, #tpu.memory_space<vmem>>, vector<256x128xf32>
    tpu.vector_store %arg6[%c0_66, %c0_67], %54 {strides = array<i32>} : memref<256x128xf32, #tpu.memory_space<vmem>>, vector<256x128xf32>,
    %c0_68 = arith.constant 0 : index
    %c2_69 = arith.constant 2 : index
    %c0_70 = arith.constant 0 : index
    %c0_71 = arith.constant 0 : index
    %56 = vector.load %arg1[%c0_68, %c2_69, %c0_70, %c0_71] : memref<1x18x18x128xbf16, #tpu.memory_space<vmem>>, vector<1x16x16x128xbf16>
    %57 = vector.shape_cast %56 : vector<1x16x16x128xbf16> to vector<16x16x128xbf16>
    %58 = vector.shape_cast %57 : vector<16x16x128xbf16> to vector<256x128xbf16>
    %c0_72 = arith.constant 0 : index
    %c0_73 = arith.constant 0 : index
    %59 = vector.load %arg6[%c0_72, %c0_73] : memref<256x128xf32, #tpu.memory_space<vmem>>, vector<256x128xf32>
    %c6 = arith.constant 6 : index
    %c0_74 = arith.constant 0 : index
    %c0_75 = arith.constant 0 : index
    %60 = vector.load %arg2[%c6, %c0_74, %c0_75] : memref<9x128x128xbf16, #tpu.memory_space<vmem>>, vector<1x128x128xbf16>
    %61 = vector.shape_cast %60 : vector<1x128x128xbf16> to vector<128x128xbf16>
    %cst_76 = arith.constant dense<0.000000e+00> : vector<256x128xf32>
    %62 = tpu.matmul %58, %61, %cst_76 {dimension_numbers = #tpu.dot_dimension_numbers<[1], [0], [0], [1], [0, 0, 1, 1], [], []>} : vector<256x128xbf16>, vector<128x128xbf16>, vector<256x128xf32> -> vector<256x128xf32>
    %63 = arith.addf %59, %62 : vector<256x128xf32>
    %c0_77 = arith.constant 0 : index
    %c0_78 = arith.constant 0 : index
    %64 = vector.load %arg6[%c0_77, %c0_78] : memref<256x128xf32, #tpu.memory_space<vmem>>, vector<256x128xf32>
    tpu.vector_store %arg6[%c0_77, %c0_78], %63 {strides = array<i32>} : memref<256x128xf32, #tpu.memory_space<vmem>>, vector<256x128xf32>,
    %c0_79 = arith.constant 0 : index
    %c2_80 = arith.constant 2 : index
    %c1_81 = arith.constant 1 : index
    %c0_82 = arith.constant 0 : index
    %65 = vector.load %arg1[%c0_79, %c2_80, %c1_81, %c0_82] : memref<1x18x18x128xbf16, #tpu.memory_space<vmem>>, vector<1x16x16x128xbf16>
    %66 = vector.shape_cast %65 : vector<1x16x16x128xbf16> to vector<16x16x128xbf16>
    %67 = vector.shape_cast %66 : vector<16x16x128xbf16> to vector<256x128xbf16>
    %c0_83 = arith.constant 0 : index
    %c0_84 = arith.constant 0 : index
    %68 = vector.load %arg6[%c0_83, %c0_84] : memref<256x128xf32, #tpu.memory_space<vmem>>, vector<256x128xf32>
    %c7 = arith.constant 7 : index
    %c0_85 = arith.constant 0 : index
    %c0_86 = arith.constant 0 : index
    %69 = vector.load %arg2[%c7, %c0_85, %c0_86] : memref<9x128x128xbf16, #tpu.memory_space<vmem>>, vector<1x128x128xbf16>
    %70 = vector.shape_cast %69 : vector<1x128x128xbf16> to vector<128x128xbf16>
    %cst_87 = arith.constant dense<0.000000e+00> : vector<256x128xf32>
    %71 = tpu.matmul %67, %70, %cst_87 {dimension_numbers = #tpu.dot_dimension_numbers<[1], [0], [0], [1], [0, 0, 1, 1], [], []>} : vector<256x128xbf16>, vector<128x128xbf16>, vector<256x128xf32> -> vector<256x128xf32>
    %72 = arith.addf %68, %71 : vector<256x128xf32>
    %c0_88 = arith.constant 0 : index
    %c0_89 = arith.constant 0 : index
    %73 = vector.load %arg6[%c0_88, %c0_89] : memref<256x128xf32, #tpu.memory_space<vmem>>, vector<256x128xf32>
    tpu.vector_store %arg6[%c0_88, %c0_89], %72 {strides = array<i32>} : memref<256x128xf32, #tpu.memory_space<vmem>>, vector<256x128xf32>,
    %c0_90 = arith.constant 0 : index
    %c2_91 = arith.constant 2 : index
    %c2_92 = arith.constant 2 : index
    %c0_93 = arith.constant 0 : index
    %74 = vector.load %arg1[%c0_90, %c2_91, %c2_92, %c0_93] : memref<1x18x18x128xbf16, #tpu.memory_space<vmem>>, vector<1x16x16x128xbf16>
    %75 = vector.shape_cast %74 : vector<1x16x16x128xbf16> to vector<16x16x128xbf16>
    %76 = vector.shape_cast %75 : vector<16x16x128xbf16> to vector<256x128xbf16>
    %c0_94 = arith.constant 0 : index
    %c0_95 = arith.constant 0 : index
    %77 = vector.load %arg6[%c0_94, %c0_95] : memref<256x128xf32, #tpu.memory_space<vmem>>, vector<256x128xf32>
    %c8 = arith.constant 8 : index
    %c0_96 = arith.constant 0 : index
    %c0_97 = arith.constant 0 : index
    %78 = vector.load %arg2[%c8, %c0_96, %c0_97] : memref<9x128x128xbf16, #tpu.memory_space<vmem>>, vector<1x128x128xbf16>
    %79 = vector.shape_cast %78 : vector<1x128x128xbf16> to vector<128x128xbf16>
    %cst_98 = arith.constant dense<0.000000e+00> : vector<256x128xf32>
    %80 = tpu.matmul %76, %79, %cst_98 {dimension_numbers = #tpu.dot_dimension_numbers<[1], [0], [0], [1], [0, 0, 1, 1], [], []>} : vector<256x128xbf16>, vector<128x128xbf16>, vector<256x128xf32> -> vector<256x128xf32>
    %81 = arith.addf %77, %80 : vector<256x128xf32>
    %c0_99 = arith.constant 0 : index
    %c0_100 = arith.constant 0 : index
    %82 = vector.load %arg6[%c0_99, %c0_100] : memref<256x128xf32, #tpu.memory_space<vmem>>, vector<256x128xf32>
    tpu.vector_store %arg6[%c0_99, %c0_100], %81 {strides = array<i32>} : memref<256x128xf32, #tpu.memory_space<vmem>>, vector<256x128xf32>,
    %c0_101 = arith.constant 0 : index
    %c0_102 = arith.constant 0 : index
    %83 = vector.load %arg6[%c0_101, %c0_102] : memref<256x128xf32, #tpu.memory_space<vmem>>, vector<256x128xf32>
    %84 = arith.truncf %83 : vector<256x128xf32> to vector<256x128xbf16>
    %c0_103 = arith.constant 0 : index
    %c0_104 = arith.constant 0 : index
    %c0_105 = arith.constant 0 : index
    %85 = vector.load %arg3[%c0_103, %c0_104, %c0_105] : memref<1x256x128xbf16, #tpu.memory_space<vmem>>, vector<1x256x128xbf16>
    %86 = vector.shape_cast %85 : vector<1x256x128xbf16> to vector<256x128xbf16>
    %87 = vector.shape_cast %84 : vector<256x128xbf16> to vector<1x256x128xbf16>
    tpu.vector_store %arg3[%c0_103, %c0_104, %c0_105], %87 {strides = array<i32>} : memref<1x256x128xbf16, #tpu.memory_space<vmem>>, vector<1x256x128xbf16>,
    %cst_106 = arith.constant dense<0.000000e+00> : vector<128xf32>
    %88 = vector.multi_reduction <add>, %83, %cst_106 [0] : vector<256x128xf32> to vector<128xf32>
    %89 = vector.shape_cast %88 : vector<128xf32> to vector<1x128xf32>
    %c0_107 = arith.constant 0 : index
    %c0_108 = arith.constant 0 : index
    %c0_109 = arith.constant 0 : index
    %90 = vector.load %arg4[%c0_107, %c0_108, %c0_109] : memref<1x1x128xf32, #tpu.memory_space<vmem>>, vector<1x1x128xf32>
    %91 = vector.shape_cast %90 : vector<1x1x128xf32> to vector<1x128xf32>
    %92 = vector.shape_cast %89 : vector<1x128xf32> to vector<1x1x128xf32>
    tpu.vector_store %arg4[%c0_107, %c0_108, %c0_109], %92 {strides = array<i32>} : memref<1x1x128xf32, #tpu.memory_space<vmem>>, vector<1x1x128xf32>,
    %93 = arith.mulf %83, %83 : vector<256x128xf32>
    %cst_110 = arith.constant dense<0.000000e+00> : vector<128xf32>
    %94 = vector.multi_reduction <add>, %93, %cst_110 [0] : vector<256x128xf32> to vector<128xf32>
    %95 = vector.shape_cast %94 : vector<128xf32> to vector<1x128xf32>
    %c0_111 = arith.constant 0 : index
    %c0_112 = arith.constant 0 : index
    %c0_113 = arith.constant 0 : index
    %96 = vector.load %arg5[%c0_111, %c0_112, %c0_113] : memref<1x1x128xf32, #tpu.memory_space<vmem>>, vector<1x1x128xf32>
    %97 = vector.shape_cast %96 : vector<1x1x128xf32> to vector<1x128xf32>
    %98 = vector.shape_cast %95 : vector<1x128xf32> to vector<1x1x128xf32>
    tpu.vector_store %arg5[%c0_111, %c0_112, %c0_113], %98 {strides = array<i32>} : memref<1x1x128xf32, #tpu.memory_space<vmem>>, vector<1x1x128xf32>,
    return
  }
  func.func @transform_0(%arg0: i32) -> (i32, i32, i32, i32) {
    %c0_i32 = arith.constant 0 : i32
    %c0_i32_0 = arith.constant 0 : i32
    %c0_i32_1 = arith.constant 0 : i32
    %c0_i32_2 = arith.constant 0 : i32
    return %arg0, %c0_i32, %c0_i32_0, %c0_i32_1 : i32, i32, i32, i32
  }
  func.func @transform_1(%arg0: i32) -> (i32, i32, i32) {
    %c0_i32 = arith.constant 0 : i32
    %c0_i32_0 = arith.constant 0 : i32
    %c0_i32_1 = arith.constant 0 : i32
    %c0_i32_2 = arith.constant 0 : i32
    return %c0_i32, %c0_i32_0, %c0_i32_1 : i32, i32, i32
  }
  func.func @transform_2(%arg0: i32) -> (i32, i32, i32) {
    %c0_i32 = arith.constant 0 : i32
    %c0_i32_0 = arith.constant 0 : i32
    %c0_i32_1 = arith.constant 0 : i32
    return %arg0, %c0_i32, %c0_i32_0 : i32, i32, i32
  }
  func.func @transform_3(%arg0: i32) -> (i32, i32, i32) {
    %c0_i32 = arith.constant 0 : i32
    %c0_i32_0 = arith.constant 0 : i32
    %c0_i32_1 = arith.constant 0 : i32
    return %arg0, %c0_i32, %c0_i32_0 : i32, i32, i32
  }
  func.func @transform_4(%arg0: i32) -> (i32, i32, i32) {
    %c0_i32 = arith.constant 0 : i32
    %c0_i32_0 = arith.constant 0 : i32
    %c0_i32_1 = arith.constant 0 : i32
    return %arg0, %c0_i32, %c0_i32_0 : i32, i32, i32
  }
}

module attributes {stable_mosaic.version = 11 : i64} {
  func.func @_mm_pro_stats_kernel(%arg0: i32, %arg1: i32, %arg2: memref<512x128xbf16, #tpu.memory_space<vmem>>, %arg3: memref<1x128xf32, #tpu.memory_space<vmem>>, %arg4: memref<1x128xf32, #tpu.memory_space<vmem>>, %arg5: memref<128x256xbf16, #tpu.memory_space<vmem>>, %arg6: memref<512x256xbf16, #tpu.memory_space<vmem>>, %arg7: memref<1x1x256xf32, #tpu.memory_space<vmem>>, %arg8: memref<1x1x256xf32, #tpu.memory_space<vmem>>) attributes {dimension_semantics = [#tpu.dimension_semantics<parallel>, #tpu.dimension_semantics<parallel>], iteration_bounds = array<i64: 1, 1>, scalar_prefetch = 0 : i64, scratch_operands = 0 : i64, tpu.core_type = #tpu.core_type<tc>, window_params = [{transform_indices = @transform_0, window_bounds = array<i64: 512, 128>}, {pipeline_mode = #tpu.pipeline_mode<synchronous>, transform_indices = @transform_1, window_bounds = array<i64: 1, 128>}, {pipeline_mode = #tpu.pipeline_mode<synchronous>, transform_indices = @transform_2, window_bounds = array<i64: 1, 128>}, {transform_indices = @transform_3, window_bounds = array<i64: 128, 256>}, {transform_indices = @transform_4, window_bounds = array<i64: 512, 256>}, {transform_indices = @transform_5, window_bounds = array<i64: 1, 1, 256>}, {transform_indices = @transform_6, window_bounds = array<i64: 1, 1, 256>}]} {
    %c0 = arith.constant 0 : index
    %c0_0 = arith.constant 0 : index
    %0 = vector.load %arg2[%c0, %c0_0] : memref<512x128xbf16, #tpu.memory_space<vmem>>, vector<512x128xbf16>
    %1 = arith.extf %0 : vector<512x128xbf16> to vector<512x128xf32>
    %c0_1 = arith.constant 0 : index
    %c0_2 = arith.constant 0 : index
    %2 = vector.load %arg3[%c0_1, %c0_2] : memref<1x128xf32, #tpu.memory_space<vmem>>, vector<1x128xf32>
    %3 = vector.broadcast %2 : vector<1x128xf32> to vector<512x128xf32>
    %4 = arith.mulf %1, %3 : vector<512x128xf32>
    %c0_3 = arith.constant 0 : index
    %c0_4 = arith.constant 0 : index
    %5 = vector.load %arg4[%c0_3, %c0_4] : memref<1x128xf32, #tpu.memory_space<vmem>>, vector<1x128xf32>
    %6 = vector.broadcast %5 : vector<1x128xf32> to vector<512x128xf32>
    %7 = arith.addf %4, %6 : vector<512x128xf32>
    %cst = arith.constant 0.000000e+00 : f32
    %8 = vector.broadcast %cst : f32 to vector<512x128xf32>
    %9 = arith.maximumf %7, %8 : vector<512x128xf32>
    %10 = arith.truncf %9 : vector<512x128xf32> to vector<512x128xbf16>
    %c0_5 = arith.constant 0 : index
    %c0_6 = arith.constant 0 : index
    %11 = vector.load %arg5[%c0_5, %c0_6] : memref<128x256xbf16, #tpu.memory_space<vmem>>, vector<128x256xbf16>
    %cst_7 = arith.constant dense<0.000000e+00> : vector<512x256xf32>
    %12 = tpu.matmul %10, %11, %cst_7 {dimension_numbers = #tpu.dot_dimension_numbers<[1], [0], [0], [1], [0, 0, 1, 1], [], []>} : vector<512x128xbf16>, vector<128x256xbf16>, vector<512x256xf32> -> vector<512x256xf32>
    %13 = arith.truncf %12 : vector<512x256xf32> to vector<512x256xbf16>
    %c0_8 = arith.constant 0 : index
    %c0_9 = arith.constant 0 : index
    %14 = vector.load %arg6[%c0_8, %c0_9] : memref<512x256xbf16, #tpu.memory_space<vmem>>, vector<512x256xbf16>
    tpu.vector_store %arg6[%c0_8, %c0_9], %13 {strides = array<i32>} : memref<512x256xbf16, #tpu.memory_space<vmem>>, vector<512x256xbf16>,
    %cst_10 = arith.constant dense<0.000000e+00> : vector<256xf32>
    %15 = vector.multi_reduction <add>, %12, %cst_10 [0] : vector<512x256xf32> to vector<256xf32>
    %16 = vector.shape_cast %15 : vector<256xf32> to vector<1x256xf32>
    %c0_11 = arith.constant 0 : index
    %c0_12 = arith.constant 0 : index
    %c0_13 = arith.constant 0 : index
    %17 = vector.load %arg7[%c0_11, %c0_12, %c0_13] : memref<1x1x256xf32, #tpu.memory_space<vmem>>, vector<1x1x256xf32>
    %18 = vector.shape_cast %17 : vector<1x1x256xf32> to vector<1x256xf32>
    %19 = vector.shape_cast %16 : vector<1x256xf32> to vector<1x1x256xf32>
    tpu.vector_store %arg7[%c0_11, %c0_12, %c0_13], %19 {strides = array<i32>} : memref<1x1x256xf32, #tpu.memory_space<vmem>>, vector<1x1x256xf32>,
    %20 = arith.mulf %12, %12 : vector<512x256xf32>
    %cst_14 = arith.constant dense<0.000000e+00> : vector<256xf32>
    %21 = vector.multi_reduction <add>, %20, %cst_14 [0] : vector<512x256xf32> to vector<256xf32>
    %22 = vector.shape_cast %21 : vector<256xf32> to vector<1x256xf32>
    %c0_15 = arith.constant 0 : index
    %c0_16 = arith.constant 0 : index
    %c0_17 = arith.constant 0 : index
    %23 = vector.load %arg8[%c0_15, %c0_16, %c0_17] : memref<1x1x256xf32, #tpu.memory_space<vmem>>, vector<1x1x256xf32>
    %24 = vector.shape_cast %23 : vector<1x1x256xf32> to vector<1x256xf32>
    %25 = vector.shape_cast %22 : vector<1x256xf32> to vector<1x1x256xf32>
    tpu.vector_store %arg8[%c0_15, %c0_16, %c0_17], %25 {strides = array<i32>} : memref<1x1x256xf32, #tpu.memory_space<vmem>>, vector<1x1x256xf32>,
    return
  }
  func.func @transform_0(%arg0: i32, %arg1: i32) -> (i32, i32) {
    %c0_i32 = arith.constant 0 : i32
    %c0_i32_0 = arith.constant 0 : i32
    return %arg0, %c0_i32 : i32, i32
  }
  func.func @transform_1(%arg0: i32, %arg1: i32) -> (i32, i32) {
    %c0_i32 = arith.constant 0 : i32
    %c0_i32_0 = arith.constant 0 : i32
    %c0_i32_1 = arith.constant 0 : i32
    return %c0_i32, %c0_i32_0 : i32, i32
  }
  func.func @transform_2(%arg0: i32, %arg1: i32) -> (i32, i32) {
    %c0_i32 = arith.constant 0 : i32
    %c0_i32_0 = arith.constant 0 : i32
    %c0_i32_1 = arith.constant 0 : i32
    return %c0_i32, %c0_i32_0 : i32, i32
  }
  func.func @transform_3(%arg0: i32, %arg1: i32) -> (i32, i32) {
    %c0_i32 = arith.constant 0 : i32
    %c0_i32_0 = arith.constant 0 : i32
    return %c0_i32, %arg1 : i32, i32
  }
  func.func @transform_4(%arg0: i32, %arg1: i32) -> (i32, i32) {
    %c0_i32 = arith.constant 0 : i32
    return %arg0, %arg1 : i32, i32
  }
  func.func @transform_5(%arg0: i32, %arg1: i32) -> (i32, i32, i32) {
    %c0_i32 = arith.constant 0 : i32
    %c0_i32_0 = arith.constant 0 : i32
    return %arg0, %c0_i32, %arg1 : i32, i32, i32
  }
  func.func @transform_6(%arg0: i32, %arg1: i32) -> (i32, i32, i32) {
    %c0_i32 = arith.constant 0 : i32
    %c0_i32_0 = arith.constant 0 : i32
    return %arg0, %c0_i32, %arg1 : i32, i32, i32
  }
}

module attributes {stable_mosaic.version = 11 : i64} {
  func.func @_final_ds_kernel(%arg0: i32, %arg1: memref<512x256xbf16, #tpu.memory_space<vmem>>, %arg2: memref<1x256xf32, #tpu.memory_space<vmem>>, %arg3: memref<1x256xf32, #tpu.memory_space<vmem>>, %arg4: memref<512x256xbf16, #tpu.memory_space<vmem>>, %arg5: memref<1x256xf32, #tpu.memory_space<vmem>>, %arg6: memref<1x256xf32, #tpu.memory_space<vmem>>, %arg7: memref<512x256xf32, #tpu.memory_space<vmem>>) attributes {dimension_semantics = [#tpu.dimension_semantics<parallel>], iteration_bounds = array<i64: 1>, scalar_prefetch = 0 : i64, scratch_operands = 0 : i64, tpu.core_type = #tpu.core_type<tc>, window_params = [{transform_indices = @transform_0, window_bounds = array<i64: 512, 256>}, {pipeline_mode = #tpu.pipeline_mode<synchronous>, transform_indices = @transform_1, window_bounds = array<i64: 1, 256>}, {pipeline_mode = #tpu.pipeline_mode<synchronous>, transform_indices = @transform_2, window_bounds = array<i64: 1, 256>}, {transform_indices = @transform_3, window_bounds = array<i64: 512, 256>}, {pipeline_mode = #tpu.pipeline_mode<synchronous>, transform_indices = @transform_4, window_bounds = array<i64: 1, 256>}, {pipeline_mode = #tpu.pipeline_mode<synchronous>, transform_indices = @transform_5, window_bounds = array<i64: 1, 256>}, {transform_indices = @transform_6, window_bounds = array<i64: 512, 256>}]} {
    %c0 = arith.constant 0 : index
    %c0_0 = arith.constant 0 : index
    %0 = vector.load %arg1[%c0, %c0_0] : memref<512x256xbf16, #tpu.memory_space<vmem>>, vector<512x256xbf16>
    %1 = arith.extf %0 : vector<512x256xbf16> to vector<512x256xf32>
    %c0_1 = arith.constant 0 : index
    %c0_2 = arith.constant 0 : index
    %2 = vector.load %arg2[%c0_1, %c0_2] : memref<1x256xf32, #tpu.memory_space<vmem>>, vector<1x256xf32>
    %3 = vector.broadcast %2 : vector<1x256xf32> to vector<512x256xf32>
    %4 = arith.mulf %1, %3 : vector<512x256xf32>
    %c0_3 = arith.constant 0 : index
    %c0_4 = arith.constant 0 : index
    %5 = vector.load %arg3[%c0_3, %c0_4] : memref<1x256xf32, #tpu.memory_space<vmem>>, vector<1x256xf32>
    %6 = vector.broadcast %5 : vector<1x256xf32> to vector<512x256xf32>
    %7 = arith.addf %4, %6 : vector<512x256xf32>
    %c0_5 = arith.constant 0 : index
    %c0_6 = arith.constant 0 : index
    %8 = vector.load %arg4[%c0_5, %c0_6] : memref<512x256xbf16, #tpu.memory_space<vmem>>, vector<512x256xbf16>
    %9 = arith.extf %8 : vector<512x256xbf16> to vector<512x256xf32>
    %c0_7 = arith.constant 0 : index
    %c0_8 = arith.constant 0 : index
    %10 = vector.load %arg5[%c0_7, %c0_8] : memref<1x256xf32, #tpu.memory_space<vmem>>, vector<1x256xf32>
    %11 = vector.broadcast %10 : vector<1x256xf32> to vector<512x256xf32>
    %12 = arith.mulf %9, %11 : vector<512x256xf32>
    %c0_9 = arith.constant 0 : index
    %c0_10 = arith.constant 0 : index
    %13 = vector.load %arg6[%c0_9, %c0_10] : memref<1x256xf32, #tpu.memory_space<vmem>>, vector<1x256xf32>
    %14 = vector.broadcast %13 : vector<1x256xf32> to vector<512x256xf32>
    %15 = arith.addf %12, %14 : vector<512x256xf32>
    %16 = arith.addf %7, %15 : vector<512x256xf32>
    %cst = arith.constant 0.000000e+00 : f32
    %17 = vector.broadcast %cst : f32 to vector<512x256xf32>
    %18 = arith.maximumf %16, %17 : vector<512x256xf32>
    %c0_11 = arith.constant 0 : index
    %c0_12 = arith.constant 0 : index
    %19 = vector.load %arg7[%c0_11, %c0_12] : memref<512x256xf32, #tpu.memory_space<vmem>>, vector<512x256xf32>
    tpu.vector_store %arg7[%c0_11, %c0_12], %18 {strides = array<i32>} : memref<512x256xf32, #tpu.memory_space<vmem>>, vector<512x256xf32>,
    return
  }
  func.func @transform_0(%arg0: i32) -> (i32, i32) {
    %c0_i32 = arith.constant 0 : i32
    %c0_i32_0 = arith.constant 0 : i32
    return %arg0, %c0_i32 : i32, i32
  }
  func.func @transform_1(%arg0: i32) -> (i32, i32) {
    %c0_i32 = arith.constant 0 : i32
    %c0_i32_0 = arith.constant 0 : i32
    %c0_i32_1 = arith.constant 0 : i32
    return %c0_i32, %c0_i32_0 : i32, i32
  }
  func.func @transform_2(%arg0: i32) -> (i32, i32) {
    %c0_i32 = arith.constant 0 : i32
    %c0_i32_0 = arith.constant 0 : i32
    %c0_i32_1 = arith.constant 0 : i32
    return %c0_i32, %c0_i32_0 : i32, i32
  }
  func.func @transform_3(%arg0: i32) -> (i32, i32) {
    %c0_i32 = arith.constant 0 : i32
    %c0_i32_0 = arith.constant 0 : i32
    return %arg0, %c0_i32 : i32, i32
  }
  func.func @transform_4(%arg0: i32) -> (i32, i32) {
    %c0_i32 = arith.constant 0 : i32
    %c0_i32_0 = arith.constant 0 : i32
    %c0_i32_1 = arith.constant 0 : i32
    return %c0_i32, %c0_i32_0 : i32, i32
  }
  func.func @transform_5(%arg0: i32) -> (i32, i32) {
    %c0_i32 = arith.constant 0 : i32
    %c0_i32_0 = arith.constant 0 : i32
    %c0_i32_1 = arith.constant 0 : i32
    return %c0_i32, %c0_i32_0 : i32, i32
  }
  func.func @transform_6(%arg0: i32) -> (i32, i32) {
    %c0_i32 = arith.constant 0 : i32
    %c0_i32_0 = arith.constant 0 : i32
    return %arg0, %c0_i32 : i32, i32
  }
}

module attributes {stable_mosaic.version = 11 : i64} {
  func.func @_mm_stats_kernel(%arg0: i32, %arg1: i32, %arg2: memref<512x64xbf16, #tpu.memory_space<vmem>>, %arg3: memref<64x256xbf16, #tpu.memory_space<vmem>>, %arg4: memref<512x256xbf16, #tpu.memory_space<vmem>>, %arg5: memref<1x1x256xf32, #tpu.memory_space<vmem>>, %arg6: memref<1x1x256xf32, #tpu.memory_space<vmem>>) attributes {dimension_semantics = [#tpu.dimension_semantics<parallel>, #tpu.dimension_semantics<parallel>], iteration_bounds = array<i64: 1, 1>, scalar_prefetch = 0 : i64, scratch_operands = 0 : i64, tpu.core_type = #tpu.core_type<tc>, window_params = [{transform_indices = @transform_0, window_bounds = array<i64: 512, 64>}, {transform_indices = @transform_1, window_bounds = array<i64: 64, 256>}, {transform_indices = @transform_2, window_bounds = array<i64: 512, 256>}, {transform_indices = @transform_3, window_bounds = array<i64: 1, 1, 256>}, {transform_indices = @transform_4, window_bounds = array<i64: 1, 1, 256>}]} {
    %c0 = arith.constant 0 : index
    %c0_0 = arith.constant 0 : index
    %0 = vector.load %arg2[%c0, %c0_0] : memref<512x64xbf16, #tpu.memory_space<vmem>>, vector<512x64xbf16>
    %c0_1 = arith.constant 0 : index
    %c0_2 = arith.constant 0 : index
    %1 = vector.load %arg3[%c0_1, %c0_2] : memref<64x256xbf16, #tpu.memory_space<vmem>>, vector<64x256xbf16>
    %cst = arith.constant dense<0.000000e+00> : vector<512x256xf32>
    %2 = tpu.matmul %0, %1, %cst {dimension_numbers = #tpu.dot_dimension_numbers<[1], [0], [0], [1], [0, 0, 1, 1], [], []>} : vector<512x64xbf16>, vector<64x256xbf16>, vector<512x256xf32> -> vector<512x256xf32>
    %3 = arith.truncf %2 : vector<512x256xf32> to vector<512x256xbf16>
    %c0_3 = arith.constant 0 : index
    %c0_4 = arith.constant 0 : index
    %4 = vector.load %arg4[%c0_3, %c0_4] : memref<512x256xbf16, #tpu.memory_space<vmem>>, vector<512x256xbf16>
    tpu.vector_store %arg4[%c0_3, %c0_4], %3 {strides = array<i32>} : memref<512x256xbf16, #tpu.memory_space<vmem>>, vector<512x256xbf16>,
    %cst_5 = arith.constant dense<0.000000e+00> : vector<256xf32>
    %5 = vector.multi_reduction <add>, %2, %cst_5 [0] : vector<512x256xf32> to vector<256xf32>
    %6 = vector.shape_cast %5 : vector<256xf32> to vector<1x256xf32>
    %c0_6 = arith.constant 0 : index
    %c0_7 = arith.constant 0 : index
    %c0_8 = arith.constant 0 : index
    %7 = vector.load %arg5[%c0_6, %c0_7, %c0_8] : memref<1x1x256xf32, #tpu.memory_space<vmem>>, vector<1x1x256xf32>
    %8 = vector.shape_cast %7 : vector<1x1x256xf32> to vector<1x256xf32>
    %9 = vector.shape_cast %6 : vector<1x256xf32> to vector<1x1x256xf32>
    tpu.vector_store %arg5[%c0_6, %c0_7, %c0_8], %9 {strides = array<i32>} : memref<1x1x256xf32, #tpu.memory_space<vmem>>, vector<1x1x256xf32>,
    %10 = arith.mulf %2, %2 : vector<512x256xf32>
    %cst_9 = arith.constant dense<0.000000e+00> : vector<256xf32>
    %11 = vector.multi_reduction <add>, %10, %cst_9 [0] : vector<512x256xf32> to vector<256xf32>
    %12 = vector.shape_cast %11 : vector<256xf32> to vector<1x256xf32>
    %c0_10 = arith.constant 0 : index
    %c0_11 = arith.constant 0 : index
    %c0_12 = arith.constant 0 : index
    %13 = vector.load %arg6[%c0_10, %c0_11, %c0_12] : memref<1x1x256xf32, #tpu.memory_space<vmem>>, vector<1x1x256xf32>
    %14 = vector.shape_cast %13 : vector<1x1x256xf32> to vector<1x256xf32>
    %15 = vector.shape_cast %12 : vector<1x256xf32> to vector<1x1x256xf32>
    tpu.vector_store %arg6[%c0_10, %c0_11, %c0_12], %15 {strides = array<i32>} : memref<1x1x256xf32, #tpu.memory_space<vmem>>, vector<1x1x256xf32>,
    return
  }
  func.func @transform_0(%arg0: i32, %arg1: i32) -> (i32, i32) {
    %c0_i32 = arith.constant 0 : i32
    %c0_i32_0 = arith.constant 0 : i32
    return %arg0, %c0_i32 : i32, i32
  }
  func.func @transform_1(%arg0: i32, %arg1: i32) -> (i32, i32) {
    %c0_i32 = arith.constant 0 : i32
    %c0_i32_0 = arith.constant 0 : i32
    return %c0_i32, %arg1 : i32, i32
  }
  func.func @transform_2(%arg0: i32, %arg1: i32) -> (i32, i32) {
    %c0_i32 = arith.constant 0 : i32
    return %arg0, %arg1 : i32, i32
  }
  func.func @transform_3(%arg0: i32, %arg1: i32) -> (i32, i32, i32) {
    %c0_i32 = arith.constant 0 : i32
    %c0_i32_0 = arith.constant 0 : i32
    return %arg0, %c0_i32, %arg1 : i32, i32, i32
  }
  func.func @transform_4(%arg0: i32, %arg1: i32) -> (i32, i32, i32) {
    %c0_i32 = arith.constant 0 : i32
    %c0_i32_0 = arith.constant 0 : i32
    return %arg0, %c0_i32, %arg1 : i32, i32, i32
  }
}

</mosaic_0001>

<bundles_post_ra>
// kernel: _forward.7
= control target key start
LH: loop header
LB: loop body
LE: loop exit
PB: predicated region body
PF: predicated region fallthrough
CT: control target
= control target key end

     0   :  { %s1176_s0 = inlined_call_operand.vmem [shape: bf16[512,128], index: 0, kind: input, shape index: {}]   ;;  %s1177_s1 = inlined_call_operand.vmem [shape: f32[1,128], index: 1, kind: input, shape index: {}]   ;;  %s1178_s2 = inlined_call_operand.vmem [shape: f32[1,128], index: 2, kind: input, shape index: {}]   ;;  %s1179_s3 = inlined_call_operand.vmem [shape: bf16[512,128], index: 3, kind: output, shape index: {}]  }
   0x1   :  { %v475_v0 = vld [vmem:[%s1176_s0] sm:$0xff]   ;;  %v762_v5 = vld [vmem:[%s1176_s0 + $0x8] sm:$0xff]   ;;  %v763_v8 = vld [vmem:[%s1176_s0 + $0x10] sm:$0xff]  }
   0x2   :  { %v852_v1 = vld [vmem:[%s1177_s1] ss:$0 sm:$0xff]  ;;  %v476_v2 = vunpack.c.l.bf16 %v475_v0  ;;  %v477_v3 = vunpack.c.h.bf16 %v475_v0  ;;  %v480_v6 = vunpack.c.l.bf16 %v762_v5  ;;  %v481_v7 = vunpack.c.h.bf16 %v762_v5  ;;  %v764_v9 = vld [vmem:[%s1176_s0 + $0x18] sm:$0xff]   ;;  %v766_v35 = vld [vmem:[%s1176_s0 + $0x28] sm:$0xff]  }
   0x3   :  { %v857_v4 = vld [vmem:[%s1178_s2] ss:$0 sm:$0xff]  ;;  %v484_v12 = vunpack.c.l.bf16 %v763_v8  ;;  %v485_v13 = vunpack.c.h.bf16 %v763_v8  ;;  %v488_v16 = vunpack.c.l.bf16 %v764_v9  ;;  %v489_v17 = vunpack.c.h.bf16 %v764_v9  ;;  %v767_v40 = vld [vmem:[%s1176_s0 + $0x30] sm:$0xff]   ;;  %v768_v45 = vld [vmem:[%s1176_s0 + $0x38] sm:$0xff]  }
   0x4   :  { %v146_v10 = vmul.f32 %v852_v1, %v476_v2  ;;  %v147_v11 = vmul.f32 %v852_v1, %v477_v3  ;;  %v148_v14 = vmul.f32 %v852_v1, %v480_v6  ;;  %v149_v15 = vmul.f32 %v852_v1, %v481_v7  ;;  %v765_v26 = vld [vmem:[%s1176_s0 + $0x20] sm:$0xff]  }
   0x5   :  { %v150_v20 = vmul.f32 %v852_v1, %v484_v12  ;;  %v151_v21 = vmul.f32 %v852_v1, %v485_v13  ;;  %v152_v24 = vmul.f32 %v852_v1, %v488_v16  ;;  %v153_v25 = vmul.f32 %v852_v1, %v489_v17  ;;  %v769_v62 = vld [vmem:[%s1176_s0 + $0x40] sm:$0xff]   ;;  %v770_v13 = vld [vmem:[%s1176_s0 + $0x48] sm:$0xff]  }
   0x6   :  { %v214_v18 = vadd.f32 %v857_v4, %v146_v10  ;;  %v215_v19 = vadd.f32 %v857_v4, %v147_v11  ;;  %v216_v22 = vadd.f32 %v857_v4, %v148_v14  ;;  %v217_v23 = vadd.f32 %v857_v4, %v149_v15 }
   0x7   :  { %v218_v29 = vadd.f32 %v857_v4, %v150_v20  ;;  %v219_v30 = vadd.f32 %v857_v4, %v151_v21  ;;  %v220_v33 = vadd.f32 %v857_v4, %v152_v24  ;;  %v221_v34 = vadd.f32 %v857_v4, %v153_v25 }
   0x8   :  { %v278_v27 = vmax.f32 %v214_v18, 0.0  ;;  %v279_v28 = vmax.f32 %v215_v19, 0.0  ;;  %v280_v31 = vmax.f32 %v216_v22, 0.0  ;;  %v281_v32 = vmax.f32 %v217_v23, 0.0  ;;  %v771_v18 = vld [vmem:[%s1176_s0 + $0x50] sm:$0xff]   ;;  %v772_v23 = vld [vmem:[%s1176_s0 + $0x58] sm:$0xff]  }
   0x9   :  { %v282_v37 = vmax.f32 %v218_v29, 0.0  ;;  %v283_v38 = vmax.f32 %v219_v30, 0.0  ;;  %v492_v39 = vunpack.c.l.bf16 %v765_v26  ;;  %v284_v42 = vmax.f32 %v220_v33, 0.0 }
   0xa   :  { %v605_v36 = vpack.c.bf16 %v279_v28, %v278_v27  ;;  %v610_v41 = vpack.c.bf16 %v281_v32, %v280_v31  ;;  %v285_v43 = vmax.f32 %v221_v34, 0.0  ;;  %v493_v44 = vunpack.c.h.bf16 %v765_v26 }
   0xb   :  { %v615_v46 = vpack.c.bf16 %v283_v38, %v282_v37  ;;  %v154_v47 = vmul.f32 %v852_v1, %v492_v39  ;;  %v496_v48 = vunpack.c.l.bf16 %v766_v35  ;;  %v497_v49 = vunpack.c.h.bf16 %v766_v35 }
   0xc   :  { %606 = vst [vmem:[%s1179_s3] sm:$0xff] %v605_v36   ;;  %v620_v50 = vpack.c.bf16 %v285_v43, %v284_v42  ;;  %v155_v51 = vmul.f32 %v852_v1, %v493_v44  ;;  %v500_v52 = vunpack.c.l.bf16 %v767_v40  ;;  %v501_v53 = vunpack.c.h.bf16 %v767_v40  ;;  %v773_v36 = vld [vmem:[%s1176_s0 + $0x60] sm:$0xff]  }
   0xd   :  { %793 = vst [vmem:[%s1179_s3 + $0x8] sm:$0xff] %v610_v41   ;;  %v222_v54 = vadd.f32 %v857_v4, %v154_v47  ;;  %v156_v55 = vmul.f32 %v852_v1, %v496_v48  ;;  %v157_v56 = vmul.f32 %v852_v1, %v497_v49  ;;  %v504_v57 = vunpack.c.l.bf16 %v768_v45 }
   0xe   :  { %794 = vst [vmem:[%s1179_s3 + $0x10] sm:$0xff] %v615_v46   ;;  %v223_v58 = vadd.f32 %v857_v4, %v155_v51  ;;  %v158_v59 = vmul.f32 %v852_v1, %v500_v52  ;;  %v159_v60 = vmul.f32 %v852_v1, %v501_v53  ;;  %v505_v61 = vunpack.c.h.bf16 %v768_v45  ;;  %v774_v53 = vld [vmem:[%s1176_s0 + $0x68] sm:$0xff]  }
   0xf   :  { %795 = vst [vmem:[%s1179_s3 + $0x18] sm:$0xff] %v620_v50   ;;  %v286_v63 = vmax.f32 %v222_v54, 0.0  ;;  %v224_v0 = vadd.f32 %v857_v4, %v156_v55  ;;  %v225_v2 = vadd.f32 %v857_v4, %v157_v56  ;;  %v160_v3 = vmul.f32 %v852_v1, %v504_v57 }
  0x10   :  { %v287_v5 = vmax.f32 %v223_v58, 0.0  ;;  %v226_v6 = vadd.f32 %v857_v4, %v158_v59  ;;  %v227_v7 = vadd.f32 %v857_v4, %v159_v60  ;;  %v161_v8 = vmul.f32 %v852_v1, %v505_v61  ;;  %v775_v58 = vld [vmem:[%s1176_s0 + $0x70] sm:$0xff]  }
  0x11   :  { %v288_v9 = vmax.f32 %v224_v0, 0.0  ;;  %v289_v10 = vmax.f32 %v225_v2, 0.0  ;;  %v228_v11 = vadd.f32 %v857_v4, %v160_v3  ;;  %v508_v12 = vunpack.c.l.bf16 %v769_v62 }
  0x12   :  { %v625_v14 = vpack.c.bf16 %v287_v5, %v286_v63  ;;  %v290_v15 = vmax.f32 %v226_v6, 0.0  ;;  %v291_v16 = vmax.f32 %v227_v7, 0.0  ;;  %v229_v17 = vadd.f32 %v857_v4, %v161_v8  ;;  %v776_v63 = vld [vmem:[%s1176_s0 + $0x78] sm:$0xff]  }
  0x13   :  { %v630_v19 = vpack.c.bf16 %v289_v10, %v288_v9  ;;  %v292_v20 = vmax.f32 %v228_v11, 0.0  ;;  %v509_v21 = vunpack.c.h.bf16 %v769_v62  ;;  %v162_v22 = vmul.f32 %v852_v1, %v508_v12 }
  0x14   :  { %796 = vst [vmem:[%s1179_s3 + $0x20] sm:$0xff] %v625_v14   ;;  %v635_v24 = vpack.c.bf16 %v291_v16, %v290_v15  ;;  %v293_v25 = vmax.f32 %v229_v17, 0.0  ;;  %v512_v26 = vunpack.c.l.bf16 %v770_v13  ;;  %v513_v27 = vunpack.c.h.bf16 %v770_v13  ;;  %v777_v14 = vld [vmem:[%s1176_s0 + $0x80] sm:$0xff]  }
  0x15   :  { %797 = vst [vmem:[%s1179_s3 + $0x28] sm:$0xff] %v630_v19   ;;  %v163_v28 = vmul.f32 %v852_v1, %v509_v21  ;;  %v230_v29 = vadd.f32 %v857_v4, %v162_v22  ;;  %v516_v30 = vunpack.c.l.bf16 %v771_v18  ;;  %v517_v31 = vunpack.c.h.bf16 %v771_v18 }
  0x16   :  { %798 = vst [vmem:[%s1179_s3 + $0x30] sm:$0xff] %v635_v24   ;;  %v640_v32 = vpack.c.bf16 %v293_v25, %v292_v20  ;;  %v164_v33 = vmul.f32 %v852_v1, %v512_v26  ;;  %v165_v34 = vmul.f32 %v852_v1, %v513_v27  ;;  %v520_v35 = vunpack.c.l.bf16 %v772_v23  ;;  %v778_v27 = vld [vmem:[%s1176_s0 + $0x88] sm:$0xff]  }
  0x17   :  { %v231_v37 = vadd.f32 %v857_v4, %v163_v28  ;;  %v294_v38 = vmax.f32 %v230_v29, 0.0  ;;  %v166_v39 = vmul.f32 %v852_v1, %v516_v30  ;;  %v167_v40 = vmul.f32 %v852_v1, %v517_v31 }
  0x18   :  { %799 = vst [vmem:[%s1179_s3 + $0x38] sm:$0xff] %v640_v32   ;;  %v232_v41 = vadd.f32 %v857_v4, %v164_v33  ;;  %v233_v42 = vadd.f32 %v857_v4, %v165_v34  ;;  %v521_v43 = vunpack.c.h.bf16 %v772_v23  ;;  %v168_v44 = vmul.f32 %v852_v1, %v520_v35 }
  0x19   :  { %v295_v45 = vmax.f32 %v231_v37, 0.0  ;;  %v234_v46 = vadd.f32 %v857_v4, %v166_v39  ;;  %v235_v47 = vadd.f32 %v857_v4, %v167_v40  ;;  %v524_v48 = vunpack.c.l.bf16 %v773_v36 }
  0x1a   :  { %v296_v49 = vmax.f32 %v232_v41, 0.0  ;;  %v297_v50 = vmax.f32 %v233_v42, 0.0  ;;  %v169_v51 = vmul.f32 %v852_v1, %v521_v43  ;;  %v236_v52 = vadd.f32 %v857_v4, %v168_v44  ;;  %v780_v41 = vld [vmem:[%s1176_s0 + $0x98] sm:$0xff]  }
  0x1b   :  { %v645_v54 = vpack.c.bf16 %v295_v45, %v294_v38  ;;  %v298_v55 = vmax.f32 %v234_v46, 0.0  ;;  %v299_v56 = vmax.f32 %v235_v47, 0.0  ;;  %v525_v57 = vunpack.c.h.bf16 %v773_v36  ;;  %v779_v36 = vld [vmem:[%s1176_s0 + $0x90] sm:$0xff]  }
  0x1c   :  { %v650_v59 = vpack.c.bf16 %v297_v50, %v296_v49  ;;  %v237_v60 = vadd.f32 %v857_v4, %v169_v51  ;;  %v300_v61 = vmax.f32 %v236_v52, 0.0  ;;  %v170_v62 = vmul.f32 %v852_v1, %v524_v48 }
  0x1d   :  { %800 = vst [vmem:[%s1179_s3 + $0x40] sm:$0xff] %v645_v54   ;;  %v655_v0 = vpack.c.bf16 %v299_v56, %v298_v55  ;;  %v171_v2 = vmul.f32 %v852_v1, %v525_v57  ;;  %v528_v3 = vunpack.c.l.bf16 %v774_v53  ;;  %v529_v5 = vunpack.c.h.bf16 %v774_v53  ;;  %v781_v54 = vld [vmem:[%s1176_s0 + $0xa0] sm:$0xff]  }
  0x1e   :  { %801 = vst [vmem:[%s1179_s3 + $0x48] sm:$0xff] %v650_v59   ;;  %v301_v6 = vmax.f32 %v237_v60, 0.0  ;;  %v238_v7 = vadd.f32 %v857_v4, %v170_v62  ;;  %v532_v8 = vunpack.c.l.bf16 %v775_v58  ;;  %v533_v9 = vunpack.c.h.bf16 %v775_v58 }
  0x1f   :  { %802 = vst [vmem:[%s1179_s3 + $0x50] sm:$0xff] %v655_v0   ;;  %v239_v10 = vadd.f32 %v857_v4, %v171_v2  ;;  %v172_v11 = vmul.f32 %v852_v1, %v528_v3  ;;  %v173_v12 = vmul.f32 %v852_v1, %v529_v5  ;;  %v536_v13 = vunpack.c.l.bf16 %v776_v63  ;;  %v782_v5 = vld [vmem:[%s1176_s0 + $0xa8] sm:$0xff]  }
  0x20   :  { %v660_v15 = vpack.c.bf16 %v301_v6, %v300_v61  ;;  %v302_v16 = vmax.f32 %v238_v7, 0.0  ;;  %v174_v17 = vmul.f32 %v852_v1, %v532_v8  ;;  %v175_v18 = vmul.f32 %v852_v1, %v533_v9 }
  0x21   :  { %v303_v19 = vmax.f32 %v239_v10, 0.0  ;;  %v240_v20 = vadd.f32 %v857_v4, %v172_v11  ;;  %v241_v21 = vadd.f32 %v857_v4, %v173_v12  ;;  %v537_v22 = vunpack.c.h.bf16 %v776_v63 }
  0x22   :  { %803 = vst [vmem:[%s1179_s3 + $0x58] sm:$0xff] %v660_v15   ;;  %v242_v23 = vadd.f32 %v857_v4, %v174_v17  ;;  %v243_v24 = vadd.f32 %v857_v4, %v175_v18  ;;  %v176_v25 = vmul.f32 %v852_v1, %v536_v13  ;;  %v540_v26 = vunpack.c.l.bf16 %v777_v14 }
  0x23   :  { %v665_v28 = vpack.c.bf16 %v303_v19, %v302_v16  ;;  %v304_v29 = vmax.f32 %v240_v20, 0.0  ;;  %v305_v30 = vmax.f32 %v241_v21, 0.0  ;;  %v177_v31 = vmul.f32 %v852_v1, %v537_v22 }
  0x24   :  { %v306_v32 = vmax.f32 %v242_v23, 0.0  ;;  %v307_v33 = vmax.f32 %v243_v24, 0.0  ;;  %v244_v34 = vadd.f32 %v857_v4, %v176_v25  ;;  %v541_v35 = vunpack.c.h.bf16 %v777_v14  ;;  %v783_v14 = vld [vmem:[%s1176_s0 + $0xb0] sm:$0xff]   ;;  %v784_v23 = vld [vmem:[%s1176_s0 + $0xb8] sm:$0xff]  }
  0x25   :  { %804 = vst [vmem:[%s1179_s3 + $0x60] sm:$0xff] %v665_v28   ;;  %v670_v37 = vpack.c.bf16 %v305_v30, %v304_v29  ;;  %v245_v38 = vadd.f32 %v857_v4, %v177_v31  ;;  %v178_v39 = vmul.f32 %v852_v1, %v540_v26  ;;  %v544_v40 = vunpack.c.l.bf16 %v778_v27 }
  0x26   :  { %v675_v42 = vpack.c.bf16 %v307_v33, %v306_v32  ;;  %v308_v43 = vmax.f32 %v244_v34, 0.0  ;;  %v179_v44 = vmul.f32 %v852_v1, %v541_v35  ;;  %v545_v45 = vunpack.c.h.bf16 %v778_v27  ;;  %v785_v32 = vld [vmem:[%s1176_s0 + $0xc0] sm:$0xff]  }
  0x27   :  { %805 = vst [vmem:[%s1179_s3 + $0x68] sm:$0xff] %v670_v37   ;;  %v309_v46 = vmax.f32 %v245_v38, 0.0  ;;  %v246_v47 = vadd.f32 %v857_v4, %v178_v39  ;;  %v180_v48 = vmul.f32 %v852_v1, %v544_v40  ;;  %v548_v49 = vunpack.c.l.bf16 %v779_v36 }
  0x28   :  { %806 = vst [vmem:[%s1179_s3 + $0x70] sm:$0xff] %v675_v42   ;;  %v247_v50 = vadd.f32 %v857_v4, %v179_v44  ;;  %v181_v51 = vmul.f32 %v852_v1, %v545_v45  ;;  %v549_v52 = vunpack.c.h.bf16 %v779_v36  ;;  %v552_v53 = vunpack.c.l.bf16 %v780_v41  ;;  %v786_v45 = vld [vmem:[%s1176_s0 + $0xc8] sm:$0xff]  }
  0x29   :  { %v680_v55 = vpack.c.bf16 %v309_v46, %v308_v43  ;;  %v310_v56 = vmax.f32 %v246_v47, 0.0  ;;  %v248_v57 = vadd.f32 %v857_v4, %v180_v48  ;;  %v182_v58 = vmul.f32 %v852_v1, %v548_v49 }
  0x2a   :  { %v311_v59 = vmax.f32 %v247_v50, 0.0  ;;  %v249_v60 = vadd.f32 %v857_v4, %v181_v51  ;;  %v183_v61 = vmul.f32 %v852_v1, %v549_v52  ;;  %v553_v62 = vunpack.c.h.bf16 %v780_v41 }
  0x2b   :  { %807 = vst [vmem:[%s1179_s3 + $0x78] sm:$0xff] %v680_v55   ;;  %v312_v63 = vmax.f32 %v248_v57, 0.0  ;;  %v250_v0 = vadd.f32 %v857_v4, %v182_v58  ;;  %v184_v2 = vmul.f32 %v852_v1, %v552_v53  ;;  %v556_v3 = vunpack.c.l.bf16 %v781_v54 }
  0x2c   :  { %v685_v6 = vpack.c.bf16 %v311_v59, %v310_v56  ;;  %v313_v7 = vmax.f32 %v249_v60, 0.0  ;;  %v251_v8 = vadd.f32 %v857_v4, %v183_v61  ;;  %v185_v9 = vmul.f32 %v852_v1, %v553_v62 }
  0x2d   :  { %v314_v10 = vmax.f32 %v250_v0, 0.0  ;;  %v252_v11 = vadd.f32 %v857_v4, %v184_v2  ;;  %v557_v12 = vunpack.c.h.bf16 %v781_v54  ;;  %v186_v13 = vmul.f32 %v852_v1, %v556_v3  ;;  %v787_v54 = vld [vmem:[%s1176_s0 + $0xd0] sm:$0xff]  }
  0x2e   :  { %808 = vst [vmem:[%s1179_s3 + $0x80] sm:$0xff] %v685_v6   ;;  %v690_v15 = vpack.c.bf16 %v313_v7, %v312_v63  ;;  %v315_v16 = vmax.f32 %v251_v8, 0.0  ;;  %v253_v17 = vadd.f32 %v857_v4, %v185_v9  ;;  %v560_v18 = vunpack.c.l.bf16 %v782_v5  ;;  %v788_v63 = vld [vmem:[%s1176_s0 + $0xd8] sm:$0xff]  }
  0x2f   :  { %v316_v19 = vmax.f32 %v252_v11, 0.0  ;;  %v187_v20 = vmul.f32 %v852_v1, %v557_v12  ;;  %v254_v21 = vadd.f32 %v857_v4, %v186_v13  ;;  %v561_v22 = vunpack.c.h.bf16 %v782_v5 }
  0x30   :  { %809 = vst [vmem:[%s1179_s3 + $0x88] sm:$0xff] %v690_v15   ;;  %v695_v24 = vpack.c.bf16 %v315_v16, %v314_v10  ;;  %v317_v25 = vmax.f32 %v253_v17, 0.0  ;;  %v188_v26 = vmul.f32 %v852_v1, %v560_v18  ;;  %v564_v27 = vunpack.c.l.bf16 %v783_v14  ;;  %v789_v10 = vld [vmem:[%s1176_s0 + $0xe0] sm:$0xff]  }
  0x31   :  { %v255_v28 = vadd.f32 %v857_v4, %v187_v20  ;;  %v318_v29 = vmax.f32 %v254_v21, 0.0  ;;  %v189_v30 = vmul.f32 %v852_v1, %v561_v22  ;;  %v565_v31 = vunpack.c.h.bf16 %v783_v14 }
  0x32   :  { %810 = vst [vmem:[%s1179_s3 + $0x90] sm:$0xff] %v695_v24   ;;  %v700_v33 = vpack.c.bf16 %v317_v25, %v316_v19  ;;  %v256_v34 = vadd.f32 %v857_v4, %v188_v26  ;;  %v190_v35 = vmul.f32 %v852_v1, %v564_v27  ;;  %v568_v36 = vunpack.c.l.bf16 %v784_v23 }
  0x33   :  { %v319_v37 = vmax.f32 %v255_v28, 0.0  ;;  %v257_v38 = vadd.f32 %v857_v4, %v189_v30  ;;  %v191_v39 = vmul.f32 %v852_v1, %v565_v31  ;;  %v569_v40 = vunpack.c.h.bf16 %v784_v23  ;;  %v790_v23 = vld [vmem:[%s1176_s0 + $0xe8] sm:$0xff]  }
  0x34   :  { %811 = vst [vmem:[%s1179_s3 + $0x98] sm:$0xff] %v700_v33   ;;  %v320_v41 = vmax.f32 %v256_v34, 0.0  ;;  %v258_v42 = vadd.f32 %v857_v4, %v190_v35  ;;  %v192_v43 = vmul.f32 %v852_v1, %v568_v36  ;;  %v572_v44 = vunpack.c.l.bf16 %v785_v32 }
  0x35   :  { %v705_v46 = vpack.c.bf16 %v319_v37, %v318_v29  ;;  %v321_v47 = vmax.f32 %v257_v38, 0.0  ;;  %v259_v48 = vadd.f32 %v857_v4, %v191_v39  ;;  %v193_v49 = vmul.f32 %v852_v1, %v569_v40 }
  0x36   :  { %v322_v50 = vmax.f32 %v258_v42, 0.0  ;;  %v260_v51 = vadd.f32 %v857_v4, %v192_v43  ;;  %v573_v52 = vunpack.c.h.bf16 %v785_v32  ;;  %v194_v53 = vmul.f32 %v852_v1, %v572_v44  ;;  %v791_v32 = vld [vmem:[%s1176_s0 + $0xf0] sm:$0xff]  }
  0x37   :  { %812 = vst [vmem:[%s1179_s3 + $0xa0] sm:$0xff] %v705_v46   ;;  %v710_v55 = vpack.c.bf16 %v321_v47, %v320_v41  ;;  %v323_v56 = vmax.f32 %v259_v48, 0.0  ;;  %v261_v57 = vadd.f32 %v857_v4, %v193_v49  ;;  %v576_v58 = vunpack.c.l.bf16 %v786_v45  ;;  %v792_v41 = vld [vmem:[%s1176_s0 + $0xf8] sm:$0xff]  }
  0x38   :  { %v324_v59 = vmax.f32 %v260_v51, 0.0  ;;  %v195_v60 = vmul.f32 %v852_v1, %v573_v52  ;;  %v262_v61 = vadd.f32 %v857_v4, %v194_v53  ;;  %v577_v62 = vunpack.c.h.bf16 %v786_v45 }
  0x39   :  { %813 = vst [vmem:[%s1179_s3 + $0xa8] sm:$0xff] %v710_v55   ;;  %v715_v0 = vpack.c.bf16 %v323_v56, %v322_v50  ;;  %v325_v2 = vmax.f32 %v261_v57, 0.0  ;;  %v196_v3 = vmul.f32 %v852_v1, %v576_v58  ;;  %v580_v5 = vunpack.c.l.bf16 %v787_v54 }
  0x3a   :  { %v263_v6 = vadd.f32 %v857_v4, %v195_v60  ;;  %v326_v7 = vmax.f32 %v262_v61, 0.0  ;;  %v197_v8 = vmul.f32 %v852_v1, %v577_v62  ;;  %v581_v9 = vunpack.c.h.bf16 %v787_v54 }
  0x3b   :  { %814 = vst [vmem:[%s1179_s3 + $0xb0] sm:$0xff] %v715_v0   ;;  %v720_v11 = vpack.c.bf16 %v325_v2, %v324_v59  ;;  %v264_v12 = vadd.f32 %v857_v4, %v196_v3  ;;  %v198_v13 = vmul.f32 %v852_v1, %v580_v5  ;;  %v584_v14 = vunpack.c.l.bf16 %v788_v63 }
  0x3c   :  { %v327_v15 = vmax.f32 %v263_v6, 0.0  ;;  %v265_v16 = vadd.f32 %v857_v4, %v197_v8  ;;  %v199_v17 = vmul.f32 %v852_v1, %v581_v9  ;;  %v585_v18 = vunpack.c.h.bf16 %v788_v63 }
  0x3d   :  { %815 = vst [vmem:[%s1179_s3 + $0xb8] sm:$0xff] %v720_v11   ;;  %v328_v19 = vmax.f32 %v264_v12, 0.0  ;;  %v266_v20 = vadd.f32 %v857_v4, %v198_v13  ;;  %v200_v21 = vmul.f32 %v852_v1, %v584_v14  ;;  %v588_v22 = vunpack.c.l.bf16 %v789_v10 }
  0x3e   :  { %v725_v24 = vpack.c.bf16 %v327_v15, %v326_v7  ;;  %v329_v25 = vmax.f32 %v265_v16, 0.0  ;;  %v267_v26 = vadd.f32 %v857_v4, %v199_v17  ;;  %v201_v27 = vmul.f32 %v852_v1, %v585_v18 }
  0x3f   :  { %v330_v28 = vmax.f32 %v266_v20, 0.0  ;;  %v268_v29 = vadd.f32 %v857_v4, %v200_v21  ;;  %v589_v30 = vunpack.c.h.bf16 %v789_v10  ;;  %v202_v31 = vmul.f32 %v852_v1, %v588_v22 }
  0x40   :  { %816 = vst [vmem:[%s1179_s3 + $0xc0] sm:$0xff] %v725_v24   ;;  %v730_v33 = vpack.c.bf16 %v329_v25, %v328_v19  ;;  %v331_v34 = vmax.f32 %v267_v26, 0.0  ;;  %v269_v35 = vadd.f32 %v857_v4, %v201_v27  ;;  %v592_v36 = vunpack.c.l.bf16 %v790_v23 }
  0x41   :  { %v332_v37 = vmax.f32 %v268_v29, 0.0  ;;  %v203_v38 = vmul.f32 %v852_v1, %v589_v30  ;;  %v270_v39 = vadd.f32 %v857_v4, %v202_v31  ;;  %v593_v40 = vunpack.c.h.bf16 %v790_v23 }
  0x42   :  { %817 = vst [vmem:[%s1179_s3 + $0xc8] sm:$0xff] %v730_v33   ;;  %v735_v42 = vpack.c.bf16 %v331_v34, %v330_v28  ;;  %v333_v43 = vmax.f32 %v269_v35, 0.0  ;;  %v204_v44 = vmul.f32 %v852_v1, %v592_v36  ;;  %v596_v45 = vunpack.c.l.bf16 %v791_v32 }
  0x43   :  { %v271_v46 = vadd.f32 %v857_v4, %v203_v38  ;;  %v334_v47 = vmax.f32 %v270_v39, 0.0  ;;  %v205_v48 = vmul.f32 %v852_v1, %v593_v40  ;;  %v597_v49 = vunpack.c.h.bf16 %v791_v32 }
  0x44   :  { %818 = vst [vmem:[%s1179_s3 + $0xd0] sm:$0xff] %v735_v42   ;;  %v740_v50 = vpack.c.bf16 %v333_v43, %v332_v37  ;;  %v272_v51 = vadd.f32 %v857_v4, %v204_v44  ;;  %v206_v52 = vmul.f32 %v852_v1, %v596_v45  ;;  %v600_v53 = vunpack.c.l.bf16 %v792_v41 }
  0x45   :  { %v335_v54 = vmax.f32 %v271_v46, 0.0  ;;  %v273_v55 = vadd.f32 %v857_v4, %v205_v48  ;;  %v207_v56 = vmul.f32 %v852_v1, %v597_v49  ;;  %v601_v57 = vunpack.c.h.bf16 %v792_v41 }
  0x46   :  { %819 = vst [vmem:[%s1179_s3 + $0xd8] sm:$0xff] %v740_v50   ;;  %v336_v58 = vmax.f32 %v272_v51, 0.0  ;;  %v274_v59 = vadd.f32 %v857_v4, %v206_v52  ;;  %v208_v60 = vmul.f32 %v852_v1, %v600_v53 }
  0x47   :  { %v745_v61 = vpack.c.bf16 %v335_v54, %v334_v47  ;;  %v337_v62 = vmax.f32 %v273_v55, 0.0  ;;  %v275_v63 = vadd.f32 %v857_v4, %v207_v56  ;;  %v209_v0 = vmul.f32 %v852_v1, %v601_v57 }
  0x48   :  { %v338_v2 = vmax.f32 %v274_v59, 0.0  ;;  %v276_v3 = vadd.f32 %v857_v4, %v208_v60 }
  0x49   :  { %820 = vst [vmem:[%s1179_s3 + $0xe0] sm:$0xff] %v745_v61   ;;  %v750_v5 = vpack.c.bf16 %v337_v62, %v336_v58  ;;  %v339_v6 = vmax.f32 %v275_v63, 0.0  ;;  %v277_v7 = vadd.f32 %v857_v4, %v209_v0 }
  0x4a   :  { %v340_v8 = vmax.f32 %v276_v3, 0.0 }
  0x4b   :  { %821 = vst [vmem:[%s1179_s3 + $0xe8] sm:$0xff] %v750_v5   ;;  %v755_v9 = vpack.c.bf16 %v339_v6, %v338_v2  ;;  %v341_v10 = vmax.f32 %v277_v7, 0.0 }
  0x4d   :  { %822 = vst [vmem:[%s1179_s3 + $0xf0] sm:$0xff] %v755_v9   ;;  %v760_v1 = vpack.c.bf16 %v341_v10, %v340_v8 }
  0x4f   :  { %823 = vst [vmem:[%s1179_s3 + $0xf8] sm:$0xff] %v760_v1  }

// kernel: _forward.6
= control target key start
LH: loop header
LB: loop body
LE: loop exit
PB: predicated region body
PF: predicated region fallthrough
CT: control target
= control target key end

     0   :  { %vm271_vm0 = vcmask 523264   ;;  %s1851_s1 = inlined_call_operand.vmem [shape: bf16[64,128], index: 1, kind: input, shape index: {}]   ;;  %s1852_s0 = inlined_call_operand.vmem [shape: bf16[512,64], index: 0, kind: input, shape index: {}]   ;;  %s1853_s2 = inlined_call_operand.vmem [shape: bf16[512,128], index: 2, kind: output, shape index: {0}]   ;;  %s1854_s3 = inlined_call_operand.vmem [shape: f32[1,1,128], index: 3, kind: output, shape index: {1}]   ;;  %s1855_s4 = inlined_call_operand.vmem [shape: f32[1,1,128], index: 4, kind: output, shape index: {2}]  }
   0x1   :  { %v1092_v0 = vld [vmem:[%s1851_s1 + $0x18] sm:$0xff]  ;;  %v1091_v1 = vld [vmem:[%s1851_s1 + $0x10] sm:$0xff]  ;;  %v1090_v2 = vld [vmem:[%s1851_s1 + $0x8] sm:$0xff] }
   0x2   :  { %372 = vmatpush.bf16.msra.mxu0 %v1092_v0  ;;  %1284 = vmatpush.bf16.msra.mxu1 %v1092_v0  ;;  %v1089_v3 = vld [vmem:[%s1851_s1] sm:$0xff]  ;;  %v1058_v6 = vld [vmem:[%s1852_s0 + $0x8] sm:$0xff]  ;;  %v1059_v9 = vld [vmem:[%s1852_s0 + $0x10] sm:$0xff] }
   0x3   :  { %1285 = vmatpush.bf16.msra.mxu2 %v1092_v0  ;;  %1286 = vmatpush.bf16.msra.mxu3 %v1092_v0  ;;  %v1057_v4 = vld [vmem:[%s1852_s0] sm:$0xff]  ;;  %v1066_v7 = vld [vmem:[%s1852_s0 + $0x48] sm:$0xff]  ;;  %v1067_v10 = vld [vmem:[%s1852_s0 + $0x50] sm:$0xff] }
   0x4   :  { %v1065_v5 = vld [vmem:[%s1852_s0 + $0x40] sm:$0xff]  ;;  %v1074_v11 = vld [vmem:[%s1852_s0 + $0x88] sm:$0xff]  ;;  %v1060_v12 = vld [vmem:[%s1852_s0 + $0x18] sm:$0xff] }
   0x5   :  { %v1073_v8 = vld [vmem:[%s1852_s0 + $0x80] sm:$0xff]  ;;  %v1068_v13 = vld [vmem:[%s1852_s0 + $0x58] sm:$0xff]  ;;  %v1075_v14 = vld [vmem:[%s1852_s0 + $0x90] sm:$0xff] }
   0x6   :  { %373 = vmatpush.bf16.msra.mxu0 %v1091_v1  ;;  %1287 = vmatpush.bf16.msra.mxu1 %v1091_v1  ;;  %v1081_v15 = vld [vmem:[%s1852_s0 + $0xc0] sm:$0xff]  ;;  %v1076_v18 = vld [vmem:[%s1852_s0 + $0x98] sm:$0xff]  ;;  %v1082_v19 = vld [vmem:[%s1852_s0 + $0xc8] sm:$0xff] }
   0x7   :  { %1288 = vmatpush.bf16.msra.mxu2 %v1091_v1  ;;  %1289 = vmatpush.bf16.msra.mxu3 %v1091_v1  ;;  %v1061_v16 = vld [vmem:[%s1852_s0 + $0x20] sm:$0xff]  ;;  %v1062_v20 = vld [vmem:[%s1852_s0 + $0x28] sm:$0xff]  ;;  %v1083_v23 = vld [vmem:[%s1852_s0 + $0xd0] sm:$0xff] }
   0x8   :  { %v1069_v17 = vld [vmem:[%s1852_s0 + $0x60] sm:$0xff]  ;;  %v1070_v21 = vld [vmem:[%s1852_s0 + $0x68] sm:$0xff]  ;;  %v1063_v24 = vld [vmem:[%s1852_s0 + $0x30] sm:$0xff] }
   0x9   :  { %v1077_v22 = vld [vmem:[%s1852_s0 + $0xa0] sm:$0xff]  ;;  %v1071_v25 = vld [vmem:[%s1852_s0 + $0x70] sm:$0xff]  ;;  %v1078_v26 = vld [vmem:[%s1852_s0 + $0xa8] sm:$0xff] }
   0xa   :  { %374 = vmatpush.bf16.msra.mxu0 %v1090_v2  ;;  %1290 = vmatpush.bf16.msra.mxu1 %v1090_v2  ;;  %v1084_v27 = vld [vmem:[%s1852_s0 + $0xd8] sm:$0xff]  ;;  %v1079_v30 = vld [vmem:[%s1852_s0 + $0xb0] sm:$0xff]  ;;  %v1085_v31 = vld [vmem:[%s1852_s0 + $0xe0] sm:$0xff] }
   0xb   :  { %1291 = vmatpush.bf16.msra.mxu2 %v1090_v2  ;;  %1292 = vmatpush.bf16.msra.mxu3 %v1090_v2  ;;  %v1064_v28 = vld [vmem:[%s1852_s0 + $0x38] sm:$0xff]  ;;  %v1086_v35 = vld [vmem:[%s1852_s0 + $0xe8] sm:$0xff]  ;;  %v1087_v49 = vld [vmem:[%s1852_s0 + $0xf0] sm:$0xff] }
   0xc   :  { %v1072_v29 = vld [vmem:[%s1852_s0 + $0x78] sm:$0xff] }
   0xd   :  { %v1080_v34 = vld [vmem:[%s1852_s0 + $0xb8] sm:$0xff] }
   0xe   :  { %375 = vmatpush.bf16.msra.mxu0 %v1089_v3  ;;  %1293 = vmatpush.bf16.msra.mxu1 %v1089_v3  ;;  %v1088_v1 = vld [vmem:[%s1852_s0 + $0xf8] sm:$0xff] }
   0xf   :  { %1294 = vmatpush.bf16.msra.mxu2 %v1089_v3  ;;  %1295 = vmatpush.bf16.msra.mxu3 %v1089_v3 }
  0x11   :  { %1025 = vmatmul.msk.bf16.vlgmr.msra.gmra.mxu0 %vm271_vm0, %v1057_v4  ;;  %1033 = vmatmul.msk.bf16.vlgmr.msra.gmra.mxu1 %vm271_vm0, %v1065_v5 }
  0x12   :  { %1041 = vmatmul.msk.bf16.vlgmr.msra.gmra.mxu2 %vm271_vm0, %v1073_v8  ;;  %1049 = vmatmul.msk.bf16.vlgmr.msra.gmra.mxu3 %vm271_vm0, %v1081_v15 }
  0x21   :  { %1026 = vmatmul.msk.bf16.gmra.mxu0 %vm271_vm0, %v1058_v6  ;;  %1034 = vmatmul.msk.bf16.gmra.mxu1 %vm271_vm0, %v1066_v7 }
  0x22   :  { %1042 = vmatmul.msk.bf16.gmra.mxu2 %vm271_vm0, %v1074_v11  ;;  %1050 = vmatmul.msk.bf16.gmra.mxu3 %vm271_vm0, %v1082_v19 }
  0x31   :  { %1027 = vmatmul.msk.bf16.gmra.mxu0 %vm271_vm0, %v1059_v9  ;;  %1035 = vmatmul.msk.bf16.gmra.mxu1 %vm271_vm0, %v1067_v10 }
  0x32   :  { %1043 = vmatmul.msk.bf16.gmra.mxu2 %vm271_vm0, %v1075_v14  ;;  %1051 = vmatmul.msk.bf16.gmra.mxu3 %vm271_vm0, %v1083_v23 }
  0x41   :  { %1028 = vmatmul.msk.bf16.gmra.mxu0 %vm271_vm0, %v1060_v12  ;;  %1036 = vmatmul.msk.bf16.gmra.mxu1 %vm271_vm0, %v1068_v13 }
  0x42   :  { %1044 = vmatmul.msk.bf16.gmra.mxu2 %vm271_vm0, %v1076_v18  ;;  %1052 = vmatmul.msk.bf16.gmra.mxu3 %vm271_vm0, %v1084_v27 }
  0x51   :  { %1029 = vmatmul.msk.bf16.gmra.mxu0 %vm271_vm0, %v1061_v16  ;;  %1037 = vmatmul.msk.bf16.gmra.mxu1 %vm271_vm0, %v1069_v17 }
  0x52   :  { %1045 = vmatmul.msk.bf16.gmra.mxu2 %vm271_vm0, %v1077_v22  ;;  %1053 = vmatmul.msk.bf16.gmra.mxu3 %vm271_vm0, %v1085_v31 }
  0x61   :  { %1030 = vmatmul.msk.bf16.gmra.mxu0 %vm271_vm0, %v1062_v20  ;;  %1038 = vmatmul.msk.bf16.gmra.mxu1 %vm271_vm0, %v1070_v21 }
  0x62   :  { %1046 = vmatmul.msk.bf16.gmra.mxu2 %vm271_vm0, %v1078_v26  ;;  %1054 = vmatmul.msk.bf16.gmra.mxu3 %vm271_vm0, %v1086_v35 }
  0x71   :  { %1031 = vmatmul.msk.bf16.gmra.mxu0 %vm271_vm0, %v1063_v24  ;;  %1039 = vmatmul.msk.bf16.gmra.mxu1 %vm271_vm0, %v1071_v25 }
  0x72   :  { %1047 = vmatmul.msk.bf16.gmra.mxu2 %vm271_vm0, %v1079_v30  ;;  %1055 = vmatmul.msk.bf16.gmra.mxu3 %vm271_vm0, %v1087_v49 }
  0x81   :  { %1032 = vmatmul.msk.bf16.gmra.mxu0 %vm271_vm0, %v1064_v28  ;;  %1040 = vmatmul.msk.bf16.gmra.mxu1 %vm271_vm0, %v1072_v29 }
  0x82   :  { %1048 = vmatmul.msk.bf16.gmra.mxu2 %vm271_vm0, %v1080_v34  ;;  %1056 = vmatmul.msk.bf16.gmra.mxu3 %vm271_vm0, %v1088_v1 }
  0x8e   :  { %v377_v32 = vpop.f32.mrf.mxu0  ;;  %v1445_v33 = vpop.f32.mrf.mxu1 }
  0x8f   :  { %v735_v36 = vmul.f32 %v377_v32, %v377_v32 }
  0x95   :  { %v1475_v56 = vpop.f32.mrf.mxu2  ;;  %v1527_v16 = vpop.f32.mrf.mxu3 }
  0x96   :  { %v379_v37 = vpop.f32.mrf.mxu0  ;;  %v1455_v38 = vpop.f32.mrf.mxu1 }
  0x97   :  { %v1096_v39 = vpack.c.bf16 %v379_v37, %v377_v32  ;;  %v665_v40 = vadd.f32 %v379_v37, %v377_v32  ;;  %v736_v41 = vmul.f32 %v379_v37, %v379_v37  ;;  %v1136_v42 = vpack.c.bf16 %v1455_v38, %v1445_v33 }
  0x99   :  { %1097 = vst [vmem:[%s1853_s2] sm:$0xff] %v1096_v39   ;;  %v799_v43 = vadd.f32 %v736_v41, %v735_v36 }
  0x9a   :  { %1260 = vst [vmem:[%s1853_s2 + $0x40] sm:$0xff] %v1136_v42  }
  0x9d   :  { %v1487_v62 = vpop.f32.mrf.mxu2  ;;  %v1539_v20 = vpop.f32.mrf.mxu3 }
  0x9e   :  { %v382_v44 = vpop.f32.mrf.mxu0  ;;  %v1465_v45 = vpop.f32.mrf.mxu1  ;;  %v1176_v63 = vpack.c.bf16 %v1487_v62, %v1475_v56  ;;  %v1216_v22 = vpack.c.bf16 %v1539_v20, %v1527_v16 }
  0x9f   :  { %v666_v46 = vadd.f32 %v665_v40, %v382_v44  ;;  %v737_v47 = vmul.f32 %v382_v44, %v382_v44 }
  0xa0   :  { %1268 = vst [vmem:[%s1853_s2 + $0x80] sm:$0xff] %v1176_v63  }
  0xa1   :  { %v800_v48 = vadd.f32 %v799_v43, %v737_v47  ;;  %1276 = vst [vmem:[%s1853_s2 + $0xc0] sm:$0xff] %v1216_v22  }
  0xa5   :  { %v1504_v6 = vpop.f32.mrf.mxu2  ;;  %v1557_v28 = vpop.f32.mrf.mxu3 }
  0xa6   :  { %v384_v50 = vpop.f32.mrf.mxu0  ;;  %v1471_v51 = vpop.f32.mrf.mxu1 }
  0xa7   :  { %v1101_v52 = vpack.c.bf16 %v384_v50, %v382_v44  ;;  %v667_v53 = vadd.f32 %v666_v46, %v384_v50  ;;  %v738_v54 = vmul.f32 %v384_v50, %v384_v50  ;;  %v1141_v55 = vpack.c.bf16 %v1471_v51, %v1465_v45 }
  0xa9   :  { %1253 = vst [vmem:[%s1853_s2 + $0x8] sm:$0xff] %v1101_v52   ;;  %v801_v57 = vadd.f32 %v800_v48, %v738_v54 }
  0xaa   :  { %1261 = vst [vmem:[%s1853_s2 + $0x48] sm:$0xff] %v1141_v55  }
  0xad   :  { %v1514_v9 = vpop.f32.mrf.mxu2  ;;  %v1569_v32 = vpop.f32.mrf.mxu3 }
  0xae   :  { %v387_v58 = vpop.f32.mrf.mxu0  ;;  %v1483_v59 = vpop.f32.mrf.mxu1  ;;  %v1181_v10 = vpack.c.bf16 %v1514_v9, %v1504_v6  ;;  %v1221_v35 = vpack.c.bf16 %v1569_v32, %v1557_v28 }
  0xaf   :  { %v1485_v60 = vadd.f32 %v667_v53, %v387_v58  ;;  %v739_v61 = vmul.f32 %v387_v58, %v387_v58 }
  0xb0   :  { %1269 = vst [vmem:[%s1853_s2 + $0x88] sm:$0xff] %v1181_v10  }
  0xb1   :  { %v1491_v0 = vadd.f32 %v801_v57, %v739_v61  ;;  %1277 = vst [vmem:[%s1853_s2 + $0xc8] sm:$0xff] %v1221_v35  }
  0xb5   :  { %v1525_v15 = vpop.f32.mrf.mxu2  ;;  %v1587_v42 = vpop.f32.mrf.mxu3 }
  0xb6   :  { %v389_v2 = vpop.f32.mrf.mxu0  ;;  %v1500_v3 = vpop.f32.mrf.mxu1 }
  0xb7   :  { %v1106_v4 = vpack.c.bf16 %v389_v2, %v387_v58  ;;  %v1146_v5 = vpack.c.bf16 %v1500_v3, %v1483_v59  ;;  %v740_v48 = vmul.f32 %v389_v2, %v389_v2  ;;  %v669_v53 = vadd.f32 %v1485_v60, %v389_v2 }
  0xb9   :  { %1254 = vst [vmem:[%s1853_s2 + $0x10] sm:$0xff] %v1106_v4   ;;  %v803_v54 = vadd.f32 %v1491_v0, %v740_v48 }
  0xba   :  { %1262 = vst [vmem:[%s1853_s2 + $0x50] sm:$0xff] %v1146_v5  }
  0xbd   :  { %v1537_v19 = vpop.f32.mrf.mxu2  ;;  %v1599_v47 = vpop.f32.mrf.mxu3 }
  0xbe   :  { %v392_v7 = vpop.f32.mrf.mxu0  ;;  %v1512_v8 = vpop.f32.mrf.mxu1  ;;  %v1186_v21 = vpack.c.bf16 %v1537_v19, %v1525_v15  ;;  %v1226_v50 = vpack.c.bf16 %v1599_v47, %v1587_v42 }
  0xbf   :  { %v741_v52 = vmul.f32 %v392_v7, %v392_v7  ;;  %v670_v57 = vadd.f32 %v669_v53, %v392_v7 }
  0xc0   :  { %1270 = vst [vmem:[%s1853_s2 + $0x90] sm:$0xff] %v1186_v21  }
  0xc1   :  { %1278 = vst [vmem:[%s1853_s2 + $0xd0] sm:$0xff] %v1226_v50   ;;  %v804_v58 = vadd.f32 %v803_v54, %v741_v52 }
  0xc5   :  { %v1555_v27 = vpop.f32.mrf.mxu2  ;;  %v1619_v60 = vpop.f32.mrf.mxu3 }
  0xc6   :  { %v394_v11 = vpop.f32.mrf.mxu0  ;;  %v1521_v12 = vpop.f32.mrf.mxu1 }
  0xc7   :  { %v1111_v13 = vpack.c.bf16 %v394_v11, %v392_v7  ;;  %v1151_v14 = vpack.c.bf16 %v1521_v12, %v1512_v8  ;;  %v742_v55 = vmul.f32 %v394_v11, %v394_v11  ;;  %v671_v4 = vadd.f32 %v670_v57, %v394_v11 }
  0xc9   :  { %1255 = vst [vmem:[%s1853_s2 + $0x18] sm:$0xff] %v1111_v13   ;;  %v805_v2 = vadd.f32 %v804_v58, %v742_v55 }
  0xca   :  { %1263 = vst [vmem:[%s1853_s2 + $0x58] sm:$0xff] %v1151_v14  }
  0xcd   :  { %v1567_v31 = vpop.f32.mrf.mxu2 }
  0xce   :  { %v397_v17 = vpop.f32.mrf.mxu0  ;;  %v1535_v18 = vpop.f32.mrf.mxu1  ;;  %v1191_v34 = vpack.c.bf16 %v1567_v31, %v1555_v27 }
  0xcf   :  { %v743_v61 = vmul.f32 %v397_v17, %v397_v17  ;;  %v672_v21 = vadd.f32 %v671_v4, %v397_v17 }
  0xd0   :  { %1271 = vst [vmem:[%s1853_s2 + $0x98] sm:$0xff] %v1191_v34  }
  0xd1   :  { %v806_v0 = vadd.f32 %v805_v2, %v743_v61 }
  0xd5   :  { %v1585_v41 = vpop.f32.mrf.mxu2 }
  0xd6   :  { %v399_v23 = vpop.f32.mrf.mxu0  ;;  %v1551_v24 = vpop.f32.mrf.mxu1 }
  0xd7   :  { %v1116_v25 = vpack.c.bf16 %v399_v23, %v397_v17  ;;  %v1156_v26 = vpack.c.bf16 %v1551_v24, %v1535_v18  ;;  %v744_v14 = vmul.f32 %v399_v23, %v399_v23  ;;  %v673_v11 = vadd.f32 %v672_v21, %v399_v23 }
  0xd9   :  { %1256 = vst [vmem:[%s1853_s2 + $0x20] sm:$0xff] %v1116_v25   ;;  %v807_v22 = vadd.f32 %v806_v0, %v744_v14 }
  0xda   :  { %1264 = vst [vmem:[%s1853_s2 + $0x60] sm:$0xff] %v1156_v26  }
  0xdd   :  { %v1597_v46 = vpop.f32.mrf.mxu2 }
  0xde   :  { %v402_v29 = vpop.f32.mrf.mxu0  ;;  %v1565_v30 = vpop.f32.mrf.mxu1  ;;  %v1196_v49 = vpack.c.bf16 %v1597_v46, %v1585_v41 }
  0xdf   :  { %v745_v7 = vmul.f32 %v402_v29, %v402_v29  ;;  %v674_v26 = vadd.f32 %v673_v11, %v402_v29 }
  0xe0   :  { %1272 = vst [vmem:[%s1853_s2 + $0xa0] sm:$0xff] %v1196_v49   ;;  %v1631_v49 = vpop.f32.mrf.mxu3 }
  0xe1   :  { %v808_v34 = vadd.f32 %v807_v22, %v745_v7  ;;  %v1231_v23 = vpack.c.bf16 %v1631_v49, %v1619_v60  ;;  %v752_v22 = vmul.f32 %v1455_v38, %v1455_v38 }
  0xe3   :  { %1279 = vst [vmem:[%s1853_s2 + $0xd8] sm:$0xff] %v1231_v23  }
  0xe5   :  { %v1617_v13 = vpop.f32.mrf.mxu2 }
  0xe6   :  { %v404_v36 = vpop.f32.mrf.mxu0  ;;  %v1581_v37 = vpop.f32.mrf.mxu1 }
  0xe7   :  { %v1121_v39 = vpack.c.bf16 %v404_v36, %v402_v29  ;;  %v1161_v40 = vpack.c.bf16 %v1581_v37, %v1565_v30  ;;  %v746_v25 = vmul.f32 %v404_v36, %v404_v36  ;;  %v675_v17 = vadd.f32 %v674_v26, %v404_v36 }
  0xe8   :  { %v1649_v0 = vpop.f32.mrf.mxu3 }
  0xe9   :  { %1257 = vst [vmem:[%s1853_s2 + $0x28] sm:$0xff] %v1121_v39   ;;  %v809_v50 = vadd.f32 %v808_v34, %v746_v25  ;;  %v753_v34 = vmul.f32 %v1465_v45, %v1465_v45 }
  0xea   :  { %1265 = vst [vmem:[%s1853_s2 + $0x68] sm:$0xff] %v1161_v40  }
  0xed   :  { %v1629_v48 = vpop.f32.mrf.mxu2 }
  0xee   :  { %v407_v43 = vpop.f32.mrf.mxu0  ;;  %v1595_v44 = vpop.f32.mrf.mxu1  ;;  %v1201_v53 = vpack.c.bf16 %v1629_v48, %v1617_v13 }
  0xef   :  { %v747_v35 = vmul.f32 %v407_v43, %v407_v43  ;;  %v676_v54 = vadd.f32 %v675_v17, %v407_v43 }
  0xf0   :  { %1273 = vst [vmem:[%s1853_s2 + $0xa8] sm:$0xff] %v1201_v53   ;;  %v1671_v53 = vpop.f32.mrf.mxu3 }
  0xf1   :  { %v810_v29 = vadd.f32 %v809_v50, %v747_v35  ;;  %v1236_v23 = vpack.c.bf16 %v1671_v53, %v1649_v0 }
  0xf3   :  { %1280 = vst [vmem:[%s1853_s2 + $0xe0] sm:$0xff] %v1236_v23  }
  0xf5   :  { %v1647_v21 = vpop.f32.mrf.mxu2 }
  0xf6   :  { %v409_v63 = vpop.f32.mrf.mxu0  ;;  %v1613_v1 = vpop.f32.mrf.mxu1 }
  0xf7   :  { %v1126_v5 = vpack.c.bf16 %v409_v63, %v407_v43  ;;  %v1166_v10 = vpack.c.bf16 %v1613_v1, %v1595_v44  ;;  %v748_v52 = vmul.f32 %v409_v63, %v409_v63  ;;  %v677_v36 = vadd.f32 %v676_v54, %v409_v63 }
  0xf8   :  { %v751_v63 = vmul.f32 %v1445_v33, %v1445_v33  ;;  %v764_v23 = vmul.f32 %v1613_v1, %v1613_v1 }
  0xf9   :  { %1258 = vst [vmem:[%s1853_s2 + $0x30] sm:$0xff] %v1126_v5   ;;  %v811_v57 = vadd.f32 %v810_v29, %v748_v52 }
  0xfa   :  { %1266 = vst [vmem:[%s1853_s2 + $0x70] sm:$0xff] %v1166_v10  }
  0xfd   :  { %v1669_v52 = vpop.f32.mrf.mxu2 }
  0xfe   :  { %v412_v39 = vpop.f32.mrf.mxu0  ;;  %v1627_v40 = vpop.f32.mrf.mxu1 }
  0xff   :  { %v749_v55 = vmul.f32 %v412_v39, %v412_v39  ;;  %v678_v58 = vadd.f32 %v677_v36, %v412_v39 }
 0x101   :  { %v812_v61 = vadd.f32 %v811_v57, %v749_v55  ;;  %v757_v57 = vmul.f32 %v1512_v8, %v1512_v8 }
 0x106   :  { %v414_v4 = vpop.f32.mrf.mxu0  ;;  %v1643_v5 = vpop.f32.mrf.mxu1 }
 0x107   :  { %v1131_v10 = vpack.c.bf16 %v414_v4, %v412_v39  ;;  %v679_v2 = vadd.f32 %v678_v58, %v414_v4  ;;  %v750_v43 = vmul.f32 %v414_v4, %v414_v4  ;;  %v1171_v14 = vpack.c.bf16 %v1643_v5, %v1627_v40 }
 0x109   :  { %1259 = vst [vmem:[%s1853_s2 + $0x38] sm:$0xff] %v1131_v10   ;;  %v680_v7 = vadd.f32 %v679_v2, %v1445_v33  ;;  %v813_v11 = vadd.f32 %v812_v61, %v750_v43  ;;  %v754_v33 = vmul.f32 %v1471_v51, %v1471_v51  ;;  %v758_v61 = vmul.f32 %v1521_v12, %v1521_v12  ;;  %v1695_v2 = vpop.f32.mrf.mxu2 }
 0x10a   :  { %1267 = vst [vmem:[%s1853_s2 + $0x78] sm:$0xff] %v1171_v14   ;;  %v759_v43 = vmul.f32 %v1535_v18, %v1535_v18 }
 0x10b   :  { %v681_v25 = vadd.f32 %v680_v7, %v1455_v38  ;;  %v814_v26 = vadd.f32 %v813_v11, %v751_v63  ;;  %v1206_v38 = vpack.c.bf16 %v1669_v52, %v1647_v21  ;;  %v760_v7 = vmul.f32 %v1551_v24, %v1551_v24 }
 0x10d   :  { %v682_v35 = vadd.f32 %v681_v25, %v1465_v45  ;;  %v815_v39 = vadd.f32 %v814_v26, %v752_v22  ;;  %v755_v45 = vmul.f32 %v1483_v59, %v1483_v59  ;;  %1274 = vst [vmem:[%s1853_s2 + $0xb0] sm:$0xff] %v1206_v38   ;;  %v762_v26 = vmul.f32 %v1581_v37, %v1581_v37 }
 0x10f   :  { %v683_v17 = vadd.f32 %v682_v35, %v1471_v51  ;;  %v816_v50 = vadd.f32 %v815_v39, %v753_v34  ;;  %v756_v51 = vmul.f32 %v1500_v3, %v1500_v3 }
 0x111   :  { %v684_v54 = vadd.f32 %v683_v17, %v1483_v59  ;;  %v817_v29 = vadd.f32 %v816_v50, %v754_v33 }
 0x113   :  { %v685_v55 = vadd.f32 %v684_v54, %v1500_v3  ;;  %v818_v36 = vadd.f32 %v817_v29, %v755_v45  ;;  %v1697_v3 = vpop.f32.mrf.mxu3 }
 0x115   :  { %v819_v58 = vadd.f32 %v818_v36, %v756_v51  ;;  %v686_v59 = vadd.f32 %v685_v55, %v1512_v8  ;;  %v766_v55 = vmul.f32 %v1643_v5, %v1643_v5 }
 0x117   :  { %v687_v4 = vadd.f32 %v686_v59, %v1521_v12  ;;  %v820_v10 = vadd.f32 %v819_v58, %v757_v57  ;;  %v761_v12 = vmul.f32 %v1565_v30, %v1565_v30  ;;  %v768_v59 = vmul.f32 %v1487_v62, %v1487_v62 }
 0x119   :  { %v688_v14 = vadd.f32 %v687_v4, %v1535_v18  ;;  %v821_v63 = vadd.f32 %v820_v10, %v758_v61  ;;  %v1711_v18 = vpop.f32.mrf.mxu2  ;;  %v769_v4 = vmul.f32 %v1504_v6, %v1504_v6 }
 0x11b   :  { %v689_v8 = vadd.f32 %v688_v14, %v1551_v24  ;;  %v822_v11 = vadd.f32 %v821_v63, %v759_v43  ;;  %v1713_v39 = vpop.f32.mrf.mxu3  ;;  %v1211_v24 = vpack.c.bf16 %v1711_v18, %v1695_v2  ;;  %v770_v43 = vmul.f32 %v1514_v9, %v1514_v9 }
 0x11c   :  { %v1241_v33 = vpack.c.bf16 %v1713_v39, %v1697_v3 }
 0x11d   :  { %v690_v22 = vadd.f32 %v689_v8, %v1565_v30  ;;  %v823_v25 = vadd.f32 %v822_v11, %v760_v7  ;;  %v763_v30 = vmul.f32 %v1595_v44, %v1595_v44  ;;  %1275 = vst [vmem:[%s1853_s2 + $0xb8] sm:$0xff] %v1211_v24  }
 0x11e   :  { %1281 = vst [vmem:[%s1853_s2 + $0xe8] sm:$0xff] %v1241_v33   ;;  %v775_v33 = vmul.f32 %v1585_v41, %v1585_v41 }
 0x11f   :  { %v691_v34 = vadd.f32 %v690_v22, %v1581_v37  ;;  %v824_v35 = vadd.f32 %v823_v25, %v761_v12  ;;  %v773_v22 = vmul.f32 %v1555_v27, %v1555_v27 }
 0x121   :  { %v692_v17 = vadd.f32 %v691_v34, %v1595_v44  ;;  %v825_v50 = vadd.f32 %v824_v35, %v762_v26  ;;  %v765_v44 = vmul.f32 %v1627_v40, %v1627_v40 }
 0x123   :  { %v826_v37 = vadd.f32 %v825_v50, %v763_v30  ;;  %v693_v38 = vadd.f32 %v692_v17, %v1613_v1  ;;  %v1737_v36 = vpop.f32.mrf.mxu3  ;;  %v767_v1 = vmul.f32 %v1475_v56, %v1475_v56  ;;  %v776_v30 = vmul.f32 %v1597_v46, %v1597_v46 }
 0x125   :  { %v827_v45 = vadd.f32 %v826_v37, %v764_v23  ;;  %v694_v54 = vadd.f32 %v693_v38, %v1627_v40  ;;  %v777_v37 = vmul.f32 %v1617_v13, %v1617_v13 }
 0x127   :  { %v828_v29 = vadd.f32 %v827_v45, %v765_v44  ;;  %v695_v51 = vadd.f32 %v694_v54, %v1643_v5  ;;  %v778_v45 = vmul.f32 %v1629_v48, %v1629_v48 }
 0x129   :  { %v696_v57 = vadd.f32 %v695_v51, %v1475_v56  ;;  %v829_v58 = vadd.f32 %v828_v29, %v766_v55 }
 0x12b   :  { %v697_v61 = vadd.f32 %v696_v57, %v1487_v62  ;;  %v830_v40 = vadd.f32 %v829_v58, %v767_v1  ;;  %v1751_v56 = vpop.f32.mrf.mxu3  ;;  %v771_v62 = vmul.f32 %v1525_v15, %v1525_v15  ;;  %v781_v58 = vmul.f32 %v1695_v2, %v1695_v2 }
 0x12c   :  { %v1246_v7 = vpack.c.bf16 %v1751_v56, %v1737_v36 }
 0x12d   :  { %v698_v10 = vadd.f32 %v697_v61, %v1504_v6  ;;  %v831_v5 = vadd.f32 %v830_v40, %v768_v59  ;;  %v772_v6 = vmul.f32 %v1537_v19, %v1537_v19  ;;  %v783_v40 = vmul.f32 %v1527_v16, %v1527_v16 }
 0x12e   :  { %1282 = vst [vmem:[%s1853_s2 + $0xf0] sm:$0xff] %v1246_v7  }
 0x12f   :  { %v699_v14 = vadd.f32 %v698_v10, %v1514_v9  ;;  %v832_v63 = vadd.f32 %v831_v5, %v769_v4 }
 0x131   :  { %v700_v8 = vadd.f32 %v699_v14, %v1525_v15  ;;  %v833_v11 = vadd.f32 %v832_v63, %v770_v43  ;;  %v774_v15 = vmul.f32 %v1567_v31, %v1567_v31 }
 0x133   :  { %v701_v9 = vadd.f32 %v700_v8, %v1537_v19  ;;  %v834_v12 = vadd.f32 %v833_v11, %v771_v62  ;;  %v1770_v24 = vpop.f32.mrf.mxu3 }
 0x135   :  { %v835_v25 = vadd.f32 %v834_v12, %v772_v6  ;;  %v702_v26 = vadd.f32 %v701_v9, %v1555_v27 }
 0x137   :  { %v703_v34 = vadd.f32 %v702_v26, %v1567_v31  ;;  %v836_v35 = vadd.f32 %v835_v25, %v773_v22 }
 0x139   :  { %v704_v19 = vadd.f32 %v703_v34, %v1585_v41  ;;  %v837_v17 = vadd.f32 %v836_v35, %v774_v15 }
 0x13b   :  { %v705_v50 = vadd.f32 %v704_v19, %v1597_v46  ;;  %v838_v27 = vadd.f32 %v837_v17, %v775_v33  ;;  %v534_v41 = vpop.f32.mrf.mxu3  ;;  %v779_v46 = vmul.f32 %v1647_v21, %v1647_v21 }
 0x13c   :  { %v1251_v44 = vpack.c.bf16 %v534_v41, %v1770_v24 }
 0x13d   :  { %v706_v31 = vadd.f32 %v705_v50, %v1617_v13  ;;  %v839_v38 = vadd.f32 %v838_v27, %v776_v30  ;;  %v794_v30 = vmul.f32 %v1713_v39, %v1713_v39 }
 0x13e   :  { %1283 = vst [vmem:[%s1853_s2 + $0xf8] sm:$0xff] %v1251_v44   ;;  %v798_v44 = vmul.f32 %v534_v41, %v534_v41 }
 0x13f   :  { %v707_v23 = vadd.f32 %v706_v31, %v1629_v48  ;;  %v840_v54 = vadd.f32 %v839_v38, %v777_v37  ;;  %v780_v48 = vmul.f32 %v1669_v52, %v1669_v52  ;;  %v795_v37 = vmul.f32 %v1737_v36, %v1737_v36 }
 0x140   :  { %v796_v38 = vmul.f32 %v1751_v56, %v1751_v56 }
 0x141   :  { %v841_v29 = vadd.f32 %v840_v54, %v778_v45  ;;  %v708_v51 = vadd.f32 %v707_v23, %v1647_v21  ;;  %v782_v21 = vmul.f32 %v1711_v18, %v1711_v18  ;;  %v797_v45 = vmul.f32 %v1770_v24, %v1770_v24 }
 0x143   :  { %v842_v13 = vadd.f32 %v841_v29, %v779_v46  ;;  %v709_v55 = vadd.f32 %v708_v51, %v1669_v52  ;;  %v784_v52 = vmul.f32 %v1539_v20, %v1539_v20 }
 0x145   :  { %v843_v1 = vadd.f32 %v842_v13, %v780_v48  ;;  %v710_v57 = vadd.f32 %v709_v55, %v1695_v2  ;;  %v785_v2 = vmul.f32 %v1557_v28, %v1557_v28 }
 0x147   :  { %v844_v59 = vadd.f32 %v843_v1, %v781_v58  ;;  %v711_v61 = vadd.f32 %v710_v57, %v1711_v18  ;;  %v786_v18 = vmul.f32 %v1569_v32, %v1569_v32 }
 0x149   :  { %v712_v4 = vadd.f32 %v711_v61, %v1527_v16  ;;  %v845_v10 = vadd.f32 %v844_v59, %v782_v21  ;;  %v787_v16 = vmul.f32 %v1587_v42, %v1587_v42 }
 0x14b   :  { %v713_v5 = vadd.f32 %v712_v4, %v1539_v20  ;;  %v846_v43 = vadd.f32 %v845_v10, %v783_v40  ;;  %v788_v20 = vmul.f32 %v1599_v47, %v1599_v47 }
 0x14d   :  { %v714_v14 = vadd.f32 %v713_v5, %v1557_v28  ;;  %v847_v63 = vadd.f32 %v846_v43, %v784_v52  ;;  %v789_v28 = vmul.f32 %v1619_v60, %v1619_v60 }
 0x14f   :  { %v715_v7 = vadd.f32 %v714_v14, %v1569_v32  ;;  %v848_v62 = vadd.f32 %v847_v63, %v785_v2  ;;  %v790_v32 = vmul.f32 %v1631_v49, %v1631_v49 }
 0x151   :  { %v716_v8 = vadd.f32 %v715_v7, %v1587_v42  ;;  %v849_v11 = vadd.f32 %v848_v62, %v786_v18  ;;  %v791_v42 = vmul.f32 %v1649_v0, %v1649_v0 }
 0x153   :  { %v717_v6 = vadd.f32 %v716_v8, %v1599_v47  ;;  %v850_v9 = vadd.f32 %v849_v11, %v787_v16  ;;  %v792_v47 = vmul.f32 %v1671_v53, %v1671_v53 }
 0x155   :  { %v851_v12 = vadd.f32 %v850_v9, %v788_v20  ;;  %v718_v22 = vadd.f32 %v717_v6, %v1619_v60  ;;  %v793_v60 = vmul.f32 %v1697_v3, %v1697_v3 }
 0x157   :  { %v719_v25 = vadd.f32 %v718_v22, %v1631_v49  ;;  %v852_v26 = vadd.f32 %v851_v12, %v789_v28 }
 0x159   :  { %v720_v15 = vadd.f32 %v719_v25, %v1649_v0  ;;  %v853_v34 = vadd.f32 %v852_v26, %v790_v32 }
 0x15b   :  { %v721_v35 = vadd.f32 %v720_v15, %v1671_v53  ;;  %v854_v33 = vadd.f32 %v853_v34, %v791_v42 }
 0x15d   :  { %v722_v19 = vadd.f32 %v721_v35, %v1697_v3  ;;  %v855_v17 = vadd.f32 %v854_v33, %v792_v47 }
 0x15f   :  { %v723_v49 = vadd.f32 %v722_v19, %v1713_v39  ;;  %v856_v50 = vadd.f32 %v855_v17, %v793_v60 }
 0x161   :  { %v857_v0 = vadd.f32 %v856_v50, %v794_v30  ;;  %v724_v27 = vadd.f32 %v723_v49, %v1737_v36 }
 0x163   :  { %v858_v53 = vadd.f32 %v857_v0, %v795_v37  ;;  %v725_v31 = vadd.f32 %v724_v27, %v1751_v56 }
 0x165   :  { %v859_v3 = vadd.f32 %v858_v53, %v796_v38  ;;  %v726_v23 = vadd.f32 %v725_v31, %v1770_v24 }
 0x167   :  { %v860_v39 = vadd.f32 %v859_v3, %v797_v45  ;;  %v727_v54 = vadd.f32 %v726_v23, %v534_v41 }
 0x169   :  { %v728_v29 = vrot.slane %v727_v54, 4  ;;  %v861_v51 = vadd.f32 %v860_v39, %v798_v44 }
 0x16b   :  { %v729_v46 = vadd.f32 %v728_v29, %v727_v54  ;;  %v862_v13 = vrot.slane %v861_v51, 4 }
 0x16d   :  { %v730_v36 = vrot.slane %v729_v46, 2  ;;  %v863_v55 = vadd.f32 %v862_v13, %v861_v51 }
 0x16f   :  { %v731_v48 = vadd.f32 %v730_v36, %v729_v46  ;;  %v864_v1 = vrot.slane %v863_v55, 2 }
 0x171   :  { %v732_v57 = vrot.slane %v731_v48, 1  ;;  %v865_v58 = vadd.f32 %v864_v1, %v863_v55 }
 0x173   :  { %v733_v56 = vadd.f32 %v732_v57, %v731_v48  ;;  %v866_v59 = vrot.slane %v865_v58, 1 }
 0x175   :  { %734 = vst [vmem:[%s1854_s3] sm:$0x1] %v733_v56  ;;  %v867_v24 = vadd.f32 %v866_v59, %v865_v58 }
 0x177   :  { %868 = vst [vmem:[%s1855_s4] sm:$0x1] %v867_v24 }

// kernel: _forward.9
= control target key start
LH: loop header
LB: loop body
LE: loop exit
PB: predicated region body
PF: predicated region fallthrough
CT: control target
= control target key end

     0   :  { %vm1083_vm0 = vcmask 1040384   ;;  %s2687_s3 = inlined_call_operand.vmem [shape: bf16[128,256], index: 3, kind: input, shape index: {}]   ;;  %s2688_s0 = inlined_call_operand.vmem [shape: bf16[512,128], index: 0, kind: input, shape index: {}]   ;;  %s2689_s1 = inlined_call_operand.vmem [shape: f32[1,128], index: 1, kind: input, shape index: {}]   ;;  %s2690_s2 = inlined_call_operand.vmem [shape: f32[1,128], index: 2, kind: input, shape index: {}]   ;;  %s2691_s4 = inlined_call_operand.vmem [shape: bf16[512,256], index: 4, kind: output, shape index: {0}]   ;;  %s2692_s5 = inlined_call_operand.vmem [shape: f32[1,1,256], index: 5, kind: output, shape index: {1}]   ;;  %s2693_s6 = inlined_call_operand.vmem [shape: f32[1,1,256], index: 6, kind: output, shape index: {2}]  }
   0x1   :  { %v1433_v0 = vld [vmem:[%s2687_s3 + $0x70] sm:$0xf]  ;;  %v1454_v1 = vld [vmem:[%s2687_s3 + $0x74] sm:$0xf0]  ;;  %v1453_v2 = vld [vmem:[%s2687_s3 + $0x74] sm:$0xf] }
   0x2   :  { %v1434_v3 = vor.u32 %v1454_v1, %v1433_v0  ;;  %v1435_v4 = vld [vmem:[%s2687_s3 + $0x78] sm:$0xf0]  ;;  %v1425_v5 = vld [vmem:[%s2687_s3 + $0x60] sm:$0xf]  ;;  %v1452_v6 = vld [vmem:[%s2687_s3 + $0x64] sm:$0xf0] }
   0x3   :  { %v1438_v7 = vor.u32 %v1453_v2, %v1435_v4  ;;  %v1451_v8 = vld [vmem:[%s2687_s3 + $0x64] sm:$0xf]  ;;  %v1427_v9 = vld [vmem:[%s2687_s3 + $0x68] sm:$0xf0]  ;;  %v1426_v10 = vor.u32 %v1452_v6, %v1425_v5  ;;  %v1417_v12 = vld [vmem:[%s2687_s3 + $0x50] sm:$0xf] }
   0x4   :  { %476 = vmatpush.bf16.msra.mxu0 %v1434_v3  ;;  %1614 = vmatpush.bf16.msra.mxu2 %v1434_v3  ;;  %v1430_v11 = vor.u32 %v1451_v8, %v1427_v9  ;;  %v1450_v13 = vld [vmem:[%s2687_s3 + $0x54] sm:$0xf0]  ;;  %v1449_v14 = vld [vmem:[%s2687_s3 + $0x54] sm:$0xf]  ;;  %v1419_v15 = vld [vmem:[%s2687_s3 + $0x58] sm:$0xf0] }
   0x5   :  { %645 = vmatpush.bf16.msra.mxu1 %v1438_v7  ;;  %1622 = vmatpush.bf16.msra.mxu3 %v1438_v7  ;;  %v1418_v16 = vor.u32 %v1450_v13, %v1417_v12  ;;  %v1422_v17 = vor.u32 %v1449_v14, %v1419_v15  ;;  %v1409_v18 = vld [vmem:[%s2687_s3 + $0x40] sm:$0xf]  ;;  %v1448_v19 = vld [vmem:[%s2687_s3 + $0x44] sm:$0xf0]  ;;  %v1447_v20 = vld [vmem:[%s2687_s3 + $0x44] sm:$0xf] }
   0x6   :  { %v1411_v21 = vld [vmem:[%s2687_s3 + $0x48] sm:$0xf0]  ;;  %v1410_v22 = vor.u32 %v1448_v19, %v1409_v18  ;;  %v1456_v23 = vld [vmem:[%s2688_s0] sm:$0xff]   ;;  %v1401_v25 = vld [vmem:[%s2687_s3 + $0x30] sm:$0xf] }
   0x7   :  { %v1414_v24 = vor.u32 %v1447_v20, %v1411_v21  ;;  %v1446_v26 = vld [vmem:[%s2687_s3 + $0x34] sm:$0xf0]  ;;  %v1445_v27 = vld [vmem:[%s2687_s3 + $0x34] sm:$0xf]  ;;  %v1403_v28 = vld [vmem:[%s2687_s3 + $0x38] sm:$0xf0]  ;;  %v1457_v29 = vunpack.c.l.bf16 %v1456_v23  ;;  %v1458_v30 = vunpack.c.h.bf16 %v1456_v23 }
   0x8   :  { %477 = vmatpush.bf16.msra.mxu0 %v1426_v10  ;;  %1615 = vmatpush.bf16.msra.mxu2 %v1426_v10  ;;  %v1735_v31 = vld [vmem:[%s2689_s1] ss:$0 sm:$0xff]  ;;  %v1402_v32 = vor.u32 %v1446_v26, %v1401_v25  ;;  %v1406_v33 = vor.u32 %v1445_v27, %v1403_v28  ;;  %v1444_v35 = vld [vmem:[%s2687_s3 + $0x24] sm:$0xf0]  ;;  %v1443_v36 = vld [vmem:[%s2687_s3 + $0x24] sm:$0xf] }
   0x9   :  { %646 = vmatpush.bf16.msra.mxu1 %v1430_v11  ;;  %1623 = vmatpush.bf16.msra.mxu3 %v1430_v11  ;;  %v1393_v34 = vld [vmem:[%s2687_s3 + $0x20] sm:$0xf]  ;;  %v1395_v37 = vld [vmem:[%s2687_s3 + $0x28] sm:$0xf0]  ;;  %v152_v38 = vmul.f32 %v1735_v31, %v1457_v29  ;;  %v153_v39 = vmul.f32 %v1735_v31, %v1458_v30  ;;  %v1385_v43 = vld [vmem:[%s2687_s3 + $0x10] sm:$0xf] }
   0xa   :  { %v1754_v40 = vld [vmem:[%s2690_s2] ss:$0 sm:$0xff]  ;;  %v1394_v41 = vor.u32 %v1444_v35, %v1393_v34  ;;  %v1398_v42 = vor.u32 %v1443_v36, %v1395_v37  ;;  %v1442_v44 = vld [vmem:[%s2687_s3 + $0x14] sm:$0xf0]  ;;  %v1441_v45 = vld [vmem:[%s2687_s3 + $0x14] sm:$0xf] }
   0xb   :  { %v1387_v46 = vld [vmem:[%s2687_s3 + $0x18] sm:$0xf0]  ;;  %v220_v47 = vadd.f32 %v1754_v40, %v152_v38  ;;  %v221_v48 = vadd.f32 %v1754_v40, %v153_v39  ;;  %v1386_v49 = vor.u32 %v1442_v44, %v1385_v43  ;;  %v1377_v51 = vld [vmem:[%s2687_s3] sm:$0xf]  ;;  %v1440_v52 = vld [vmem:[%s2687_s3 + $0x4] sm:$0xf0] }
   0xc   :  { %478 = vmatpush.bf16.msra.mxu0 %v1418_v16  ;;  %1616 = vmatpush.bf16.msra.mxu2 %v1418_v16  ;;  %v1390_v50 = vor.u32 %v1441_v45, %v1387_v46  ;;  %v1439_v53 = vld [vmem:[%s2687_s3 + $0x4] sm:$0xf]  ;;  %v1379_v54 = vld [vmem:[%s2687_s3 + $0x8] sm:$0xf0]  ;;  %v1378_v57 = vor.u32 %v1440_v52, %v1377_v51  ;;  %v1584_v6 = vld [vmem:[%s2688_s0 + $0x10] sm:$0xff]  }
   0xd   :  { %647 = vmatpush.bf16.msra.mxu1 %v1422_v17  ;;  %1624 = vmatpush.bf16.msra.mxu3 %v1422_v17  ;;  %v284_v55 = vmax.f32 %v220_v47, 0.0  ;;  %v285_v56 = vmax.f32 %v221_v48, 0.0  ;;  %v1583_v58 = vld [vmem:[%s2688_s0 + $0x8] sm:$0xff]   ;;  %v1382_v59 = vor.u32 %v1439_v53, %v1379_v54  ;;  %v1598_v5 = vld [vmem:[%s2688_s0 + $0x80] sm:$0xff]   ;;  %v1465_v12 = vunpack.c.l.bf16 %v1584_v6  ;;  %v1585_v26 = vld [vmem:[%s2688_s0 + $0x18] sm:$0xff]  }
   0xe   :  { %v1461_v61 = vunpack.c.l.bf16 %v1583_v58  ;;  %v1462_v62 = vunpack.c.h.bf16 %v1583_v58  ;;  %v1521_v7 = vunpack.c.l.bf16 %v1598_v5  ;;  %v1522_v8 = vunpack.c.h.bf16 %v1598_v5  ;;  %v1599_v25 = vld [vmem:[%s2688_s0 + $0x88] sm:$0xff]   ;;  %v1600_v47 = vld [vmem:[%s2688_s0 + $0x90] sm:$0xff]   ;;  %v1586_v48 = vld [vmem:[%s2688_s0 + $0x20] sm:$0xff]  }
   0xf   :  { %v348_v60 = vpack.c.bf16 %v285_v56, %v284_v55  ;;  %v1466_v13 = vunpack.c.h.bf16 %v1584_v6  ;;  %v156_v18 = vmul.f32 %v1735_v31, %v1465_v12  ;;  %v1525_v27 = vunpack.c.l.bf16 %v1599_v25 }
  0x10   :  { %479 = vmatpush.bf16.msra.mxu0 %v1410_v22  ;;  %1617 = vmatpush.bf16.msra.mxu2 %v1410_v22  ;;  %v154_v63 = vmul.f32 %v1735_v31, %v1461_v61  ;;  %v155_v0 = vmul.f32 %v1735_v31, %v1462_v62  ;;  %v184_v9 = vmul.f32 %v1735_v31, %v1521_v7  ;;  %v1526_v28 = vunpack.c.h.bf16 %v1599_v25 }
  0x11   :  { %648 = vmatpush.bf16.msra.mxu1 %v1414_v24  ;;  %1625 = vmatpush.bf16.msra.mxu3 %v1414_v24  ;;  %v185_v10 = vmul.f32 %v1735_v31, %v1522_v8  ;;  %v157_v19 = vmul.f32 %v1735_v31, %v1466_v13  ;;  %v224_v21 = vadd.f32 %v1754_v40, %v156_v18  ;;  %v1470_v34 = vunpack.c.h.bf16 %v1585_v26 }
  0x12   :  { %v222_v1 = vadd.f32 %v1754_v40, %v154_v63  ;;  %v223_v2 = vadd.f32 %v1754_v40, %v155_v0  ;;  %v252_v14 = vadd.f32 %v1754_v40, %v184_v9  ;;  %v186_v29 = vmul.f32 %v1735_v31, %v1525_v27 }
  0x13   :  { %v253_v15 = vadd.f32 %v1754_v40, %v185_v10  ;;  %v225_v22 = vadd.f32 %v1754_v40, %v157_v19  ;;  %v288_v23 = vmax.f32 %v224_v21, 0.0  ;;  %v187_v30 = vmul.f32 %v1735_v31, %v1526_v28 }
  0x14   :  { %480 = vmatpush.bf16.msra.mxu0 %v1402_v32  ;;  %1618 = vmatpush.bf16.msra.mxu2 %v1402_v32  ;;  %v286_v3 = vmax.f32 %v222_v1, 0.0  ;;  %v287_v4 = vmax.f32 %v223_v2, 0.0  ;;  %v316_v16 = vmax.f32 %v252_v14, 0.0  ;;  %v254_v35 = vadd.f32 %v1754_v40, %v186_v29 }
  0x15   :  { %649 = vmatpush.bf16.msra.mxu1 %v1406_v33  ;;  %1626 = vmatpush.bf16.msra.mxu3 %v1406_v33  ;;  %v317_v17 = vmax.f32 %v253_v15, 0.0  ;;  %v289_v24 = vmax.f32 %v225_v22, 0.0  ;;  %v1469_v33 = vunpack.c.l.bf16 %v1585_v26  ;;  %v255_v36 = vadd.f32 %v1754_v40, %v187_v30 }
  0x16   :  { %v349_v11 = vpack.c.bf16 %v287_v4, %v286_v3  ;;  %v318_v37 = vmax.f32 %v254_v35, 0.0  ;;  %v1473_v54 = vunpack.c.l.bf16 %v1586_v48  ;;  %v1474_v55 = vunpack.c.h.bf16 %v1586_v48  ;;  %v1601_v3 = vld [vmem:[%s2688_s0 + $0x98] sm:$0xff]   ;;  %v1587_v4 = vld [vmem:[%s2688_s0 + $0x28] sm:$0xff]  }
  0x17   :  { %v364_v20 = vpack.c.bf16 %v317_v17, %v316_v16  ;;  %v350_v32 = vpack.c.bf16 %v289_v24, %v288_v23  ;;  %v319_v38 = vmax.f32 %v255_v36, 0.0  ;;  %v158_v39 = vmul.f32 %v1735_v31, %v1469_v33  ;;  %v1602_v23 = vld [vmem:[%s2688_s0 + $0xa0] sm:$0xff]   ;;  %v1588_v24 = vld [vmem:[%s2688_s0 + $0x30] sm:$0xff]  }
  0x18   :  { %481 = vmatpush.bf16.msra.mxu0 %v1394_v41  ;;  %1619 = vmatpush.bf16.msra.mxu2 %v1394_v41  ;;  %v159_v41 = vmul.f32 %v1735_v31, %v1470_v34  ;;  %v161_v61 = vmul.f32 %v1735_v31, %v1474_v55  ;;  %v1533_v5 = vunpack.c.l.bf16 %v1601_v3  ;;  %v1534_v6 = vunpack.c.h.bf16 %v1601_v3 }
  0x19   :  { %650 = vmatpush.bf16.msra.mxu1 %v1398_v42  ;;  %1627 = vmatpush.bf16.msra.mxu3 %v1398_v42  ;;  %v365_v42 = vpack.c.bf16 %v319_v38, %v318_v37  ;;  %v226_v43 = vadd.f32 %v1754_v40, %v158_v39  ;;  %v1477_v10 = vunpack.c.l.bf16 %v1587_v4  ;;  %v1537_v25 = vunpack.c.l.bf16 %v1602_v23 }
  0x1a   :  { %v227_v44 = vadd.f32 %v1754_v40, %v159_v41  ;;  %v229_v0 = vadd.f32 %v1754_v40, %v161_v61  ;;  %v190_v7 = vmul.f32 %v1735_v31, %v1533_v5  ;;  %v191_v8 = vmul.f32 %v1735_v31, %v1534_v6 }
  0x1b   :  { %v290_v45 = vmax.f32 %v226_v43, 0.0  ;;  %v162_v16 = vmul.f32 %v1735_v31, %v1477_v10  ;;  %v1538_v26 = vunpack.c.h.bf16 %v1602_v23  ;;  %v192_v27 = vmul.f32 %v1735_v31, %v1537_v25 }
  0x1c   :  { %482 = vmatpush.bf16.msra.mxu0 %v1386_v49  ;;  %1620 = vmatpush.bf16.msra.mxu2 %v1386_v49  ;;  %v291_v46 = vmax.f32 %v227_v44, 0.0  ;;  %v1529_v49 = vunpack.c.l.bf16 %v1600_v47  ;;  %v293_v2 = vmax.f32 %v229_v0, 0.0  ;;  %v258_v12 = vadd.f32 %v1754_v40, %v190_v7 }
  0x1d   :  { %651 = vmatpush.bf16.msra.mxu1 %v1390_v50  ;;  %1628 = vmatpush.bf16.msra.mxu3 %v1390_v50  ;;  %v1530_v50 = vunpack.c.h.bf16 %v1600_v47  ;;  %v259_v13 = vadd.f32 %v1754_v40, %v191_v8  ;;  %v230_v19 = vadd.f32 %v1754_v40, %v162_v16  ;;  %v193_v28 = vmul.f32 %v1735_v31, %v1538_v26 }
  0x1e   :  { %v188_v51 = vmul.f32 %v1735_v31, %v1529_v49  ;;  %v351_v53 = vpack.c.bf16 %v291_v46, %v290_v45  ;;  %v322_v14 = vmax.f32 %v258_v12, 0.0  ;;  %v1481_v30 = vunpack.c.l.bf16 %v1588_v24  ;;  %v1603_v45 = vld [vmem:[%s2688_s0 + $0xa8] sm:$0xff]   ;;  %v1589_v46 = vld [vmem:[%s2688_s0 + $0x38] sm:$0xff]  }
  0x1f   :  { %v189_v52 = vmul.f32 %v1735_v31, %v1530_v50  ;;  %v323_v15 = vmax.f32 %v259_v13, 0.0  ;;  %v294_v21 = vmax.f32 %v230_v19, 0.0  ;;  %v260_v33 = vadd.f32 %v1754_v40, %v192_v27 }
  0x20   :  { %483 = vmatpush.bf16.msra.mxu0 %v1378_v57  ;;  %1621 = vmatpush.bf16.msra.mxu2 %v1378_v57  ;;  %v256_v56 = vadd.f32 %v1754_v40, %v188_v51  ;;  %v261_v34 = vadd.f32 %v1754_v40, %v193_v28  ;;  %v164_v37 = vmul.f32 %v1735_v31, %v1481_v30  ;;  %v1541_v47 = vunpack.c.l.bf16 %v1603_v45 }
  0x21   :  { %652 = vmatpush.bf16.msra.mxu1 %v1382_v59  ;;  %1629 = vmatpush.bf16.msra.mxu3 %v1382_v59  ;;  %v257_v57 = vadd.f32 %v1754_v40, %v189_v52  ;;  %v367_v18 = vpack.c.bf16 %v323_v15, %v322_v14  ;;  %v324_v35 = vmax.f32 %v260_v33, 0.0  ;;  %v1542_v48 = vunpack.c.h.bf16 %v1603_v45 }
  0x22   :  { %v320_v58 = vmax.f32 %v256_v56, 0.0  ;;  %v325_v36 = vmax.f32 %v261_v34, 0.0  ;;  %v232_v41 = vadd.f32 %v1754_v40, %v164_v37  ;;  %v194_v49 = vmul.f32 %v1735_v31, %v1541_v47 }
  0x23   :  { %484 = vmatmul.bf16.vlgmr.msra.gmra.mxu0 %v348_v60  ;;  %564 = vmatmul.bf16.vlgmr.msra.gmra.mxu2 %v364_v20  ;;  %v321_v59 = vmax.f32 %v257_v57, 0.0  ;;  %v195_v50 = vmul.f32 %v1735_v31, %v1542_v48  ;;  %v1485_v52 = vunpack.c.l.bf16 %v1589_v46 }
  0x24   :  { %653 = vmatmul.bf16.vlgmr.msra.gmra.mxu1 %v348_v60  ;;  %733 = vmatmul.bf16.vlgmr.msra.gmra.mxu3 %v364_v20  ;;  %v160_v60 = vmul.f32 %v1735_v31, %v1473_v54  ;;  %v368_v39 = vpack.c.bf16 %v325_v36, %v324_v35  ;;  %v296_v43 = vmax.f32 %v232_v41, 0.0  ;;  %v262_v54 = vadd.f32 %v1754_v40, %v194_v49 }
  0x25   :  { %v366_v62 = vpack.c.bf16 %v321_v59, %v320_v58  ;;  %v263_v55 = vadd.f32 %v1754_v40, %v195_v50  ;;  %v166_v58 = vmul.f32 %v1735_v31, %v1485_v52 }
  0x26   :  { %v228_v63 = vadd.f32 %v1754_v40, %v160_v60  ;;  %v326_v56 = vmax.f32 %v262_v54, 0.0 }
  0x27   :  { %v327_v57 = vmax.f32 %v263_v55, 0.0  ;;  %v234_v61 = vadd.f32 %v1754_v40, %v166_v58  ;;  %v1592_v58 = vld [vmem:[%s2688_s0 + $0x50] sm:$0xff]  }
  0x28   :  { %v292_v1 = vmax.f32 %v228_v63, 0.0 }
  0x29   :  { %v369_v60 = vpack.c.bf16 %v327_v57, %v326_v56  ;;  %v298_v63 = vmax.f32 %v234_v61, 0.0  ;;  %v1606_v56 = vld [vmem:[%s2688_s0 + $0xc0] sm:$0xff]  }
  0x2a   :  { %v352_v9 = vpack.c.bf16 %v293_v2, %v292_v1  ;;  %v1604_v1 = vld [vmem:[%s2688_s0 + $0xb0] sm:$0xff]   ;;  %v1590_v2 = vld [vmem:[%s2688_s0 + $0x40] sm:$0xff]  }
  0x2b   :  { %v1545_v3 = vunpack.c.l.bf16 %v1604_v1  ;;  %v1489_v8 = vunpack.c.l.bf16 %v1590_v2 }
  0x2d   :  { %v196_v5 = vmul.f32 %v1735_v31, %v1545_v3  ;;  %v168_v14 = vmul.f32 %v1735_v31, %v1489_v8 }
  0x2f   :  { %v264_v10 = vadd.f32 %v1754_v40, %v196_v5 }
  0x31   :  { %v328_v12 = vmax.f32 %v264_v10, 0.0 }
  0x33   :  { %489 = vmatmul.bf16.gmra.mxu0 %v349_v11  ;;  %569 = vmatmul.bf16.gmra.mxu2 %v365_v42 }
  0x34   :  { %658 = vmatmul.bf16.gmra.mxu1 %v349_v11  ;;  %738 = vmatmul.bf16.gmra.mxu3 %v365_v42  ;;  %v1478_v11 = vunpack.c.h.bf16 %v1587_v4  ;;  %v1546_v4 = vunpack.c.h.bf16 %v1604_v1  ;;  %v1498_v1 = vunpack.c.h.bf16 %v1592_v58 }
  0x36   :  { %v163_v17 = vmul.f32 %v1735_v31, %v1478_v11  ;;  %v197_v6 = vmul.f32 %v1735_v31, %v1546_v4 }
  0x38   :  { %v231_v20 = vadd.f32 %v1754_v40, %v163_v17  ;;  %v265_v11 = vadd.f32 %v1754_v40, %v197_v6  ;;  %v236_v17 = vadd.f32 %v1754_v40, %v168_v14  ;;  %v173_v14 = vmul.f32 %v1735_v31, %v1498_v1 }
  0x3a   :  { %v295_v22 = vmax.f32 %v231_v20, 0.0  ;;  %v329_v13 = vmax.f32 %v265_v11, 0.0  ;;  %v300_v19 = vmax.f32 %v236_v17, 0.0 }
  0x3c   :  { %v353_v29 = vpack.c.bf16 %v295_v22, %v294_v21  ;;  %v370_v16 = vpack.c.bf16 %v329_v13, %v328_v12  ;;  %v1605_v21 = vld [vmem:[%s2688_s0 + $0xb8] sm:$0xff]   ;;  %v1591_v22 = vld [vmem:[%s2688_s0 + $0x48] sm:$0xff]  }
  0x3d   :  { %v1549_v23 = vunpack.c.l.bf16 %v1605_v21  ;;  %v1493_v28 = vunpack.c.l.bf16 %v1591_v22 }
  0x3f   :  { %v198_v25 = vmul.f32 %v1735_v31, %v1549_v23  ;;  %v170_v37 = vmul.f32 %v1735_v31, %v1493_v28  ;;  %v1593_v28 = vld [vmem:[%s2688_s0 + $0x58] sm:$0xff]  }
  0x43   :  { %494 = vmatmul.bf16.gmra.mxu0 %v350_v32  ;;  %574 = vmatmul.bf16.gmra.mxu2 %v366_v62 }
  0x44   :  { %663 = vmatmul.bf16.gmra.mxu1 %v350_v32  ;;  %743 = vmatmul.bf16.gmra.mxu3 %v366_v62  ;;  %v1482_v32 = vunpack.c.h.bf16 %v1588_v24  ;;  %v1550_v24 = vunpack.c.h.bf16 %v1605_v21 }
  0x46   :  { %v165_v38 = vmul.f32 %v1735_v31, %v1482_v32  ;;  %v199_v26 = vmul.f32 %v1735_v31, %v1550_v24  ;;  %v266_v32 = vadd.f32 %v1754_v40, %v198_v25 }
  0x48   :  { %v233_v42 = vadd.f32 %v1754_v40, %v165_v38  ;;  %v267_v33 = vadd.f32 %v1754_v40, %v199_v26  ;;  %v330_v36 = vmax.f32 %v266_v32, 0.0 }
  0x4a   :  { %v297_v44 = vmax.f32 %v233_v42, 0.0  ;;  %v238_v42 = vadd.f32 %v1754_v40, %v170_v37 }
  0x4c   :  { %v354_v51 = vpack.c.bf16 %v297_v44, %v296_v43  ;;  %v302_v54 = vmax.f32 %v238_v42, 0.0 }
  0x53   :  { %499 = vmatmul.bf16.gmra.mxu0 %v351_v53  ;;  %579 = vmatmul.bf16.gmra.mxu2 %v367_v18 }
  0x54   :  { %668 = vmatmul.bf16.gmra.mxu1 %v351_v53  ;;  %748 = vmatmul.bf16.gmra.mxu3 %v367_v18  ;;  %v1486_v53 = vunpack.c.h.bf16 %v1589_v46 }
  0x56   :  { %v167_v59 = vmul.f32 %v1735_v31, %v1486_v53 }
  0x58   :  { %v235_v62 = vadd.f32 %v1754_v40, %v167_v59  ;;  %v1553_v59 = vunpack.c.l.bf16 %v1606_v56 }
  0x5a   :  { %v299_v0 = vmax.f32 %v235_v62, 0.0  ;;  %v200_v61 = vmul.f32 %v1735_v31, %v1553_v59 }
  0x5c   :  { %v355_v7 = vpack.c.bf16 %v299_v0, %v298_v63  ;;  %v1497_v0 = vunpack.c.l.bf16 %v1592_v58  ;;  %v268_v3 = vadd.f32 %v1754_v40, %v200_v61 }
  0x5e   :  { %v332_v11 = vmax.f32 %v268_v3, 0.0  ;;  %v172_v13 = vmul.f32 %v1735_v31, %v1497_v0 }
  0x63   :  { %504 = vmatmul.bf16.gmra.mxu0 %v352_v9  ;;  %584 = vmatmul.bf16.gmra.mxu2 %v368_v39 }
  0x64   :  { %673 = vmatmul.bf16.gmra.mxu1 %v352_v9  ;;  %753 = vmatmul.bf16.gmra.mxu3 %v368_v39  ;;  %v1490_v9 = vunpack.c.h.bf16 %v1590_v2  ;;  %v331_v39 = vmax.f32 %v267_v33, 0.0 }
  0x66   :  { %v169_v15 = vmul.f32 %v1735_v31, %v1490_v9  ;;  %v371_v41 = vpack.c.bf16 %v331_v39, %v330_v36  ;;  %v1502_v39 = vunpack.c.h.bf16 %v1593_v28 }
  0x68   :  { %v237_v18 = vadd.f32 %v1754_v40, %v169_v15 }
  0x6a   :  { %v301_v20 = vmax.f32 %v237_v18, 0.0  ;;  %v240_v18 = vadd.f32 %v1754_v40, %v172_v13 }
  0x6c   :  { %v356_v27 = vpack.c.bf16 %v301_v20, %v300_v19  ;;  %v241_v19 = vadd.f32 %v1754_v40, %v173_v14  ;;  %v304_v32 = vmax.f32 %v240_v18, 0.0  ;;  %v1608_v14 = vld [vmem:[%s2688_s0 + $0xd0] sm:$0xff]  }
  0x6d   :  { %v1561_v18 = vunpack.c.l.bf16 %v1608_v14 }
  0x6e   :  { %v305_v33 = vmax.f32 %v241_v19, 0.0  ;;  %v1562_v19 = vunpack.c.h.bf16 %v1608_v14 }
  0x73   :  { %509 = vmatmul.bf16.gmra.mxu0 %v353_v29  ;;  %589 = vmatmul.bf16.gmra.mxu2 %v369_v60 }
  0x74   :  { %678 = vmatmul.bf16.gmra.mxu1 %v353_v29  ;;  %758 = vmatmul.bf16.gmra.mxu3 %v369_v60  ;;  %v1494_v29 = vunpack.c.h.bf16 %v1591_v22  ;;  %v1554_v60 = vunpack.c.h.bf16 %v1606_v56 }
  0x76   :  { %v171_v38 = vmul.f32 %v1735_v31, %v1494_v29  ;;  %v201_v62 = vmul.f32 %v1735_v31, %v1554_v60 }
  0x78   :  { %v239_v43 = vadd.f32 %v1754_v40, %v171_v38  ;;  %v269_v4 = vadd.f32 %v1754_v40, %v201_v62  ;;  %v1501_v38 = vunpack.c.l.bf16 %v1593_v28 }
  0x7a   :  { %v303_v55 = vmax.f32 %v239_v43, 0.0  ;;  %v333_v15 = vmax.f32 %v269_v4, 0.0  ;;  %v358_v43 = vpack.c.bf16 %v305_v33, %v304_v32 }
  0x7c   :  { %v357_v63 = vpack.c.bf16 %v303_v55, %v302_v54  ;;  %v372_v17 = vpack.c.bf16 %v333_v15, %v332_v11 }
  0x83   :  { %514 = vmatmul.bf16.gmra.mxu0 %v354_v51  ;;  %594 = vmatmul.bf16.gmra.mxu2 %v370_v16 }
  0x84   :  { %683 = vmatmul.bf16.gmra.mxu1 %v354_v51  ;;  %763 = vmatmul.bf16.gmra.mxu3 %v370_v16 }
  0x93   :  { %519 = vmatmul.bf16.gmra.mxu0 %v355_v7  ;;  %599 = vmatmul.bf16.gmra.mxu2 %v371_v41 }
  0x94   :  { %688 = vmatmul.bf16.gmra.mxu1 %v355_v7  ;;  %768 = vmatmul.bf16.gmra.mxu3 %v371_v41 }
  0xa0   :  { %v485_v30 = vpop.f32.mrf.mxu0 }
  0xa1   :  { %v654_v34 = vpop.f32.mrf.mxu1  ;;  %v1091_v45 = vmul.f32 %v485_v30, %v485_v30 }
  0xa2   :  { %v814_v35 = vpack.c.bf16 %v654_v34, %v485_v30  ;;  %v1092_v49 = vmul.f32 %v654_v34, %v654_v34 }
  0xa3   :  { %524 = vmatmul.bf16.gmra.mxu0 %v356_v27  ;;  %604 = vmatmul.bf16.gmra.mxu2 %v372_v17 }
  0xa4   :  { %878 = vst [vmem:[%s2691_s4] sm:$0xff] %v814_v35  ;;  %693 = vmatmul.bf16.gmra.mxu1 %v356_v27  ;;  %773 = vmatmul.bf16.gmra.mxu3 %v372_v17 }
  0xa6   :  { %v1924_v24 = vpop.f32.mrf.mxu2 }
  0xa7   :  { %v1929_v29 = vpop.f32.mrf.mxu3 }
  0xa8   :  { %v487_v44 = vpop.f32.mrf.mxu0  ;;  %v846_v36 = vpack.c.bf16 %v1929_v29, %v1924_v24 }
  0xa9   :  { %v1093_v46 = vmul.f32 %v487_v44, %v487_v44  ;;  %v656_v47 = vpop.f32.mrf.mxu1  ;;  %v942_v48 = vadd.f32 %v487_v44, %v485_v30 }
  0xaa   :  { %v815_v50 = vpack.c.bf16 %v656_v47, %v487_v44  ;;  %v1094_v51 = vmul.f32 %v656_v47, %v656_v47  ;;  %v1011_v52 = vadd.f32 %v656_v47, %v654_v34  ;;  %v1607_v34 = vld [vmem:[%s2688_s0 + $0xc8] sm:$0xff]   ;;  %910 = vst [vmem:[%s2691_s4 + $0x100] sm:$0xff] %v846_v36 }
  0xab   :  { %v1219_v53 = vadd.f32 %v1093_v46, %v1091_v45  ;;  %v1557_v37 = vunpack.c.l.bf16 %v1607_v34  ;;  %v1558_v41 = vunpack.c.h.bf16 %v1607_v34 }
  0xac   :  { %879 = vst [vmem:[%s2691_s4 + $0x8] sm:$0xff] %v815_v50  ;;  %v1288_v57 = vadd.f32 %v1094_v51, %v1092_v49  ;;  %v174_v50 = vmul.f32 %v1735_v31, %v1501_v38  ;;  %v175_v51 = vmul.f32 %v1735_v31, %v1502_v39 }
  0xad   :  { %v202_v42 = vmul.f32 %v1735_v31, %v1557_v37  ;;  %v203_v44 = vmul.f32 %v1735_v31, %v1558_v41 }
  0xae   :  { %v243_v0 = vadd.f32 %v1754_v40, %v175_v51 }
  0xaf   :  { %v270_v46 = vadd.f32 %v1754_v40, %v202_v42  ;;  %v1949_v56 = vpop.f32.mrf.mxu3 }
  0xb0   :  { %v490_v2 = vpop.f32.mrf.mxu0  ;;  %v307_v11 = vmax.f32 %v243_v0, 0.0 }
  0xb1   :  { %v943_v5 = vadd.f32 %v942_v48, %v490_v2  ;;  %v1095_v6 = vmul.f32 %v490_v2, %v490_v2  ;;  %v659_v7 = vpop.f32.mrf.mxu1  ;;  %v334_v61 = vmax.f32 %v270_v46, 0.0 }
  0xb2   :  { %v816_v8 = vpack.c.bf16 %v659_v7, %v490_v2  ;;  %v1012_v9 = vadd.f32 %v1011_v52, %v659_v7  ;;  %v1096_v10 = vmul.f32 %v659_v7, %v659_v7  ;;  %v1947_v52 = vpop.f32.mrf.mxu2 }
  0xb3   :  { %v1220_v12 = vadd.f32 %v1219_v53, %v1095_v6  ;;  %529 = vmatmul.bf16.gmra.mxu0 %v357_v63  ;;  %v847_v59 = vpack.c.bf16 %v1949_v56, %v1947_v52 }
  0xb4   :  { %880 = vst [vmem:[%s2691_s4 + $0x10] sm:$0xff] %v816_v8  ;;  %v1289_v16 = vadd.f32 %v1288_v57, %v1096_v10  ;;  %698 = vmatmul.bf16.gmra.mxu1 %v357_v63  ;;  %v271_v57 = vadd.f32 %v1754_v40, %v203_v44  ;;  %v242_v63 = vadd.f32 %v1754_v40, %v174_v50 }
  0xb5   :  { %911 = vst [vmem:[%s2691_s4 + $0x108] sm:$0xff] %v847_v59 }
  0xb6   :  { %v335_v62 = vmax.f32 %v271_v57, 0.0  ;;  %v306_v6 = vmax.f32 %v242_v63, 0.0 }
  0xb8   :  { %v492_v20 = vpop.f32.mrf.mxu0  ;;  %v373_v1 = vpack.c.bf16 %v335_v62, %v334_v61 }
  0xb9   :  { %v1097_v21 = vmul.f32 %v492_v20, %v492_v20  ;;  %v661_v22 = vpop.f32.mrf.mxu1  ;;  %v944_v23 = vadd.f32 %v943_v5, %v492_v20 }
  0xba   :  { %v817_v25 = vpack.c.bf16 %v661_v22, %v492_v20  ;;  %v1098_v26 = vmul.f32 %v661_v22, %v661_v22  ;;  %v1013_v27 = vadd.f32 %v1012_v9, %v661_v22  ;;  %609 = vmatmul.bf16.gmra.mxu2 %v373_v1  ;;  %778 = vmatmul.bf16.gmra.mxu3 %v373_v1  ;;  %v1962_v7 = vpop.f32.mrf.mxu2  ;;  %v1609_v1 = vld [vmem:[%s2688_s0 + $0xd8] sm:$0xff]  }
  0xbb   :  { %v1221_v30 = vadd.f32 %v1220_v12, %v1097_v21  ;;  %v1964_v12 = vpop.f32.mrf.mxu3  ;;  %v359_v20 = vpack.c.bf16 %v307_v11, %v306_v6  ;;  %v1565_v6 = vunpack.c.l.bf16 %v1609_v1 }
  0xbc   :  { %881 = vst [vmem:[%s2691_s4 + $0x18] sm:$0xff] %v817_v25  ;;  %v1290_v35 = vadd.f32 %v1289_v16, %v1098_v26  ;;  %v1594_v16 = vld [vmem:[%s2688_s0 + $0x60] sm:$0xff]   ;;  %v848_v17 = vpack.c.bf16 %v1964_v12, %v1962_v7  ;;  %v205_v25 = vmul.f32 %v1735_v31, %v1562_v19 }
  0xbd   :  { %v1505_v21 = vunpack.c.l.bf16 %v1594_v16  ;;  %v1506_v22 = vunpack.c.h.bf16 %v1594_v16 }
  0xbe   :  { %912 = vst [vmem:[%s2691_s4 + $0x110] sm:$0xff] %v848_v17  ;;  %v273_v38 = vadd.f32 %v1754_v40, %v205_v25 }
  0xbf   :  { %v176_v41 = vmul.f32 %v1735_v31, %v1505_v21  ;;  %v177_v42 = vmul.f32 %v1735_v31, %v1506_v22 }
  0xc0   :  { %v495_v45 = vpop.f32.mrf.mxu0  ;;  %v337_v46 = vmax.f32 %v273_v38, 0.0 }
  0xc1   :  { %v945_v47 = vadd.f32 %v944_v23, %v495_v45  ;;  %v1099_v48 = vmul.f32 %v495_v45, %v495_v45  ;;  %v664_v49 = vpop.f32.mrf.mxu1  ;;  %v204_v23 = vmul.f32 %v1735_v31, %v1561_v18 }
  0xc2   :  { %v818_v53 = vpack.c.bf16 %v664_v49, %v495_v45  ;;  %v1014_v54 = vadd.f32 %v1013_v27, %v664_v49  ;;  %v1100_v55 = vmul.f32 %v664_v49, %v664_v49  ;;  %v1982_v32 = vpop.f32.mrf.mxu2  ;;  %v245_v49 = vadd.f32 %v1754_v40, %v177_v42 }
  0xc3   :  { %v1222_v58 = vadd.f32 %v1221_v30, %v1099_v48  ;;  %534 = vmatmul.bf16.gmra.mxu0 %v358_v43  ;;  %v272_v33 = vadd.f32 %v1754_v40, %v204_v23  ;;  %v1985_v37 = vpop.f32.mrf.mxu3  ;;  %v244_v48 = vadd.f32 %v1754_v40, %v176_v41 }
  0xc4   :  { %882 = vst [vmem:[%s2691_s4 + $0x20] sm:$0xff] %v818_v53  ;;  %v1291_v60 = vadd.f32 %v1290_v35, %v1100_v55  ;;  %703 = vmatmul.bf16.gmra.mxu1 %v358_v43  ;;  %v849_v43 = vpack.c.bf16 %v1985_v37, %v1982_v32  ;;  %v1595_v55 = vld [vmem:[%s2688_s0 + $0x68] sm:$0xff]   ;;  %v309_v0 = vmax.f32 %v245_v49, 0.0 }
  0xc5   :  { %v336_v45 = vmax.f32 %v272_v33, 0.0  ;;  %v308_v63 = vmax.f32 %v244_v48, 0.0 }
  0xc6   :  { %913 = vst [vmem:[%s2691_s4 + $0x118] sm:$0xff] %v849_v43 }
  0xc8   :  { %v497_v2 = vpop.f32.mrf.mxu0 }
  0xc9   :  { %v1101_v3 = vmul.f32 %v497_v2, %v497_v2  ;;  %v666_v4 = vpop.f32.mrf.mxu1  ;;  %v946_v5 = vadd.f32 %v945_v47, %v497_v2  ;;  %v374_v47 = vpack.c.bf16 %v337_v46, %v336_v45 }
  0xca   :  { %v819_v8 = vpack.c.bf16 %v666_v4, %v497_v2  ;;  %v1102_v9 = vmul.f32 %v666_v4, %v666_v4  ;;  %v1015_v10 = vadd.f32 %v1014_v54, %v666_v4  ;;  %v2003_v57 = vpop.f32.mrf.mxu2 }
  0xcb   :  { %v1223_v13 = vadd.f32 %v1222_v58, %v1101_v3  ;;  %614 = vmatmul.bf16.gmra.mxu2 %v374_v47  ;;  %783 = vmatmul.bf16.gmra.mxu3 %v374_v47  ;;  %v2005_v61 = vpop.f32.mrf.mxu3  ;;  %v1509_v3 = vunpack.c.l.bf16 %v1595_v55 }
  0xcc   :  { %883 = vst [vmem:[%s2691_s4 + $0x28] sm:$0xff] %v819_v8  ;;  %v1292_v15 = vadd.f32 %v1291_v60, %v1102_v9  ;;  %v850_v4 = vpack.c.bf16 %v2005_v61, %v2003_v57  ;;  %v1566_v8 = vunpack.c.h.bf16 %v1609_v1  ;;  %v360_v9 = vpack.c.bf16 %v309_v0, %v308_v63 }
  0xcd   :  { %v178_v14 = vmul.f32 %v1735_v31, %v1509_v3 }
  0xce   :  { %914 = vst [vmem:[%s2691_s4 + $0x120] sm:$0xff] %v850_v4  ;;  %v207_v11 = vmul.f32 %v1735_v31, %v1566_v8 }
  0xd0   :  { %v500_v26 = vpop.f32.mrf.mxu0 }
  0xd1   :  { %v947_v27 = vadd.f32 %v946_v5, %v500_v26  ;;  %v1103_v28 = vmul.f32 %v500_v26, %v500_v26  ;;  %v669_v30 = vpop.f32.mrf.mxu1  ;;  %v1510_v5 = vunpack.c.h.bf16 %v1595_v55  ;;  %v1596_v55 = vld [vmem:[%s2688_s0 + $0x70] sm:$0xff]  }
  0xd2   :  { %v820_v34 = vpack.c.bf16 %v669_v30, %v500_v26  ;;  %v1016_v35 = vadd.f32 %v1015_v10, %v669_v30  ;;  %v1104_v36 = vmul.f32 %v669_v30, %v669_v30  ;;  %v206_v10 = vmul.f32 %v1735_v31, %v1565_v6  ;;  %v2022_v19 = vpop.f32.mrf.mxu2 }
  0xd3   :  { %v1224_v39 = vadd.f32 %v1223_v13, %v1103_v28  ;;  %539 = vmatmul.bf16.gmra.mxu0 %v359_v20  ;;  %v179_v18 = vmul.f32 %v1735_v31, %v1510_v5  ;;  %v2025_v25 = vpop.f32.mrf.mxu3  ;;  %v275_v26 = vadd.f32 %v1754_v40, %v207_v11  ;;  %v1513_v63 = vunpack.c.l.bf16 %v1596_v55 }
  0xd4   :  { %884 = vst [vmem:[%s2691_s4 + $0x30] sm:$0xff] %v820_v34  ;;  %v1293_v44 = vadd.f32 %v1292_v15, %v1104_v36  ;;  %708 = vmatmul.bf16.gmra.mxu1 %v359_v20  ;;  %v274_v20 = vadd.f32 %v1754_v40, %v206_v10  ;;  %v851_v28 = vpack.c.bf16 %v2025_v25, %v2022_v19  ;;  %v1514_v0 = vunpack.c.h.bf16 %v1596_v55 }
  0xd5   :  { %v339_v34 = vmax.f32 %v275_v26, 0.0  ;;  %v247_v36 = vadd.f32 %v1754_v40, %v179_v18 }
  0xd6   :  { %v338_v33 = vmax.f32 %v274_v20, 0.0  ;;  %915 = vst [vmem:[%s2691_s4 + $0x128] sm:$0xff] %v851_v28  ;;  %v181_v18 = vmul.f32 %v1735_v31, %v1514_v0 }
  0xd7   :  { %v311_v49 = vmax.f32 %v247_v36, 0.0 }
  0xd8   :  { %v502_v50 = vpop.f32.mrf.mxu0  ;;  %v375_v38 = vpack.c.bf16 %v339_v34, %v338_v33 }
  0xd9   :  { %v1105_v51 = vmul.f32 %v502_v50, %v502_v50  ;;  %v671_v53 = vpop.f32.mrf.mxu1  ;;  %v948_v54 = vadd.f32 %v947_v27, %v502_v50 }
  0xda   :  { %v821_v58 = vpack.c.bf16 %v671_v53, %v502_v50  ;;  %v1106_v59 = vmul.f32 %v671_v53, %v671_v53  ;;  %v1017_v60 = vadd.f32 %v1016_v35, %v671_v53  ;;  %v246_v35 = vadd.f32 %v1754_v40, %v178_v14  ;;  %v2038_v45 = vpop.f32.mrf.mxu2  ;;  %v1610_v53 = vld [vmem:[%s2688_s0 + $0xe0] sm:$0xff]  }
  0xdb   :  { %v1225_v62 = vadd.f32 %v1224_v39, %v1105_v51  ;;  %619 = vmatmul.bf16.gmra.mxu2 %v375_v38  ;;  %788 = vmatmul.bf16.gmra.mxu3 %v375_v38  ;;  %v2040_v50 = vpop.f32.mrf.mxu3 }
  0xdc   :  { %885 = vst [vmem:[%s2691_s4 + $0x38] sm:$0xff] %v821_v58  ;;  %v1294_v2 = vadd.f32 %v1293_v44, %v1106_v59  ;;  %v310_v44 = vmax.f32 %v246_v35, 0.0  ;;  %v852_v58 = vpack.c.bf16 %v2040_v50, %v2038_v45  ;;  %v1569_v59 = vunpack.c.l.bf16 %v1610_v53 }
  0xde   :  { %916 = vst [vmem:[%s2691_s4 + $0x130] sm:$0xff] %v852_v58  ;;  %v208_v1 = vmul.f32 %v1735_v31, %v1569_v59 }
  0xe0   :  { %v505_v13 = vpop.f32.mrf.mxu0 }
  0xe1   :  { %v949_v15 = vadd.f32 %v948_v54, %v505_v13  ;;  %v1107_v16 = vmul.f32 %v505_v13, %v505_v13  ;;  %v674_v17 = vpop.f32.mrf.mxu1 }
  0xe2   :  { %v822_v21 = vpack.c.bf16 %v674_v17, %v505_v13  ;;  %v1018_v22 = vadd.f32 %v1017_v60, %v674_v17  ;;  %v1108_v23 = vmul.f32 %v674_v17, %v674_v17  ;;  %v1570_v60 = vunpack.c.h.bf16 %v1610_v53  ;;  %v2058_v8 = vpop.f32.mrf.mxu2  ;;  %v2097_v53 = vld [vmem:[%s2689_s1] ss:$0 sm:$0xff] }
  0xe3   :  { %v1226_v27 = vadd.f32 %v1225_v62, %v1107_v16  ;;  %544 = vmatmul.bf16.gmra.mxu0 %v360_v9  ;;  %v361_v62 = vpack.c.bf16 %v311_v49, %v310_v44  ;;  %v2061_v14 = vpop.f32.mrf.mxu3  ;;  %v180_v17 = vmul.f32 %v1735_v31, %v1513_v63  ;;  %v2104_v63 = vld [vmem:[%s2690_s2] ss:$0 sm:$0xff] }
  0xe4   :  { %886 = vst [vmem:[%s2691_s4 + $0x40] sm:$0xff] %v822_v21  ;;  %v1295_v30 = vadd.f32 %v1294_v2, %v1108_v23  ;;  %713 = vmatmul.bf16.gmra.mxu1 %v360_v9  ;;  %v209_v2 = vmul.f32 %v1735_v31, %v1570_v60  ;;  %v276_v9 = vadd.f32 %v1754_v40, %v208_v1 }
  0xe5   :  { %v853_v20 = vpack.c.bf16 %v2061_v14, %v2058_v8  ;;  %v249_v31 = vadd.f32 %v1754_v40, %v181_v18 }
  0xe7   :  { %917 = vst [vmem:[%s2691_s4 + $0x138] sm:$0xff] %v853_v20  ;;  %v313_v44 = vmax.f32 %v249_v31, 0.0 }
  0xe8   :  { %v507_v39 = vpop.f32.mrf.mxu0 }
  0xe9   :  { %v950_v41 = vadd.f32 %v949_v15, %v507_v39  ;;  %v1109_v42 = vmul.f32 %v507_v39, %v507_v39  ;;  %v676_v43 = vpop.f32.mrf.mxu1  ;;  %v277_v15 = vadd.f32 %v1754_v40, %v209_v2 }
  0xea   :  { %v823_v46 = vpack.c.bf16 %v676_v43, %v507_v39  ;;  %v1019_v47 = vadd.f32 %v1018_v22, %v676_v43  ;;  %v1110_v48 = vmul.f32 %v676_v43, %v676_v43  ;;  %v340_v22 = vmax.f32 %v276_v9, 0.0  ;;  %v2076_v35 = vpop.f32.mrf.mxu2 }
  0xeb   :  { %v1227_v51 = vadd.f32 %v1226_v27, %v1109_v42  ;;  %v341_v23 = vmax.f32 %v277_v15, 0.0  ;;  %v248_v27 = vadd.f32 %v1754_v40, %v180_v17  ;;  %v1611_v40 = vld [vmem:[%s2688_s0 + $0xe8] sm:$0xff]  }
  0xec   :  { %887 = vst [vmem:[%s2691_s4 + $0x48] sm:$0xff] %v823_v46  ;;  %v1296_v54 = vadd.f32 %v1295_v30, %v1110_v48  ;;  %v1573_v49 = vunpack.c.l.bf16 %v1611_v40 }
  0xed   :  { %v376_v26 = vpack.c.bf16 %v341_v23, %v340_v22  ;;  %v312_v43 = vmax.f32 %v248_v27, 0.0 }
  0xef   :  { %624 = vmatmul.bf16.gmra.mxu2 %v376_v26  ;;  %793 = vmatmul.bf16.gmra.mxu3 %v376_v26  ;;  %v362_v55 = vpack.c.bf16 %v313_v44, %v312_v43 }
  0xf0   :  { %v510_v3 = vpop.f32.mrf.mxu0 }
  0xf1   :  { %v951_v4 = vadd.f32 %v950_v41, %v510_v3  ;;  %v1111_v5 = vmul.f32 %v510_v3, %v510_v3  ;;  %v679_v6 = vpop.f32.mrf.mxu1  ;;  %v2078_v41 = vpop.f32.mrf.mxu3 }
  0xf2   :  { %v824_v10 = vpack.c.bf16 %v679_v6, %v510_v3  ;;  %v1020_v11 = vadd.f32 %v1019_v47, %v679_v6  ;;  %v1112_v13 = vmul.f32 %v679_v6, %v679_v6  ;;  %v1597_v47 = vld [vmem:[%s2688_s0 + $0x78] sm:$0xff]   ;;  %v854_v48 = vpack.c.bf16 %v2078_v41, %v2076_v35 }
  0xf3   :  { %v1228_v16 = vadd.f32 %v1227_v51, %v1111_v5  ;;  %549 = vmatmul.bf16.gmra.mxu0 %v361_v62  ;;  %v1574_v51 = vunpack.c.h.bf16 %v1611_v40  ;;  %v1517_v58 = vunpack.c.l.bf16 %v1597_v47  ;;  %v1518_v59 = vunpack.c.h.bf16 %v1597_v47  ;;  %v1612_v40 = vld [vmem:[%s2688_s0 + $0xf0] sm:$0xff]  }
  0xf4   :  { %888 = vst [vmem:[%s2691_s4 + $0x50] sm:$0xff] %v824_v10  ;;  %v1297_v21 = vadd.f32 %v1296_v54, %v1112_v13  ;;  %718 = vmatmul.bf16.gmra.mxu1 %v361_v62  ;;  %v210_v54 = vmul.f32 %v2097_v53, %v1573_v49  ;;  %v1578_v49 = vunpack.c.h.bf16 %v1612_v40 }
  0xf5   :  { %918 = vst [vmem:[%s2691_s4 + $0x140] sm:$0xff] %v854_v48  ;;  %v211_v60 = vmul.f32 %v2097_v53, %v1574_v51  ;;  %v183_v17 = vmul.f32 %v2097_v53, %v1518_v59  ;;  %v1577_v48 = vunpack.c.l.bf16 %v1612_v40 }
  0xf6   :  { %v278_v0 = vadd.f32 %v2104_v63, %v210_v54 }
  0xf7   :  { %v279_v5 = vadd.f32 %v2104_v63, %v211_v60  ;;  %v251_v26 = vadd.f32 %v2104_v63, %v183_v17  ;;  %v212_v51 = vmul.f32 %v2097_v53, %v1577_v48 }
  0xf8   :  { %v512_v28 = vpop.f32.mrf.mxu0  ;;  %v342_v13 = vmax.f32 %v278_v0, 0.0 }
  0xf9   :  { %v952_v30 = vadd.f32 %v951_v4, %v512_v28  ;;  %v1113_v33 = vmul.f32 %v512_v28, %v512_v28  ;;  %v681_v34 = vpop.f32.mrf.mxu1  ;;  %v2107_v4 = vpop.f32.mrf.mxu2  ;;  %v315_v44 = vmax.f32 %v251_v26, 0.0  ;;  %v280_v59 = vadd.f32 %v2104_v63, %v212_v51 }
  0xfa   :  { %v825_v36 = vpack.c.bf16 %v681_v34, %v512_v28  ;;  %v1021_v38 = vadd.f32 %v1020_v11, %v681_v34  ;;  %v1114_v39 = vmul.f32 %v681_v34, %v681_v34  ;;  %v2110_v11 = vpop.f32.mrf.mxu3 }
  0xfb   :  { %v1229_v42 = vadd.f32 %v1228_v16, %v1113_v33  ;;  %v182_v16 = vmul.f32 %v2097_v53, %v1517_v58  ;;  %v855_v18 = vpack.c.bf16 %v2110_v11, %v2107_v4 }
  0xfc   :  { %889 = vst [vmem:[%s2691_s4 + $0x58] sm:$0xff] %v825_v36  ;;  %v1298_v46 = vadd.f32 %v1297_v21, %v1114_v39  ;;  %v343_v21 = vmax.f32 %v279_v5, 0.0 }
  0xfd   :  { %919 = vst [vmem:[%s2691_s4 + $0x148] sm:$0xff] %v855_v18  ;;  %v250_v23 = vadd.f32 %v2104_v63, %v182_v16 }
  0xfe   :  { %v377_v22 = vpack.c.bf16 %v343_v21, %v342_v13 }
  0xff   :  { %v314_v43 = vmax.f32 %v250_v23, 0.0 }
 0x100   :  { %v515_v62 = vpop.f32.mrf.mxu0  ;;  %629 = vmatmul.bf16.gmra.mxu2 %v377_v22  ;;  %798 = vmatmul.bf16.gmra.mxu3 %v377_v22 }
 0x101   :  { %v953_v1 = vadd.f32 %v952_v30, %v515_v62  ;;  %v1115_v2 = vmul.f32 %v515_v62, %v515_v62  ;;  %v684_v3 = vpop.f32.mrf.mxu1  ;;  %v2124_v33 = vpop.f32.mrf.mxu2  ;;  %v363_v54 = vpack.c.bf16 %v315_v44, %v314_v43 }
 0x102   :  { %v826_v6 = vpack.c.bf16 %v684_v3, %v515_v62  ;;  %v1022_v9 = vadd.f32 %v1021_v38, %v684_v3  ;;  %v1116_v10 = vmul.f32 %v684_v3, %v684_v3  ;;  %v2126_v39 = vpop.f32.mrf.mxu3 }
 0x103   :  { %v1230_v15 = vadd.f32 %v1229_v42, %v1115_v2  ;;  %554 = vmatmul.bf16.gmra.mxu0 %v362_v55  ;;  %v856_v47 = vpack.c.bf16 %v2126_v39, %v2124_v33 }
 0x104   :  { %890 = vst [vmem:[%s2691_s4 + $0x60] sm:$0xff] %v826_v6  ;;  %v1299_v20 = vadd.f32 %v1298_v46, %v1116_v10  ;;  %723 = vmatmul.bf16.gmra.mxu1 %v362_v55  ;;  %v213_v55 = vmul.f32 %v2097_v53, %v1578_v49  ;;  %v344_v10 = vmax.f32 %v280_v59, 0.0 }
 0x105   :  { %920 = vst [vmem:[%s2691_s4 + $0x150] sm:$0xff] %v856_v47 }
 0x106   :  { %v281_v2 = vadd.f32 %v2104_v63, %v213_v55 }
 0x108   :  { %v517_v27 = vpop.f32.mrf.mxu0  ;;  %v345_v17 = vmax.f32 %v281_v2, 0.0 }
 0x109   :  { %v954_v31 = vadd.f32 %v953_v1, %v517_v27  ;;  %v1117_v28 = vmul.f32 %v517_v27, %v517_v27  ;;  %v686_v30 = vpop.f32.mrf.mxu1  ;;  %v2142_v1 = vpop.f32.mrf.mxu2 }
 0x10a   :  { %v827_v34 = vpack.c.bf16 %v686_v30, %v517_v27  ;;  %v1023_v36 = vadd.f32 %v1022_v9, %v686_v30  ;;  %v1118_v38 = vmul.f32 %v686_v30, %v686_v30  ;;  %v2145_v9 = vpop.f32.mrf.mxu3  ;;  %v378_v18 = vpack.c.bf16 %v345_v17, %v344_v10 }
 0x10b   :  { %v1231_v42 = vadd.f32 %v1230_v15, %v1117_v28  ;;  %v857_v15 = vpack.c.bf16 %v2145_v9, %v2142_v1 }
 0x10c   :  { %891 = vst [vmem:[%s2691_s4 + $0x68] sm:$0xff] %v827_v34  ;;  %v1300_v46 = vadd.f32 %v1299_v20, %v1118_v38 }
 0x10d   :  { %921 = vst [vmem:[%s2691_s4 + $0x158] sm:$0xff] %v857_v15 }
 0x110   :  { %v520_v58 = vpop.f32.mrf.mxu0  ;;  %634 = vmatmul.bf16.gmra.mxu2 %v378_v18  ;;  %803 = vmatmul.bf16.gmra.mxu3 %v378_v18 }
 0x111   :  { %v955_v60 = vadd.f32 %v954_v31, %v520_v58  ;;  %v1119_v62 = vmul.f32 %v520_v58, %v520_v58  ;;  %v689_v0 = vpop.f32.mrf.mxu1  ;;  %v2155_v26 = vpop.f32.mrf.mxu2 }
 0x112   :  { %v828_v3 = vpack.c.bf16 %v689_v0, %v520_v58  ;;  %v1024_v5 = vadd.f32 %v1023_v36, %v689_v0  ;;  %v1120_v6 = vmul.f32 %v689_v0, %v689_v0  ;;  %v2157_v30 = vpop.f32.mrf.mxu3  ;;  %v1613_v36 = vld [vmem:[%s2688_s0 + $0xf8] sm:$0xff]  }
 0x113   :  { %v1232_v13 = vadd.f32 %v1231_v42, %v1119_v62  ;;  %559 = vmatmul.bf16.gmra.mxu0 %v363_v54  ;;  %v858_v42 = vpack.c.bf16 %v2157_v30, %v2155_v26  ;;  %v1581_v43 = vunpack.c.l.bf16 %v1613_v36  ;;  %v1582_v44 = vunpack.c.h.bf16 %v1613_v36 }
 0x114   :  { %892 = vst [vmem:[%s2691_s4 + $0x70] sm:$0xff] %v828_v3  ;;  %v1301_v16 = vadd.f32 %v1300_v46, %v1120_v6  ;;  %728 = vmatmul.bf16.gmra.mxu1 %v363_v54 }
 0x115   :  { %922 = vst [vmem:[%s2691_s4 + $0x160] sm:$0xff] %v858_v42  ;;  %v214_v40 = vmul.f32 %v2097_v53, %v1581_v43  ;;  %v215_v46 = vmul.f32 %v2097_v53, %v1582_v44 }
 0x117   :  { %v282_v48 = vadd.f32 %v2104_v63, %v214_v40  ;;  %v283_v58 = vadd.f32 %v2104_v63, %v215_v46 }
 0x118   :  { %v522_v20 = vpop.f32.mrf.mxu0 }
 0x119   :  { %v956_v21 = vadd.f32 %v955_v60, %v522_v20  ;;  %v1121_v22 = vmul.f32 %v522_v20, %v522_v20  ;;  %v691_v23 = vpop.f32.mrf.mxu1  ;;  %v2173_v55 = vpop.f32.mrf.mxu2  ;;  %v346_v2 = vmax.f32 %v282_v48, 0.0  ;;  %v347_v6 = vmax.f32 %v283_v58, 0.0 }
 0x11a   :  { %v829_v27 = vpack.c.bf16 %v691_v23, %v522_v20  ;;  %v1025_v31 = vadd.f32 %v1024_v5, %v691_v23  ;;  %v1122_v28 = vmul.f32 %v691_v23, %v691_v23  ;;  %v2176_v0 = vpop.f32.mrf.mxu3 }
 0x11b   :  { %v1233_v34 = vadd.f32 %v1232_v13, %v1121_v22  ;;  %v859_v53 = vpack.c.bf16 %v2176_v0, %v2173_v55  ;;  %v379_v63 = vpack.c.bf16 %v347_v6, %v346_v2 }
 0x11c   :  { %893 = vst [vmem:[%s2691_s4 + $0x78] sm:$0xff] %v829_v27  ;;  %v1302_v38 = vadd.f32 %v1301_v16, %v1122_v28 }
 0x11d   :  { %923 = vst [vmem:[%s2691_s4 + $0x168] sm:$0xff] %v859_v53 }
 0x120   :  { %v525_v47 = vpop.f32.mrf.mxu0  ;;  %639 = vmatmul.bf16.gmra.mxu2 %v379_v63  ;;  %808 = vmatmul.bf16.gmra.mxu3 %v379_v63 }
 0x121   :  { %v957_v49 = vadd.f32 %v956_v21, %v525_v47  ;;  %v1123_v51 = vmul.f32 %v525_v47, %v525_v47  ;;  %v694_v54 = vpop.f32.mrf.mxu1  ;;  %v2186_v21 = vpop.f32.mrf.mxu2 }
 0x122   :  { %v830_v59 = vpack.c.bf16 %v694_v54, %v525_v47  ;;  %v1026_v60 = vadd.f32 %v1025_v31, %v694_v54  ;;  %v1124_v62 = vmul.f32 %v694_v54, %v694_v54  ;;  %v2188_v22 = vpop.f32.mrf.mxu3 }
 0x123   :  { %v1234_v3 = vadd.f32 %v1233_v34, %v1123_v51  ;;  %v860_v31 = vpack.c.bf16 %v2188_v22, %v2186_v21 }
 0x124   :  { %894 = vst [vmem:[%s2691_s4 + $0x80] sm:$0xff] %v830_v59  ;;  %v1303_v5 = vadd.f32 %v1302_v38, %v1124_v62 }
 0x125   :  { %924 = vst [vmem:[%s2691_s4 + $0x170] sm:$0xff] %v860_v31 }
 0x128   :  { %v527_v10 = vpop.f32.mrf.mxu0 }
 0x129   :  { %v958_v13 = vadd.f32 %v957_v49, %v527_v10  ;;  %v1125_v15 = vmul.f32 %v527_v10, %v527_v10  ;;  %v696_v16 = vpop.f32.mrf.mxu1  ;;  %v2198_v40 = vpop.f32.mrf.mxu2 }
 0x12a   :  { %v831_v17 = vpack.c.bf16 %v696_v16, %v527_v10  ;;  %v1027_v18 = vadd.f32 %v1026_v60, %v696_v16  ;;  %v1126_v20 = vmul.f32 %v696_v16, %v696_v16  ;;  %v2200_v46 = vpop.f32.mrf.mxu3 }
 0x12b   :  { %v1235_v23 = vadd.f32 %v1234_v3, %v1125_v15  ;;  %2736 = vst [vmem:[#allocation2_spill] sm:$0xff] %v2200_v46  ;;  %v861_v48 = vpack.c.bf16 %v2200_v46, %v2198_v40 }
 0x12c   :  { %895 = vst [vmem:[%s2691_s4 + $0x88] sm:$0xff] %v831_v17  ;;  %v1304_v27 = vadd.f32 %v1303_v5, %v1126_v20 }
 0x12d   :  { %925 = vst [vmem:[%s2691_s4 + $0x178] sm:$0xff] %v861_v48 }
 0x130   :  { %v530_v28 = vpop.f32.mrf.mxu0 }
 0x131   :  { %v959_v34 = vadd.f32 %v958_v13, %v530_v28  ;;  %v1127_v36 = vmul.f32 %v530_v28, %v530_v28  ;;  %v699_v38 = vpop.f32.mrf.mxu1  ;;  %v2210_v3 = vpop.f32.mrf.mxu2 }
 0x132   :  { %v832_v42 = vpack.c.bf16 %v699_v38, %v530_v28  ;;  %v1028_v43 = vadd.f32 %v1027_v18, %v699_v38  ;;  %v1128_v44 = vmul.f32 %v699_v38, %v699_v38  ;;  %2737 = vst [vmem:[#allocation3_spill] sm:$0xff] %v2210_v3  ;;  %v2212_v53 = vpop.f32.mrf.mxu3 }
 0x133   :  { %v1236_v47 = vadd.f32 %v1235_v23, %v1127_v36  ;;  %2738 = vst [vmem:[#allocation4_spill] sm:$0xff] %v2212_v53  ;;  %v862_v63 = vpack.c.bf16 %v2212_v53, %v2210_v3 }
 0x134   :  { %896 = vst [vmem:[%s2691_s4 + $0x90] sm:$0xff] %v832_v42  ;;  %v1305_v49 = vadd.f32 %v1304_v27, %v1128_v44 }
 0x135   :  { %926 = vst [vmem:[%s2691_s4 + $0x180] sm:$0xff] %v862_v63 }
 0x138   :  { %v532_v51 = vpop.f32.mrf.mxu0 }
 0x139   :  { %v960_v54 = vadd.f32 %v959_v34, %v532_v51  ;;  %v1129_v58 = vmul.f32 %v532_v51, %v532_v51  ;;  %v701_v59 = vpop.f32.mrf.mxu1  ;;  %v2226_v23 = vpop.f32.mrf.mxu2 }
 0x13a   :  { %v833_v60 = vpack.c.bf16 %v701_v59, %v532_v51  ;;  %v1029_v62 = vadd.f32 %v1028_v43, %v701_v59  ;;  %v1130_v2 = vmul.f32 %v701_v59, %v701_v59  ;;  %2739 = vst [vmem:[#allocation5_spill] sm:$0xff] %v2226_v23  ;;  %v2228_v27 = vpop.f32.mrf.mxu3 }
 0x13b   :  { %v1237_v5 = vadd.f32 %v1236_v47, %v1129_v58  ;;  %2740 = vst [vmem:[#allocation6_spill] sm:$0xff] %v2228_v27  ;;  %v863_v28 = vpack.c.bf16 %v2228_v27, %v2226_v23 }
 0x13c   :  { %897 = vst [vmem:[%s2691_s4 + $0x98] sm:$0xff] %v833_v60  ;;  %v1306_v6 = vadd.f32 %v1305_v49, %v1130_v2 }
 0x13d   :  { %927 = vst [vmem:[%s2691_s4 + $0x188] sm:$0xff] %v863_v28 }
 0x140   :  { %v535_v10 = vpop.f32.mrf.mxu0 }
 0x141   :  { %v2222_v13 = vadd.f32 %v960_v54, %v535_v10  ;;  %v1131_v15 = vmul.f32 %v535_v10, %v535_v10  ;;  %v704_v16 = vpop.f32.mrf.mxu1  ;;  %v2248_v43 = vpop.f32.mrf.mxu2 }
 0x142   :  { %v834_v17 = vpack.c.bf16 %v704_v16, %v535_v10  ;;  %v2224_v18 = vadd.f32 %v1029_v62, %v704_v16  ;;  %v1132_v20 = vmul.f32 %v704_v16, %v704_v16  ;;  %2741 = vst [vmem:[#allocation7_spill] sm:$0xff] %v2248_v43  ;;  %v2250_v44 = vpop.f32.mrf.mxu3 }
 0x143   :  { %v2230_v31 = vadd.f32 %v1237_v5, %v1131_v15  ;;  %2742 = vst [vmem:[#allocation8_spill] sm:$0xff] %v2250_v44  ;;  %v864_v47 = vpack.c.bf16 %v2250_v44, %v2248_v43 }
 0x144   :  { %898 = vst [vmem:[%s2691_s4 + $0xa0] sm:$0xff] %v834_v17  ;;  %v2237_v34 = vadd.f32 %v1306_v6, %v1132_v20 }
 0x145   :  { %928 = vst [vmem:[%s2691_s4 + $0x190] sm:$0xff] %v864_v47 }
 0x148   :  { %v2242_v36 = vpop.f32.mrf.mxu0 }
 0x149   :  { %v2244_v38 = vpop.f32.mrf.mxu1  ;;  %v2266_v54 = vpop.f32.mrf.mxu2 }
 0x14a   :  { %v835_v42 = vpack.c.bf16 %v2244_v38, %v2242_v36  ;;  %2743 = vst [vmem:[#allocation9_spill] sm:$0xff] %v2266_v54  ;;  %v2268_v58 = vpop.f32.mrf.mxu3  ;;  %v1134_v44 = vmul.f32 %v2244_v38, %v2244_v38  ;;  %v1031_v3 = vadd.f32 %v2224_v18, %v2244_v38 }
 0x14b   :  { %2744 = vst [vmem:[#allocation10_spill] sm:$0xff] %v2268_v58  ;;  %v865_v59 = vpack.c.bf16 %v2268_v58, %v2266_v54 }
 0x14c   :  { %899 = vst [vmem:[%s2691_s4 + $0xa8] sm:$0xff] %v835_v42 }
 0x14d   :  { %929 = vst [vmem:[%s2691_s4 + $0x198] sm:$0xff] %v865_v59 }
 0x150   :  { %v2260_v48 = vpop.f32.mrf.mxu0 }
 0x151   :  { %v2262_v49 = vpop.f32.mrf.mxu1  ;;  %v2284_v5 = vpop.f32.mrf.mxu2 }
 0x152   :  { %v836_v51 = vpack.c.bf16 %v2262_v49, %v2260_v48  ;;  %2745 = vst [vmem:[#allocation11_spill] sm:$0xff] %v2284_v5  ;;  %v2286_v6 = vpop.f32.mrf.mxu3 }
 0x153   :  { %2746 = vst [vmem:[#allocation12_spill] sm:$0xff] %v2286_v6  ;;  %v866_v63 = vpack.c.bf16 %v2286_v6, %v2284_v5 }
 0x154   :  { %900 = vst [vmem:[%s2691_s4 + $0xb0] sm:$0xff] %v836_v51 }
 0x155   :  { %930 = vst [vmem:[%s2691_s4 + $0x1a0] sm:$0xff] %v866_v63 }
 0x158   :  { %v2278_v60 = vpop.f32.mrf.mxu0 }
 0x159   :  { %v2280_v62 = vpop.f32.mrf.mxu1  ;;  %v2302_v17 = vpop.f32.mrf.mxu2 }
 0x15a   :  { %v837_v2 = vpack.c.bf16 %v2280_v62, %v2278_v60  ;;  %2747 = vst [vmem:[#allocation13_spill] sm:$0xff] %v2302_v17  ;;  %v2304_v20 = vpop.f32.mrf.mxu3 }
 0x15b   :  { %2748 = vst [vmem:[#allocation14_spill] sm:$0xff] %v2304_v20  ;;  %v867_v28 = vpack.c.bf16 %v2304_v20, %v2302_v17 }
 0x15c   :  { %901 = vst [vmem:[%s2691_s4 + $0xb8] sm:$0xff] %v837_v2 }
 0x15d   :  { %931 = vst [vmem:[%s2691_s4 + $0x1a8] sm:$0xff] %v867_v28 }
 0x160   :  { %v2296_v10 = vpop.f32.mrf.mxu0 }
 0x161   :  { %v2298_v15 = vpop.f32.mrf.mxu1  ;;  %v2320_v59 = vpop.f32.mrf.mxu2  ;;  %v1139_v18 = vmul.f32 %v2296_v10, %v2296_v10 }
 0x162   :  { %v838_v16 = vpack.c.bf16 %v2298_v15, %v2296_v10  ;;  %2749 = vst [vmem:[#allocation15_spill] sm:$0xff] %v2320_v59  ;;  %v2322_v2 = vpop.f32.mrf.mxu3 }
 0x163   :  { %2750 = vst [vmem:[#allocation16_spill] sm:$0xff] %v2322_v2  ;;  %v868_v63 = vpack.c.bf16 %v2322_v2, %v2320_v59 }
 0x164   :  { %902 = vst [vmem:[%s2691_s4 + $0xc0] sm:$0xff] %v838_v16 }
 0x165   :  { %932 = vst [vmem:[%s2691_s4 + $0x1b0] sm:$0xff] %v868_v63 }
 0x168   :  { %v2314_v42 = vpop.f32.mrf.mxu0 }
 0x169   :  { %v2316_v47 = vpop.f32.mrf.mxu1  ;;  %v2335_v17 = vpop.f32.mrf.mxu2 }
 0x16a   :  { %v839_v51 = vpack.c.bf16 %v2316_v47, %v2314_v42  ;;  %2751 = vst [vmem:[#allocation17_spill] sm:$0xff] %v2335_v17  ;;  %v2337_v6 = vpop.f32.mrf.mxu3 }
 0x16b   :  { %2752 = vst [vmem:[#allocation18_spill] sm:$0xff] %v2337_v6 }
 0x16c   :  { %903 = vst [vmem:[%s2691_s4 + $0xc8] sm:$0xff] %v839_v51  ;;  %v869_v51 = vpack.c.bf16 %v2337_v6, %v2335_v17 }
 0x16e   :  { %933 = vst [vmem:[%s2691_s4 + $0x1b8] sm:$0xff] %v869_v51  ;;  %v1133_v51 = vmul.f32 %v2242_v36, %v2242_v36 }
 0x170   :  { %v550_v16 = vpop.f32.mrf.mxu0  ;;  %v1239_v53 = vadd.f32 %v2230_v31, %v1133_v51  ;;  %v1032_v31 = vadd.f32 %v1031_v3, %v2262_v49  ;;  %v1141_v3 = vmul.f32 %v2314_v42, %v2314_v42 }
 0x171   :  { %v2332_v28 = vpop.f32.mrf.mxu1 }
 0x172   :  { %v840_v20 = vpack.c.bf16 %v2332_v28, %v550_v16  ;;  %v2350_v5 = vpop.f32.mrf.mxu2  ;;  %v2352_v58 = vpop.f32.mrf.mxu3 }
 0x173   :  { %2753 = vst [vmem:[#allocation19_spill] sm:$0xff] %v2350_v5  ;;  %v870_v54 = vpack.c.bf16 %v2352_v58, %v2350_v5  ;;  %v1136_v5 = vmul.f32 %v2262_v49, %v2262_v49  ;;  %v1142_v49 = vmul.f32 %v2316_v47, %v2316_v47 }
 0x174   :  { %904 = vst [vmem:[%s2691_s4 + $0xd0] sm:$0xff] %v840_v20 }
 0x175   :  { %2754 = vst [vmem:[#allocation20_spill] sm:$0xff] %v2352_v58  ;;  %v962_v58 = vadd.f32 %v2222_v13, %v2242_v36  ;;  %v1308_v13 = vadd.f32 %v2237_v34, %v1134_v44  ;;  %v1033_v44 = vadd.f32 %v1032_v31, %v2280_v62 }
 0x176   :  { %934 = vst [vmem:[%s2691_s4 + $0x1c0] sm:$0xff] %v870_v54 }
 0x177   :  { %v963_v36 = vadd.f32 %v962_v58, %v2260_v48  ;;  %v1309_v51 = vadd.f32 %v1308_v13, %v1136_v5  ;;  %v1034_v13 = vadd.f32 %v1033_v44, %v2298_v15 }
 0x178   :  { %v552_v63 = vpop.f32.mrf.mxu0 }
 0x179   :  { %v2347_v2 = vpop.f32.mrf.mxu1 }
 0x17a   :  { %v841_v59 = vpack.c.bf16 %v2347_v2, %v552_v63  ;;  %v2369_v43 = vpop.f32.mrf.mxu2  ;;  %v2371_v27 = vpop.f32.mrf.mxu3 }
 0x17b   :  { %2755 = vst [vmem:[#allocation21_spill] sm:$0xff] %v2369_v43  ;;  %v871_v23 = vpack.c.bf16 %v2371_v27, %v2369_v43  ;;  %v964_v43 = vadd.f32 %v963_v36, %v2278_v60 }
 0x17c   :  { %905 = vst [vmem:[%s2691_s4 + $0xd8] sm:$0xff] %v841_v59  ;;  %v1135_v59 = vmul.f32 %v2260_v48, %v2260_v48 }
 0x17d   :  { %2756 = vst [vmem:[#allocation22_spill] sm:$0xff] %v2371_v27  ;;  %v1138_v27 = vmul.f32 %v2280_v62, %v2280_v62  ;;  %v1143_v62 = vmul.f32 %v550_v16, %v550_v16 }
 0x17e   :  { %935 = vst [vmem:[%s2691_s4 + $0x1c8] sm:$0xff] %v871_v23  ;;  %v1240_v54 = vadd.f32 %v1239_v53, %v1135_v59  ;;  %v1140_v23 = vmul.f32 %v2298_v15, %v2298_v15  ;;  %v965_v53 = vadd.f32 %v964_v43, %v2296_v10  ;;  %v1144_v10 = vmul.f32 %v2332_v28, %v2332_v28 }
 0x17f   :  { %v1310_v58 = vadd.f32 %v1309_v51, %v1138_v27  ;;  %v1145_v51 = vmul.f32 %v552_v63, %v552_v63  ;;  %v1146_v15 = vmul.f32 %v2347_v2, %v2347_v2 }
 0x180   :  { %v2357_v20 = vpop.f32.mrf.mxu0  ;;  %v966_v43 = vadd.f32 %v965_v53, %v2314_v42 }
 0x181   :  { %v2359_v6 = vpop.f32.mrf.mxu1  ;;  %v1311_v27 = vadd.f32 %v1310_v58, %v1140_v23  ;;  %v1147_v42 = vmul.f32 %v2357_v20, %v2357_v20 }
 0x182   :  { %v842_v17 = vpack.c.bf16 %v2359_v6, %v2357_v20  ;;  %v967_v31 = vadd.f32 %v966_v43, %v550_v16 }
 0x183   :  { %v2411_v5 = vpop.f32.mrf.mxu2 }
 0x184   :  { %906 = vst [vmem:[%s2691_s4 + $0xe0] sm:$0xff] %v842_v17  ;;  %v1137_v17 = vmul.f32 %v2278_v60, %v2278_v60  ;;  %v2413_v60 = vpop.f32.mrf.mxu3 }
 0x186   :  { %v1241_v34 = vadd.f32 %v1240_v54, %v1137_v17  ;;  %v1035_v17 = vadd.f32 %v1034_v13, %v2316_v47  ;;  %v1312_v54 = vadd.f32 %v1311_v27, %v1142_v49  ;;  %v1148_v47 = vmul.f32 %v2359_v6, %v2359_v6 }
 0x188   :  { %v557_v38 = vpop.f32.mrf.mxu0  ;;  %v1242_v59 = vadd.f32 %v1241_v34, %v1139_v18  ;;  %v1036_v18 = vadd.f32 %v1035_v17, %v2332_v28  ;;  %v1313_v23 = vadd.f32 %v1312_v54, %v1144_v10  ;;  %v872_v28 = vpack.c.bf16 %v2413_v60, %v2411_v5 }
 0x189   :  { %v726_v46 = vpop.f32.mrf.mxu1 }
 0x18a   :  { %v843_v48 = vpack.c.bf16 %v726_v46, %v557_v38  ;;  %v1243_v36 = vadd.f32 %v1242_v59, %v1141_v3  ;;  %v1037_v53 = vadd.f32 %v1036_v18, %v2347_v2  ;;  %v1149_v59 = vmul.f32 %v557_v38, %v557_v38  ;;  %936 = vst [vmem:[%s2691_s4 + $0x1d0] sm:$0xff] %v872_v28 }
 0x18b   :  { %v2434_v13 = vpop.f32.mrf.mxu2  ;;  %v1314_v27 = vadd.f32 %v1313_v23, %v1146_v15 }
 0x18c   :  { %907 = vst [vmem:[%s2691_s4 + $0xe8] sm:$0xff] %v843_v48  ;;  %v1244_v44 = vadd.f32 %v1243_v36, %v1143_v62  ;;  %v968_v48 = vadd.f32 %v967_v31, %v552_v63  ;;  %v2436_v63 = vpop.f32.mrf.mxu3  ;;  %v1038_v43 = vadd.f32 %v1037_v53, %v2359_v6  ;;  %v1150_v62 = vmul.f32 %v726_v46, %v726_v46 }
 0x18d   :  { %v873_v2 = vpack.c.bf16 %v2436_v63, %v2434_v13 }
 0x18e   :  { %v1245_v3 = vadd.f32 %v1244_v44, %v1145_v51  ;;  %v969_v49 = vadd.f32 %v968_v48, %v2357_v20  ;;  %v1315_v20 = vadd.f32 %v1314_v27, %v1148_v47  ;;  %v1039_v54 = vadd.f32 %v1038_v43, %v726_v46 }
 0x18f   :  { %937 = vst [vmem:[%s2691_s4 + $0x1d8] sm:$0xff] %v873_v2  ;;  %v1155_v46 = vmul.f32 %v1924_v24, %v1924_v24 }
 0x190   :  { %v560_v34 = vpop.f32.mrf.mxu0  ;;  %v1246_v10 = vadd.f32 %v1245_v3, %v1147_v42  ;;  %v970_v17 = vadd.f32 %v969_v49, %v557_v38  ;;  %v1316_v18 = vadd.f32 %v1315_v20, %v1150_v62  ;;  %v1157_v62 = vmul.f32 %v1947_v52, %v1947_v52 }
 0x191   :  { %v729_v58 = vpop.f32.mrf.mxu1  ;;  %v1151_v36 = vmul.f32 %v560_v34, %v560_v34  ;;  %v1159_v20 = vmul.f32 %v1962_v7, %v1962_v7 }
 0x192   :  { %v844_v16 = vpack.c.bf16 %v729_v58, %v560_v34  ;;  %v1152_v31 = vmul.f32 %v729_v58, %v729_v58  ;;  %v1247_v6 = vadd.f32 %v1246_v10, %v1149_v59  ;;  %v971_v51 = vadd.f32 %v970_v17, %v560_v34 }
 0x193   :  { %v1040_v15 = vadd.f32 %v1039_v54, %v729_v58  ;;  %v2453_v27 = vpop.f32.mrf.mxu2  ;;  %v1156_v58 = vmul.f32 %v1929_v29, %v1929_v29  ;;  %v1158_v10 = vmul.f32 %v1949_v56, %v1949_v56 }
 0x194   :  { %908 = vst [vmem:[%s2691_s4 + $0xf0] sm:$0xff] %v844_v16  ;;  %v1248_v23 = vadd.f32 %v1247_v6, %v1151_v36  ;;  %v1317_v53 = vadd.f32 %v1316_v18, %v1152_v31  ;;  %v2455_v34 = vpop.f32.mrf.mxu3 }
 0x198   :  { %v562_v44 = vpop.f32.mrf.mxu0 }
 0x199   :  { %v972_v48 = vadd.f32 %v971_v51, %v562_v44  ;;  %v1153_v38 = vmul.f32 %v562_v44, %v562_v44  ;;  %v731_v42 = vpop.f32.mrf.mxu1 }
 0x19a   :  { %v845_v16 = vpack.c.bf16 %v731_v42, %v562_v44  ;;  %v1041_v3 = vadd.f32 %v1040_v15, %v731_v42  ;;  %v1154_v28 = vmul.f32 %v731_v42, %v731_v42 }
 0x19b   :  { %v973_v47 = vadd.f32 %v972_v48, %v1924_v24  ;;  %v1249_v49 = vadd.f32 %v1248_v23, %v1153_v38  ;;  %v1163_v48 = vmul.f32 %v2003_v57, %v2003_v57  ;;  %v2486_v42 = vpop.f32.mrf.mxu2 }
 0x19c   :  { %909 = vst [vmem:[%s2691_s4 + $0xf8] sm:$0xff] %v845_v16  ;;  %v1042_v59 = vadd.f32 %v1041_v3, %v1929_v29  ;;  %v1318_v43 = vadd.f32 %v1317_v53, %v1154_v28  ;;  %v1160_v29 = vmul.f32 %v1964_v12, %v1964_v12  ;;  %v2488_v53 = vpop.f32.mrf.mxu3  ;;  %v1165_v3 = vmul.f32 %v2022_v19, %v2022_v19 }
 0x19d   :  { %v974_v24 = vadd.f32 %v973_v47, %v1947_v52  ;;  %v1250_v2 = vadd.f32 %v1249_v49, %v1155_v46  ;;  %v1161_v52 = vmul.f32 %v1982_v32, %v1982_v32  ;;  %v875_v46 = vpack.c.bf16 %v2488_v53, %v2486_v42 }
 0x19e   :  { %v1043_v17 = vadd.f32 %v1042_v59, %v1949_v56  ;;  %v1319_v36 = vadd.f32 %v1318_v43, %v1156_v58  ;;  %v1162_v56 = vmul.f32 %v1985_v37, %v1985_v37  ;;  %v1166_v47 = vmul.f32 %v2025_v25, %v2025_v25 }
 0x19f   :  { %v975_v54 = vadd.f32 %v974_v24, %v1962_v7  ;;  %v1251_v31 = vadd.f32 %v1250_v2, %v1157_v62  ;;  %v874_v7 = vpack.c.bf16 %v2455_v34, %v2453_v27  ;;  %v1167_v58 = vmul.f32 %v2038_v45, %v2038_v45  ;;  %939 = vst [vmem:[%s2691_s4 + $0x1e8] sm:$0xff] %v875_v46 }
 0x1a0   :  { %v1044_v6 = vadd.f32 %v1043_v17, %v1964_v12  ;;  %v1320_v51 = vadd.f32 %v1319_v36, %v1158_v10 }
 0x1a1   :  { %v976_v18 = vadd.f32 %v975_v54, %v1982_v32  ;;  %v1252_v15 = vadd.f32 %v1251_v31, %v1159_v20  ;;  %v1164_v32 = vmul.f32 %v2005_v61, %v2005_v61  ;;  %938 = vst [vmem:[%s2691_s4 + $0x1e0] sm:$0xff] %v874_v7  ;;  %v1171_v20 = vmul.f32 %v2076_v35, %v2076_v35 }
 0x1a2   :  { %v1045_v44 = vadd.f32 %v1044_v6, %v1985_v37  ;;  %v1321_v23 = vadd.f32 %v1320_v51, %v1160_v29 }
 0x1a3   :  { %v977_v12 = vadd.f32 %v976_v18, %v2003_v57  ;;  %v1253_v38 = vadd.f32 %v1252_v15, %v1161_v52 }
 0x1a4   :  { %v1046_v16 = vadd.f32 %v1045_v44, %v2005_v61  ;;  %v1322_v37 = vadd.f32 %v1321_v23, %v1162_v56  ;;  %v2524_v29 = vpop.f32.mrf.mxu3  ;;  %v1175_v44 = vmul.f32 %v2124_v33, %v2124_v33 }
 0x1a5   :  { %v978_v57 = vadd.f32 %v977_v12, %v2022_v19  ;;  %v1254_v28 = vadd.f32 %v1253_v38, %v1163_v48  ;;  %v1168_v19 = vmul.f32 %v2040_v50, %v2040_v50 }
 0x1a6   :  { %v1047_v49 = vadd.f32 %v1046_v16, %v2025_v25  ;;  %v1323_v61 = vadd.f32 %v1322_v37, %v1164_v32  ;;  %v1169_v25 = vmul.f32 %v2058_v8, %v2058_v8 }
 0x1a7   :  { %v979_v59 = vadd.f32 %v978_v57, %v2038_v45  ;;  %v1255_v43 = vadd.f32 %v1254_v28, %v1165_v3  ;;  %v1170_v45 = vmul.f32 %v2061_v14, %v2061_v14  ;;  %v1179_v3 = vmul.f32 %v2155_v26, %v2155_v26 }
 0x1a8   :  { %v1048_v62 = vadd.f32 %v1047_v49, %v2040_v50  ;;  %v1324_v24 = vadd.f32 %v1323_v61, %v1166_v47  ;;  %v2522_v50 = vpop.f32.mrf.mxu2  ;;  %v1181_v49 = vmul.f32 %v2173_v55, %v2173_v55 }
 0x1a9   :  { %v980_v2 = vadd.f32 %v979_v59, %v2058_v8  ;;  %v1256_v10 = vadd.f32 %v1255_v43, %v1167_v58  ;;  %v1172_v8 = vmul.f32 %v2078_v41, %v2078_v41  ;;  %v1182_v59 = vmul.f32 %v2176_v0, %v2176_v0 }
 0x1aa   :  { %v1049_v17 = vadd.f32 %v1048_v62, %v2061_v14  ;;  %v1325_v36 = vadd.f32 %v1324_v24, %v1168_v19  ;;  %v1173_v14 = vmul.f32 %v2107_v4, %v2107_v4 }
 0x1ab   :  { %v981_v54 = vadd.f32 %v980_v2, %v2076_v35  ;;  %v1257_v31 = vadd.f32 %v1256_v10, %v1169_v25  ;;  %v1174_v35 = vmul.f32 %v2110_v11, %v2110_v11 }
 0x1ac   :  { %v1050_v6 = vadd.f32 %v1049_v17, %v2078_v41  ;;  %v1326_v51 = vadd.f32 %v1325_v36, %v1170_v45  ;;  %v1176_v41 = vmul.f32 %v2126_v39, %v2126_v39  ;;  %v2554_v46 = vpop.f32.mrf.mxu3  ;;  %v2757_v17 = vld [vmem:[#allocation2_spill] sm:$0xff] }
 0x1ad   :  { %v982_v52 = vadd.f32 %v981_v54, %v2107_v4  ;;  %v1258_v18 = vadd.f32 %v1257_v31, %v1171_v20  ;;  %v1177_v4 = vmul.f32 %v2142_v1, %v2142_v1  ;;  %v2758_v54 = vld [vmem:[#allocation3_spill] sm:$0xff] }
 0x1ae   :  { %v1051_v15 = vadd.f32 %v1050_v6, %v2110_v11  ;;  %v1327_v56 = vadd.f32 %v1326_v51, %v1172_v8  ;;  %v1178_v11 = vmul.f32 %v2145_v9, %v2145_v9  ;;  %v1187_v31 = vmul.f32 %v2758_v54, %v2758_v54 }
 0x1af   :  { %v983_v23 = vadd.f32 %v982_v52, %v2124_v33  ;;  %v1259_v7 = vadd.f32 %v1258_v18, %v1173_v14  ;;  %v876_v33 = vpack.c.bf16 %v2524_v29, %v2522_v50 }
 0x1b0   :  { %v1052_v48 = vadd.f32 %v1051_v15, %v2126_v39  ;;  %v1328_v12 = vadd.f32 %v1327_v56, %v1174_v35  ;;  %v2552_v28 = vpop.f32.mrf.mxu2  ;;  %v2761_v56 = vld [vmem:[#allocation6_spill] sm:$0xff] }
 0x1b1   :  { %v984_v38 = vadd.f32 %v983_v23, %v2142_v1  ;;  %v1260_v32 = vadd.f32 %v1259_v7, %v1175_v44  ;;  %v1180_v1 = vmul.f32 %v2157_v30, %v2157_v30  ;;  %940 = vst [vmem:[%s2691_s4 + $0x1f0] sm:$0xff] %v876_v33  ;;  %v877_v58 = vpack.c.bf16 %v2554_v46, %v2552_v28 }
 0x1b2   :  { %v1053_v16 = vadd.f32 %v1052_v48, %v2145_v9  ;;  %v1329_v37 = vadd.f32 %v1328_v12, %v1176_v41  ;;  %v1190_v44 = vmul.f32 %v2761_v56, %v2761_v56  ;;  %v2762_v41 = vld [vmem:[#allocation7_spill] sm:$0xff] }
 0x1b3   :  { %v1261_v39 = vadd.f32 %v1260_v32, %v1177_v4  ;;  %v985_v57 = vadd.f32 %v984_v38, %v2155_v26  ;;  %941 = vst [vmem:[%s2691_s4 + $0x1f8] sm:$0xff] %v877_v58  ;;  %v1191_v48 = vmul.f32 %v2762_v41, %v2762_v41  ;;  %v2763_v38 = vld [vmem:[#allocation8_spill] sm:$0xff] }
 0x1b4   :  { %v1330_v47 = vadd.f32 %v1329_v37, %v1178_v11  ;;  %v1054_v9 = vadd.f32 %v1053_v16, %v2157_v30  ;;  %v1183_v30 = vmul.f32 %v2186_v21, %v2186_v21  ;;  %v1192_v32 = vmul.f32 %v2763_v38, %v2763_v38  ;;  %v2764_v37 = vld [vmem:[#allocation9_spill] sm:$0xff] }
 0x1b5   :  { %v986_v61 = vadd.f32 %v985_v57, %v2173_v55  ;;  %v1262_v26 = vadd.f32 %v1261_v39, %v1179_v3  ;;  %v1184_v55 = vmul.f32 %v2188_v22, %v2188_v22  ;;  %v1193_v33 = vmul.f32 %v2764_v37, %v2764_v37  ;;  %v2765_v57 = vld [vmem:[#allocation10_spill] sm:$0xff] }
 0x1b6   :  { %v1055_v43 = vadd.f32 %v1054_v9, %v2176_v0  ;;  %v1331_v19 = vadd.f32 %v1330_v47, %v1180_v1  ;;  %v1185_v0 = vmul.f32 %v2198_v40, %v2198_v40  ;;  %v1194_v1 = vmul.f32 %v2765_v57, %v2765_v57 }
 0x1b7   :  { %v987_v62 = vadd.f32 %v986_v61, %v2186_v21  ;;  %v1263_v24 = vadd.f32 %v1262_v26, %v1181_v49  ;;  %v1186_v21 = vmul.f32 %v2757_v17, %v2757_v17  ;;  %v2766_v49 = vld [vmem:[#allocation11_spill] sm:$0xff] }
 0x1b8   :  { %v1056_v25 = vadd.f32 %v1055_v43, %v2188_v22  ;;  %v1332_v2 = vadd.f32 %v1331_v19, %v1182_v59  ;;  %v2759_v22 = vld [vmem:[#allocation4_spill] sm:$0xff]  ;;  %v1195_v61 = vmul.f32 %v2766_v49, %v2766_v49 }
 0x1b9   :  { %v988_v10 = vadd.f32 %v987_v62, %v2198_v40  ;;  %v1264_v45 = vadd.f32 %v1263_v24, %v1183_v30  ;;  %v1188_v51 = vmul.f32 %v2759_v22, %v2759_v22  ;;  %v2760_v40 = vld [vmem:[#allocation5_spill] sm:$0xff]  ;;  %v2767_v59 = vld [vmem:[#allocation12_spill] sm:$0xff] }
 0x1ba   :  { %v1057_v36 = vadd.f32 %v1056_v25, %v2757_v17  ;;  %v1333_v20 = vadd.f32 %v1332_v2, %v1184_v55  ;;  %v1189_v18 = vmul.f32 %v2760_v40, %v2760_v40  ;;  %v1196_v43 = vmul.f32 %v2767_v59, %v2767_v59  ;;  %v2768_v62 = vld [vmem:[#allocation13_spill] sm:$0xff]  ;;  %v2769_v2 = vld [vmem:[#allocation14_spill] sm:$0xff]  ;;  %v2770_v17 = vld [vmem:[#allocation15_spill] sm:$0xff] }
 0x1bb   :  { %v989_v8 = vadd.f32 %v988_v10, %v2758_v54  ;;  %v1265_v6 = vadd.f32 %v1264_v45, %v1185_v0  ;;  %v1197_v24 = vmul.f32 %v2768_v62, %v2768_v62  ;;  %v1198_v0 = vmul.f32 %v2769_v2, %v2769_v2  ;;  %v2771_v54 = vld [vmem:[#allocation16_spill] sm:$0xff] }
 0x1bc   :  { %v1058_v14 = vadd.f32 %v1057_v36, %v2759_v22  ;;  %v1334_v52 = vadd.f32 %v1333_v20, %v1186_v21  ;;  %v1199_v21 = vmul.f32 %v2770_v17, %v2770_v17  ;;  %v2772_v22 = vld [vmem:[#allocation17_spill] sm:$0xff] }
 0x1bd   :  { %v990_v35 = vadd.f32 %v989_v8, %v2760_v40  ;;  %v1266_v15 = vadd.f32 %v1265_v6, %v1187_v31  ;;  %v1200_v31 = vmul.f32 %v2771_v54, %v2771_v54  ;;  %v2773_v40 = vld [vmem:[#allocation18_spill] sm:$0xff] }
 0x1be   :  { %v1059_v23 = vadd.f32 %v1058_v14, %v2761_v56  ;;  %v1335_v7 = vadd.f32 %v1334_v52, %v1188_v51  ;;  %v1201_v51 = vmul.f32 %v2772_v22, %v2772_v22  ;;  %v2774_v56 = vld [vmem:[#allocation19_spill] sm:$0xff] }
 0x1bf   :  { %v991_v12 = vadd.f32 %v990_v35, %v2762_v41  ;;  %v1267_v4 = vadd.f32 %v1266_v15, %v1189_v18  ;;  %v1202_v18 = vmul.f32 %v2773_v40, %v2773_v40  ;;  %v2775_v41 = vld [vmem:[#allocation20_spill] sm:$0xff] }
 0x1c0   :  { %v1060_v11 = vadd.f32 %v1059_v23, %v2763_v38  ;;  %v1336_v16 = vadd.f32 %v1335_v7, %v1190_v44  ;;  %v1203_v23 = vmul.f32 %v2774_v56, %v2774_v56 }
 0x1c1   :  { %v992_v3 = vadd.f32 %v991_v12, %v2764_v37  ;;  %v1268_v39 = vadd.f32 %v1267_v4, %v1191_v48  ;;  %v1204_v12 = vmul.f32 %v2775_v41, %v2775_v41 }
 0x1c2   :  { %v1061_v47 = vadd.f32 %v1060_v11, %v2765_v57  ;;  %v1337_v9 = vadd.f32 %v1336_v16, %v1192_v32  ;;  %v2776_v32 = vld [vmem:[#allocation21_spill] sm:$0xff] }
 0x1c3   :  { %v993_v26 = vadd.f32 %v992_v3, %v2766_v49  ;;  %v1269_v58 = vadd.f32 %v1268_v39, %v1193_v33  ;;  %v1205_v16 = vmul.f32 %v2776_v32, %v2776_v32  ;;  %v2777_v33 = vld [vmem:[#allocation22_spill] sm:$0xff] }
 0x1c4   :  { %v1062_v19 = vadd.f32 %v1061_v47, %v2767_v59  ;;  %v1338_v30 = vadd.f32 %v1337_v9, %v1194_v1  ;;  %v1206_v39 = vmul.f32 %v2777_v33, %v2777_v33  ;;  %v1207_v47 = vmul.f32 %v2411_v5, %v2411_v5 }
 0x1c5   :  { %v994_v55 = vadd.f32 %v993_v26, %v2768_v62  ;;  %v1270_v25 = vadd.f32 %v1269_v58, %v1195_v61  ;;  %v1208_v61 = vmul.f32 %v2413_v60, %v2413_v60  ;;  %v1209_v59 = vmul.f32 %v2434_v13, %v2434_v13 }
 0x1c6   :  { %v1063_v10 = vadd.f32 %v1062_v19, %v2769_v2  ;;  %v1339_v45 = vadd.f32 %v1338_v30, %v1196_v43  ;;  %v1210_v30 = vmul.f32 %v2436_v63, %v2436_v63 }
 0x1c7   :  { %v995_v36 = vadd.f32 %v994_v55, %v2770_v17  ;;  %v1271_v20 = vadd.f32 %v1270_v25, %v1197_v24  ;;  %v1211_v24 = vmul.f32 %v2453_v27, %v2453_v27  ;;  %v1212_v25 = vmul.f32 %v2455_v34, %v2455_v34 }
 0x1c8   :  { %v1064_v8 = vadd.f32 %v1063_v10, %v2771_v54  ;;  %v1340_v6 = vadd.f32 %v1339_v45, %v1198_v0  ;;  %v1213_v0 = vmul.f32 %v2486_v42, %v2486_v42  ;;  %v1214_v45 = vmul.f32 %v2488_v53, %v2488_v53 }
 0x1c9   :  { %v996_v14 = vadd.f32 %v995_v36, %v2772_v22  ;;  %v1272_v52 = vadd.f32 %v1271_v20, %v1199_v21  ;;  %v1215_v21 = vmul.f32 %v2522_v50, %v2522_v50  ;;  %v1216_v20 = vmul.f32 %v2524_v29, %v2524_v29 }
 0x1ca   :  { %v1065_v35 = vadd.f32 %v1064_v8, %v2773_v40  ;;  %v1341_v15 = vadd.f32 %v1340_v6, %v1200_v31  ;;  %v1217_v31 = vmul.f32 %v2552_v28, %v2552_v28  ;;  %v1218_v6 = vmul.f32 %v2554_v46, %v2554_v46 }
 0x1cb   :  { %v997_v44 = vadd.f32 %v996_v14, %v2774_v56  ;;  %v1273_v7 = vadd.f32 %v1272_v52, %v1201_v51 }
 0x1cc   :  { %v1066_v48 = vadd.f32 %v1065_v35, %v2775_v41  ;;  %v1342_v4 = vadd.f32 %v1341_v15, %v1202_v18 }
 0x1cd   :  { %v1274_v38 = vadd.f32 %v1273_v7, %v1203_v23  ;;  %v998_v11 = vadd.f32 %v997_v44, %v2776_v32 }
 0x1ce   :  { %v1343_v37 = vadd.f32 %v1342_v4, %v1204_v12  ;;  %v1067_v3 = vadd.f32 %v1066_v48, %v2777_v33 }
 0x1cf   :  { %v1275_v57 = vadd.f32 %v1274_v38, %v1205_v16  ;;  %v999_v1 = vadd.f32 %v998_v11, %v2411_v5 }
 0x1d0   :  { %v1344_v9 = vadd.f32 %v1343_v37, %v1206_v39  ;;  %v1068_v49 = vadd.f32 %v1067_v3, %v2413_v60 }
 0x1d1   :  { %v1276_v26 = vadd.f32 %v1275_v57, %v1207_v47  ;;  %v1000_v58 = vadd.f32 %v999_v1, %v2434_v13 }
 0x1d2   :  { %v1345_v43 = vadd.f32 %v1344_v9, %v1208_v61  ;;  %v1069_v19 = vadd.f32 %v1068_v49, %v2436_v63 }
 0x1d3   :  { %v1277_v62 = vadd.f32 %v1276_v26, %v1209_v59  ;;  %v1001_v5 = vadd.f32 %v1000_v58, %v2453_v27 }
 0x1d4   :  { %v1346_v55 = vadd.f32 %v1345_v43, %v1210_v30  ;;  %v1070_v60 = vadd.f32 %v1069_v19, %v2455_v34 }
 0x1d5   :  { %v1278_v2 = vadd.f32 %v1277_v62, %v1211_v24  ;;  %v1002_v13 = vadd.f32 %v1001_v5, %v2486_v42 }
 0x1d6   :  { %v1347_v10 = vadd.f32 %v1346_v55, %v1212_v25  ;;  %v1071_v63 = vadd.f32 %v1070_v60, %v2488_v53 }
 0x1d7   :  { %v1279_v17 = vadd.f32 %v1278_v2, %v1213_v0  ;;  %v1003_v27 = vadd.f32 %v1002_v13, %v2522_v50 }
 0x1d8   :  { %v1348_v36 = vadd.f32 %v1347_v10, %v1214_v45  ;;  %v1072_v34 = vadd.f32 %v1071_v63, %v2524_v29 }
 0x1d9   :  { %v1280_v54 = vadd.f32 %v1279_v17, %v1215_v21  ;;  %v1004_v42 = vadd.f32 %v1003_v27, %v2552_v28 }
 0x1da   :  { %v1349_v8 = vadd.f32 %v1348_v36, %v1216_v20  ;;  %v1073_v53 = vadd.f32 %v1072_v34, %v2554_v46  ;;  %v1086_v46 = vlaneseq }
 0x1db   :  { %v1005_v22 = vrot.slane %v1004_v42, 4  ;;  %v1281_v50 = vadd.f32 %v1280_v54, %v1217_v31 }
 0x1dc   :  { %v1074_v51 = vrot.slane %v1073_v53, 4  ;;  %v1350_v14 = vadd.f32 %v1349_v8, %v1218_v6  ;;  %vm1088_vm1 = vcmp.lt.s32.totalorder %v1086_v46, 256 }
 0x1dd   :  { %v1006_v52 = vadd.f32 %v1005_v22, %v1004_v42  ;;  %v1282_v40 = vrot.slane %v1281_v50, 4 }
 0x1de   :  { %v1075_v18 = vadd.f32 %v1074_v51, %v1073_v53  ;;  %v1351_v29 = vrot.slane %v1350_v14, 4 }
 0x1df   :  { %v1007_v35 = vrot.slane %v1006_v52, 2  ;;  %v1283_v15 = vadd.f32 %v1282_v40, %v1281_v50 }
 0x1e0   :  { %v1076_v56 = vrot.slane %v1075_v18, 2  ;;  %v1352_v44 = vadd.f32 %v1351_v29, %v1350_v14 }
 0x1e1   :  { %v1008_v23 = vadd.f32 %v1007_v35, %v1006_v52  ;;  %v1284_v28 = vrot.slane %v1283_v15, 2 }
 0x1e2   :  { %v1077_v7 = vadd.f32 %v1076_v56, %v1075_v18  ;;  %v1353_v41 = vrot.slane %v1352_v44, 2 }
 0x1e3   :  { %v1285_v48 = vadd.f32 %v1284_v28, %v1283_v15  ;;  %v1009_v12 = vrot.slane %v1008_v23, 1 }
 0x1e4   :  { %v1078_v4 = vrot.slane %v1077_v7, 1  ;;  %v1354_v38 = vadd.f32 %v1353_v41, %v1352_v44 }
 0x1e5   :  { %v1286_v32 = vrot.slane %v1285_v48, 1  ;;  %v1010_v37 = vadd.f32 %v1009_v12, %v1008_v23 }
 0x1e6   :  { %v1079_v11 = vadd.f32 %v1078_v4, %v1077_v7  ;;  %v1355_v16 = vrot.slane %v1354_v38, 1 }
 0x1e7   :  { %v1287_v39 = vadd.f32 %v1286_v32, %v1285_v48 }
 0x1e8   :  { %v1082_v33 = vrot.slane %v1079_v11, 7  ;;  %v1356_v3 = vadd.f32 %v1355_v16, %v1354_v38 }
 0x1ea   :  { %v1084_v57 = vsel %vm1083_vm0, %v1010_v37, %v1082_v33  ;;  %v1359_v1 = vrot.slane %v1356_v3, 7 }
 0x1eb   :  { %1090 = vst.msk [vmem:[%s2692_s5] sm:$0x3] %vm1088_vm1, %v1084_v57 }
 0x1ec   :  { %v1360_v47 = vsel %vm1083_vm0, %v1287_v39, %v1359_v1 }
 0x1ed   :  { %1362 = vst.msk [vmem:[%s2693_s6] sm:$0x3] %vm1088_vm1, %v1360_v47 }

// kernel: _forward.11
= control target key start
LH: loop header
LB: loop body
LE: loop exit
PB: predicated region body
PF: predicated region fallthrough
CT: control target
= control target key end

     0   :  { %s2340_s0 = inlined_call_operand.vmem [shape: bf16[512,256], index: 0, kind: input, shape index: {}]   ;;  %s2341_s1 = inlined_call_operand.vmem [shape: f32[1,256], index: 1, kind: input, shape index: {}]   ;;  %s2342_s2 = inlined_call_operand.vmem [shape: f32[1,256], index: 2, kind: input, shape index: {}]   ;;  %s2343_s3 = inlined_call_operand.vmem [shape: bf16[512,256], index: 3, kind: input, shape index: {}]   ;;  %s2344_s4 = inlined_call_operand.vmem [shape: f32[1,256], index: 4, kind: input, shape index: {}]   ;;  %s2345_s5 = inlined_call_operand.vmem [shape: f32[1,256], index: 5, kind: input, shape index: {}]   ;;  %s2346_s6 = inlined_call_operand.hbm [shape: f32[512,256], index: 6, kind: output, shape index: {}]  }
   0x1   :  { %v24_v0 = vld [vmem:[%s2340_s0] sm:$0xff]  ;;  %v25_v9 = vld [vmem:[%s2340_s0 + $0x8] sm:$0xff]  ;;  %v26_v24 = vld [vmem:[%s2340_s0 + $0x10] sm:$0xff] }
   0x2   :  { %v216_v1 = vld [vmem:[%s2341_s1] sm:$0x3]  ;;  %v88_v3 = vunpack.c.l.bf16 %v24_v0  ;;  %v89_v8 = vunpack.c.h.bf16 %v24_v0  ;;  %v485_v15 = vld [vmem:[%s2343_s3 + $0x8] sm:$0xff]  ;;  %v90_v23 = vunpack.c.l.bf16 %v25_v9  ;;  %v91_v28 = vunpack.c.h.bf16 %v25_v9  ;;  %v486_v29 = vld [vmem:[%s2343_s3 + $0x10] sm:$0xff] }
   0x3   :  { %v350_v2 = vld [vmem:[%s2342_s2] sm:$0x3]  ;;  %v1422_v4 = vperm.slane %v216_v1, 0  ;;  %v1440_v13 = vperm.slane %v216_v1, 1  ;;  %v550_v27 = vunpack.c.l.bf16 %v485_v15  ;;  %v551_v33 = vunpack.c.h.bf16 %v485_v15  ;;  %v27_v46 = vld [vmem:[%s2340_s0 + $0x18] sm:$0xff] }
   0x4   :  { %v1424_v5 = vperm.slane %v350_v2, 0  ;;  %v484_v6 = vld [vmem:[%s2343_s3] sm:$0xff]  ;;  %v1442_v14 = vperm.slane %v350_v2, 1  ;;  %v92_v37 = vunpack.c.l.bf16 %v26_v24  ;;  %v552_v41 = vunpack.c.l.bf16 %v486_v29 }
   0x5   :  { %v676_v7 = vld [vmem:[%s2344_s4] sm:$0x3]  ;;  %v548_v10 = vunpack.c.l.bf16 %v484_v6  ;;  %v222_v16 = vmul.f32 %v1422_v4, %v88_v3  ;;  %v549_v18 = vunpack.c.h.bf16 %v484_v6  ;;  %v223_v21 = vmul.f32 %v1440_v13, %v89_v8 }
   0x6   :  { %v1435_v11 = vperm.slane %v676_v7, 0  ;;  %v810_v12 = vld [vmem:[%s2345_s5] sm:$0x3]  ;;  %v1450_v19 = vperm.slane %v676_v7, 1  ;;  %v224_v32 = vmul.f32 %v1422_v4, %v90_v23  ;;  %v225_v36 = vmul.f32 %v1440_v13, %v91_v28 }
   0x7   :  { %v1448_v17 = vperm.slane %v810_v12, 0  ;;  %v1454_v22 = vperm.slane %v810_v12, 1  ;;  %v356_v25 = vadd.f32 %v1424_v5, %v222_v16  ;;  %v357_v31 = vadd.f32 %v1442_v14, %v223_v21 }
   0x8   :  { %v682_v20 = vmul.f32 %v1435_v11, %v548_v10  ;;  %v683_v26 = vmul.f32 %v1450_v19, %v549_v18  ;;  %v684_v35 = vmul.f32 %v1435_v11, %v550_v27  ;;  %v358_v39 = vadd.f32 %v1424_v5, %v224_v32 }
   0x9   :  { %v685_v40 = vmul.f32 %v1450_v19, %v551_v33  ;;  %v359_v44 = vadd.f32 %v1442_v14, %v225_v36  ;;  %v226_v45 = vmul.f32 %v1422_v4, %v92_v37 }
   0xa   :  { %v816_v30 = vadd.f32 %v1448_v17, %v682_v20  ;;  %v817_v34 = vadd.f32 %v1454_v22, %v683_v26  ;;  %v818_v43 = vadd.f32 %v1448_v17, %v684_v35 }
   0xc   :  { %v944_v38 = vadd.f32 %v816_v30, %v356_v25  ;;  %v945_v42 = vadd.f32 %v817_v34, %v357_v31 }
   0xd   :  { %11 = vsyncpa [#allocation3], 0  ;;  %v819_v48 = vadd.f32 %v1454_v22, %v685_v40  ;;  %v686_v49 = vmul.f32 %v1435_v11, %v552_v41  ;;  %v93_v50 = vunpack.c.h.bf16 %v26_v24  ;;  %v487_v51 = vld [vmem:[%s2343_s3 + $0x18] sm:$0xff]  ;;  %v946_v53 = vadd.f32 %v818_v43, %v358_v39  ;;  %v28_v0 = vld [vmem:[%s2340_s0 + $0x20] sm:$0xff]  ;;  %s1334_s9 = sshll.u32 %s2346_s6, 4  ;;  %s1376_s10 = smov 256   ;;  %s1335_s9 = int_to_ptr.hbm [resolvable:$true] %s1334_s9 }
   0xe   :  { %v1072_v47 = vmax.f32 %v944_v38, 0.0  ;;  %v1073_v52 = vmax.f32 %v945_v42, 0.0  ;;  %v360_v54 = vadd.f32 %v1424_v5, %v226_v45  ;;  %v553_v55 = vunpack.c.h.bf16 %v486_v29  ;;  %v488_v1 = vld [vmem:[%s2343_s3 + $0x20] sm:$0xff]  ;;  %v29_v21 = vld [vmem:[%s2340_s0 + $0x28] sm:$0xff]  ;;  %s1377_s4 = smov 16  }
   0xf   :  { %v947_v56 = vadd.f32 %v819_v48, %v359_v44  ;;  %v820_v57 = vadd.f32 %v1448_v17, %v686_v49  ;;  %v227_v58 = vmul.f32 %v1440_v13, %v93_v50  ;;  %v94_v59 = vunpack.c.l.bf16 %v27_v46  ;;  %v489_v31 = vld [vmem:[%s2343_s3 + $0x28] sm:$0xff]  ;;  %v30_v44 = vld [vmem:[%s2340_s0 + $0x30] sm:$0xff] }
  0x10   :  { %1200 = vst [vmem:[#allocation2] sm:$0xff] %v1072_v47  ;;  %v1074_v60 = vmax.f32 %v946_v53, 0.0  ;;  %v687_v61 = vmul.f32 %v1450_v19, %v553_v55  ;;  %v554_v62 = vunpack.c.l.bf16 %v487_v51  ;;  %v95_v63 = vunpack.c.h.bf16 %v27_v46  ;;  %v490_v49 = vld [vmem:[%s2343_s3 + $0x30] sm:$0xff] }
  0x11   :  { %1201 = vst [vmem:[#allocation2 + $0x8] sm:$0xff] %v1073_v52  ;;  %v1075_v2 = vmax.f32 %v947_v56, 0.0  ;;  %v948_v3 = vadd.f32 %v820_v57, %v360_v54  ;;  %v361_v6 = vadd.f32 %v1442_v14, %v227_v58  ;;  %v228_v7 = vmul.f32 %v1422_v4, %v94_v59 }
  0x12   :  { %1202 = vst [vmem:[#allocation2 + $0x10] sm:$0xff] %v1074_v60  ;;  %v821_v8 = vadd.f32 %v1454_v22, %v687_v61  ;;  %v688_v9 = vmul.f32 %v1435_v11, %v554_v62  ;;  %v229_v10 = vmul.f32 %v1440_v13, %v95_v63  ;;  %v555_v12 = vunpack.c.h.bf16 %v487_v51  ;;  %v31_v62 = vld [vmem:[%s2340_s0 + $0x38] sm:$0xff] }
  0x13   :  { %1203 = vst [vmem:[#allocation2 + $0x18] sm:$0xff] %v1075_v2  ;;  %v1076_v15 = vmax.f32 %v948_v3, 0.0  ;;  %v362_v16 = vadd.f32 %v1424_v5, %v228_v7  ;;  %v96_v18 = vunpack.c.l.bf16 %v28_v0  ;;  %v556_v20 = vunpack.c.l.bf16 %v488_v1  ;;  %v491_v63 = vld [vmem:[%s2343_s3 + $0x38] sm:$0xff] }
  0x14   :  { %v949_v23 = vadd.f32 %v821_v8, %v361_v6  ;;  %v822_v24 = vadd.f32 %v1448_v17, %v688_v9  ;;  %v363_v25 = vadd.f32 %v1442_v14, %v229_v10  ;;  %v689_v26 = vmul.f32 %v1450_v19, %v555_v12 }
  0x15   :  { %1204 = vst [vmem:[#allocation2 + $0x20] sm:$0xff] %v1076_v15  ;;  %v230_v27 = vmul.f32 %v1422_v4, %v96_v18  ;;  %v690_v28 = vmul.f32 %v1435_v11, %v556_v20  ;;  %v97_v29 = vunpack.c.h.bf16 %v28_v0  ;;  %v557_v30 = vunpack.c.h.bf16 %v488_v1  ;;  %v32_v18 = vld [vmem:[%s2340_s0 + $0x40] sm:$0xff] }
  0x16   :  { %v1077_v32 = vmax.f32 %v949_v23, 0.0  ;;  %v950_v33 = vadd.f32 %v822_v24, %v362_v16  ;;  %v823_v34 = vadd.f32 %v1454_v22, %v689_v26  ;;  %v98_v35 = vunpack.c.l.bf16 %v29_v21 }
  0x17   :  { %v364_v36 = vadd.f32 %v1424_v5, %v230_v27  ;;  %v824_v37 = vadd.f32 %v1448_v17, %v690_v28  ;;  %v231_v38 = vmul.f32 %v1440_v13, %v97_v29  ;;  %v691_v39 = vmul.f32 %v1450_v19, %v557_v30  ;;  %v492_v29 = vld [vmem:[%s2343_s3 + $0x40] sm:$0xff] }
  0x18   :  { %1205 = vst [vmem:[#allocation2 + $0x28] sm:$0xff] %v1077_v32  ;;  %v1078_v40 = vmax.f32 %v950_v33, 0.0  ;;  %v951_v41 = vadd.f32 %v823_v34, %v363_v25  ;;  %v232_v42 = vmul.f32 %v1422_v4, %v98_v35  ;;  %v558_v43 = vunpack.c.l.bf16 %v489_v31 }
  0x19   :  { %v952_v45 = vadd.f32 %v824_v37, %v364_v36  ;;  %v365_v46 = vadd.f32 %v1442_v14, %v231_v38  ;;  %v825_v47 = vadd.f32 %v1454_v22, %v691_v39  ;;  %v99_v48 = vunpack.c.h.bf16 %v29_v21 }
  0x1a   :  { %1206 = vst [vmem:[#allocation2 + $0x30] sm:$0xff] %v1078_v40  ;;  %v1079_v50 = vmax.f32 %v951_v41, 0.0  ;;  %v366_v51 = vadd.f32 %v1424_v5, %v232_v42  ;;  %v692_v52 = vmul.f32 %v1435_v11, %v558_v43  ;;  %v559_v53 = vunpack.c.h.bf16 %v489_v31  ;;  %v33_v42 = vld [vmem:[%s2340_s0 + $0x48] sm:$0xff] }
  0x1b   :  { %v1080_v54 = vmax.f32 %v952_v45, 0.0  ;;  %v953_v55 = vadd.f32 %v825_v47, %v365_v46  ;;  %v233_v56 = vmul.f32 %v1440_v13, %v99_v48  ;;  %v100_v57 = vunpack.c.l.bf16 %v30_v44  ;;  %v493_v43 = vld [vmem:[%s2343_s3 + $0x48] sm:$0xff] }
  0x1c   :  { %1207 = vst [vmem:[#allocation2 + $0x38] sm:$0xff] %v1079_v50  ;;  %v826_v58 = vadd.f32 %v1448_v17, %v692_v52  ;;  %v693_v59 = vmul.f32 %v1450_v19, %v559_v53  ;;  %v560_v60 = vunpack.c.l.bf16 %v490_v49  ;;  %v101_v61 = vunpack.c.h.bf16 %v30_v44 }
  0x1d   :  { %1208 = vst [vmem:[#allocation2 + $0x40] sm:$0xff] %v1080_v54  ;;  %v1081_v0 = vmax.f32 %v953_v55, 0.0  ;;  %v367_v1 = vadd.f32 %v1442_v14, %v233_v56  ;;  %v234_v2 = vmul.f32 %v1422_v4, %v100_v57  ;;  %v561_v3 = vunpack.c.h.bf16 %v490_v49 }
  0x1e   :  { %v954_v6 = vadd.f32 %v826_v58, %v366_v51  ;;  %v827_v7 = vadd.f32 %v1454_v22, %v693_v59  ;;  %v694_v8 = vmul.f32 %v1435_v11, %v560_v60  ;;  %v235_v9 = vmul.f32 %v1440_v13, %v101_v61  ;;  %v34_v60 = vld [vmem:[%s2340_s0 + $0x50] sm:$0xff] }
  0x1f   :  { %1209 = vst [vmem:[#allocation2 + $0x48] sm:$0xff] %v1081_v0  ;;  %v368_v10 = vadd.f32 %v1424_v5, %v234_v2  ;;  %v695_v12 = vmul.f32 %v1450_v19, %v561_v3  ;;  %v102_v15 = vunpack.c.l.bf16 %v31_v62  ;;  %v562_v16 = vunpack.c.l.bf16 %v491_v63 }
  0x20   :  { %v1082_v20 = vmax.f32 %v954_v6, 0.0  ;;  %v955_v21 = vadd.f32 %v827_v7, %v367_v1  ;;  %v828_v23 = vadd.f32 %v1448_v17, %v694_v8  ;;  %v369_v24 = vadd.f32 %v1442_v14, %v235_v9  ;;  %v494_v1 = vld [vmem:[%s2343_s3 + $0x50] sm:$0xff] }
  0x21   :  { %v829_v25 = vadd.f32 %v1454_v22, %v695_v12  ;;  %v236_v26 = vmul.f32 %v1422_v4, %v102_v15  ;;  %v696_v27 = vmul.f32 %v1435_v11, %v562_v16  ;;  %v103_v28 = vunpack.c.h.bf16 %v31_v62  ;;  %v35_v15 = vld [vmem:[%s2340_s0 + $0x58] sm:$0xff] }
  0x22   :  { %1210 = vst [vmem:[#allocation2 + $0x50] sm:$0xff] %v1082_v20  ;;  %v1083_v30 = vmax.f32 %v955_v21, 0.0  ;;  %v956_v31 = vadd.f32 %v828_v23, %v368_v10  ;;  %v563_v32 = vunpack.c.h.bf16 %v491_v63  ;;  %v104_v33 = vunpack.c.l.bf16 %v32_v18 }
  0x23   :  { %v957_v34 = vadd.f32 %v829_v25, %v369_v24  ;;  %v370_v35 = vadd.f32 %v1424_v5, %v236_v26  ;;  %v830_v36 = vadd.f32 %v1448_v17, %v696_v27  ;;  %v237_v37 = vmul.f32 %v1440_v13, %v103_v28  ;;  %v495_v27 = vld [vmem:[%s2343_s3 + $0x58] sm:$0xff] }
  0x24   :  { %1211 = vst [vmem:[#allocation2 + $0x58] sm:$0xff] %v1083_v30  ;;  %v1084_v38 = vmax.f32 %v956_v31, 0.0  ;;  %v697_v39 = vmul.f32 %v1450_v19, %v563_v32  ;;  %v238_v40 = vmul.f32 %v1422_v4, %v104_v33  ;;  %v564_v41 = vunpack.c.l.bf16 %v492_v29 }
  0x25   :  { %v1085_v44 = vmax.f32 %v957_v34, 0.0  ;;  %v958_v45 = vadd.f32 %v830_v36, %v370_v35  ;;  %v371_v46 = vadd.f32 %v1442_v14, %v237_v37  ;;  %v105_v47 = vunpack.c.h.bf16 %v32_v18 }
  0x26   :  { %1212 = vst [vmem:[#allocation2 + $0x60] sm:$0xff] %v1084_v38  ;;  %v831_v48 = vadd.f32 %v1454_v22, %v697_v39  ;;  %v372_v49 = vadd.f32 %v1424_v5, %v238_v40  ;;  %v698_v50 = vmul.f32 %v1435_v11, %v564_v41  ;;  %v565_v51 = vunpack.c.h.bf16 %v492_v29  ;;  %v36_v40 = vld [vmem:[%s2340_s0 + $0x60] sm:$0xff] }
  0x27   :  { %1213 = vst [vmem:[#allocation2 + $0x68] sm:$0xff] %v1085_v44  ;;  %v1086_v52 = vmax.f32 %v958_v45, 0.0  ;;  %v239_v53 = vmul.f32 %v1440_v13, %v105_v47  ;;  %v106_v54 = vunpack.c.l.bf16 %v33_v42  ;;  %v566_v55 = vunpack.c.l.bf16 %v493_v43  ;;  %v496_v41 = vld [vmem:[%s2343_s3 + $0x60] sm:$0xff] }
  0x28   :  { %v959_v56 = vadd.f32 %v831_v48, %v371_v46  ;;  %v832_v57 = vadd.f32 %v1448_v17, %v698_v50  ;;  %v699_v58 = vmul.f32 %v1450_v19, %v565_v51  ;;  %v107_v59 = vunpack.c.h.bf16 %v33_v42 }
  0x29   :  { %1214 = vst [vmem:[#allocation2 + $0x70] sm:$0xff] %v1086_v52  ;;  %v373_v61 = vadd.f32 %v1442_v14, %v239_v53  ;;  %v240_v62 = vmul.f32 %v1422_v4, %v106_v54  ;;  %v700_v63 = vmul.f32 %v1435_v11, %v566_v55  ;;  %v567_v0 = vunpack.c.h.bf16 %v493_v43 }
  0x2a   :  { %v1087_v2 = vmax.f32 %v959_v56, 0.0  ;;  %v960_v3 = vadd.f32 %v832_v57, %v372_v49  ;;  %v833_v6 = vadd.f32 %v1454_v22, %v699_v58  ;;  %v241_v7 = vmul.f32 %v1440_v13, %v107_v59  ;;  %v37_v58 = vld [vmem:[%s2340_s0 + $0x68] sm:$0xff] }
  0x2b   :  { %v374_v8 = vadd.f32 %v1424_v5, %v240_v62  ;;  %v834_v9 = vadd.f32 %v1448_v17, %v700_v63  ;;  %v701_v10 = vmul.f32 %v1450_v19, %v567_v0  ;;  %v108_v12 = vunpack.c.l.bf16 %v34_v60  ;;  %v497_v63 = vld [vmem:[%s2343_s3 + $0x68] sm:$0xff] }
  0x2c   :  { %1215 = vst [vmem:[#allocation2 + $0x78] sm:$0xff] %v1087_v2  ;;  %v1088_v16 = vmax.f32 %v960_v3, 0.0  ;;  %v961_v18 = vadd.f32 %v833_v6, %v373_v61  ;;  %v375_v20 = vadd.f32 %v1442_v14, %v241_v7  ;;  %v568_v21 = vunpack.c.l.bf16 %v494_v1 }
  0x2d   :  { %v962_v23 = vadd.f32 %v834_v9, %v374_v8  ;;  %v835_v24 = vadd.f32 %v1454_v22, %v701_v10  ;;  %v242_v25 = vmul.f32 %v1422_v4, %v108_v12  ;;  %v109_v26 = vunpack.c.h.bf16 %v34_v60  ;;  %v38_v10 = vld [vmem:[%s2340_s0 + $0x70] sm:$0xff] }
  0x2e   :  { %1216 = vst [vmem:[#allocation2 + $0x80] sm:$0xff] %v1088_v16  ;;  %v1089_v28 = vmax.f32 %v961_v18, 0.0  ;;  %v702_v29 = vmul.f32 %v1435_v11, %v568_v21  ;;  %v569_v30 = vunpack.c.h.bf16 %v494_v1  ;;  %v110_v31 = vunpack.c.l.bf16 %v35_v15 }
  0x2f   :  { %v1090_v32 = vmax.f32 %v962_v23, 0.0  ;;  %v963_v33 = vadd.f32 %v835_v24, %v375_v20  ;;  %v376_v34 = vadd.f32 %v1424_v5, %v242_v25  ;;  %v243_v35 = vmul.f32 %v1440_v13, %v109_v26  ;;  %v498_v20 = vld [vmem:[%s2343_s3 + $0x70] sm:$0xff] }
  0x30   :  { %1217 = vst [vmem:[#allocation2 + $0x88] sm:$0xff] %v1089_v28  ;;  %v836_v36 = vadd.f32 %v1448_v17, %v702_v29  ;;  %v703_v37 = vmul.f32 %v1450_v19, %v569_v30  ;;  %v244_v38 = vmul.f32 %v1422_v4, %v110_v31  ;;  %v570_v39 = vunpack.c.l.bf16 %v495_v27 }
  0x31   :  { %1218 = vst [vmem:[#allocation2 + $0x90] sm:$0xff] %v1090_v32  ;;  %v1091_v42 = vmax.f32 %v963_v33, 0.0  ;;  %v377_v43 = vadd.f32 %v1442_v14, %v243_v35  ;;  %v111_v44 = vunpack.c.h.bf16 %v35_v15  ;;  %v571_v45 = vunpack.c.h.bf16 %v495_v27 }
  0x32   :  { %v964_v46 = vadd.f32 %v836_v36, %v376_v34  ;;  %v837_v47 = vadd.f32 %v1454_v22, %v703_v37  ;;  %v378_v48 = vadd.f32 %v1424_v5, %v244_v38  ;;  %v704_v49 = vmul.f32 %v1435_v11, %v570_v39  ;;  %v39_v38 = vld [vmem:[%s2340_s0 + $0x78] sm:$0xff] }
  0x33   :  { %1219 = vst [vmem:[#allocation2 + $0x98] sm:$0xff] %v1091_v42  ;;  %v245_v50 = vmul.f32 %v1440_v13, %v111_v44  ;;  %v705_v51 = vmul.f32 %v1450_v19, %v571_v45  ;;  %v112_v52 = vunpack.c.l.bf16 %v36_v40  ;;  %v572_v53 = vunpack.c.l.bf16 %v496_v41 }
  0x34   :  { %v1092_v54 = vmax.f32 %v964_v46, 0.0  ;;  %v965_v55 = vadd.f32 %v837_v47, %v377_v43  ;;  %v838_v56 = vadd.f32 %v1448_v17, %v704_v49  ;;  %v113_v57 = vunpack.c.h.bf16 %v36_v40  ;;  %v499_v43 = vld [vmem:[%s2343_s3 + $0x78] sm:$0xff] }
  0x35   :  { %v379_v59 = vadd.f32 %v1442_v14, %v245_v50  ;;  %v839_v60 = vadd.f32 %v1454_v22, %v705_v51  ;;  %v246_v61 = vmul.f32 %v1422_v4, %v112_v52  ;;  %v706_v62 = vmul.f32 %v1435_v11, %v572_v53 }
  0x36   :  { %1220 = vst [vmem:[#allocation2 + $0xa0] sm:$0xff] %v1092_v54  ;;  %v1093_v0 = vmax.f32 %v965_v55, 0.0  ;;  %v966_v1 = vadd.f32 %v838_v56, %v378_v48  ;;  %v247_v2 = vmul.f32 %v1440_v13, %v113_v57  ;;  %v573_v3 = vunpack.c.h.bf16 %v496_v41  ;;  %v40_v56 = vld [vmem:[%s2340_s0 + $0x80] sm:$0xff] }
  0x37   :  { %v967_v6 = vadd.f32 %v839_v60, %v379_v59  ;;  %v380_v7 = vadd.f32 %v1424_v5, %v246_v61  ;;  %v840_v8 = vadd.f32 %v1448_v17, %v706_v62  ;;  %v114_v9 = vunpack.c.l.bf16 %v37_v58  ;;  %v500_v61 = vld [vmem:[%s2343_s3 + $0x80] sm:$0xff] }
  0x38   :  { %1221 = vst [vmem:[#allocation2 + $0xa8] sm:$0xff] %v1093_v0  ;;  %v1094_v12 = vmax.f32 %v966_v1, 0.0  ;;  %v381_v15 = vadd.f32 %v1442_v14, %v247_v2  ;;  %v707_v16 = vmul.f32 %v1450_v19, %v573_v3  ;;  %v574_v18 = vunpack.c.l.bf16 %v497_v63 }
  0x39   :  { %v1095_v21 = vmax.f32 %v967_v6, 0.0  ;;  %v968_v23 = vadd.f32 %v840_v8, %v380_v7  ;;  %v248_v24 = vmul.f32 %v1422_v4, %v114_v9  ;;  %v115_v25 = vunpack.c.h.bf16 %v37_v58  ;;  %v41_v8 = vld [vmem:[%s2340_s0 + $0x88] sm:$0xff] }
  0x3a   :  { %1222 = vst [vmem:[#allocation2 + $0xb0] sm:$0xff] %v1094_v12  ;;  %v841_v26 = vadd.f32 %v1454_v22, %v707_v16  ;;  %v708_v27 = vmul.f32 %v1435_v11, %v574_v18  ;;  %v575_v28 = vunpack.c.h.bf16 %v497_v63  ;;  %v116_v29 = vunpack.c.l.bf16 %v38_v10  ;;  %v501_v16 = vld [vmem:[%s2343_s3 + $0x88] sm:$0xff] }
  0x3b   :  { %1223 = vst [vmem:[#allocation2 + $0xb8] sm:$0xff] %v1095_v21  ;;  %v1096_v30 = vmax.f32 %v968_v23, 0.0  ;;  %v382_v31 = vadd.f32 %v1424_v5, %v248_v24  ;;  %v249_v32 = vmul.f32 %v1440_v13, %v115_v25  ;;  %v576_v33 = vunpack.c.l.bf16 %v498_v20 }
  0x3c   :  { %v969_v34 = vadd.f32 %v841_v26, %v381_v15  ;;  %v842_v35 = vadd.f32 %v1448_v17, %v708_v27  ;;  %v709_v36 = vmul.f32 %v1450_v19, %v575_v28  ;;  %v250_v37 = vmul.f32 %v1422_v4, %v116_v29 }
  0x3d   :  { %1224 = vst [vmem:[#allocation2 + $0xc0] sm:$0xff] %v1096_v30  ;;  %v383_v39 = vadd.f32 %v1442_v14, %v249_v32  ;;  %v710_v40 = vmul.f32 %v1435_v11, %v576_v33  ;;  %v117_v41 = vunpack.c.h.bf16 %v38_v10  ;;  %v577_v42 = vunpack.c.h.bf16 %v498_v20 }
  0x3e   :  { %v1097_v44 = vmax.f32 %v969_v34, 0.0  ;;  %v970_v45 = vadd.f32 %v842_v35, %v382_v31  ;;  %v843_v46 = vadd.f32 %v1454_v22, %v709_v36  ;;  %v384_v47 = vadd.f32 %v1424_v5, %v250_v37  ;;  %v42_v36 = vld [vmem:[%s2340_s0 + $0x90] sm:$0xff] }
  0x3f   :  { %v844_v48 = vadd.f32 %v1448_v17, %v710_v40  ;;  %v251_v49 = vmul.f32 %v1440_v13, %v117_v41  ;;  %v711_v50 = vmul.f32 %v1450_v19, %v577_v42  ;;  %v118_v51 = vunpack.c.l.bf16 %v39_v38  ;;  %v502_v41 = vld [vmem:[%s2343_s3 + $0x90] sm:$0xff] }
  0x40   :  { %1225 = vst [vmem:[#allocation2 + $0xc8] sm:$0xff] %v1097_v44  ;;  %v1098_v52 = vmax.f32 %v970_v45, 0.0  ;;  %v971_v53 = vadd.f32 %v843_v46, %v383_v39  ;;  %v578_v54 = vunpack.c.l.bf16 %v499_v43  ;;  %v119_v55 = vunpack.c.h.bf16 %v39_v38 }
  0x41   :  { %v972_v57 = vadd.f32 %v844_v48, %v384_v47  ;;  %v385_v58 = vadd.f32 %v1442_v14, %v251_v49  ;;  %v845_v59 = vadd.f32 %v1454_v22, %v711_v50  ;;  %v252_v60 = vmul.f32 %v1422_v4, %v118_v51 }
  0x42   :  { %1226 = vst [vmem:[#allocation2 + $0xd0] sm:$0xff] %v1098_v52  ;;  %v1099_v62 = vmax.f32 %v971_v53, 0.0  ;;  %v712_v63 = vmul.f32 %v1435_v11, %v578_v54  ;;  %v253_v0 = vmul.f32 %v1440_v13, %v119_v55  ;;  %v579_v1 = vunpack.c.h.bf16 %v499_v43  ;;  %v43_v54 = vld [vmem:[%s2340_s0 + $0x98] sm:$0xff] }
  0x43   :  { %v1100_v2 = vmax.f32 %v972_v57, 0.0  ;;  %v973_v3 = vadd.f32 %v845_v59, %v385_v58  ;;  %v386_v6 = vadd.f32 %v1424_v5, %v252_v60  ;;  %v120_v7 = vunpack.c.l.bf16 %v40_v56  ;;  %v503_v55 = vld [vmem:[%s2343_s3 + $0x98] sm:$0xff] }
  0x44   :  { %1227 = vst [vmem:[#allocation2 + $0xd8] sm:$0xff] %v1099_v62  ;;  %v846_v9 = vadd.f32 %v1448_v17, %v712_v63  ;;  %v387_v10 = vadd.f32 %v1442_v14, %v253_v0  ;;  %v713_v12 = vmul.f32 %v1450_v19, %v579_v1  ;;  %v580_v15 = vunpack.c.l.bf16 %v500_v61 }
  0x45   :  { %1228 = vst [vmem:[#allocation2 + $0xe0] sm:$0xff] %v1100_v2  ;;  %v1101_v18 = vmax.f32 %v973_v3, 0.0  ;;  %v254_v20 = vmul.f32 %v1422_v4, %v120_v7  ;;  %v121_v21 = vunpack.c.h.bf16 %v40_v56  ;;  %v581_v23 = vunpack.c.h.bf16 %v500_v61 }
  0x46   :  { %v974_v24 = vadd.f32 %v846_v9, %v386_v6  ;;  %v847_v25 = vadd.f32 %v1454_v22, %v713_v12  ;;  %v714_v26 = vmul.f32 %v1435_v11, %v580_v15  ;;  %v122_v27 = vunpack.c.l.bf16 %v41_v8  ;;  %v44_v6 = vld [vmem:[%s2340_s0 + $0xa0] sm:$0xff] }
  0x47   :  { %1229 = vst [vmem:[#allocation2 + $0xe8] sm:$0xff] %v1101_v18  ;;  %v388_v28 = vadd.f32 %v1424_v5, %v254_v20  ;;  %v255_v29 = vmul.f32 %v1440_v13, %v121_v21  ;;  %v715_v30 = vmul.f32 %v1450_v19, %v581_v23  ;;  %v582_v31 = vunpack.c.l.bf16 %v501_v16  ;;  %v504_v20 = vld [vmem:[%s2343_s3 + $0xa0] sm:$0xff] }
  0x48   :  { %v1102_v32 = vmax.f32 %v974_v24, 0.0  ;;  %v975_v33 = vadd.f32 %v847_v25, %v387_v10  ;;  %v848_v34 = vadd.f32 %v1448_v17, %v714_v26  ;;  %v256_v35 = vmul.f32 %v1422_v4, %v122_v27 }
  0x49   :  { %v389_v37 = vadd.f32 %v1442_v14, %v255_v29  ;;  %v849_v38 = vadd.f32 %v1454_v22, %v715_v30  ;;  %v716_v39 = vmul.f32 %v1435_v11, %v582_v31  ;;  %v123_v40 = vunpack.c.h.bf16 %v41_v8 }
  0x4a   :  { %1230 = vst [vmem:[#allocation2 + $0xf0] sm:$0xff] %v1102_v32  ;;  %v1103_v42 = vmax.f32 %v975_v33, 0.0  ;;  %v976_v43 = vadd.f32 %v848_v34, %v388_v28  ;;  %v390_v44 = vadd.f32 %v1424_v5, %v256_v35  ;;  %v583_v45 = vunpack.c.h.bf16 %v501_v16  ;;  %v45_v34 = vld [vmem:[%s2340_s0 + $0xa8] sm:$0xff] }
  0x4b   :  { %v977_v46 = vadd.f32 %v849_v38, %v389_v37  ;;  %v850_v47 = vadd.f32 %v1448_v17, %v716_v39  ;;  %v257_v48 = vmul.f32 %v1440_v13, %v123_v40  ;;  %v124_v49 = vunpack.c.l.bf16 %v42_v36  ;;  %v505_v39 = vld [vmem:[%s2343_s3 + $0xa8] sm:$0xff] }
  0x4c   :  { %1231 = vst [vmem:[#allocation2 + $0xf8] sm:$0xff] %v1103_v42  ;;  %v1104_v50 = vmax.f32 %v976_v43, 0.0  ;;  %v717_v51 = vmul.f32 %v1450_v19, %v583_v45  ;;  %v584_v52 = vunpack.c.l.bf16 %v502_v41  ;;  %v125_v53 = vunpack.c.h.bf16 %v42_v36 }
  0x4d   :  { %v1105_v56 = vmax.f32 %v977_v46, 0.0  ;;  %v978_v57 = vadd.f32 %v850_v47, %v390_v44  ;;  %v391_v58 = vadd.f32 %v1442_v14, %v257_v48  ;;  %v258_v59 = vmul.f32 %v1422_v4, %v124_v49 }
  0x4e   :  { %1232 = vst [vmem:[#allocation2 + $0x100] sm:$0xff] %v1104_v50  ;;  %v851_v60 = vadd.f32 %v1454_v22, %v717_v51  ;;  %v718_v61 = vmul.f32 %v1435_v11, %v584_v52  ;;  %v259_v62 = vmul.f32 %v1440_v13, %v125_v53  ;;  %v585_v63 = vunpack.c.h.bf16 %v502_v41  ;;  %v46_v52 = vld [vmem:[%s2340_s0 + $0xb0] sm:$0xff] }
  0x4f   :  { %1233 = vst [vmem:[#allocation2 + $0x108] sm:$0xff] %v1105_v56  ;;  %v1106_v0 = vmax.f32 %v978_v57, 0.0  ;;  %v392_v1 = vadd.f32 %v1424_v5, %v258_v59  ;;  %v126_v2 = vunpack.c.l.bf16 %v43_v54  ;;  %v586_v3 = vunpack.c.l.bf16 %v503_v55  ;;  %v506_v53 = vld [vmem:[%s2343_s3 + $0xb0] sm:$0xff] }
  0x50   :  { %v979_v7 = vadd.f32 %v851_v60, %v391_v58  ;;  %v852_v8 = vadd.f32 %v1448_v17, %v718_v61  ;;  %v393_v9 = vadd.f32 %v1442_v14, %v259_v62  ;;  %v719_v10 = vmul.f32 %v1450_v19, %v585_v63 }
  0x51   :  { %1234 = vst [vmem:[#allocation2 + $0x110] sm:$0xff] %v1106_v0  ;;  %v260_v12 = vmul.f32 %v1422_v4, %v126_v2  ;;  %v720_v15 = vmul.f32 %v1435_v11, %v586_v3  ;;  %v127_v16 = vunpack.c.h.bf16 %v43_v54  ;;  %v587_v18 = vunpack.c.h.bf16 %v503_v55  ;;  %v47_v2 = vld [vmem:[%s2340_s0 + $0xb8] sm:$0xff] }
  0x52   :  { %v1107_v21 = vmax.f32 %v979_v7, 0.0  ;;  %v980_v23 = vadd.f32 %v852_v8, %v392_v1  ;;  %v853_v24 = vadd.f32 %v1454_v22, %v719_v10  ;;  %v128_v25 = vunpack.c.l.bf16 %v44_v6 }
  0x53   :  { %v394_v26 = vadd.f32 %v1424_v5, %v260_v12  ;;  %v854_v27 = vadd.f32 %v1448_v17, %v720_v15  ;;  %v261_v28 = vmul.f32 %v1440_v13, %v127_v16  ;;  %v721_v29 = vmul.f32 %v1450_v19, %v587_v18  ;;  %v507_v16 = vld [vmem:[%s2343_s3 + $0xb8] sm:$0xff] }
  0x54   :  { %1235 = vst [vmem:[#allocation2 + $0x118] sm:$0xff] %v1107_v21  ;;  %v1108_v30 = vmax.f32 %v980_v23, 0.0  ;;  %v981_v31 = vadd.f32 %v853_v24, %v393_v9  ;;  %v262_v32 = vmul.f32 %v1422_v4, %v128_v25  ;;  %v588_v33 = vunpack.c.l.bf16 %v504_v20 }
  0x55   :  { %v982_v35 = vadd.f32 %v854_v27, %v394_v26  ;;  %v395_v36 = vadd.f32 %v1442_v14, %v261_v28  ;;  %v855_v37 = vadd.f32 %v1454_v22, %v721_v29  ;;  %v129_v38 = vunpack.c.h.bf16 %v44_v6 }
  0x56   :  { %1236 = vst [vmem:[#allocation2 + $0x120] sm:$0xff] %v1108_v30  ;;  %v1109_v40 = vmax.f32 %v981_v31, 0.0  ;;  %v396_v41 = vadd.f32 %v1424_v5, %v262_v32  ;;  %v722_v42 = vmul.f32 %v1435_v11, %v588_v33  ;;  %v589_v43 = vunpack.c.h.bf16 %v504_v20  ;;  %v48_v32 = vld [vmem:[%s2340_s0 + $0xc0] sm:$0xff] }
  0x57   :  { %v1110_v44 = vmax.f32 %v982_v35, 0.0  ;;  %v983_v45 = vadd.f32 %v855_v37, %v395_v36  ;;  %v263_v46 = vmul.f32 %v1440_v13, %v129_v38  ;;  %v130_v47 = vunpack.c.l.bf16 %v45_v34  ;;  %v508_v33 = vld [vmem:[%s2343_s3 + $0xc0] sm:$0xff] }
  0x58   :  { %1237 = vst [vmem:[#allocation2 + $0x128] sm:$0xff] %v1109_v40  ;;  %v856_v48 = vadd.f32 %v1448_v17, %v722_v42  ;;  %v723_v49 = vmul.f32 %v1450_v19, %v589_v43  ;;  %v590_v50 = vunpack.c.l.bf16 %v505_v39  ;;  %v131_v51 = vunpack.c.h.bf16 %v45_v34 }
  0x59   :  { %1238 = vst [vmem:[#allocation2 + $0x130] sm:$0xff] %v1110_v44  ;;  %v1111_v54 = vmax.f32 %v983_v45, 0.0  ;;  %v397_v55 = vadd.f32 %v1442_v14, %v263_v46  ;;  %v264_v56 = vmul.f32 %v1422_v4, %v130_v47  ;;  %v591_v57 = vunpack.c.h.bf16 %v505_v39 }
  0x5a   :  { %v984_v58 = vadd.f32 %v856_v48, %v396_v41  ;;  %v857_v59 = vadd.f32 %v1454_v22, %v723_v49  ;;  %v724_v60 = vmul.f32 %v1435_v11, %v590_v50  ;;  %v265_v61 = vmul.f32 %v1440_v13, %v131_v51  ;;  %v49_v50 = vld [vmem:[%s2340_s0 + $0xc8] sm:$0xff] }
  0x5b   :  { %1239 = vst [vmem:[#allocation2 + $0x138] sm:$0xff] %v1111_v54  ;;  %v398_v62 = vadd.f32 %v1424_v5, %v264_v56  ;;  %v725_v63 = vmul.f32 %v1450_v19, %v591_v57  ;;  %v132_v0 = vunpack.c.l.bf16 %v46_v52  ;;  %v592_v1 = vunpack.c.l.bf16 %v506_v53 }
  0x5c   :  { %v1112_v3 = vmax.f32 %v984_v58, 0.0  ;;  %v985_v6 = vadd.f32 %v857_v59, %v397_v55  ;;  %v858_v7 = vadd.f32 %v1448_v17, %v724_v60  ;;  %v399_v8 = vadd.f32 %v1442_v14, %v265_v61  ;;  %v509_v55 = vld [vmem:[%s2343_s3 + $0xc8] sm:$0xff] }
  0x5d   :  { %v859_v9 = vadd.f32 %v1454_v22, %v725_v63  ;;  %v266_v10 = vmul.f32 %v1422_v4, %v132_v0  ;;  %v726_v12 = vmul.f32 %v1435_v11, %v592_v1  ;;  %v133_v15 = vunpack.c.h.bf16 %v46_v52  ;;  %v50_v0 = vld [vmem:[%s2340_s0 + $0xd0] sm:$0xff] }
  0x5e   :  { %1240 = vst [vmem:[#allocation2 + $0x140] sm:$0xff] %v1112_v3  ;;  %v1113_v18 = vmax.f32 %v985_v6, 0.0  ;;  %v986_v20 = vadd.f32 %v858_v7, %v398_v62  ;;  %v593_v21 = vunpack.c.h.bf16 %v506_v53  ;;  %v134_v23 = vunpack.c.l.bf16 %v47_v2 }
  0x5f   :  { %v987_v24 = vadd.f32 %v859_v9, %v399_v8  ;;  %v400_v25 = vadd.f32 %v1424_v5, %v266_v10  ;;  %v860_v26 = vadd.f32 %v1448_v17, %v726_v12  ;;  %v267_v27 = vmul.f32 %v1440_v13, %v133_v15  ;;  %v510_v12 = vld [vmem:[%s2343_s3 + $0xd0] sm:$0xff] }
  0x60   :  { %1241 = vst [vmem:[#allocation2 + $0x148] sm:$0xff] %v1113_v18  ;;  %v1114_v28 = vmax.f32 %v986_v20, 0.0  ;;  %v727_v29 = vmul.f32 %v1450_v19, %v593_v21  ;;  %v268_v30 = vmul.f32 %v1422_v4, %v134_v23  ;;  %v594_v31 = vunpack.c.l.bf16 %v507_v16 }
  0x61   :  { %v1115_v34 = vmax.f32 %v987_v24, 0.0  ;;  %v988_v35 = vadd.f32 %v860_v26, %v400_v25  ;;  %v401_v36 = vadd.f32 %v1442_v14, %v267_v27  ;;  %v135_v37 = vunpack.c.h.bf16 %v47_v2 }
  0x62   :  { %1242 = vst [vmem:[#allocation2 + $0x150] sm:$0xff] %v1114_v28  ;;  %v861_v38 = vadd.f32 %v1454_v22, %v727_v29  ;;  %v402_v39 = vadd.f32 %v1424_v5, %v268_v30  ;;  %v728_v40 = vmul.f32 %v1435_v11, %v594_v31  ;;  %v595_v41 = vunpack.c.h.bf16 %v507_v16  ;;  %v51_v30 = vld [vmem:[%s2340_s0 + $0xd8] sm:$0xff] }
  0x63   :  { %1243 = vst [vmem:[#allocation2 + $0x158] sm:$0xff] %v1115_v34  ;;  %v1116_v42 = vmax.f32 %v988_v35, 0.0  ;;  %v269_v43 = vmul.f32 %v1440_v13, %v135_v37  ;;  %v136_v44 = vunpack.c.l.bf16 %v48_v32  ;;  %v596_v45 = vunpack.c.l.bf16 %v508_v33  ;;  %v511_v31 = vld [vmem:[%s2343_s3 + $0xd8] sm:$0xff] }
  0x64   :  { %v989_v46 = vadd.f32 %v861_v38, %v401_v36  ;;  %v862_v47 = vadd.f32 %v1448_v17, %v728_v40  ;;  %v729_v48 = vmul.f32 %v1450_v19, %v595_v41  ;;  %v137_v49 = vunpack.c.h.bf16 %v48_v32 }
  0x65   :  { %1244 = vst [vmem:[#allocation2 + $0x160] sm:$0xff] %v1116_v42  ;;  %v403_v51 = vadd.f32 %v1442_v14, %v269_v43  ;;  %v270_v52 = vmul.f32 %v1422_v4, %v136_v44  ;;  %v730_v53 = vmul.f32 %v1435_v11, %v596_v45  ;;  %v597_v54 = vunpack.c.h.bf16 %v508_v33 }
  0x66   :  { %v1117_v56 = vmax.f32 %v989_v46, 0.0  ;;  %v990_v57 = vadd.f32 %v862_v47, %v402_v39  ;;  %v863_v58 = vadd.f32 %v1454_v22, %v729_v48  ;;  %v271_v59 = vmul.f32 %v1440_v13, %v137_v49  ;;  %v52_v48 = vld [vmem:[%s2340_s0 + $0xe0] sm:$0xff] }
  0x67   :  { %v404_v60 = vadd.f32 %v1424_v5, %v270_v52  ;;  %v864_v61 = vadd.f32 %v1448_v17, %v730_v53  ;;  %v731_v62 = vmul.f32 %v1450_v19, %v597_v54  ;;  %v138_v63 = vunpack.c.l.bf16 %v49_v50  ;;  %v512_v53 = vld [vmem:[%s2343_s3 + $0xe0] sm:$0xff] }
  0x68   :  { %1245 = vst [vmem:[#allocation2 + $0x168] sm:$0xff] %v1117_v56  ;;  %v1118_v1 = vmax.f32 %v990_v57, 0.0  ;;  %v991_v2 = vadd.f32 %v863_v58, %v403_v51  ;;  %v405_v3 = vadd.f32 %v1442_v14, %v271_v59  ;;  %v598_v6 = vunpack.c.l.bf16 %v509_v55 }
  0x69   :  { %v992_v7 = vadd.f32 %v864_v61, %v404_v60  ;;  %v865_v8 = vadd.f32 %v1454_v22, %v731_v62  ;;  %v272_v9 = vmul.f32 %v1422_v4, %v138_v63  ;;  %v139_v10 = vunpack.c.h.bf16 %v49_v50  ;;  %v53_v62 = vld [vmem:[%s2340_s0 + $0xe8] sm:$0xff] }
  0x6a   :  { %1246 = vst [vmem:[#allocation2 + $0x170] sm:$0xff] %v1118_v1  ;;  %v1119_v15 = vmax.f32 %v991_v2, 0.0  ;;  %v732_v16 = vmul.f32 %v1435_v11, %v598_v6  ;;  %v599_v18 = vunpack.c.h.bf16 %v509_v55  ;;  %v140_v20 = vunpack.c.l.bf16 %v50_v0 }
  0x6b   :  { %v1120_v21 = vmax.f32 %v992_v7, 0.0  ;;  %v993_v23 = vadd.f32 %v865_v8, %v405_v3  ;;  %v406_v24 = vadd.f32 %v1424_v5, %v272_v9  ;;  %v273_v25 = vmul.f32 %v1440_v13, %v139_v10  ;;  %v513_v3 = vld [vmem:[%s2343_s3 + $0xe8] sm:$0xff] }
  0x6c   :  { %1247 = vst [vmem:[#allocation2 + $0x178] sm:$0xff] %v1119_v15  ;;  %v866_v26 = vadd.f32 %v1448_v17, %v732_v16  ;;  %v733_v27 = vmul.f32 %v1450_v19, %v599_v18  ;;  %v274_v28 = vmul.f32 %v1422_v4, %v140_v20  ;;  %v600_v29 = vunpack.c.l.bf16 %v510_v12 }
  0x6d   :  { %1248 = vst [vmem:[#allocation2 + $0x180] sm:$0xff] %v1120_v21  ;;  %v1121_v32 = vmax.f32 %v993_v23, 0.0  ;;  %v407_v33 = vadd.f32 %v1442_v14, %v273_v25  ;;  %v141_v34 = vunpack.c.h.bf16 %v50_v0  ;;  %v601_v35 = vunpack.c.h.bf16 %v510_v12 }
  0x6e   :  { %v994_v36 = vadd.f32 %v866_v26, %v406_v24  ;;  %v867_v37 = vadd.f32 %v1454_v22, %v733_v27  ;;  %v408_v38 = vadd.f32 %v1424_v5, %v274_v28  ;;  %v734_v39 = vmul.f32 %v1435_v11, %v600_v29  ;;  %v54_v28 = vld [vmem:[%s2340_s0 + $0xf0] sm:$0xff] }
  0x6f   :  { %1249 = vst [vmem:[#allocation2 + $0x188] sm:$0xff] %v1121_v32  ;;  %v275_v40 = vmul.f32 %v1440_v13, %v141_v34  ;;  %v735_v41 = vmul.f32 %v1450_v19, %v601_v35  ;;  %v142_v42 = vunpack.c.l.bf16 %v51_v30  ;;  %v602_v43 = vunpack.c.l.bf16 %v511_v31 }
  0x70   :  { %v1122_v44 = vmax.f32 %v994_v36, 0.0  ;;  %v995_v45 = vadd.f32 %v867_v37, %v407_v33  ;;  %v868_v46 = vadd.f32 %v1448_v17, %v734_v39  ;;  %v143_v47 = vunpack.c.h.bf16 %v51_v30  ;;  %v514_v33 = vld [vmem:[%s2343_s3 + $0xf0] sm:$0xff] }
  0x71   :  { %v409_v49 = vadd.f32 %v1442_v14, %v275_v40  ;;  %v869_v50 = vadd.f32 %v1454_v22, %v735_v41  ;;  %v276_v51 = vmul.f32 %v1422_v4, %v142_v42  ;;  %v736_v52 = vmul.f32 %v1435_v11, %v602_v43 }
  0x72   :  { %1250 = vst [vmem:[#allocation2 + $0x190] sm:$0xff] %v1122_v44  ;;  %v1123_v54 = vmax.f32 %v995_v45, 0.0  ;;  %v996_v55 = vadd.f32 %v868_v46, %v408_v38  ;;  %v277_v56 = vmul.f32 %v1440_v13, %v143_v47  ;;  %v603_v57 = vunpack.c.h.bf16 %v511_v31  ;;  %v55_v46 = vld [vmem:[%s2340_s0 + $0xf8] sm:$0xff] }
  0x73   :  { %v997_v58 = vadd.f32 %v869_v50, %v409_v49  ;;  %v410_v59 = vadd.f32 %v1424_v5, %v276_v51  ;;  %v870_v60 = vadd.f32 %v1448_v17, %v736_v52  ;;  %v144_v61 = vunpack.c.l.bf16 %v52_v48  ;;  %v515_v51 = vld [vmem:[%s2343_s3 + $0xf8] sm:$0xff] }
  0x74   :  { %1251 = vst [vmem:[#allocation2 + $0x198] sm:$0xff] %v1123_v54  ;;  %v1124_v63 = vmax.f32 %v996_v55, 0.0  ;;  %v411_v0 = vadd.f32 %v1442_v14, %v277_v56  ;;  %v737_v1 = vmul.f32 %v1450_v19, %v603_v57  ;;  %v604_v2 = vunpack.c.l.bf16 %v512_v53 }
  0x75   :  { %v1125_v6 = vmax.f32 %v997_v58, 0.0  ;;  %v998_v7 = vadd.f32 %v870_v60, %v410_v59  ;;  %v278_v8 = vmul.f32 %v1422_v4, %v144_v61  ;;  %v145_v9 = vunpack.c.h.bf16 %v52_v48  ;;  %v56_v60 = vld [vmem:[%s2340_s0 + $0x100] sm:$0xff] }
  0x76   :  { %1252 = vst [vmem:[#allocation2 + $0x1a0] sm:$0xff] %v1124_v63  ;;  %v871_v10 = vadd.f32 %v1454_v22, %v737_v1  ;;  %v738_v12 = vmul.f32 %v1435_v11, %v604_v2  ;;  %v605_v15 = vunpack.c.h.bf16 %v512_v53  ;;  %v146_v16 = vunpack.c.l.bf16 %v53_v62  ;;  %v516_v1 = vld [vmem:[%s2343_s3 + $0x100] sm:$0xff] }
  0x77   :  { %1253 = vst [vmem:[#allocation2 + $0x1a8] sm:$0xff] %v1125_v6  ;;  %v1126_v18 = vmax.f32 %v998_v7, 0.0  ;;  %v412_v20 = vadd.f32 %v1424_v5, %v278_v8  ;;  %v279_v21 = vmul.f32 %v1440_v13, %v145_v9  ;;  %v606_v23 = vunpack.c.l.bf16 %v513_v3 }
  0x78   :  { %v999_v24 = vadd.f32 %v871_v10, %v411_v0  ;;  %v872_v25 = vadd.f32 %v1448_v17, %v738_v12  ;;  %v739_v26 = vmul.f32 %v1450_v19, %v605_v15  ;;  %v280_v27 = vmul.f32 %v1422_v4, %v146_v16 }
  0x79   :  { %1254 = vst [vmem:[#allocation2 + $0x1b0] sm:$0xff] %v1126_v18  ;;  %v413_v29 = vadd.f32 %v1442_v14, %v279_v21  ;;  %v740_v30 = vmul.f32 %v1435_v11, %v606_v23  ;;  %v147_v31 = vunpack.c.h.bf16 %v53_v62  ;;  %v607_v32 = vunpack.c.h.bf16 %v513_v3 }
  0x7a   :  { %v1127_v34 = vmax.f32 %v999_v24, 0.0  ;;  %v1000_v35 = vadd.f32 %v872_v25, %v412_v20  ;;  %v873_v36 = vadd.f32 %v1454_v22, %v739_v26  ;;  %v414_v37 = vadd.f32 %v1424_v5, %v280_v27  ;;  %v57_v26 = vld [vmem:[%s2340_s0 + $0x108] sm:$0xff] }
  0x7b   :  { %v874_v38 = vadd.f32 %v1448_v17, %v740_v30  ;;  %v281_v39 = vmul.f32 %v1440_v13, %v147_v31  ;;  %v741_v40 = vmul.f32 %v1450_v19, %v607_v32  ;;  %v148_v41 = vunpack.c.l.bf16 %v54_v28  ;;  %v517_v31 = vld [vmem:[%s2343_s3 + $0x108] sm:$0xff] }
  0x7c   :  { %1255 = vst [vmem:[#allocation2 + $0x1b8] sm:$0xff] %v1127_v34  ;;  %v1128_v42 = vmax.f32 %v1000_v35, 0.0  ;;  %v1001_v43 = vadd.f32 %v873_v36, %v413_v29  ;;  %v608_v44 = vunpack.c.l.bf16 %v514_v33  ;;  %v149_v45 = vunpack.c.h.bf16 %v54_v28 }
  0x7d   :  { %v1002_v47 = vadd.f32 %v874_v38, %v414_v37  ;;  %v415_v48 = vadd.f32 %v1442_v14, %v281_v39  ;;  %v875_v49 = vadd.f32 %v1454_v22, %v741_v40  ;;  %v282_v50 = vmul.f32 %v1422_v4, %v148_v41 }
  0x7e   :  { %1256 = vst [vmem:[#allocation2 + $0x1c0] sm:$0xff] %v1128_v42  ;;  %v1129_v52 = vmax.f32 %v1001_v43, 0.0  ;;  %v742_v53 = vmul.f32 %v1435_v11, %v608_v44  ;;  %v283_v54 = vmul.f32 %v1440_v13, %v149_v45  ;;  %v609_v55 = vunpack.c.h.bf16 %v514_v33  ;;  %v58_v44 = vld [vmem:[%s2340_s0 + $0x110] sm:$0xff] }
  0x7f   :  { %v1130_v56 = vmax.f32 %v1002_v47, 0.0  ;;  %v1003_v57 = vadd.f32 %v875_v49, %v415_v48  ;;  %v416_v58 = vadd.f32 %v1424_v5, %v282_v50  ;;  %v150_v59 = vunpack.c.l.bf16 %v55_v46  ;;  %v518_v45 = vld [vmem:[%s2343_s3 + $0x110] sm:$0xff] }
  0x80   :  { %1257 = vst [vmem:[#allocation2 + $0x1c8] sm:$0xff] %v1129_v52  ;;  %v876_v61 = vadd.f32 %v1448_v17, %v742_v53  ;;  %v417_v62 = vadd.f32 %v1442_v14, %v283_v54  ;;  %v743_v63 = vmul.f32 %v1450_v19, %v609_v55  ;;  %v610_v0 = vunpack.c.l.bf16 %v515_v51 }
  0x81   :  { %1258 = vst [vmem:[#allocation2 + $0x1d0] sm:$0xff] %v1130_v56  ;;  %v1131_v2 = vmax.f32 %v1003_v57, 0.0  ;;  %v284_v3 = vmul.f32 %v1422_v4, %v150_v59  ;;  %v151_v6 = vunpack.c.h.bf16 %v55_v46  ;;  %v611_v7 = vunpack.c.h.bf16 %v515_v51 }
  0x82   :  { %v1004_v8 = vadd.f32 %v876_v61, %v416_v58  ;;  %v877_v9 = vadd.f32 %v1454_v22, %v743_v63  ;;  %v744_v10 = vmul.f32 %v1435_v11, %v610_v0  ;;  %v152_v12 = vunpack.c.l.bf16 %v56_v60  ;;  %v59_v58 = vld [vmem:[%s2340_s0 + $0x118] sm:$0xff] }
  0x83   :  { %1259 = vst [vmem:[#allocation2 + $0x1d8] sm:$0xff] %v1131_v2  ;;  %v418_v15 = vadd.f32 %v1424_v5, %v284_v3  ;;  %v285_v16 = vmul.f32 %v1440_v13, %v151_v6  ;;  %v745_v18 = vmul.f32 %v1450_v19, %v611_v7  ;;  %v612_v20 = vunpack.c.l.bf16 %v516_v1  ;;  %v519_v3 = vld [vmem:[%s2343_s3 + $0x118] sm:$0xff] }
  0x84   :  { %v1132_v21 = vmax.f32 %v1004_v8, 0.0  ;;  %v1005_v23 = vadd.f32 %v877_v9, %v417_v62  ;;  %v878_v24 = vadd.f32 %v1448_v17, %v744_v10  ;;  %v286_v25 = vmul.f32 %v1422_v4, %v152_v12 }
  0x85   :  { %v419_v27 = vadd.f32 %v1442_v14, %v285_v16  ;;  %v879_v28 = vadd.f32 %v1454_v22, %v745_v18  ;;  %v746_v29 = vmul.f32 %v1435_v11, %v612_v20  ;;  %v153_v30 = vunpack.c.h.bf16 %v56_v60 }
  0x86   :  { %1260 = vst [vmem:[#allocation2 + $0x1e0] sm:$0xff] %v1132_v21  ;;  %v1133_v32 = vmax.f32 %v1005_v23, 0.0  ;;  %v1006_v33 = vadd.f32 %v878_v24, %v418_v15  ;;  %v420_v34 = vadd.f32 %v1424_v5, %v286_v25  ;;  %v613_v35 = vunpack.c.h.bf16 %v516_v1  ;;  %v60_v24 = vld [vmem:[%s2340_s0 + $0x120] sm:$0xff] }
  0x87   :  { %v1007_v36 = vadd.f32 %v879_v28, %v419_v27  ;;  %v880_v37 = vadd.f32 %v1448_v17, %v746_v29  ;;  %v287_v38 = vmul.f32 %v1440_v13, %v153_v30  ;;  %v154_v39 = vunpack.c.l.bf16 %v57_v26  ;;  %v520_v29 = vld [vmem:[%s2343_s3 + $0x120] sm:$0xff] }
  0x88   :  { %1261 = vst [vmem:[#allocation2 + $0x1e8] sm:$0xff] %v1133_v32  ;;  %v1134_v40 = vmax.f32 %v1006_v33, 0.0  ;;  %v747_v41 = vmul.f32 %v1450_v19, %v613_v35  ;;  %v614_v42 = vunpack.c.l.bf16 %v517_v31  ;;  %v155_v43 = vunpack.c.h.bf16 %v57_v26 }
  0x89   :  { %v1135_v46 = vmax.f32 %v1007_v36, 0.0  ;;  %v1008_v47 = vadd.f32 %v880_v37, %v420_v34  ;;  %v421_v48 = vadd.f32 %v1442_v14, %v287_v38  ;;  %v288_v49 = vmul.f32 %v1422_v4, %v154_v39 }
  0x8a   :  { %1262 = vst [vmem:[#allocation2 + $0x1f0] sm:$0xff] %v1134_v40  ;;  %v881_v50 = vadd.f32 %v1454_v22, %v747_v41  ;;  %v748_v51 = vmul.f32 %v1435_v11, %v614_v42  ;;  %v289_v52 = vmul.f32 %v1440_v13, %v155_v43  ;;  %v615_v53 = vunpack.c.h.bf16 %v517_v31  ;;  %v61_v42 = vld [vmem:[%s2340_s0 + $0x128] sm:$0xff] }
  0x8b   :  { %1263 = vst [vmem:[#allocation2 + $0x1f8] sm:$0xff] %v1135_v46  ;;  %v1136_v54 = vmax.f32 %v1008_v47, 0.0  ;;  %v422_v55 = vadd.f32 %v1424_v5, %v288_v49  ;;  %v156_v56 = vunpack.c.l.bf16 %v58_v44  ;;  %v616_v57 = vunpack.c.l.bf16 %v518_v45  ;;  %v521_v43 = vld [vmem:[%s2343_s3 + $0x128] sm:$0xff] }
  0x8c   :  { %v1009_v59 = vadd.f32 %v881_v50, %v421_v48  ;;  %v882_v60 = vadd.f32 %v1448_v17, %v748_v51  ;;  %v423_v61 = vadd.f32 %v1442_v14, %v289_v52  ;;  %v749_v62 = vmul.f32 %v1450_v19, %v615_v53 }
  0x8d   :  { %1264 = vst [vmem:[#allocation2 + $0x200] sm:$0xff] %v1136_v54  ;;  %v290_v63 = vmul.f32 %v1422_v4, %v156_v56  ;;  %v750_v0 = vmul.f32 %v1435_v11, %v616_v57  ;;  %v157_v1 = vunpack.c.h.bf16 %v58_v44  ;;  %v617_v2 = vunpack.c.h.bf16 %v518_v45  ;;  %v62_v56 = vld [vmem:[%s2340_s0 + $0x130] sm:$0xff] }
  0x8e   :  { %v1137_v6 = vmax.f32 %v1009_v59, 0.0  ;;  %v1010_v7 = vadd.f32 %v882_v60, %v422_v55  ;;  %v883_v8 = vadd.f32 %v1454_v22, %v749_v62  ;;  %v158_v9 = vunpack.c.l.bf16 %v59_v58 }
  0x8f   :  { %v424_v10 = vadd.f32 %v1424_v5, %v290_v63  ;;  %v884_v12 = vadd.f32 %v1448_v17, %v750_v0  ;;  %v291_v15 = vmul.f32 %v1440_v13, %v157_v1  ;;  %v751_v16 = vmul.f32 %v1450_v19, %v617_v2  ;;  %v522_v1 = vld [vmem:[%s2343_s3 + $0x130] sm:$0xff] }
  0x90   :  { %1265 = vst [vmem:[#allocation2 + $0x208] sm:$0xff] %v1137_v6  ;;  %v1138_v18 = vmax.f32 %v1010_v7, 0.0  ;;  %v1011_v20 = vadd.f32 %v883_v8, %v423_v61  ;;  %v292_v21 = vmul.f32 %v1422_v4, %v158_v9  ;;  %v618_v23 = vunpack.c.l.bf16 %v519_v3 }
  0x91   :  { %v1012_v25 = vadd.f32 %v884_v12, %v424_v10  ;;  %v425_v26 = vadd.f32 %v1442_v14, %v291_v15  ;;  %v885_v27 = vadd.f32 %v1454_v22, %v751_v16  ;;  %v159_v28 = vunpack.c.h.bf16 %v59_v58 }
  0x92   :  { %1266 = vst [vmem:[#allocation2 + $0x210] sm:$0xff] %v1138_v18  ;;  %v1139_v30 = vmax.f32 %v1011_v20, 0.0  ;;  %v426_v31 = vadd.f32 %v1424_v5, %v292_v21  ;;  %v752_v32 = vmul.f32 %v1435_v11, %v618_v23  ;;  %v619_v33 = vunpack.c.h.bf16 %v519_v3  ;;  %v63_v21 = vld [vmem:[%s2340_s0 + $0x138] sm:$0xff] }
  0x93   :  { %v1140_v34 = vmax.f32 %v1012_v25, 0.0  ;;  %v1013_v35 = vadd.f32 %v885_v27, %v425_v26  ;;  %v293_v36 = vmul.f32 %v1440_v13, %v159_v28  ;;  %v160_v37 = vunpack.c.l.bf16 %v60_v24  ;;  %v523_v23 = vld [vmem:[%s2343_s3 + $0x138] sm:$0xff] }
  0x94   :  { %1267 = vst [vmem:[#allocation2 + $0x218] sm:$0xff] %v1139_v30  ;;  %v886_v38 = vadd.f32 %v1448_v17, %v752_v32  ;;  %v753_v39 = vmul.f32 %v1450_v19, %v619_v33  ;;  %v620_v40 = vunpack.c.l.bf16 %v520_v29  ;;  %v161_v41 = vunpack.c.h.bf16 %v60_v24 }
  0x95   :  { %1268 = vst [vmem:[#allocation2 + $0x220] sm:$0xff] %v1140_v34  ;;  %v1141_v44 = vmax.f32 %v1013_v35, 0.0  ;;  %v427_v45 = vadd.f32 %v1442_v14, %v293_v36  ;;  %v294_v46 = vmul.f32 %v1422_v4, %v160_v37  ;;  %v621_v47 = vunpack.c.h.bf16 %v520_v29 }
  0x96   :  { %v1014_v48 = vadd.f32 %v886_v38, %v426_v31  ;;  %v887_v49 = vadd.f32 %v1454_v22, %v753_v39  ;;  %v754_v50 = vmul.f32 %v1435_v11, %v620_v40  ;;  %v295_v51 = vmul.f32 %v1440_v13, %v161_v41  ;;  %v64_v40 = vld [vmem:[%s2340_s0 + $0x140] sm:$0xff] }
  0x97   :  { %1269 = vst [vmem:[#allocation2 + $0x228] sm:$0xff] %v1141_v44  ;;  %v428_v52 = vadd.f32 %v1424_v5, %v294_v46  ;;  %v755_v53 = vmul.f32 %v1450_v19, %v621_v47  ;;  %v162_v54 = vunpack.c.l.bf16 %v61_v42  ;;  %v622_v55 = vunpack.c.l.bf16 %v521_v43 }
  0x98   :  { %v1142_v57 = vmax.f32 %v1014_v48, 0.0  ;;  %v1015_v58 = vadd.f32 %v887_v49, %v427_v45  ;;  %v888_v59 = vadd.f32 %v1448_v17, %v754_v50  ;;  %v429_v60 = vadd.f32 %v1442_v14, %v295_v51  ;;  %v524_v45 = vld [vmem:[%s2343_s3 + $0x140] sm:$0xff] }
  0x99   :  { %v889_v61 = vadd.f32 %v1454_v22, %v755_v53  ;;  %v296_v62 = vmul.f32 %v1422_v4, %v162_v54  ;;  %v756_v63 = vmul.f32 %v1435_v11, %v622_v55  ;;  %v163_v0 = vunpack.c.h.bf16 %v61_v42  ;;  %v65_v54 = vld [vmem:[%s2340_s0 + $0x148] sm:$0xff] }
  0x9a   :  { %1270 = vst [vmem:[#allocation2 + $0x230] sm:$0xff] %v1142_v57  ;;  %v1143_v2 = vmax.f32 %v1015_v58, 0.0  ;;  %v1016_v3 = vadd.f32 %v888_v59, %v428_v52  ;;  %v623_v6 = vunpack.c.h.bf16 %v521_v43  ;;  %v164_v7 = vunpack.c.l.bf16 %v62_v56 }
  0x9b   :  { %v1017_v8 = vadd.f32 %v889_v61, %v429_v60  ;;  %v430_v9 = vadd.f32 %v1424_v5, %v296_v62  ;;  %v890_v10 = vadd.f32 %v1448_v17, %v756_v63  ;;  %v297_v12 = vmul.f32 %v1440_v13, %v163_v0  ;;  %v525_v63 = vld [vmem:[%s2343_s3 + $0x148] sm:$0xff] }
  0x9c   :  { %1271 = vst [vmem:[#allocation2 + $0x238] sm:$0xff] %v1143_v2  ;;  %v1144_v15 = vmax.f32 %v1016_v3, 0.0  ;;  %v757_v16 = vmul.f32 %v1450_v19, %v623_v6  ;;  %v298_v18 = vmul.f32 %v1422_v4, %v164_v7  ;;  %v624_v20 = vunpack.c.l.bf16 %v522_v1 }
  0x9d   :  { %v1145_v24 = vmax.f32 %v1017_v8, 0.0  ;;  %v1018_v25 = vadd.f32 %v890_v10, %v430_v9  ;;  %v431_v26 = vadd.f32 %v1442_v14, %v297_v12  ;;  %v165_v27 = vunpack.c.h.bf16 %v62_v56 }
  0x9e   :  { %1272 = vst [vmem:[#allocation2 + $0x240] sm:$0xff] %v1144_v15  ;;  %v891_v28 = vadd.f32 %v1454_v22, %v757_v16  ;;  %v432_v29 = vadd.f32 %v1424_v5, %v298_v18  ;;  %v758_v30 = vmul.f32 %v1435_v11, %v624_v20  ;;  %v625_v31 = vunpack.c.h.bf16 %v522_v1  ;;  %v66_v18 = vld [vmem:[%s2340_s0 + $0x150] sm:$0xff] }
  0x9f   :  { %1273 = vst [vmem:[#allocation2 + $0x248] sm:$0xff] %v1145_v24  ;;  %v1146_v32 = vmax.f32 %v1018_v25, 0.0  ;;  %v299_v33 = vmul.f32 %v1440_v13, %v165_v27  ;;  %v166_v34 = vunpack.c.l.bf16 %v63_v21  ;;  %v626_v35 = vunpack.c.l.bf16 %v523_v23  ;;  %v526_v20 = vld [vmem:[%s2343_s3 + $0x150] sm:$0xff] }
  0xa0   :  { %v1019_v36 = vadd.f32 %v891_v28, %v431_v26  ;;  %v892_v37 = vadd.f32 %v1448_v17, %v758_v30  ;;  %v759_v38 = vmul.f32 %v1450_v19, %v625_v31  ;;  %v167_v39 = vunpack.c.h.bf16 %v63_v21 }
  0xa1   :  { %1274 = vst [vmem:[#allocation2 + $0x250] sm:$0xff] %v1146_v32  ;;  %v433_v41 = vadd.f32 %v1442_v14, %v299_v33  ;;  %v300_v42 = vmul.f32 %v1422_v4, %v166_v34  ;;  %v760_v43 = vmul.f32 %v1435_v11, %v626_v35  ;;  %v627_v44 = vunpack.c.h.bf16 %v523_v23 }
  0xa2   :  { %v1147_v46 = vmax.f32 %v1019_v36, 0.0  ;;  %v1020_v47 = vadd.f32 %v892_v37, %v432_v29  ;;  %v893_v48 = vadd.f32 %v1454_v22, %v759_v38  ;;  %v301_v49 = vmul.f32 %v1440_v13, %v167_v39  ;;  %v67_v38 = vld [vmem:[%s2340_s0 + $0x158] sm:$0xff] }
  0xa3   :  { %v434_v50 = vadd.f32 %v1424_v5, %v300_v42  ;;  %v894_v51 = vadd.f32 %v1448_v17, %v760_v43  ;;  %v761_v52 = vmul.f32 %v1450_v19, %v627_v44  ;;  %v168_v53 = vunpack.c.l.bf16 %v64_v40  ;;  %v527_v43 = vld [vmem:[%s2343_s3 + $0x158] sm:$0xff] }
  0xa4   :  { %1275 = vst [vmem:[#allocation2 + $0x258] sm:$0xff] %v1147_v46  ;;  %v1148_v55 = vmax.f32 %v1020_v47, 0.0  ;;  %v1021_v56 = vadd.f32 %v893_v48, %v433_v41  ;;  %v435_v57 = vadd.f32 %v1442_v14, %v301_v49  ;;  %v628_v58 = vunpack.c.l.bf16 %v524_v45 }
  0xa5   :  { %v1022_v59 = vadd.f32 %v894_v51, %v434_v50  ;;  %v895_v60 = vadd.f32 %v1454_v22, %v761_v52  ;;  %v302_v61 = vmul.f32 %v1422_v4, %v168_v53  ;;  %v169_v62 = vunpack.c.h.bf16 %v64_v40  ;;  %v68_v52 = vld [vmem:[%s2340_s0 + $0x160] sm:$0xff] }
  0xa6   :  { %1276 = vst [vmem:[#allocation2 + $0x260] sm:$0xff] %v1148_v55  ;;  %v1149_v0 = vmax.f32 %v1021_v56, 0.0  ;;  %v762_v1 = vmul.f32 %v1435_v11, %v628_v58  ;;  %v629_v2 = vunpack.c.h.bf16 %v524_v45  ;;  %v170_v3 = vunpack.c.l.bf16 %v65_v54 }
  0xa7   :  { %v1150_v6 = vmax.f32 %v1022_v59, 0.0  ;;  %v1023_v7 = vadd.f32 %v895_v60, %v435_v57  ;;  %v436_v8 = vadd.f32 %v1424_v5, %v302_v61  ;;  %v303_v9 = vmul.f32 %v1440_v13, %v169_v62  ;;  %v528_v57 = vld [vmem:[%s2343_s3 + $0x160] sm:$0xff] }
  0xa8   :  { %1277 = vst [vmem:[#allocation2 + $0x268] sm:$0xff] %v1149_v0  ;;  %v896_v10 = vadd.f32 %v1448_v17, %v762_v1  ;;  %v763_v12 = vmul.f32 %v1450_v19, %v629_v2  ;;  %v304_v15 = vmul.f32 %v1422_v4, %v170_v3  ;;  %v630_v16 = vunpack.c.l.bf16 %v525_v63 }
  0xa9   :  { %1278 = vst [vmem:[#allocation2 + $0x270] sm:$0xff] %v1150_v6  ;;  %v1151_v21 = vmax.f32 %v1023_v7, 0.0  ;;  %v437_v23 = vadd.f32 %v1442_v14, %v303_v9  ;;  %v171_v24 = vunpack.c.h.bf16 %v65_v54  ;;  %v631_v25 = vunpack.c.h.bf16 %v525_v63 }
  0xaa   :  { %v1024_v26 = vadd.f32 %v896_v10, %v436_v8  ;;  %v897_v27 = vadd.f32 %v1454_v22, %v763_v12  ;;  %v438_v28 = vadd.f32 %v1424_v5, %v304_v15  ;;  %v764_v29 = vmul.f32 %v1435_v11, %v630_v16  ;;  %v69_v15 = vld [vmem:[%s2340_s0 + $0x168] sm:$0xff] }
  0xab   :  { %1279 = vst [vmem:[#allocation2 + $0x278] sm:$0xff] %v1151_v21  ;;  %v305_v30 = vmul.f32 %v1440_v13, %v171_v24  ;;  %v765_v31 = vmul.f32 %v1450_v19, %v631_v25  ;;  %v172_v32 = vunpack.c.l.bf16 %v66_v18  ;;  %v632_v33 = vunpack.c.l.bf16 %v526_v20 }
  0xac   :  { %v1152_v34 = vmax.f32 %v1024_v26, 0.0  ;;  %v1025_v35 = vadd.f32 %v897_v27, %v437_v23  ;;  %v898_v36 = vadd.f32 %v1448_v17, %v764_v29  ;;  %v173_v37 = vunpack.c.h.bf16 %v66_v18  ;;  %v529_v23 = vld [vmem:[%s2343_s3 + $0x168] sm:$0xff] }
  0xad   :  { %v439_v39 = vadd.f32 %v1442_v14, %v305_v30  ;;  %v899_v40 = vadd.f32 %v1454_v22, %v765_v31  ;;  %v306_v41 = vmul.f32 %v1422_v4, %v172_v32  ;;  %v766_v42 = vmul.f32 %v1435_v11, %v632_v33 }
  0xae   :  { %1280 = vst [vmem:[#allocation2 + $0x280] sm:$0xff] %v1152_v34  ;;  %v1153_v44 = vmax.f32 %v1025_v35, 0.0  ;;  %v1026_v45 = vadd.f32 %v898_v36, %v438_v28  ;;  %v307_v46 = vmul.f32 %v1440_v13, %v173_v37  ;;  %v633_v47 = vunpack.c.h.bf16 %v526_v20  ;;  %v70_v36 = vld [vmem:[%s2340_s0 + $0x170] sm:$0xff] }
  0xaf   :  { %v1027_v48 = vadd.f32 %v899_v40, %v439_v39  ;;  %v440_v49 = vadd.f32 %v1424_v5, %v306_v41  ;;  %v900_v50 = vadd.f32 %v1448_v17, %v766_v42  ;;  %v174_v51 = vunpack.c.l.bf16 %v67_v38  ;;  %v530_v41 = vld [vmem:[%s2343_s3 + $0x170] sm:$0xff] }
  0xb0   :  { %1281 = vst [vmem:[#allocation2 + $0x288] sm:$0xff] %v1153_v44  ;;  %v1154_v53 = vmax.f32 %v1026_v45, 0.0  ;;  %v441_v54 = vadd.f32 %v1442_v14, %v307_v46  ;;  %v767_v55 = vmul.f32 %v1450_v19, %v633_v47  ;;  %v634_v56 = vunpack.c.l.bf16 %v527_v43 }
  0xb1   :  { %v1155_v58 = vmax.f32 %v1027_v48, 0.0  ;;  %v1028_v59 = vadd.f32 %v900_v50, %v440_v49  ;;  %v308_v60 = vmul.f32 %v1422_v4, %v174_v51  ;;  %v175_v61 = vunpack.c.h.bf16 %v67_v38  ;;  %v71_v50 = vld [vmem:[%s2340_s0 + $0x178] sm:$0xff] }
  0xb2   :  { %1282 = vst [vmem:[#allocation2 + $0x290] sm:$0xff] %v1154_v53  ;;  %v901_v62 = vadd.f32 %v1454_v22, %v767_v55  ;;  %v768_v63 = vmul.f32 %v1435_v11, %v634_v56  ;;  %v635_v0 = vunpack.c.h.bf16 %v527_v43  ;;  %v176_v1 = vunpack.c.l.bf16 %v68_v52  ;;  %v531_v55 = vld [vmem:[%s2343_s3 + $0x178] sm:$0xff] }
  0xb3   :  { %1283 = vst [vmem:[#allocation2 + $0x298] sm:$0xff] %v1155_v58  ;;  %v1156_v2 = vmax.f32 %v1028_v59, 0.0  ;;  %v442_v3 = vadd.f32 %v1424_v5, %v308_v60  ;;  %v309_v6 = vmul.f32 %v1440_v13, %v175_v61  ;;  %v636_v7 = vunpack.c.l.bf16 %v528_v57 }
  0xb4   :  { %v1029_v8 = vadd.f32 %v901_v62, %v441_v54  ;;  %v902_v9 = vadd.f32 %v1448_v17, %v768_v63  ;;  %v769_v10 = vmul.f32 %v1450_v19, %v635_v0  ;;  %v310_v12 = vmul.f32 %v1422_v4, %v176_v1 }
  0xb5   :  { %1284 = vst [vmem:[#allocation2 + $0x2a0] sm:$0xff] %v1156_v2  ;;  %v443_v16 = vadd.f32 %v1442_v14, %v309_v6  ;;  %v770_v18 = vmul.f32 %v1435_v11, %v636_v7  ;;  %v177_v20 = vunpack.c.h.bf16 %v68_v52  ;;  %v637_v21 = vunpack.c.h.bf16 %v528_v57 }
  0xb6   :  { %v1157_v24 = vmax.f32 %v1029_v8, 0.0  ;;  %v1030_v25 = vadd.f32 %v902_v9, %v442_v3  ;;  %v903_v26 = vadd.f32 %v1454_v22, %v769_v10  ;;  %v444_v27 = vadd.f32 %v1424_v5, %v310_v12  ;;  %v72_v10 = vld [vmem:[%s2340_s0 + $0x180] sm:$0xff] }
  0xb7   :  { %v904_v28 = vadd.f32 %v1448_v17, %v770_v18  ;;  %v311_v29 = vmul.f32 %v1440_v13, %v177_v20  ;;  %v771_v30 = vmul.f32 %v1450_v19, %v637_v21  ;;  %v178_v31 = vunpack.c.l.bf16 %v69_v15  ;;  %v532_v20 = vld [vmem:[%s2343_s3 + $0x180] sm:$0xff] }
  0xb8   :  { %1285 = vst [vmem:[#allocation2 + $0x2a8] sm:$0xff] %v1157_v24  ;;  %v1158_v32 = vmax.f32 %v1030_v25, 0.0  ;;  %v1031_v33 = vadd.f32 %v903_v26, %v443_v16  ;;  %v638_v34 = vunpack.c.l.bf16 %v529_v23  ;;  %v179_v35 = vunpack.c.h.bf16 %v69_v15 }
  0xb9   :  { %v1032_v37 = vadd.f32 %v904_v28, %v444_v27  ;;  %v445_v38 = vadd.f32 %v1442_v14, %v311_v29  ;;  %v905_v39 = vadd.f32 %v1454_v22, %v771_v30  ;;  %v312_v40 = vmul.f32 %v1422_v4, %v178_v31 }
  0xba   :  { %1286 = vst [vmem:[#allocation2 + $0x2b0] sm:$0xff] %v1158_v32  ;;  %v1159_v42 = vmax.f32 %v1031_v33, 0.0  ;;  %v772_v43 = vmul.f32 %v1435_v11, %v638_v34  ;;  %v313_v44 = vmul.f32 %v1440_v13, %v179_v35  ;;  %v639_v45 = vunpack.c.h.bf16 %v529_v23  ;;  %v73_v34 = vld [vmem:[%s2340_s0 + $0x188] sm:$0xff] }
  0xbb   :  { %v1160_v46 = vmax.f32 %v1032_v37, 0.0  ;;  %v1033_v47 = vadd.f32 %v905_v39, %v445_v38  ;;  %v446_v48 = vadd.f32 %v1424_v5, %v312_v40  ;;  %v180_v49 = vunpack.c.l.bf16 %v70_v36  ;;  %v533_v35 = vld [vmem:[%s2343_s3 + $0x188] sm:$0xff] }
  0xbc   :  { %1287 = vst [vmem:[#allocation2 + $0x2b8] sm:$0xff] %v1159_v42  ;;  %v906_v51 = vadd.f32 %v1448_v17, %v772_v43  ;;  %v447_v52 = vadd.f32 %v1442_v14, %v313_v44  ;;  %v773_v53 = vmul.f32 %v1450_v19, %v639_v45  ;;  %v640_v54 = vunpack.c.l.bf16 %v530_v41 }
  0xbd   :  { %1288 = vst [vmem:[#allocation2 + $0x2c0] sm:$0xff] %v1160_v46  ;;  %v1161_v56 = vmax.f32 %v1033_v47, 0.0  ;;  %v314_v57 = vmul.f32 %v1422_v4, %v180_v49  ;;  %v181_v58 = vunpack.c.h.bf16 %v70_v36  ;;  %v641_v59 = vunpack.c.h.bf16 %v530_v41 }
  0xbe   :  { %v1034_v60 = vadd.f32 %v906_v51, %v446_v48  ;;  %v907_v61 = vadd.f32 %v1454_v22, %v773_v53  ;;  %v774_v62 = vmul.f32 %v1435_v11, %v640_v54  ;;  %v182_v63 = vunpack.c.l.bf16 %v71_v50  ;;  %v74_v48 = vld [vmem:[%s2340_s0 + $0x190] sm:$0xff] }
  0xbf   :  { %1289 = vst [vmem:[#allocation2 + $0x2c8] sm:$0xff] %v1161_v56  ;;  %v448_v0 = vadd.f32 %v1424_v5, %v314_v57  ;;  %v315_v1 = vmul.f32 %v1440_v13, %v181_v58  ;;  %v775_v2 = vmul.f32 %v1450_v19, %v641_v59  ;;  %v642_v3 = vunpack.c.l.bf16 %v531_v55  ;;  %v534_v57 = vld [vmem:[%s2343_s3 + $0x190] sm:$0xff] }
  0xc0   :  { %v1162_v6 = vmax.f32 %v1034_v60, 0.0  ;;  %v1035_v7 = vadd.f32 %v907_v61, %v447_v52  ;;  %v908_v8 = vadd.f32 %v1448_v17, %v774_v62  ;;  %v316_v9 = vmul.f32 %v1422_v4, %v182_v63 }
  0xc1   :  { %v449_v12 = vadd.f32 %v1442_v14, %v315_v1  ;;  %v909_v15 = vadd.f32 %v1454_v22, %v775_v2  ;;  %v776_v16 = vmul.f32 %v1435_v11, %v642_v3  ;;  %v183_v18 = vunpack.c.h.bf16 %v71_v50 }
  0xc2   :  { %1290 = vst [vmem:[#allocation2 + $0x2d0] sm:$0xff] %v1162_v6  ;;  %v1163_v21 = vmax.f32 %v1035_v7, 0.0  ;;  %v1036_v23 = vadd.f32 %v908_v8, %v448_v0  ;;  %v450_v24 = vadd.f32 %v1424_v5, %v316_v9  ;;  %v643_v25 = vunpack.c.h.bf16 %v531_v55  ;;  %v75_v8 = vld [vmem:[%s2340_s0 + $0x198] sm:$0xff] }
  0xc3   :  { %v1037_v26 = vadd.f32 %v909_v15, %v449_v12  ;;  %v910_v27 = vadd.f32 %v1448_v17, %v776_v16  ;;  %v317_v28 = vmul.f32 %v1440_v13, %v183_v18  ;;  %v184_v29 = vunpack.c.l.bf16 %v72_v10  ;;  %v535_v16 = vld [vmem:[%s2343_s3 + $0x198] sm:$0xff] }
  0xc4   :  { %1291 = vst [vmem:[#allocation2 + $0x2d8] sm:$0xff] %v1163_v21  ;;  %v1164_v30 = vmax.f32 %v1036_v23, 0.0  ;;  %v777_v31 = vmul.f32 %v1450_v19, %v643_v25  ;;  %v644_v32 = vunpack.c.l.bf16 %v532_v20  ;;  %v185_v33 = vunpack.c.h.bf16 %v72_v10 }
  0xc5   :  { %v1165_v36 = vmax.f32 %v1037_v26, 0.0  ;;  %v1038_v37 = vadd.f32 %v910_v27, %v450_v24  ;;  %v451_v38 = vadd.f32 %v1442_v14, %v317_v28  ;;  %v318_v39 = vmul.f32 %v1422_v4, %v184_v29 }
  0xc6   :  { %1292 = vst [vmem:[#allocation2 + $0x2e0] sm:$0xff] %v1164_v30  ;;  %v911_v40 = vadd.f32 %v1454_v22, %v777_v31  ;;  %v778_v41 = vmul.f32 %v1435_v11, %v644_v32  ;;  %v319_v42 = vmul.f32 %v1440_v13, %v185_v33  ;;  %v645_v43 = vunpack.c.h.bf16 %v532_v20  ;;  %v76_v32 = vld [vmem:[%s2340_s0 + $0x1a0] sm:$0xff] }
  0xc7   :  { %1293 = vst [vmem:[#allocation2 + $0x2e8] sm:$0xff] %v1165_v36  ;;  %v1166_v44 = vmax.f32 %v1038_v37, 0.0  ;;  %v452_v45 = vadd.f32 %v1424_v5, %v318_v39  ;;  %v186_v46 = vunpack.c.l.bf16 %v73_v34  ;;  %v646_v47 = vunpack.c.l.bf16 %v533_v35  ;;  %v536_v33 = vld [vmem:[%s2343_s3 + $0x1a0] sm:$0xff] }
  0xc8   :  { %v1039_v49 = vadd.f32 %v911_v40, %v451_v38  ;;  %v912_v50 = vadd.f32 %v1448_v17, %v778_v41  ;;  %v453_v51 = vadd.f32 %v1442_v14, %v319_v42  ;;  %v779_v52 = vmul.f32 %v1450_v19, %v645_v43 }
  0xc9   :  { %1294 = vst [vmem:[#allocation2 + $0x2f0] sm:$0xff] %v1166_v44  ;;  %v320_v53 = vmul.f32 %v1422_v4, %v186_v46  ;;  %v780_v54 = vmul.f32 %v1435_v11, %v646_v47  ;;  %v187_v55 = vunpack.c.h.bf16 %v73_v34  ;;  %v647_v56 = vunpack.c.h.bf16 %v533_v35  ;;  %v77_v46 = vld [vmem:[%s2340_s0 + $0x1a8] sm:$0xff] }
  0xca   :  { %v1167_v58 = vmax.f32 %v1039_v49, 0.0  ;;  %v1040_v59 = vadd.f32 %v912_v50, %v452_v45  ;;  %v913_v60 = vadd.f32 %v1454_v22, %v779_v52  ;;  %v188_v61 = vunpack.c.l.bf16 %v74_v48 }
  0xcb   :  { %v454_v62 = vadd.f32 %v1424_v5, %v320_v53  ;;  %v914_v63 = vadd.f32 %v1448_v17, %v780_v54  ;;  %v321_v0 = vmul.f32 %v1440_v13, %v187_v55  ;;  %v781_v1 = vmul.f32 %v1450_v19, %v647_v56  ;;  %v537_v55 = vld [vmem:[%s2343_s3 + $0x1a8] sm:$0xff] }
  0xcc   :  { %1295 = vst [vmem:[#allocation2 + $0x2f8] sm:$0xff] %v1167_v58  ;;  %v1168_v2 = vmax.f32 %v1040_v59, 0.0  ;;  %v1041_v3 = vadd.f32 %v913_v60, %v453_v51  ;;  %v322_v6 = vmul.f32 %v1422_v4, %v188_v61  ;;  %v648_v7 = vunpack.c.l.bf16 %v534_v57 }
  0xcd   :  { %v1042_v9 = vadd.f32 %v914_v63, %v454_v62  ;;  %v455_v10 = vadd.f32 %v1442_v14, %v321_v0  ;;  %v915_v12 = vadd.f32 %v1454_v22, %v781_v1  ;;  %v189_v15 = vunpack.c.h.bf16 %v74_v48 }
  0xce   :  { %1296 = vst [vmem:[#allocation2 + $0x300] sm:$0xff] %v1168_v2  ;;  %v1169_v18 = vmax.f32 %v1041_v3, 0.0  ;;  %v456_v20 = vadd.f32 %v1424_v5, %v322_v6  ;;  %v782_v21 = vmul.f32 %v1435_v11, %v648_v7  ;;  %v649_v23 = vunpack.c.h.bf16 %v534_v57  ;;  %v78_v6 = vld [vmem:[%s2340_s0 + $0x1b0] sm:$0xff] }
  0xcf   :  { %v1170_v24 = vmax.f32 %v1042_v9, 0.0  ;;  %v1043_v25 = vadd.f32 %v915_v12, %v455_v10  ;;  %v323_v26 = vmul.f32 %v1440_v13, %v189_v15  ;;  %v190_v27 = vunpack.c.l.bf16 %v75_v8  ;;  %v538_v7 = vld [vmem:[%s2343_s3 + $0x1b0] sm:$0xff] }
  0xd0   :  { %1297 = vst [vmem:[#allocation2 + $0x308] sm:$0xff] %v1169_v18  ;;  %v916_v28 = vadd.f32 %v1448_v17, %v782_v21  ;;  %v783_v29 = vmul.f32 %v1450_v19, %v649_v23  ;;  %v650_v30 = vunpack.c.l.bf16 %v535_v16  ;;  %v191_v31 = vunpack.c.h.bf16 %v75_v8 }
  0xd1   :  { %1298 = vst [vmem:[#allocation2 + $0x310] sm:$0xff] %v1170_v24  ;;  %v1171_v34 = vmax.f32 %v1043_v25, 0.0  ;;  %v457_v35 = vadd.f32 %v1442_v14, %v323_v26  ;;  %v324_v36 = vmul.f32 %v1422_v4, %v190_v27  ;;  %v651_v37 = vunpack.c.h.bf16 %v535_v16 }
  0xd2   :  { %v1044_v38 = vadd.f32 %v916_v28, %v456_v20  ;;  %v917_v39 = vadd.f32 %v1454_v22, %v783_v29  ;;  %v784_v40 = vmul.f32 %v1435_v11, %v650_v30  ;;  %v325_v41 = vmul.f32 %v1440_v13, %v191_v31  ;;  %v79_v30 = vld [vmem:[%s2340_s0 + $0x1b8] sm:$0xff] }
  0xd3   :  { %1299 = vst [vmem:[#allocation2 + $0x318] sm:$0xff] %v1171_v34  ;;  %v458_v42 = vadd.f32 %v1424_v5, %v324_v36  ;;  %v785_v43 = vmul.f32 %v1450_v19, %v651_v37  ;;  %v192_v44 = vunpack.c.l.bf16 %v76_v32  ;;  %v652_v45 = vunpack.c.l.bf16 %v536_v33 }
  0xd4   :  { %v1172_v47 = vmax.f32 %v1044_v38, 0.0  ;;  %v1045_v48 = vadd.f32 %v917_v39, %v457_v35  ;;  %v918_v49 = vadd.f32 %v1448_v17, %v784_v40  ;;  %v459_v50 = vadd.f32 %v1442_v14, %v325_v41  ;;  %v539_v35 = vld [vmem:[%s2343_s3 + $0x1b8] sm:$0xff] }
  0xd5   :  { %v919_v51 = vadd.f32 %v1454_v22, %v785_v43  ;;  %v326_v52 = vmul.f32 %v1422_v4, %v192_v44  ;;  %v786_v53 = vmul.f32 %v1435_v11, %v652_v45  ;;  %v193_v54 = vunpack.c.h.bf16 %v76_v32  ;;  %v80_v44 = vld [vmem:[%s2340_s0 + $0x1c0] sm:$0xff] }
  0xd6   :  { %1300 = vst [vmem:[#allocation2 + $0x320] sm:$0xff] %v1172_v47  ;;  %v1173_v56 = vmax.f32 %v1045_v48, 0.0  ;;  %v1046_v57 = vadd.f32 %v918_v49, %v458_v42  ;;  %v653_v58 = vunpack.c.h.bf16 %v536_v33  ;;  %v194_v59 = vunpack.c.l.bf16 %v77_v46 }
  0xd7   :  { %v1047_v60 = vadd.f32 %v919_v51, %v459_v50  ;;  %v460_v61 = vadd.f32 %v1424_v5, %v326_v52  ;;  %v920_v62 = vadd.f32 %v1448_v17, %v786_v53  ;;  %v327_v63 = vmul.f32 %v1440_v13, %v193_v54  ;;  %v540_v53 = vld [vmem:[%s2343_s3 + $0x1c0] sm:$0xff] }
  0xd8   :  { %1301 = vst [vmem:[#allocation2 + $0x328] sm:$0xff] %v1173_v56  ;;  %v1174_v0 = vmax.f32 %v1046_v57, 0.0  ;;  %v787_v1 = vmul.f32 %v1450_v19, %v653_v58  ;;  %v328_v2 = vmul.f32 %v1422_v4, %v194_v59  ;;  %v654_v3 = vunpack.c.l.bf16 %v537_v55 }
  0xd9   :  { %v1175_v8 = vmax.f32 %v1047_v60, 0.0  ;;  %v1048_v9 = vadd.f32 %v920_v62, %v460_v61  ;;  %v461_v10 = vadd.f32 %v1442_v14, %v327_v63  ;;  %v195_v12 = vunpack.c.h.bf16 %v77_v46 }
  0xda   :  { %1302 = vst [vmem:[#allocation2 + $0x330] sm:$0xff] %v1174_v0  ;;  %v921_v15 = vadd.f32 %v1454_v22, %v787_v1  ;;  %v462_v16 = vadd.f32 %v1424_v5, %v328_v2  ;;  %v788_v18 = vmul.f32 %v1435_v11, %v654_v3  ;;  %v655_v20 = vunpack.c.h.bf16 %v537_v55  ;;  %v81_v2 = vld [vmem:[%s2340_s0 + $0x1c8] sm:$0xff] }
  0xdb   :  { %1303 = vst [vmem:[#allocation2 + $0x338] sm:$0xff] %v1175_v8  ;;  %v1176_v21 = vmax.f32 %v1048_v9, 0.0  ;;  %v329_v23 = vmul.f32 %v1440_v13, %v195_v12  ;;  %v196_v24 = vunpack.c.l.bf16 %v78_v6  ;;  %v656_v25 = vunpack.c.l.bf16 %v538_v7  ;;  %v541_v3 = vld [vmem:[%s2343_s3 + $0x1c8] sm:$0xff] }
  0xdc   :  { %v1049_v26 = vadd.f32 %v921_v15, %v461_v10  ;;  %v922_v27 = vadd.f32 %v1448_v17, %v788_v18  ;;  %v789_v28 = vmul.f32 %v1450_v19, %v655_v20  ;;  %v197_v29 = vunpack.c.h.bf16 %v78_v6 }
  0xdd   :  { %1304 = vst [vmem:[#allocation2 + $0x340] sm:$0xff] %v1176_v21  ;;  %v463_v31 = vadd.f32 %v1442_v14, %v329_v23  ;;  %v330_v32 = vmul.f32 %v1422_v4, %v196_v24  ;;  %v790_v33 = vmul.f32 %v1435_v11, %v656_v25  ;;  %v657_v34 = vunpack.c.h.bf16 %v538_v7 }
  0xde   :  { %v1177_v36 = vmax.f32 %v1049_v26, 0.0  ;;  %v1050_v37 = vadd.f32 %v922_v27, %v462_v16  ;;  %v923_v38 = vadd.f32 %v1454_v22, %v789_v28  ;;  %v331_v39 = vmul.f32 %v1440_v13, %v197_v29  ;;  %v82_v28 = vld [vmem:[%s2340_s0 + $0x1d0] sm:$0xff] }
  0xdf   :  { %v464_v40 = vadd.f32 %v1424_v5, %v330_v32  ;;  %v924_v41 = vadd.f32 %v1448_v17, %v790_v33  ;;  %v791_v42 = vmul.f32 %v1450_v19, %v657_v34  ;;  %v198_v43 = vunpack.c.l.bf16 %v79_v30  ;;  %v542_v33 = vld [vmem:[%s2343_s3 + $0x1d0] sm:$0xff] }
  0xe0   :  { %1305 = vst [vmem:[#allocation2 + $0x348] sm:$0xff] %v1177_v36  ;;  %v1178_v45 = vmax.f32 %v1050_v37, 0.0  ;;  %v1051_v46 = vadd.f32 %v923_v38, %v463_v31  ;;  %v465_v47 = vadd.f32 %v1442_v14, %v331_v39  ;;  %v658_v48 = vunpack.c.l.bf16 %v539_v35 }
  0xe1   :  { %v1052_v49 = vadd.f32 %v924_v41, %v464_v40  ;;  %v925_v50 = vadd.f32 %v1454_v22, %v791_v42  ;;  %v332_v51 = vmul.f32 %v1422_v4, %v198_v43  ;;  %v199_v52 = vunpack.c.h.bf16 %v79_v30  ;;  %v83_v42 = vld [vmem:[%s2340_s0 + $0x1d8] sm:$0xff] }
  0xe2   :  { %1306 = vst [vmem:[#allocation2 + $0x350] sm:$0xff] %v1178_v45  ;;  %v1179_v54 = vmax.f32 %v1051_v46, 0.0  ;;  %v792_v55 = vmul.f32 %v1435_v11, %v658_v48  ;;  %v659_v56 = vunpack.c.h.bf16 %v539_v35  ;;  %v200_v57 = vunpack.c.l.bf16 %v80_v44 }
  0xe3   :  { %v1180_v58 = vmax.f32 %v1052_v49, 0.0  ;;  %v1053_v59 = vadd.f32 %v925_v50, %v465_v47  ;;  %v466_v60 = vadd.f32 %v1424_v5, %v332_v51  ;;  %v333_v61 = vmul.f32 %v1440_v13, %v199_v52  ;;  %v543_v47 = vld [vmem:[%s2343_s3 + $0x1d8] sm:$0xff] }
  0xe4   :  { %1307 = vst [vmem:[#allocation2 + $0x358] sm:$0xff] %v1179_v54  ;;  %v926_v62 = vadd.f32 %v1448_v17, %v792_v55  ;;  %v793_v63 = vmul.f32 %v1450_v19, %v659_v56  ;;  %v334_v0 = vmul.f32 %v1422_v4, %v200_v57  ;;  %v660_v1 = vunpack.c.l.bf16 %v540_v53 }
  0xe5   :  { %1308 = vst [vmem:[#allocation2 + $0x360] sm:$0xff] %v1180_v58  ;;  %v1181_v6 = vmax.f32 %v1053_v59, 0.0  ;;  %v467_v7 = vadd.f32 %v1442_v14, %v333_v61  ;;  %v201_v8 = vunpack.c.h.bf16 %v80_v44  ;;  %v661_v9 = vunpack.c.h.bf16 %v540_v53 }
  0xe6   :  { %v1054_v10 = vadd.f32 %v926_v62, %v466_v60  ;;  %v927_v12 = vadd.f32 %v1454_v22, %v793_v63  ;;  %v468_v15 = vadd.f32 %v1424_v5, %v334_v0  ;;  %v794_v16 = vmul.f32 %v1435_v11, %v660_v1  ;;  %v84_v0 = vld [vmem:[%s2340_s0 + $0x1e0] sm:$0xff] }
  0xe7   :  { %1309 = vst [vmem:[#allocation2 + $0x368] sm:$0xff] %v1181_v6  ;;  %v335_v18 = vmul.f32 %v1440_v13, %v201_v8  ;;  %v795_v20 = vmul.f32 %v1450_v19, %v661_v9  ;;  %v202_v21 = vunpack.c.l.bf16 %v81_v2  ;;  %v662_v23 = vunpack.c.l.bf16 %v541_v3 }
  0xe8   :  { %v1182_v24 = vmax.f32 %v1054_v10, 0.0  ;;  %v1055_v25 = vadd.f32 %v927_v12, %v467_v7  ;;  %v928_v26 = vadd.f32 %v1448_v17, %v794_v16  ;;  %v203_v27 = vunpack.c.h.bf16 %v81_v2  ;;  %v544_v7 = vld [vmem:[%s2343_s3 + $0x1e0] sm:$0xff] }
  0xe9   :  { %v469_v29 = vadd.f32 %v1442_v14, %v335_v18  ;;  %v929_v30 = vadd.f32 %v1454_v22, %v795_v20  ;;  %v336_v31 = vmul.f32 %v1422_v4, %v202_v21  ;;  %v796_v32 = vmul.f32 %v1435_v11, %v662_v23 }
  0xea   :  { %1310 = vst [vmem:[#allocation2 + $0x370] sm:$0xff] %v1182_v24  ;;  %v1183_v34 = vmax.f32 %v1055_v25, 0.0  ;;  %v1056_v35 = vadd.f32 %v928_v26, %v468_v15  ;;  %v337_v36 = vmul.f32 %v1440_v13, %v203_v27  ;;  %v663_v37 = vunpack.c.h.bf16 %v541_v3  ;;  %v85_v26 = vld [vmem:[%s2340_s0 + $0x1e8] sm:$0xff] }
  0xeb   :  { %v1057_v38 = vadd.f32 %v929_v30, %v469_v29  ;;  %v470_v39 = vadd.f32 %v1424_v5, %v336_v31  ;;  %v930_v40 = vadd.f32 %v1448_v17, %v796_v32  ;;  %v204_v41 = vunpack.c.l.bf16 %v82_v28  ;;  %v545_v31 = vld [vmem:[%s2343_s3 + $0x1e8] sm:$0xff] }
  0xec   :  { %1311 = vst [vmem:[#allocation2 + $0x378] sm:$0xff] %v1183_v34  ;;  %v1184_v43 = vmax.f32 %v1056_v35, 0.0  ;;  %v471_v44 = vadd.f32 %v1442_v14, %v337_v36  ;;  %v797_v45 = vmul.f32 %v1450_v19, %v663_v37  ;;  %v664_v46 = vunpack.c.l.bf16 %v542_v33 }
  0xed   :  { %v1185_v48 = vmax.f32 %v1057_v38, 0.0  ;;  %v1058_v49 = vadd.f32 %v930_v40, %v470_v39  ;;  %v338_v50 = vmul.f32 %v1422_v4, %v204_v41  ;;  %v205_v51 = vunpack.c.h.bf16 %v82_v28  ;;  %v86_v40 = vld [vmem:[%s2340_s0 + $0x1f0] sm:$0xff] }
  0xee   :  { %1312 = vst [vmem:[#allocation2 + $0x380] sm:$0xff] %v1184_v43  ;;  %v931_v52 = vadd.f32 %v1454_v22, %v797_v45  ;;  %v798_v53 = vmul.f32 %v1435_v11, %v664_v46  ;;  %v665_v54 = vunpack.c.h.bf16 %v542_v33  ;;  %v206_v55 = vunpack.c.l.bf16 %v83_v42  ;;  %v546_v45 = vld [vmem:[%s2343_s3 + $0x1f0] sm:$0xff] }
  0xef   :  { %1313 = vst [vmem:[#allocation2 + $0x388] sm:$0xff] %v1185_v48  ;;  %v1186_v56 = vmax.f32 %v1058_v49, 0.0  ;;  %v472_v57 = vadd.f32 %v1424_v5, %v338_v50  ;;  %v339_v58 = vmul.f32 %v1440_v13, %v205_v51  ;;  %v666_v59 = vunpack.c.l.bf16 %v543_v47 }
  0xf0   :  { %v1059_v60 = vadd.f32 %v931_v52, %v471_v44  ;;  %v932_v61 = vadd.f32 %v1448_v17, %v798_v53  ;;  %v799_v62 = vmul.f32 %v1450_v19, %v665_v54  ;;  %v340_v63 = vmul.f32 %v1422_v4, %v206_v55 }
  0xf1   :  { %1314 = vst [vmem:[#allocation2 + $0x390] sm:$0xff] %v1186_v56  ;;  %v473_v1 = vadd.f32 %v1442_v14, %v339_v58  ;;  %v800_v2 = vmul.f32 %v1435_v11, %v666_v59  ;;  %v207_v3 = vunpack.c.h.bf16 %v83_v42  ;;  %v667_v6 = vunpack.c.h.bf16 %v543_v47 }
  0xf2   :  { %v1187_v8 = vmax.f32 %v1059_v60, 0.0  ;;  %v1060_v9 = vadd.f32 %v932_v61, %v472_v57  ;;  %v933_v10 = vadd.f32 %v1454_v22, %v799_v62  ;;  %v474_v12 = vadd.f32 %v1424_v5, %v340_v63  ;;  %v87_v62 = vld [vmem:[%s2340_s0 + $0x1f8] sm:$0xff]  ;;  %s1375_s0 = smov [#allocation2]  }
  0xf3   :  { %v934_v15 = vadd.f32 %v1448_v17, %v800_v2  ;;  %v341_v16 = vmul.f32 %v1440_v13, %v207_v3  ;;  %v801_v18 = vmul.f32 %v1450_v19, %v667_v6  ;;  %v208_v20 = vunpack.c.l.bf16 %v84_v0  ;;  %v547_v3 = vld [vmem:[%s2343_s3 + $0x1f8] sm:$0xff]  ;;  %s1332_s3 = sshll.u32 %s1375_s0, 4  ;;  %s1333_s3 = int_to_ptr.vmem [resolvable:$true] %s1332_s3 }
  0xf4   :  { %1315 = vst [vmem:[#allocation2 + $0x398] sm:$0xff] %v1187_v8  ;;  %v1188_v21 = vmax.f32 %v1060_v9, 0.0  ;;  %v1061_v23 = vadd.f32 %v933_v10, %v473_v1  ;;  %v668_v24 = vunpack.c.l.bf16 %v544_v7  ;;  %v209_v25 = vunpack.c.h.bf16 %v84_v0 }
  0xf5   :  { %v1062_v27 = vadd.f32 %v934_v15, %v474_v12  ;;  %v475_v28 = vadd.f32 %v1442_v14, %v341_v16  ;;  %v935_v29 = vadd.f32 %v1454_v22, %v801_v18  ;;  %v342_v30 = vmul.f32 %v1422_v4, %v208_v20 }
  0xf6   :  { %1316 = vst [vmem:[#allocation2 + $0x3a0] sm:$0xff] %v1188_v21  ;;  %v1189_v32 = vmax.f32 %v1061_v23, 0.0  ;;  %v802_v33 = vmul.f32 %v1435_v11, %v668_v24  ;;  %v343_v34 = vmul.f32 %v1440_v13, %v209_v25  ;;  %v669_v35 = vunpack.c.h.bf16 %v544_v7 }
  0xf7   :  { %v1190_v36 = vmax.f32 %v1062_v27, 0.0  ;;  %v1063_v37 = vadd.f32 %v935_v29, %v475_v28  ;;  %v476_v38 = vadd.f32 %v1424_v5, %v342_v30  ;;  %v210_v39 = vunpack.c.l.bf16 %v85_v26 }
  0xf8   :  { %1317 = vst [vmem:[#allocation2 + $0x3a8] sm:$0xff] %v1189_v32  ;;  %v936_v41 = vadd.f32 %v1448_v17, %v802_v33  ;;  %v477_v42 = vadd.f32 %v1442_v14, %v343_v34  ;;  %v803_v43 = vmul.f32 %v1450_v19, %v669_v35  ;;  %v670_v44 = vunpack.c.l.bf16 %v545_v31 }
  0xf9   :  { %1318 = vst [vmem:[#allocation2 + $0x3b0] sm:$0xff] %v1190_v36  ;;  %v1191_v46 = vmax.f32 %v1063_v37, 0.0  ;;  %v344_v47 = vmul.f32 %v1422_v4, %v210_v39  ;;  %v211_v48 = vunpack.c.h.bf16 %v85_v26  ;;  %v671_v49 = vunpack.c.h.bf16 %v545_v31 }
  0xfa   :  { %v1064_v50 = vadd.f32 %v936_v41, %v476_v38  ;;  %v937_v51 = vadd.f32 %v1454_v22, %v803_v43  ;;  %v804_v52 = vmul.f32 %v1435_v11, %v670_v44  ;;  %v212_v53 = vunpack.c.l.bf16 %v86_v40 }
  0xfb   :  { %1319 = vst [vmem:[#allocation2 + $0x3b8] sm:$0xff] %v1191_v46  ;;  %v478_v54 = vadd.f32 %v1424_v5, %v344_v47  ;;  %v345_v55 = vmul.f32 %v1440_v13, %v211_v48  ;;  %v805_v56 = vmul.f32 %v1450_v19, %v671_v49  ;;  %v672_v57 = vunpack.c.l.bf16 %v546_v45 }
  0xfc   :  { %v1192_v58 = vmax.f32 %v1064_v50, 0.0  ;;  %v1065_v59 = vadd.f32 %v937_v51, %v477_v42  ;;  %v938_v60 = vadd.f32 %v1448_v17, %v804_v52  ;;  %v346_v61 = vmul.f32 %v1422_v4, %v212_v53 }
  0xfd   :  { %v479_v63 = vadd.f32 %v1442_v14, %v345_v55  ;;  %v939_v0 = vadd.f32 %v1454_v22, %v805_v56  ;;  %v806_v1 = vmul.f32 %v1435_v11, %v672_v57  ;;  %v213_v2 = vunpack.c.h.bf16 %v86_v40 }
  0xfe   :  { %1320 = vst [vmem:[#allocation2 + $0x3c0] sm:$0xff] %v1192_v58  ;;  %v1193_v6 = vmax.f32 %v1065_v59, 0.0  ;;  %v1066_v7 = vadd.f32 %v938_v60, %v478_v54  ;;  %v480_v8 = vadd.f32 %v1424_v5, %v346_v61  ;;  %v673_v9 = vunpack.c.h.bf16 %v546_v45 }
  0xff   :  { %v1067_v10 = vadd.f32 %v939_v0, %v479_v63  ;;  %v940_v12 = vadd.f32 %v1448_v17, %v806_v1  ;;  %v347_v15 = vmul.f32 %v1440_v13, %v213_v2  ;;  %v214_v16 = vunpack.c.l.bf16 %v87_v62 }
 0x100   :  { %1321 = vst [vmem:[#allocation2 + $0x3c8] sm:$0xff] %v1193_v6  ;;  %v1194_v18 = vmax.f32 %v1066_v7, 0.0  ;;  %v807_v20 = vmul.f32 %v1450_v19, %v673_v9  ;;  %v674_v21 = vunpack.c.l.bf16 %v547_v3  ;;  %v215_v23 = vunpack.c.h.bf16 %v87_v62 }
 0x101   :  { %v1195_v24 = vmax.f32 %v1067_v10, 0.0  ;;  %v1068_v25 = vadd.f32 %v940_v12, %v480_v8  ;;  %v481_v26 = vadd.f32 %v1442_v14, %v347_v15  ;;  %v348_v27 = vmul.f32 %v1422_v4, %v214_v16 }
 0x102   :  { %1322 = vst [vmem:[#allocation2 + $0x3d0] sm:$0xff] %v1194_v18  ;;  %v941_v28 = vadd.f32 %v1454_v22, %v807_v20  ;;  %v808_v29 = vmul.f32 %v1435_v11, %v674_v21  ;;  %v349_v30 = vmul.f32 %v1440_v13, %v215_v23  ;;  %v675_v31 = vunpack.c.h.bf16 %v547_v3 }
 0x103   :  { %1323 = vst [vmem:[#allocation2 + $0x3d8] sm:$0xff] %v1195_v24  ;;  %v1196_v32 = vmax.f32 %v1068_v25, 0.0  ;;  %v482_v33 = vadd.f32 %v1424_v5, %v348_v27 }
 0x104   :  { %v1069_v34 = vadd.f32 %v941_v28, %v481_v26  ;;  %v942_v35 = vadd.f32 %v1448_v17, %v808_v29  ;;  %v483_v36 = vadd.f32 %v1442_v14, %v349_v30  ;;  %v809_v37 = vmul.f32 %v1450_v19, %v675_v31 }
 0x105   :  { %1324 = vst [vmem:[#allocation2 + $0x3e0] sm:$0xff] %v1196_v32 }
 0x106   :  { %v1197_v4 = vmax.f32 %v1069_v34, 0.0  ;;  %v1070_v38 = vadd.f32 %v942_v35, %v482_v33  ;;  %v943_v39 = vadd.f32 %v1454_v22, %v809_v37 }
 0x108   :  { %1325 = vst [vmem:[#allocation2 + $0x3e8] sm:$0xff] %v1197_v4  ;;  %v1198_v5 = vmax.f32 %v1070_v38, 0.0  ;;  %v1071_v11 = vadd.f32 %v943_v39, %v483_v36 }
 0x10a   :  { %1326 = vst [vmem:[#allocation2 + $0x3f0] sm:$0xff] %v1198_v5  ;;  %v1199_v13 = vmax.f32 %v1071_v11, 0.0 }
 0x10c   :  { %1327 = vst [vmem:[#allocation2 + $0x3f8] sm:$0xff] %v1199_v13 }
 0x10d   :  { %1340 = dma.vmem_to_hbm [thread:$0]  %s1333_s3, 16384, %s1335_s9, [#allocation3], %s1376_s10, %s1376_s10, %s1377_s4  }
 0x10e   :  { %1373 = dma.done.wait [#allocation3], 16384  }
 0x10f   :  { %1374 = vsyncadd [#allocation3], 4294950912 }
 0x110   :  { %1345 = vsyncpa [#allocation3], 1 }

// kernel: _forward.10
= control target key start
LH: loop header
LB: loop body
LE: loop exit
PB: predicated region body
PF: predicated region fallthrough
CT: control target
= control target key end

     0   :  { %vm287_vm0 = vcmask 523264   ;;  %vm991_vm1 = vcmask 1040384   ;;  %s2466_s1 = inlined_call_operand.vmem [shape: bf16[64,256], index: 1, kind: input, shape index: {}]   ;;  %s2467_s0 = inlined_call_operand.vmem [shape: bf16[512,64], index: 0, kind: input, shape index: {}]   ;;  %s2468_s2 = inlined_call_operand.vmem [shape: bf16[512,256], index: 2, kind: output, shape index: {0}]   ;;  %s2469_s3 = inlined_call_operand.vmem [shape: f32[1,1,256], index: 3, kind: output, shape index: {1}]   ;;  %s2470_s4 = inlined_call_operand.vmem [shape: f32[1,1,256], index: 4, kind: output, shape index: {2}]  }
   0x1   :  { %v1437_v0 = vld [vmem:[%s2466_s1 + $0x30] sm:$0xf]  ;;  %v1546_v1 = vld [vmem:[%s2466_s1 + $0x34] sm:$0xf0]  ;;  %v1545_v2 = vld [vmem:[%s2466_s1 + $0x34] sm:$0xf] }
   0x2   :  { %v1438_v3 = vor.u32 %v1546_v1, %v1437_v0  ;;  %v1439_v4 = vld [vmem:[%s2466_s1 + $0x38] sm:$0xf0]  ;;  %v1429_v5 = vld [vmem:[%s2466_s1 + $0x20] sm:$0xf]  ;;  %v1544_v6 = vld [vmem:[%s2466_s1 + $0x24] sm:$0xf0] }
   0x3   :  { %v1442_v7 = vor.u32 %v1545_v2, %v1439_v4  ;;  %v1543_v8 = vld [vmem:[%s2466_s1 + $0x24] sm:$0xf]  ;;  %v1431_v9 = vld [vmem:[%s2466_s1 + $0x28] sm:$0xf0]  ;;  %v1430_v10 = vor.u32 %v1544_v6, %v1429_v5  ;;  %v1421_v12 = vld [vmem:[%s2466_s1 + $0x10] sm:$0xf] }
   0x4   :  { %388 = vmatpush.bf16.msra.mxu0 %v1438_v3  ;;  %1547 = vmatpush.bf16.msra.mxu2 %v1438_v3  ;;  %v1434_v11 = vor.u32 %v1543_v8, %v1431_v9  ;;  %v1542_v13 = vld [vmem:[%s2466_s1 + $0x14] sm:$0xf0]  ;;  %v1541_v14 = vld [vmem:[%s2466_s1 + $0x14] sm:$0xf]  ;;  %v1423_v15 = vld [vmem:[%s2466_s1 + $0x18] sm:$0xf0] }
   0x5   :  { %557 = vmatpush.bf16.msra.mxu1 %v1442_v7  ;;  %1551 = vmatpush.bf16.msra.mxu3 %v1442_v7  ;;  %v1422_v16 = vor.u32 %v1542_v13, %v1421_v12  ;;  %v1426_v17 = vor.u32 %v1541_v14, %v1423_v15  ;;  %v1413_v18 = vld [vmem:[%s2466_s1] sm:$0xf]  ;;  %v1540_v19 = vld [vmem:[%s2466_s1 + $0x4] sm:$0xf0]  ;;  %v1539_v20 = vld [vmem:[%s2466_s1 + $0x4] sm:$0xf] }
   0x6   :  { %v1415_v21 = vld [vmem:[%s2466_s1 + $0x8] sm:$0xf0]  ;;  %v1414_v22 = vor.u32 %v1540_v19, %v1413_v18  ;;  %v1507_v24 = vld [vmem:[%s2467_s0] sm:$0xff]  ;;  %v1509_v27 = vld [vmem:[%s2467_s0 + $0x10] sm:$0xff] }
   0x7   :  { %v1418_v23 = vor.u32 %v1539_v20, %v1415_v21  ;;  %v1508_v25 = vld [vmem:[%s2467_s0 + $0x8] sm:$0xff]  ;;  %v1523_v26 = vld [vmem:[%s2467_s0 + $0x80] sm:$0xff]  ;;  %v1510_v29 = vld [vmem:[%s2467_s0 + $0x18] sm:$0xff] }
   0x8   :  { %389 = vmatpush.bf16.msra.mxu0 %v1430_v10  ;;  %1548 = vmatpush.bf16.msra.mxu2 %v1430_v10  ;;  %v1524_v28 = vld [vmem:[%s2467_s0 + $0x88] sm:$0xff]  ;;  %v1525_v30 = vld [vmem:[%s2467_s0 + $0x90] sm:$0xff]  ;;  %v1511_v31 = vld [vmem:[%s2467_s0 + $0x20] sm:$0xff] }
   0x9   :  { %558 = vmatpush.bf16.msra.mxu1 %v1434_v11  ;;  %1552 = vmatpush.bf16.msra.mxu3 %v1434_v11  ;;  %v1526_v32 = vld [vmem:[%s2467_s0 + $0x98] sm:$0xff]  ;;  %v1512_v33 = vld [vmem:[%s2467_s0 + $0x28] sm:$0xff]  ;;  %v1527_v34 = vld [vmem:[%s2467_s0 + $0xa0] sm:$0xff] }
   0xa   :  { %v1513_v35 = vld [vmem:[%s2467_s0 + $0x30] sm:$0xff]  ;;  %v1528_v36 = vld [vmem:[%s2467_s0 + $0xa8] sm:$0xff]  ;;  %v1514_v37 = vld [vmem:[%s2467_s0 + $0x38] sm:$0xff] }
   0xb   :  { %v1529_v38 = vld [vmem:[%s2467_s0 + $0xb0] sm:$0xff]  ;;  %v1515_v39 = vld [vmem:[%s2467_s0 + $0x40] sm:$0xff]  ;;  %v1530_v43 = vld [vmem:[%s2467_s0 + $0xb8] sm:$0xff] }
   0xc   :  { %390 = vmatpush.bf16.msra.mxu0 %v1422_v16  ;;  %1549 = vmatpush.bf16.msra.mxu2 %v1422_v16  ;;  %v1516_v55 = vld [vmem:[%s2467_s0 + $0x48] sm:$0xff]  ;;  %v1531_v1 = vld [vmem:[%s2467_s0 + $0xc0] sm:$0xff]  ;;  %v1517_v14 = vld [vmem:[%s2467_s0 + $0x50] sm:$0xff] }
   0xd   :  { %559 = vmatpush.bf16.msra.mxu1 %v1426_v17  ;;  %1553 = vmatpush.bf16.msra.mxu3 %v1426_v17 }
  0x10   :  { %391 = vmatpush.bf16.msra.mxu0 %v1414_v22  ;;  %1550 = vmatpush.bf16.msra.mxu2 %v1414_v22 }
  0x11   :  { %560 = vmatpush.bf16.msra.mxu1 %v1418_v23  ;;  %1554 = vmatpush.bf16.msra.mxu3 %v1418_v23 }
  0x13   :  { %1443 = vmatmul.msk.bf16.vlgmr.msra.gmra.mxu0 %vm287_vm0, %v1507_v24  ;;  %1459 = vmatmul.msk.bf16.vlgmr.msra.gmra.mxu2 %vm287_vm0, %v1523_v26 }
  0x14   :  { %1475 = vmatmul.msk.bf16.vlgmr.msra.gmra.mxu1 %vm287_vm0, %v1507_v24  ;;  %1491 = vmatmul.msk.bf16.vlgmr.msra.gmra.mxu3 %vm287_vm0, %v1523_v26 }
  0x23   :  { %1444 = vmatmul.msk.bf16.gmra.mxu0 %vm287_vm0, %v1508_v25  ;;  %1460 = vmatmul.msk.bf16.gmra.mxu2 %vm287_vm0, %v1524_v28 }
  0x24   :  { %1476 = vmatmul.msk.bf16.gmra.mxu1 %vm287_vm0, %v1508_v25  ;;  %1492 = vmatmul.msk.bf16.gmra.mxu3 %vm287_vm0, %v1524_v28 }
  0x33   :  { %1445 = vmatmul.msk.bf16.gmra.mxu0 %vm287_vm0, %v1509_v27  ;;  %1461 = vmatmul.msk.bf16.gmra.mxu2 %vm287_vm0, %v1525_v30 }
  0x34   :  { %1477 = vmatmul.msk.bf16.gmra.mxu1 %vm287_vm0, %v1509_v27  ;;  %1493 = vmatmul.msk.bf16.gmra.mxu3 %vm287_vm0, %v1525_v30  ;;  %v1532_v27 = vld [vmem:[%s2467_s0 + $0xc8] sm:$0xff] }
  0x43   :  { %1446 = vmatmul.msk.bf16.gmra.mxu0 %vm287_vm0, %v1510_v29  ;;  %1462 = vmatmul.msk.bf16.gmra.mxu2 %vm287_vm0, %v1526_v32 }
  0x44   :  { %1478 = vmatmul.msk.bf16.gmra.mxu1 %vm287_vm0, %v1510_v29  ;;  %1494 = vmatmul.msk.bf16.gmra.mxu3 %vm287_vm0, %v1526_v32 }
  0x53   :  { %1447 = vmatmul.msk.bf16.gmra.mxu0 %vm287_vm0, %v1511_v31  ;;  %1463 = vmatmul.msk.bf16.gmra.mxu2 %vm287_vm0, %v1527_v34 }
  0x54   :  { %1479 = vmatmul.msk.bf16.gmra.mxu1 %vm287_vm0, %v1511_v31  ;;  %1495 = vmatmul.msk.bf16.gmra.mxu3 %vm287_vm0, %v1527_v34 }
  0x63   :  { %1448 = vmatmul.msk.bf16.gmra.mxu0 %vm287_vm0, %v1512_v33  ;;  %1464 = vmatmul.msk.bf16.gmra.mxu2 %vm287_vm0, %v1528_v36 }
  0x64   :  { %1480 = vmatmul.msk.bf16.gmra.mxu1 %vm287_vm0, %v1512_v33  ;;  %1496 = vmatmul.msk.bf16.gmra.mxu3 %vm287_vm0, %v1528_v36 }
  0x73   :  { %1449 = vmatmul.msk.bf16.gmra.mxu0 %vm287_vm0, %v1513_v35  ;;  %1465 = vmatmul.msk.bf16.gmra.mxu2 %vm287_vm0, %v1529_v38 }
  0x74   :  { %1481 = vmatmul.msk.bf16.gmra.mxu1 %vm287_vm0, %v1513_v35  ;;  %1497 = vmatmul.msk.bf16.gmra.mxu3 %vm287_vm0, %v1529_v38 }
  0x83   :  { %1450 = vmatmul.msk.bf16.gmra.mxu0 %vm287_vm0, %v1514_v37  ;;  %1466 = vmatmul.msk.bf16.gmra.mxu2 %vm287_vm0, %v1530_v43 }
  0x84   :  { %1482 = vmatmul.msk.bf16.gmra.mxu1 %vm287_vm0, %v1514_v37  ;;  %1498 = vmatmul.msk.bf16.gmra.mxu3 %vm287_vm0, %v1530_v43 }
  0x90   :  { %v393_v40 = vpop.f32.mrf.mxu0 }
  0x91   :  { %v562_v41 = vpop.f32.mrf.mxu1  ;;  %v999_v45 = vmul.f32 %v393_v40, %v393_v40 }
  0x92   :  { %v722_v42 = vpack.c.bf16 %v562_v41, %v393_v40  ;;  %v1000_v49 = vmul.f32 %v562_v41, %v562_v41 }
  0x93   :  { %1451 = vmatmul.msk.bf16.gmra.mxu0 %vm287_vm0, %v1515_v39  ;;  %1467 = vmatmul.msk.bf16.gmra.mxu2 %vm287_vm0, %v1531_v1 }
  0x94   :  { %786 = vst [vmem:[%s2468_s2] sm:$0xff] %v722_v42  ;;  %1483 = vmatmul.msk.bf16.gmra.mxu1 %vm287_vm0, %v1515_v39  ;;  %1499 = vmatmul.msk.bf16.gmra.mxu3 %vm287_vm0, %v1531_v1 }
  0x96   :  { %v1732_v6 = vpop.f32.mrf.mxu2 }
  0x97   :  { %v1734_v10 = vpop.f32.mrf.mxu3 }
  0x98   :  { %v395_v44 = vpop.f32.mrf.mxu0  ;;  %v754_v13 = vpack.c.bf16 %v1734_v10, %v1732_v6 }
  0x99   :  { %v1001_v46 = vmul.f32 %v395_v44, %v395_v44  ;;  %v564_v47 = vpop.f32.mrf.mxu1  ;;  %v850_v48 = vadd.f32 %v395_v44, %v393_v40  ;;  %v1518_v40 = vld [vmem:[%s2467_s0 + $0x58] sm:$0xff] }
  0x9a   :  { %v723_v50 = vpack.c.bf16 %v564_v47, %v395_v44  ;;  %v1002_v51 = vmul.f32 %v564_v47, %v564_v47  ;;  %v919_v52 = vadd.f32 %v564_v47, %v562_v41  ;;  %818 = vst [vmem:[%s2468_s2 + $0x100] sm:$0xff] %v754_v13 }
  0x9b   :  { %v1127_v53 = vadd.f32 %v1001_v46, %v999_v45 }
  0x9c   :  { %787 = vst [vmem:[%s2468_s2 + $0x8] sm:$0xff] %v723_v50  ;;  %v1196_v54 = vadd.f32 %v1002_v51, %v1000_v49 }
  0x9e   :  { %v1747_v19 = vpop.f32.mrf.mxu2 }
  0x9f   :  { %v1749_v23 = vpop.f32.mrf.mxu3 }
  0xa0   :  { %v398_v56 = vpop.f32.mrf.mxu0  ;;  %v755_v25 = vpack.c.bf16 %v1749_v23, %v1747_v19 }
  0xa1   :  { %v851_v57 = vadd.f32 %v850_v48, %v398_v56  ;;  %v1003_v58 = vmul.f32 %v398_v56, %v398_v56  ;;  %v567_v59 = vpop.f32.mrf.mxu1 }
  0xa2   :  { %v724_v60 = vpack.c.bf16 %v567_v59, %v398_v56  ;;  %v920_v61 = vadd.f32 %v919_v52, %v567_v59  ;;  %v1004_v62 = vmul.f32 %v567_v59, %v567_v59  ;;  %819 = vst [vmem:[%s2468_s2 + $0x108] sm:$0xff] %v755_v25 }
  0xa3   :  { %v1128_v63 = vadd.f32 %v1127_v53, %v1003_v58  ;;  %1452 = vmatmul.msk.bf16.gmra.mxu0 %vm287_vm0, %v1516_v55  ;;  %1468 = vmatmul.msk.bf16.gmra.mxu2 %vm287_vm0, %v1532_v27  ;;  %v1533_v53 = vld [vmem:[%s2467_s0 + $0xd0] sm:$0xff] }
  0xa4   :  { %788 = vst [vmem:[%s2468_s2 + $0x10] sm:$0xff] %v724_v60  ;;  %v1197_v0 = vadd.f32 %v1196_v54, %v1004_v62  ;;  %1484 = vmatmul.msk.bf16.gmra.mxu1 %vm287_vm0, %v1516_v55  ;;  %1500 = vmatmul.msk.bf16.gmra.mxu3 %vm287_vm0, %v1532_v27 }
  0xa6   :  { %v1766_v32 = vpop.f32.mrf.mxu2 }
  0xa7   :  { %v1768_v36 = vpop.f32.mrf.mxu3 }
  0xa8   :  { %v400_v2 = vpop.f32.mrf.mxu0  ;;  %v756_v39 = vpack.c.bf16 %v1768_v36, %v1766_v32 }
  0xa9   :  { %v1005_v3 = vmul.f32 %v400_v2, %v400_v2  ;;  %v569_v4 = vpop.f32.mrf.mxu1  ;;  %v852_v5 = vadd.f32 %v851_v57, %v400_v2 }
  0xaa   :  { %v725_v7 = vpack.c.bf16 %v569_v4, %v400_v2  ;;  %v1006_v8 = vmul.f32 %v569_v4, %v569_v4  ;;  %v921_v9 = vadd.f32 %v920_v61, %v569_v4  ;;  %820 = vst [vmem:[%s2468_s2 + $0x110] sm:$0xff] %v756_v39  ;;  %v1519_v2 = vld [vmem:[%s2467_s0 + $0x60] sm:$0xff] }
  0xab   :  { %v1129_v11 = vadd.f32 %v1128_v63, %v1005_v3 }
  0xac   :  { %789 = vst [vmem:[%s2468_s2 + $0x18] sm:$0xff] %v725_v7  ;;  %v1198_v12 = vadd.f32 %v1197_v0, %v1006_v8 }
  0xae   :  { %v1781_v45 = vpop.f32.mrf.mxu2 }
  0xaf   :  { %v1783_v49 = vpop.f32.mrf.mxu3 }
  0xb0   :  { %v403_v15 = vpop.f32.mrf.mxu0  ;;  %v757_v51 = vpack.c.bf16 %v1783_v49, %v1781_v45 }
  0xb1   :  { %v853_v16 = vadd.f32 %v852_v5, %v403_v15  ;;  %v1007_v17 = vmul.f32 %v403_v15, %v403_v15  ;;  %v572_v18 = vpop.f32.mrf.mxu1 }
  0xb2   :  { %v726_v20 = vpack.c.bf16 %v572_v18, %v403_v15  ;;  %v922_v21 = vadd.f32 %v921_v9, %v572_v18  ;;  %v1008_v22 = vmul.f32 %v572_v18, %v572_v18  ;;  %821 = vst [vmem:[%s2468_s2 + $0x118] sm:$0xff] %v757_v51 }
  0xb3   :  { %v1130_v24 = vadd.f32 %v1129_v11, %v1007_v17  ;;  %1453 = vmatmul.msk.bf16.gmra.mxu0 %vm287_vm0, %v1517_v14  ;;  %1469 = vmatmul.msk.bf16.gmra.mxu2 %vm287_vm0, %v1533_v53  ;;  %v1534_v17 = vld [vmem:[%s2467_s0 + $0xd8] sm:$0xff] }
  0xb4   :  { %790 = vst [vmem:[%s2468_s2 + $0x20] sm:$0xff] %v726_v20  ;;  %v1199_v26 = vadd.f32 %v1198_v12, %v1008_v22  ;;  %1485 = vmatmul.msk.bf16.gmra.mxu1 %vm287_vm0, %v1517_v14  ;;  %1501 = vmatmul.msk.bf16.gmra.mxu3 %vm287_vm0, %v1533_v53 }
  0xb6   :  { %v1800_v58 = vpop.f32.mrf.mxu2 }
  0xb7   :  { %v1802_v62 = vpop.f32.mrf.mxu3 }
  0xb8   :  { %v405_v28 = vpop.f32.mrf.mxu0  ;;  %v758_v1 = vpack.c.bf16 %v1802_v62, %v1800_v58 }
  0xb9   :  { %v1009_v29 = vmul.f32 %v405_v28, %v405_v28  ;;  %v574_v30 = vpop.f32.mrf.mxu1  ;;  %v854_v31 = vadd.f32 %v853_v16, %v405_v28 }
  0xba   :  { %v727_v33 = vpack.c.bf16 %v574_v30, %v405_v28  ;;  %v1010_v34 = vmul.f32 %v574_v30, %v574_v30  ;;  %v923_v35 = vadd.f32 %v922_v21, %v574_v30  ;;  %822 = vst [vmem:[%s2468_s2 + $0x120] sm:$0xff] %v758_v1 }
  0xbb   :  { %v1131_v37 = vadd.f32 %v1130_v24, %v1009_v29 }
  0xbc   :  { %791 = vst [vmem:[%s2468_s2 + $0x28] sm:$0xff] %v727_v33  ;;  %v1200_v38 = vadd.f32 %v1199_v26, %v1010_v34  ;;  %v1520_v33 = vld [vmem:[%s2467_s0 + $0x68] sm:$0xff] }
  0xbe   :  { %v1815_v8 = vpop.f32.mrf.mxu2 }
  0xbf   :  { %v1817_v13 = vpop.f32.mrf.mxu3 }
  0xc0   :  { %v408_v41 = vpop.f32.mrf.mxu0  ;;  %v759_v15 = vpack.c.bf16 %v1817_v13, %v1815_v8 }
  0xc1   :  { %v855_v42 = vadd.f32 %v854_v31, %v408_v41  ;;  %v1011_v43 = vmul.f32 %v408_v41, %v408_v41  ;;  %v577_v44 = vpop.f32.mrf.mxu1 }
  0xc2   :  { %v728_v46 = vpack.c.bf16 %v577_v44, %v408_v41  ;;  %v924_v47 = vadd.f32 %v923_v35, %v577_v44  ;;  %v1012_v48 = vmul.f32 %v577_v44, %v577_v44  ;;  %823 = vst [vmem:[%s2468_s2 + $0x128] sm:$0xff] %v759_v15 }
  0xc3   :  { %v1132_v50 = vadd.f32 %v1131_v37, %v1011_v43  ;;  %1454 = vmatmul.msk.bf16.gmra.mxu0 %vm287_vm0, %v1518_v40  ;;  %1470 = vmatmul.msk.bf16.gmra.mxu2 %vm287_vm0, %v1534_v17 }
  0xc4   :  { %792 = vst [vmem:[%s2468_s2 + $0x30] sm:$0xff] %v728_v46  ;;  %v1201_v52 = vadd.f32 %v1200_v38, %v1012_v48  ;;  %1486 = vmatmul.msk.bf16.gmra.mxu1 %vm287_vm0, %v1518_v40  ;;  %1502 = vmatmul.msk.bf16.gmra.mxu3 %vm287_vm0, %v1534_v17  ;;  %v1535_v48 = vld [vmem:[%s2467_s0 + $0xe0] sm:$0xff]  ;;  %v1536_v17 = vld [vmem:[%s2467_s0 + $0xe8] sm:$0xff] }
  0xc6   :  { %v1834_v24 = vpop.f32.mrf.mxu2 }
  0xc7   :  { %v1836_v28 = vpop.f32.mrf.mxu3 }
  0xc8   :  { %v410_v54 = vpop.f32.mrf.mxu0  ;;  %v760_v31 = vpack.c.bf16 %v1836_v28, %v1834_v24 }
  0xc9   :  { %v1013_v55 = vmul.f32 %v410_v54, %v410_v54  ;;  %v579_v56 = vpop.f32.mrf.mxu1  ;;  %v856_v57 = vadd.f32 %v855_v42, %v410_v54 }
  0xca   :  { %v729_v59 = vpack.c.bf16 %v579_v56, %v410_v54  ;;  %v1014_v60 = vmul.f32 %v579_v56, %v579_v56  ;;  %v925_v61 = vadd.f32 %v924_v47, %v579_v56  ;;  %824 = vst [vmem:[%s2468_s2 + $0x130] sm:$0xff] %v760_v31 }
  0xcb   :  { %v1133_v63 = vadd.f32 %v1132_v50, %v1013_v55 }
  0xcc   :  { %793 = vst [vmem:[%s2468_s2 + $0x38] sm:$0xff] %v729_v59  ;;  %v1202_v0 = vadd.f32 %v1201_v52, %v1014_v60 }
  0xce   :  { %v1849_v39 = vpop.f32.mrf.mxu2 }
  0xcf   :  { %v1851_v43 = vpop.f32.mrf.mxu3 }
  0xd0   :  { %v413_v3 = vpop.f32.mrf.mxu0  ;;  %v761_v46 = vpack.c.bf16 %v1851_v43, %v1849_v39 }
  0xd1   :  { %v857_v4 = vadd.f32 %v856_v57, %v413_v3  ;;  %v1015_v5 = vmul.f32 %v413_v3, %v413_v3  ;;  %v582_v7 = vpop.f32.mrf.mxu1 }
  0xd2   :  { %v730_v9 = vpack.c.bf16 %v582_v7, %v413_v3  ;;  %v926_v11 = vadd.f32 %v925_v61, %v582_v7  ;;  %v1016_v12 = vmul.f32 %v582_v7, %v582_v7  ;;  %825 = vst [vmem:[%s2468_s2 + $0x138] sm:$0xff] %v761_v46 }
  0xd3   :  { %v1134_v14 = vadd.f32 %v1133_v63, %v1015_v5  ;;  %1455 = vmatmul.msk.bf16.gmra.mxu0 %vm287_vm0, %v1519_v2  ;;  %1471 = vmatmul.msk.bf16.gmra.mxu2 %vm287_vm0, %v1535_v48 }
  0xd4   :  { %794 = vst [vmem:[%s2468_s2 + $0x40] sm:$0xff] %v730_v9  ;;  %v1203_v16 = vadd.f32 %v1202_v0, %v1016_v12  ;;  %1487 = vmatmul.msk.bf16.gmra.mxu1 %vm287_vm0, %v1519_v2  ;;  %1503 = vmatmul.msk.bf16.gmra.mxu3 %vm287_vm0, %v1535_v48  ;;  %v1521_v0 = vld [vmem:[%s2467_s0 + $0x70] sm:$0xff] }
  0xd6   :  { %v1868_v54 = vpop.f32.mrf.mxu2 }
  0xd7   :  { %v1870_v59 = vpop.f32.mrf.mxu3 }
  0xd8   :  { %v415_v18 = vpop.f32.mrf.mxu0  ;;  %v762_v63 = vpack.c.bf16 %v1870_v59, %v1868_v54 }
  0xd9   :  { %v858_v20 = vadd.f32 %v857_v4, %v415_v18  ;;  %v1017_v21 = vmul.f32 %v415_v18, %v415_v18  ;;  %v584_v22 = vpop.f32.mrf.mxu1 }
  0xda   :  { %v731_v25 = vpack.c.bf16 %v584_v22, %v415_v18  ;;  %v927_v26 = vadd.f32 %v926_v11, %v584_v22  ;;  %v1018_v27 = vmul.f32 %v584_v22, %v584_v22  ;;  %826 = vst [vmem:[%s2468_s2 + $0x140] sm:$0xff] %v762_v63 }
  0xdb   :  { %v1135_v29 = vadd.f32 %v1134_v14, %v1017_v21 }
  0xdc   :  { %795 = vst [vmem:[%s2468_s2 + $0x48] sm:$0xff] %v731_v25  ;;  %v1204_v30 = vadd.f32 %v1203_v16, %v1018_v27 }
  0xde   :  { %v1883_v5 = vpop.f32.mrf.mxu2 }
  0xdf   :  { %v1885_v12 = vpop.f32.mrf.mxu3 }
  0xe0   :  { %v418_v34 = vpop.f32.mrf.mxu0  ;;  %v763_v15 = vpack.c.bf16 %v1885_v12, %v1883_v5 }
  0xe1   :  { %v859_v35 = vadd.f32 %v858_v20, %v418_v34  ;;  %v1019_v37 = vmul.f32 %v418_v34, %v418_v34  ;;  %v587_v38 = vpop.f32.mrf.mxu1 }
  0xe2   :  { %v732_v40 = vpack.c.bf16 %v587_v38, %v418_v34  ;;  %v928_v41 = vadd.f32 %v927_v26, %v587_v38  ;;  %v1020_v42 = vmul.f32 %v587_v38, %v587_v38  ;;  %827 = vst [vmem:[%s2468_s2 + $0x148] sm:$0xff] %v763_v15 }
  0xe3   :  { %v1136_v44 = vadd.f32 %v1135_v29, %v1019_v37  ;;  %1456 = vmatmul.msk.bf16.gmra.mxu0 %vm287_vm0, %v1520_v33  ;;  %1472 = vmatmul.msk.bf16.gmra.mxu2 %vm287_vm0, %v1536_v17 }
  0xe4   :  { %796 = vst [vmem:[%s2468_s2 + $0x50] sm:$0xff] %v732_v40  ;;  %v1205_v47 = vadd.f32 %v1204_v30, %v1020_v42  ;;  %1488 = vmatmul.msk.bf16.gmra.mxu1 %vm287_vm0, %v1520_v33  ;;  %1504 = vmatmul.msk.bf16.gmra.mxu3 %vm287_vm0, %v1536_v17 }
  0xe6   :  { %v1902_v25 = vpop.f32.mrf.mxu2 }
  0xe7   :  { %v1904_v30 = vpop.f32.mrf.mxu3 }
  0xe8   :  { %v420_v50 = vpop.f32.mrf.mxu0  ;;  %v764_v34 = vpack.c.bf16 %v1904_v30, %v1902_v25 }
  0xe9   :  { %v860_v51 = vadd.f32 %v859_v35, %v420_v50  ;;  %v1021_v52 = vmul.f32 %v420_v50, %v420_v50  ;;  %v589_v53 = vpop.f32.mrf.mxu1  ;;  %v1522_v35 = vld [vmem:[%s2467_s0 + $0x78] sm:$0xff] }
  0xea   :  { %v733_v55 = vpack.c.bf16 %v589_v53, %v420_v50  ;;  %v929_v56 = vadd.f32 %v928_v41, %v589_v53  ;;  %v1022_v57 = vmul.f32 %v589_v53, %v589_v53  ;;  %828 = vst [vmem:[%s2468_s2 + $0x150] sm:$0xff] %v764_v34  ;;  %v1537_v53 = vld [vmem:[%s2467_s0 + $0xf0] sm:$0xff] }
  0xeb   :  { %v1137_v60 = vadd.f32 %v1136_v44, %v1021_v52 }
  0xec   :  { %797 = vst [vmem:[%s2468_s2 + $0x58] sm:$0xff] %v733_v55  ;;  %v1206_v61 = vadd.f32 %v1205_v47, %v1022_v57 }
  0xee   :  { %v1917_v42 = vpop.f32.mrf.mxu2 }
  0xef   :  { %v1919_v48 = vpop.f32.mrf.mxu3 }
  0xf0   :  { %v423_v1 = vpop.f32.mrf.mxu0 }
  0xf1   :  { %v861_v2 = vadd.f32 %v860_v51, %v423_v1  ;;  %v1023_v3 = vmul.f32 %v423_v1, %v423_v1  ;;  %v592_v4 = vpop.f32.mrf.mxu1  ;;  %v765_v51 = vpack.c.bf16 %v1919_v48, %v1917_v42 }
  0xf2   :  { %v734_v7 = vpack.c.bf16 %v592_v4, %v423_v1  ;;  %v930_v9 = vadd.f32 %v929_v56, %v592_v4  ;;  %v1024_v11 = vmul.f32 %v592_v4, %v592_v4 }
  0xf3   :  { %v1138_v14 = vadd.f32 %v1137_v60, %v1023_v3  ;;  %1457 = vmatmul.msk.bf16.gmra.mxu0 %vm287_vm0, %v1521_v0  ;;  %829 = vst [vmem:[%s2468_s2 + $0x158] sm:$0xff] %v765_v51  ;;  %1473 = vmatmul.msk.bf16.gmra.mxu2 %vm287_vm0, %v1537_v53 }
  0xf4   :  { %798 = vst [vmem:[%s2468_s2 + $0x60] sm:$0xff] %v734_v7  ;;  %v1207_v16 = vadd.f32 %v1206_v61, %v1024_v11  ;;  %1489 = vmatmul.msk.bf16.gmra.mxu1 %vm287_vm0, %v1521_v0  ;;  %1505 = vmatmul.msk.bf16.gmra.mxu3 %vm287_vm0, %v1537_v53 }
  0xf6   :  { %v1936_v61 = vpop.f32.mrf.mxu2 }
  0xf8   :  { %v425_v18 = vpop.f32.mrf.mxu0 }
  0xf9   :  { %v862_v20 = vadd.f32 %v861_v2, %v425_v18  ;;  %v1025_v21 = vmul.f32 %v425_v18, %v425_v18  ;;  %v594_v22 = vpop.f32.mrf.mxu1  ;;  %v1938_v2 = vpop.f32.mrf.mxu3 }
  0xfa   :  { %v735_v26 = vpack.c.bf16 %v594_v22, %v425_v18  ;;  %v931_v27 = vadd.f32 %v930_v9, %v594_v22  ;;  %v1026_v29 = vmul.f32 %v594_v22, %v594_v22  ;;  %v766_v7 = vpack.c.bf16 %v1938_v2, %v1936_v61 }
  0xfb   :  { %v1139_v31 = vadd.f32 %v1138_v14, %v1025_v21 }
  0xfc   :  { %799 = vst [vmem:[%s2468_s2 + $0x68] sm:$0xff] %v735_v26  ;;  %v1208_v33 = vadd.f32 %v1207_v16, %v1026_v29  ;;  %v1538_v29 = vld [vmem:[%s2467_s0 + $0xf8] sm:$0xff] }
  0xfd   :  { %830 = vst [vmem:[%s2468_s2 + $0x160] sm:$0xff] %v766_v7 }
  0xfe   :  { %v1948_v16 = vpop.f32.mrf.mxu2 }
 0x100   :  { %v428_v37 = vpop.f32.mrf.mxu0 }
 0x101   :  { %v863_v38 = vadd.f32 %v862_v20, %v428_v37  ;;  %v1027_v40 = vmul.f32 %v428_v37, %v428_v37  ;;  %v597_v41 = vpop.f32.mrf.mxu1  ;;  %v1950_v21 = vpop.f32.mrf.mxu3 }
 0x102   :  { %v736_v44 = vpack.c.bf16 %v597_v41, %v428_v37  ;;  %v932_v46 = vadd.f32 %v931_v27, %v597_v41  ;;  %v1028_v47 = vmul.f32 %v597_v41, %v597_v41  ;;  %v767_v26 = vpack.c.bf16 %v1950_v21, %v1948_v16 }
 0x103   :  { %v1140_v50 = vadd.f32 %v1139_v31, %v1027_v40  ;;  %1458 = vmatmul.msk.bf16.gmra.mxu0 %vm287_vm0, %v1522_v35  ;;  %1474 = vmatmul.msk.bf16.gmra.mxu2 %vm287_vm0, %v1538_v29 }
 0x104   :  { %800 = vst [vmem:[%s2468_s2 + $0x70] sm:$0xff] %v736_v44  ;;  %v1209_v52 = vadd.f32 %v1208_v33, %v1028_v47  ;;  %1490 = vmatmul.msk.bf16.gmra.mxu1 %vm287_vm0, %v1522_v35  ;;  %1506 = vmatmul.msk.bf16.gmra.mxu3 %vm287_vm0, %v1538_v29 }
 0x105   :  { %831 = vst [vmem:[%s2468_s2 + $0x168] sm:$0xff] %v767_v26 }
 0x106   :  { %v1965_v37 = vpop.f32.mrf.mxu2 }
 0x108   :  { %v430_v55 = vpop.f32.mrf.mxu0 }
 0x109   :  { %v864_v56 = vadd.f32 %v863_v38, %v430_v55  ;;  %v1029_v57 = vmul.f32 %v430_v55, %v430_v55  ;;  %v599_v60 = vpop.f32.mrf.mxu1  ;;  %v1967_v44 = vpop.f32.mrf.mxu3 }
 0x10a   :  { %v737_v63 = vpack.c.bf16 %v599_v60, %v430_v55  ;;  %v933_v0 = vadd.f32 %v932_v46, %v599_v60  ;;  %v1030_v1 = vmul.f32 %v599_v60, %v599_v60 }
 0x10b   :  { %v1141_v3 = vadd.f32 %v1140_v50, %v1029_v57  ;;  %v768_v50 = vpack.c.bf16 %v1967_v44, %v1965_v37 }
 0x10c   :  { %801 = vst [vmem:[%s2468_s2 + $0x78] sm:$0xff] %v737_v63  ;;  %v1210_v4 = vadd.f32 %v1209_v52, %v1030_v1 }
 0x10d   :  { %832 = vst [vmem:[%s2468_s2 + $0x170] sm:$0xff] %v768_v50 }
 0x110   :  { %v433_v9 = vpop.f32.mrf.mxu0 }
 0x111   :  { %v865_v11 = vadd.f32 %v864_v56, %v433_v9  ;;  %v1031_v14 = vmul.f32 %v433_v9, %v433_v9  ;;  %v602_v15 = vpop.f32.mrf.mxu1  ;;  %v1977_v56 = vpop.f32.mrf.mxu2 }
 0x112   :  { %v738_v17 = vpack.c.bf16 %v602_v15, %v433_v9  ;;  %v934_v18 = vadd.f32 %v933_v0, %v602_v15  ;;  %v1032_v20 = vmul.f32 %v602_v15, %v602_v15  ;;  %v1979_v0 = vpop.f32.mrf.mxu3 }
 0x113   :  { %v1142_v22 = vadd.f32 %v1141_v3, %v1031_v14  ;;  %2513 = vst [vmem:[#allocation2_spill] sm:$0xff] %v1979_v0  ;;  %v769_v3 = vpack.c.bf16 %v1979_v0, %v1977_v56 }
 0x114   :  { %802 = vst [vmem:[%s2468_s2 + $0x80] sm:$0xff] %v738_v17  ;;  %v1211_v27 = vadd.f32 %v1210_v4, %v1032_v20 }
 0x115   :  { %833 = vst [vmem:[%s2468_s2 + $0x178] sm:$0xff] %v769_v3 }
 0x118   :  { %v435_v31 = vpop.f32.mrf.mxu0 }
 0x119   :  { %v866_v33 = vadd.f32 %v865_v11, %v435_v31  ;;  %v1033_v34 = vmul.f32 %v435_v31, %v435_v31  ;;  %v604_v35 = vpop.f32.mrf.mxu1  ;;  %v1989_v15 = vpop.f32.mrf.mxu2 }
 0x11a   :  { %v739_v38 = vpack.c.bf16 %v604_v35, %v435_v31  ;;  %v935_v40 = vadd.f32 %v934_v18, %v604_v35  ;;  %v1034_v41 = vmul.f32 %v604_v35, %v604_v35  ;;  %2514 = vst [vmem:[#allocation3_spill] sm:$0xff] %v1989_v15 }
 0x11b   :  { %v1143_v46 = vadd.f32 %v1142_v22, %v1033_v34  ;;  %v1991_v22 = vpop.f32.mrf.mxu3 }
 0x11c   :  { %803 = vst [vmem:[%s2468_s2 + $0x88] sm:$0xff] %v739_v38  ;;  %v1212_v47 = vadd.f32 %v1211_v27, %v1034_v41  ;;  %v770_v29 = vpack.c.bf16 %v1991_v22, %v1989_v15 }
 0x11d   :  { %2515 = vst [vmem:[#allocation4_spill] sm:$0xff] %v1991_v22 }
 0x11e   :  { %834 = vst [vmem:[%s2468_s2 + $0x180] sm:$0xff] %v770_v29 }
 0x120   :  { %v438_v51 = vpop.f32.mrf.mxu0 }
 0x121   :  { %v867_v52 = vadd.f32 %v866_v33, %v438_v51  ;;  %v1035_v53 = vmul.f32 %v438_v51, %v438_v51  ;;  %v607_v55 = vpop.f32.mrf.mxu1  ;;  %v2003_v38 = vpop.f32.mrf.mxu2 }
 0x122   :  { %v740_v57 = vpack.c.bf16 %v607_v55, %v438_v51  ;;  %v936_v60 = vadd.f32 %v935_v40, %v607_v55  ;;  %v1036_v63 = vmul.f32 %v607_v55, %v607_v55  ;;  %2516 = vst [vmem:[#allocation5_spill] sm:$0xff] %v2003_v38 }
 0x123   :  { %v1144_v1 = vadd.f32 %v1143_v46, %v1035_v53 }
 0x124   :  { %804 = vst [vmem:[%s2468_s2 + $0x90] sm:$0xff] %v740_v57  ;;  %v1213_v4 = vadd.f32 %v1212_v47, %v1036_v63  ;;  %v2007_v47 = vpop.f32.mrf.mxu3 }
 0x125   :  { %2517 = vst [vmem:[#allocation6_spill] sm:$0xff] %v2007_v47  ;;  %v771_v51 = vpack.c.bf16 %v2007_v47, %v2003_v38 }
 0x127   :  { %835 = vst [vmem:[%s2468_s2 + $0x188] sm:$0xff] %v771_v51 }
 0x128   :  { %v440_v7 = vpop.f32.mrf.mxu0 }
 0x129   :  { %v868_v9 = vadd.f32 %v867_v52, %v440_v7  ;;  %v1037_v11 = vmul.f32 %v440_v7, %v440_v7  ;;  %v609_v14 = vpop.f32.mrf.mxu1  ;;  %v2025_v57 = vpop.f32.mrf.mxu2 }
 0x12a   :  { %v741_v17 = vpack.c.bf16 %v609_v14, %v440_v7  ;;  %v937_v18 = vadd.f32 %v936_v60, %v609_v14  ;;  %v1038_v20 = vmul.f32 %v609_v14, %v609_v14  ;;  %2518 = vst [vmem:[#allocation7_spill] sm:$0xff] %v2025_v57 }
 0x12b   :  { %v1145_v26 = vadd.f32 %v1144_v1, %v1037_v11 }
 0x12c   :  { %805 = vst [vmem:[%s2468_s2 + $0x98] sm:$0xff] %v741_v17  ;;  %v1214_v27 = vadd.f32 %v1213_v4, %v1038_v20  ;;  %v2029_v63 = vpop.f32.mrf.mxu3 }
 0x12d   :  { %2519 = vst [vmem:[#allocation8_spill] sm:$0xff] %v2029_v63  ;;  %v772_v1 = vpack.c.bf16 %v2029_v63, %v2025_v57 }
 0x12f   :  { %836 = vst [vmem:[%s2468_s2 + $0x190] sm:$0xff] %v772_v1 }
 0x130   :  { %v443_v31 = vpop.f32.mrf.mxu0 }
 0x131   :  { %v2001_v33 = vadd.f32 %v868_v9, %v443_v31  ;;  %v1039_v34 = vmul.f32 %v443_v31, %v443_v31  ;;  %v612_v35 = vpop.f32.mrf.mxu1  ;;  %v2043_v7 = vpop.f32.mrf.mxu2 }
 0x132   :  { %v742_v40 = vpack.c.bf16 %v612_v35, %v443_v31  ;;  %v2005_v41 = vadd.f32 %v937_v18, %v612_v35  ;;  %v1040_v46 = vmul.f32 %v612_v35, %v612_v35  ;;  %2520 = vst [vmem:[#allocation9_spill] sm:$0xff] %v2043_v7 }
 0x133   :  { %v2009_v50 = vadd.f32 %v1145_v26, %v1039_v34 }
 0x134   :  { %806 = vst [vmem:[%s2468_s2 + $0xa0] sm:$0xff] %v742_v40  ;;  %v2016_v52 = vadd.f32 %v1214_v27, %v1040_v46  ;;  %v2047_v11 = vpop.f32.mrf.mxu3 }
 0x135   :  { %2521 = vst [vmem:[#allocation10_spill] sm:$0xff] %v2047_v11  ;;  %v773_v14 = vpack.c.bf16 %v2047_v11, %v2043_v7 }
 0x137   :  { %837 = vst [vmem:[%s2468_s2 + $0x198] sm:$0xff] %v773_v14 }
 0x138   :  { %v2021_v53 = vpop.f32.mrf.mxu0 }
 0x139   :  { %v2023_v55 = vpop.f32.mrf.mxu1  ;;  %v2061_v20 = vpop.f32.mrf.mxu2  ;;  %v870_v22 = vadd.f32 %v2001_v33, %v2021_v53 }
 0x13a   :  { %v743_v60 = vpack.c.bf16 %v2023_v55, %v2021_v53  ;;  %2522 = vst [vmem:[#allocation11_spill] sm:$0xff] %v2061_v20 }
 0x13c   :  { %807 = vst [vmem:[%s2468_s2 + $0xa8] sm:$0xff] %v743_v60  ;;  %v2065_v27 = vpop.f32.mrf.mxu3 }
 0x13d   :  { %2523 = vst [vmem:[#allocation12_spill] sm:$0xff] %v2065_v27  ;;  %v774_v29 = vpack.c.bf16 %v2065_v27, %v2061_v20 }
 0x13f   :  { %838 = vst [vmem:[%s2468_s2 + $0x1a0] sm:$0xff] %v774_v29 }
 0x140   :  { %v2039_v3 = vpop.f32.mrf.mxu0 }
 0x141   :  { %v2041_v4 = vpop.f32.mrf.mxu1  ;;  %v2079_v35 = vpop.f32.mrf.mxu2  ;;  %v1043_v38 = vmul.f32 %v2039_v3, %v2039_v3 }
 0x142   :  { %v744_v9 = vpack.c.bf16 %v2041_v4, %v2039_v3  ;;  %2524 = vst [vmem:[#allocation13_spill] sm:$0xff] %v2079_v35 }
 0x144   :  { %808 = vst [vmem:[%s2468_s2 + $0xb0] sm:$0xff] %v744_v9  ;;  %v2083_v46 = vpop.f32.mrf.mxu3 }
 0x145   :  { %2525 = vst [vmem:[#allocation14_spill] sm:$0xff] %v2083_v46  ;;  %v775_v51 = vpack.c.bf16 %v2083_v46, %v2079_v35 }
 0x147   :  { %839 = vst [vmem:[%s2468_s2 + $0x1a8] sm:$0xff] %v775_v51 }
 0x148   :  { %v2057_v17 = vpop.f32.mrf.mxu0 }
 0x149   :  { %v2059_v18 = vpop.f32.mrf.mxu1  ;;  %v2097_v9 = vpop.f32.mrf.mxu2 }
 0x14a   :  { %v745_v26 = vpack.c.bf16 %v2059_v18, %v2057_v17  ;;  %2526 = vst [vmem:[#allocation15_spill] sm:$0xff] %v2097_v9 }
 0x14c   :  { %809 = vst [vmem:[%s2468_s2 + $0xb8] sm:$0xff] %v745_v26  ;;  %v2101_v26 = vpop.f32.mrf.mxu3 }
 0x14d   :  { %2527 = vst [vmem:[#allocation16_spill] sm:$0xff] %v2101_v26  ;;  %v776_v29 = vpack.c.bf16 %v2101_v26, %v2097_v9 }
 0x14f   :  { %840 = vst [vmem:[%s2468_s2 + $0x1b0] sm:$0xff] %v776_v29 }
 0x150   :  { %v2075_v31 = vpop.f32.mrf.mxu0 }
 0x151   :  { %v2077_v34 = vpop.f32.mrf.mxu1  ;;  %v2113_v46 = vpop.f32.mrf.mxu2 }
 0x152   :  { %v746_v40 = vpack.c.bf16 %v2077_v34, %v2075_v31  ;;  %2528 = vst [vmem:[#allocation17_spill] sm:$0xff] %v2113_v46 }
 0x154   :  { %810 = vst [vmem:[%s2468_s2 + $0xc0] sm:$0xff] %v746_v40  ;;  %v2116_v27 = vpop.f32.mrf.mxu3 }
 0x155   :  { %2529 = vst [vmem:[#allocation18_spill] sm:$0xff] %v2116_v27  ;;  %v777_v20 = vpack.c.bf16 %v2116_v27, %v2113_v46 }
 0x157   :  { %841 = vst [vmem:[%s2468_s2 + $0x1b8] sm:$0xff] %v777_v20  ;;  %v1041_v20 = vmul.f32 %v2021_v53, %v2021_v53  ;;  %v871_v53 = vadd.f32 %v870_v22, %v2039_v3 }
 0x158   :  { %v2093_v60 = vpop.f32.mrf.mxu0 }
 0x159   :  { %v2095_v1 = vpop.f32.mrf.mxu1  ;;  %v2128_v26 = vpop.f32.mrf.mxu2  ;;  %v872_v15 = vadd.f32 %v871_v53, %v2057_v17 }
 0x15a   :  { %v747_v14 = vpack.c.bf16 %v2095_v1, %v2093_v60  ;;  %2530 = vst [vmem:[#allocation19_spill] sm:$0xff] %v2128_v26 }
 0x15c   :  { %811 = vst [vmem:[%s2468_s2 + $0xc8] sm:$0xff] %v747_v14  ;;  %v2131_v11 = vpop.f32.mrf.mxu3 }
 0x15d   :  { %2531 = vst [vmem:[#allocation20_spill] sm:$0xff] %v2131_v11  ;;  %v778_v63 = vpack.c.bf16 %v2131_v11, %v2128_v26  ;;  %v1044_v11 = vmul.f32 %v2041_v4, %v2041_v4  ;;  %v1147_v26 = vadd.f32 %v2009_v50, %v1041_v20 }
 0x15f   :  { %842 = vst [vmem:[%s2468_s2 + $0x1c0] sm:$0xff] %v778_v63  ;;  %v1148_v63 = vadd.f32 %v1147_v26, %v1043_v38 }
 0x160   :  { %v458_v40 = vpop.f32.mrf.mxu0 }
 0x161   :  { %v2111_v51 = vpop.f32.mrf.mxu1  ;;  %v2140_v46 = vpop.f32.mrf.mxu2  ;;  %v1051_v53 = vmul.f32 %v458_v40, %v458_v40 }
 0x162   :  { %v748_v35 = vpack.c.bf16 %v2111_v51, %v458_v40  ;;  %2532 = vst [vmem:[#allocation21_spill] sm:$0xff] %v2140_v46 }
 0x164   :  { %812 = vst [vmem:[%s2468_s2 + $0xd0] sm:$0xff] %v748_v35  ;;  %v2148_v57 = vpop.f32.mrf.mxu3 }
 0x165   :  { %2533 = vst [vmem:[#allocation22_spill] sm:$0xff] %v2148_v57  ;;  %v779_v47 = vpack.c.bf16 %v2148_v57, %v2140_v46  ;;  %v939_v57 = vadd.f32 %v2005_v41, %v2023_v55  ;;  %v1045_v46 = vmul.f32 %v2057_v17, %v2057_v17  ;;  %v1047_v41 = vmul.f32 %v2075_v31, %v2075_v31 }
 0x166   :  { %v1050_v17 = vmul.f32 %v2095_v1, %v2095_v1 }
 0x167   :  { %843 = vst [vmem:[%s2468_s2 + $0x1c8] sm:$0xff] %v779_v47  ;;  %v940_v50 = vadd.f32 %v939_v57, %v2041_v4  ;;  %v1048_v47 = vmul.f32 %v2077_v34, %v2077_v34  ;;  %v1149_v22 = vadd.f32 %v1148_v63, %v1045_v46  ;;  %v873_v4 = vadd.f32 %v872_v15, %v2075_v31 }
 0x168   :  { %v460_v14 = vpop.f32.mrf.mxu0  ;;  %v1052_v15 = vmul.f32 %v2111_v51, %v2111_v51 }
 0x169   :  { %v2126_v29 = vpop.f32.mrf.mxu1  ;;  %v941_v3 = vadd.f32 %v940_v50, %v2059_v18  ;;  %v1150_v26 = vadd.f32 %v1149_v22, %v1047_v41  ;;  %v874_v46 = vadd.f32 %v873_v4, %v2093_v60 }
 0x16a   :  { %v749_v9 = vpack.c.bf16 %v2126_v29, %v460_v14 }
 0x16b   :  { %v875_v50 = vadd.f32 %v874_v46, %v458_v40 }
 0x16c   :  { %813 = vst [vmem:[%s2468_s2 + $0xd8] sm:$0xff] %v749_v9  ;;  %v1042_v9 = vmul.f32 %v2023_v55, %v2023_v55  ;;  %v2187_v38 = vpop.f32.mrf.mxu3 }
 0x16e   :  { %v1216_v33 = vadd.f32 %v2016_v52, %v1042_v9  ;;  %v2184_v52 = vpop.f32.mrf.mxu2 }
 0x170   :  { %v2136_v27 = vpop.f32.mrf.mxu0  ;;  %v1217_v20 = vadd.f32 %v1216_v33, %v1044_v11  ;;  %v1049_v11 = vmul.f32 %v2093_v60, %v2093_v60  ;;  %v942_v33 = vadd.f32 %v941_v3, %v2077_v34  ;;  %v1054_v34 = vmul.f32 %v2126_v29, %v2126_v29 }
 0x171   :  { %v2138_v35 = vpop.f32.mrf.mxu1  ;;  %v1055_v60 = vmul.f32 %v2136_v27, %v2136_v27 }
 0x172   :  { %v750_v7 = vpack.c.bf16 %v2138_v35, %v2136_v27  ;;  %v943_v31 = vadd.f32 %v942_v33, %v2095_v1  ;;  %v1056_v40 = vmul.f32 %v2138_v35, %v2138_v35 }
 0x174   :  { %814 = vst [vmem:[%s2468_s2 + $0xe0] sm:$0xff] %v750_v7  ;;  %v1046_v7 = vmul.f32 %v2059_v18, %v2059_v18  ;;  %v944_v41 = vadd.f32 %v943_v31, %v2111_v51  ;;  %v780_v51 = vpack.c.bf16 %v2187_v38, %v2184_v52 }
 0x176   :  { %v1218_v57 = vadd.f32 %v1217_v20, %v1046_v7  ;;  %v1151_v7 = vadd.f32 %v1150_v26, %v1049_v11  ;;  %v1053_v20 = vmul.f32 %v460_v14, %v460_v14  ;;  %v2207_v4 = vpop.f32.mrf.mxu2  ;;  %v945_v1 = vadd.f32 %v944_v41, %v2126_v29  ;;  %844 = vst [vmem:[%s2468_s2 + $0x1d0] sm:$0xff] %v780_v51 }
 0x178   :  { %v465_v55 = vpop.f32.mrf.mxu0  ;;  %v1219_v18 = vadd.f32 %v1218_v57, %v1048_v47  ;;  %v1152_v3 = vadd.f32 %v1151_v7, %v1051_v53  ;;  %v946_v53 = vadd.f32 %v945_v1, %v2138_v35 }
 0x179   :  { %v634_v0 = vpop.f32.mrf.mxu1  ;;  %v1057_v33 = vmul.f32 %v465_v55, %v465_v55 }
 0x17a   :  { %v751_v9 = vpack.c.bf16 %v634_v0, %v465_v55  ;;  %v1220_v63 = vadd.f32 %v1219_v18, %v1050_v17  ;;  %v2214_v17 = vpop.f32.mrf.mxu3  ;;  %v1153_v26 = vadd.f32 %v1152_v3, %v1053_v20  ;;  %v1058_v29 = vmul.f32 %v634_v0, %v634_v0 }
 0x17b   :  { %v781_v18 = vpack.c.bf16 %v2214_v17, %v2207_v4 }
 0x17c   :  { %815 = vst [vmem:[%s2468_s2 + $0xe8] sm:$0xff] %v751_v9  ;;  %v1221_v47 = vadd.f32 %v1220_v63, %v1052_v15  ;;  %v876_v9 = vadd.f32 %v875_v50, %v460_v14  ;;  %v1154_v15 = vadd.f32 %v1153_v26, %v1055_v60  ;;  %v947_v63 = vadd.f32 %v946_v53, %v634_v0 }
 0x17d   :  { %845 = vst [vmem:[%s2468_s2 + $0x1d8] sm:$0xff] %v781_v18  ;;  %v1065_v53 = vmul.f32 %v1747_v19, %v1747_v19 }
 0x17e   :  { %v877_v14 = vadd.f32 %v876_v9, %v2136_v27  ;;  %v1222_v46 = vadd.f32 %v1221_v47, %v1054_v34  ;;  %v1155_v35 = vadd.f32 %v1154_v15, %v1057_v33  ;;  %v2229_v1 = vpop.f32.mrf.mxu2 }
 0x180   :  { %v468_v22 = vpop.f32.mrf.mxu0  ;;  %v878_v31 = vadd.f32 %v877_v14, %v465_v55  ;;  %v1223_v27 = vadd.f32 %v1222_v46, %v1056_v40  ;;  %v1063_v14 = vmul.f32 %v1732_v6, %v1732_v6 }
 0x181   :  { %v637_v57 = vpop.f32.mrf.mxu1  ;;  %v1059_v7 = vmul.f32 %v468_v22, %v468_v22 }
 0x182   :  { %v752_v11 = vpack.c.bf16 %v637_v57, %v468_v22  ;;  %v1060_v50 = vmul.f32 %v637_v57, %v637_v57  ;;  %v879_v20 = vadd.f32 %v878_v31, %v468_v22  ;;  %v1224_v41 = vadd.f32 %v1223_v27, %v1058_v29  ;;  %v2231_v26 = vpop.f32.mrf.mxu3 }
 0x183   :  { %v948_v34 = vadd.f32 %v947_v63, %v637_v57  ;;  %v1156_v47 = vadd.f32 %v1155_v35, %v1059_v7  ;;  %v1064_v57 = vmul.f32 %v1734_v10, %v1734_v10  ;;  %v1067_v27 = vmul.f32 %v1766_v32, %v1766_v32 }
 0x184   :  { %816 = vst [vmem:[%s2468_s2 + $0xf0] sm:$0xff] %v752_v11  ;;  %v1225_v11 = vadd.f32 %v1224_v41, %v1060_v50 }
 0x188   :  { %v470_v3 = vpop.f32.mrf.mxu0 }
 0x189   :  { %v880_v9 = vadd.f32 %v879_v20, %v470_v3  ;;  %v1061_v55 = vmul.f32 %v470_v3, %v470_v3  ;;  %v639_v60 = vpop.f32.mrf.mxu1 }
 0x18a   :  { %v753_v51 = vpack.c.bf16 %v639_v60, %v470_v3  ;;  %v949_v40 = vadd.f32 %v948_v34, %v639_v60  ;;  %v1062_v0 = vmul.f32 %v639_v60, %v639_v60  ;;  %v1070_v3 = vmul.f32 %v1783_v49, %v1783_v49 }
 0x18b   :  { %v881_v22 = vadd.f32 %v880_v9, %v1732_v6  ;;  %v1157_v33 = vadd.f32 %v1156_v47, %v1061_v55  ;;  %v1066_v6 = vmul.f32 %v1749_v23, %v1749_v23  ;;  %v782_v9 = vpack.c.bf16 %v2231_v26, %v2229_v1  ;;  %v2264_v55 = vpop.f32.mrf.mxu3 }
 0x18c   :  { %817 = vst [vmem:[%s2468_s2 + $0xf8] sm:$0xff] %v753_v51  ;;  %v950_v18 = vadd.f32 %v949_v40, %v1734_v10  ;;  %v1226_v46 = vadd.f32 %v1225_v11, %v1062_v0  ;;  %v1068_v10 = vmul.f32 %v1768_v36, %v1768_v36  ;;  %v1072_v51 = vmul.f32 %v1802_v62, %v1802_v62 }
 0x18d   :  { %v882_v29 = vadd.f32 %v881_v22, %v1747_v19  ;;  %v1158_v15 = vadd.f32 %v1157_v33, %v1063_v14  ;;  %v1069_v19 = vmul.f32 %v1781_v45, %v1781_v45  ;;  %846 = vst [vmem:[%s2468_s2 + $0x1e0] sm:$0xff] %v782_v9  ;;  %v1073_v0 = vmul.f32 %v1815_v8, %v1815_v8 }
 0x18e   :  { %v951_v31 = vadd.f32 %v950_v18, %v1749_v23  ;;  %v1227_v7 = vadd.f32 %v1226_v46, %v1064_v57  ;;  %v2257_v23 = vpop.f32.mrf.mxu2  ;;  %v1074_v22 = vmul.f32 %v1817_v13, %v1817_v13  ;;  %v1075_v57 = vmul.f32 %v1834_v24, %v1834_v24 }
 0x18f   :  { %v883_v63 = vadd.f32 %v882_v29, %v1766_v32  ;;  %v1159_v50 = vadd.f32 %v1158_v15, %v1065_v53  ;;  %v783_v11 = vpack.c.bf16 %v2264_v55, %v2257_v23  ;;  %v1077_v15 = vmul.f32 %v1849_v39, %v1849_v39 }
 0x190   :  { %v952_v35 = vadd.f32 %v951_v31, %v1768_v36  ;;  %v1228_v20 = vadd.f32 %v1227_v7, %v1066_v6  ;;  %v1071_v36 = vmul.f32 %v1800_v58, %v1800_v58  ;;  %v1078_v7 = vmul.f32 %v1851_v43, %v1851_v43 }
 0x191   :  { %v884_v41 = vadd.f32 %v883_v63, %v1781_v45  ;;  %v1160_v34 = vadd.f32 %v1159_v50, %v1067_v27  ;;  %847 = vst [vmem:[%s2468_s2 + $0x1e8] sm:$0xff] %v783_v11 }
 0x192   :  { %v953_v32 = vadd.f32 %v952_v35, %v1783_v49  ;;  %v1229_v47 = vadd.f32 %v1228_v20, %v1068_v10 }
 0x193   :  { %v885_v60 = vadd.f32 %v884_v41, %v1800_v58  ;;  %v1161_v45 = vadd.f32 %v1160_v34, %v1069_v19  ;;  %v2300_v63 = vpop.f32.mrf.mxu3  ;;  %v1081_v19 = vmul.f32 %v1883_v5, %v1883_v5  ;;  %v1082_v34 = vmul.f32 %v1885_v12, %v1885_v12 }
 0x194   :  { %v954_v49 = vadd.f32 %v953_v32, %v1802_v62  ;;  %v1230_v40 = vadd.f32 %v1229_v47, %v1070_v3 }
 0x195   :  { %v886_v14 = vadd.f32 %v885_v60, %v1815_v8  ;;  %v1162_v58 = vadd.f32 %v1161_v45, %v1071_v36  ;;  %v1076_v8 = vmul.f32 %v1836_v28, %v1836_v28 }
 0x196   :  { %v955_v62 = vadd.f32 %v954_v49, %v1817_v13  ;;  %v1231_v33 = vadd.f32 %v1230_v40, %v1072_v51  ;;  %v2295_v13 = vpop.f32.mrf.mxu2  ;;  %v1086_v51 = vmul.f32 %v1919_v48, %v1919_v48 }
 0x197   :  { %v887_v18 = vadd.f32 %v886_v14, %v1834_v24  ;;  %v1163_v46 = vadd.f32 %v1162_v58, %v1073_v0  ;;  %v784_v40 = vpack.c.bf16 %v2300_v63, %v2295_v13 }
 0x198   :  { %v956_v53 = vadd.f32 %v955_v62, %v1836_v28  ;;  %v1232_v29 = vadd.f32 %v1231_v33, %v1074_v22  ;;  %v1079_v28 = vmul.f32 %v1868_v54, %v1868_v54  ;;  %v1088_v22 = vmul.f32 %v1938_v2, %v1938_v2 }
 0x199   :  { %v888_v6 = vadd.f32 %v887_v18, %v1849_v39  ;;  %v1164_v31 = vadd.f32 %v1163_v46, %v1075_v57  ;;  %v1080_v39 = vmul.f32 %v1870_v59, %v1870_v59  ;;  %848 = vst [vmem:[%s2468_s2 + $0x1f0] sm:$0xff] %v784_v40  ;;  %v1089_v33 = vmul.f32 %v1948_v16, %v1948_v16 }
 0x19a   :  { %v957_v24 = vadd.f32 %v956_v53, %v1851_v43  ;;  %v1233_v27 = vadd.f32 %v1232_v29, %v1076_v8  ;;  %v1091_v8 = vmul.f32 %v1965_v37, %v1965_v37 }
 0x19b   :  { %v889_v50 = vadd.f32 %v888_v6, %v1868_v54  ;;  %v1165_v10 = vadd.f32 %v1164_v31, %v1077_v15  ;;  %v1083_v54 = vmul.f32 %v1902_v25, %v1902_v25  ;;  %v2330_v0 = vpop.f32.mrf.mxu3  ;;  %v1093_v31 = vmul.f32 %v1977_v56, %v1977_v56 }
 0x19c   :  { %v958_v35 = vadd.f32 %v957_v24, %v1870_v59  ;;  %v1234_v20 = vadd.f32 %v1233_v27, %v1078_v7  ;;  %v1084_v59 = vmul.f32 %v1904_v30, %v1904_v30 }
 0x19d   :  { %v890_v43 = vadd.f32 %v889_v50, %v1883_v5  ;;  %v1166_v41 = vadd.f32 %v1165_v10, %v1079_v28  ;;  %v1085_v5 = vmul.f32 %v1917_v42, %v1917_v42 }
 0x19e   :  { %v959_v3 = vadd.f32 %v958_v35, %v1885_v12  ;;  %v1235_v32 = vadd.f32 %v1234_v20, %v1080_v39  ;;  %v2323_v12 = vpop.f32.mrf.mxu2 }
 0x19f   :  { %v891_v47 = vadd.f32 %v890_v43, %v1902_v25  ;;  %v1167_v9 = vadd.f32 %v1166_v41, %v1081_v19  ;;  %v785_v58 = vpack.c.bf16 %v2330_v0, %v2323_v12 }
 0x1a0   :  { %v960_v36 = vadd.f32 %v959_v3, %v1904_v30  ;;  %v1236_v60 = vadd.f32 %v1235_v32, %v1082_v34  ;;  %v1087_v30 = vmul.f32 %v1936_v61, %v1936_v61  ;;  %v2538_v32 = vld [vmem:[#allocation6_spill] sm:$0xff] }
 0x1a1   :  { %v892_v45 = vadd.f32 %v891_v47, %v1917_v42  ;;  %v1168_v11 = vadd.f32 %v1167_v9, %v1083_v54  ;;  %849 = vst [vmem:[%s2468_s2 + $0x1f8] sm:$0xff] %v785_v58  ;;  %v1098_v54 = vmul.f32 %v2538_v32, %v2538_v32 }
 0x1a2   :  { %v961_v25 = vadd.f32 %v960_v36, %v1919_v48  ;;  %v1237_v49 = vadd.f32 %v1236_v60, %v1084_v59  ;;  %v2539_v59 = vld [vmem:[#allocation7_spill] sm:$0xff] }
 0x1a3   :  { %v1169_v14 = vadd.f32 %v1168_v11, %v1085_v5  ;;  %v893_v42 = vadd.f32 %v892_v45, %v1936_v61  ;;  %v1090_v61 = vmul.f32 %v1950_v21, %v1950_v21  ;;  %v1099_v36 = vmul.f32 %v2539_v59, %v2539_v59  ;;  %v2540_v45 = vld [vmem:[#allocation8_spill] sm:$0xff] }
 0x1a4   :  { %v1238_v62 = vadd.f32 %v1237_v49, %v1086_v51  ;;  %v962_v48 = vadd.f32 %v961_v25, %v1938_v2  ;;  %v1100_v11 = vmul.f32 %v2540_v45, %v2540_v45  ;;  %v2541_v49 = vld [vmem:[#allocation9_spill] sm:$0xff] }
 0x1a5   :  { %v894_v57 = vadd.f32 %v893_v42, %v1948_v16  ;;  %v1170_v18 = vadd.f32 %v1169_v14, %v1087_v30  ;;  %v1092_v16 = vmul.f32 %v1967_v44, %v1967_v44  ;;  %v1101_v40 = vmul.f32 %v2541_v49, %v2541_v49  ;;  %v2542_v42 = vld [vmem:[#allocation10_spill] sm:$0xff] }
 0x1a6   :  { %v963_v46 = vadd.f32 %v962_v48, %v1950_v21  ;;  %v1239_v2 = vadd.f32 %v1238_v62, %v1088_v22  ;;  %v2534_v21 = vld [vmem:[#allocation2_spill] sm:$0xff]  ;;  %v1102_v58 = vmul.f32 %v2542_v42, %v2542_v42  ;;  %v2543_v48 = vld [vmem:[#allocation11_spill] sm:$0xff] }
 0x1a7   :  { %v895_v53 = vadd.f32 %v894_v57, %v1965_v37  ;;  %v1171_v29 = vadd.f32 %v1170_v18, %v1089_v33  ;;  %v1094_v27 = vmul.f32 %v2534_v21, %v2534_v21  ;;  %v2535_v37 = vld [vmem:[#allocation3_spill] sm:$0xff]  ;;  %v1103_v33 = vmul.f32 %v2543_v48, %v2543_v48 }
 0x1a8   :  { %v964_v15 = vadd.f32 %v963_v46, %v1967_v44  ;;  %v1240_v6 = vadd.f32 %v1239_v2, %v1090_v61  ;;  %v1095_v10 = vmul.f32 %v2535_v37, %v2535_v37  ;;  %v2536_v44 = vld [vmem:[#allocation4_spill] sm:$0xff] }
 0x1a9   :  { %v896_v7 = vadd.f32 %v895_v53, %v1977_v56  ;;  %v1172_v24 = vadd.f32 %v1171_v29, %v1091_v8  ;;  %v1096_v20 = vmul.f32 %v2536_v44, %v2536_v44  ;;  %v2537_v56 = vld [vmem:[#allocation5_spill] sm:$0xff]  ;;  %v2544_v61 = vld [vmem:[#allocation12_spill] sm:$0xff] }
 0x1aa   :  { %v965_v28 = vadd.f32 %v964_v15, %v2534_v21  ;;  %v1241_v50 = vadd.f32 %v1240_v6, %v1092_v16  ;;  %v1097_v41 = vmul.f32 %v2537_v56, %v2537_v56  ;;  %v1104_v46 = vmul.f32 %v2544_v61, %v2544_v61  ;;  %v2545_v53 = vld [vmem:[#allocation13_spill] sm:$0xff]  ;;  %v2546_v6 = vld [vmem:[#allocation14_spill] sm:$0xff]  ;;  %v2547_v21 = vld [vmem:[#allocation15_spill] sm:$0xff] }
 0x1ab   :  { %v897_v39 = vadd.f32 %v896_v7, %v2535_v37  ;;  %v1173_v35 = vadd.f32 %v1172_v24, %v1093_v31  ;;  %v1105_v29 = vmul.f32 %v2545_v53, %v2545_v53  ;;  %v1106_v31 = vmul.f32 %v2546_v6, %v2546_v6  ;;  %v2548_v37 = vld [vmem:[#allocation16_spill] sm:$0xff] }
 0x1ac   :  { %v966_v19 = vadd.f32 %v965_v28, %v2536_v44  ;;  %v1242_v43 = vadd.f32 %v1241_v50, %v1094_v27  ;;  %v1107_v27 = vmul.f32 %v2547_v21, %v2547_v21  ;;  %v2549_v44 = vld [vmem:[#allocation17_spill] sm:$0xff] }
 0x1ad   :  { %v898_v34 = vadd.f32 %v897_v39, %v2537_v56  ;;  %v1174_v3 = vadd.f32 %v1173_v35, %v1095_v10  ;;  %v1108_v10 = vmul.f32 %v2548_v37, %v2548_v37  ;;  %v2550_v56 = vld [vmem:[#allocation18_spill] sm:$0xff] }
 0x1ae   :  { %v967_v47 = vadd.f32 %v966_v19, %v2538_v32  ;;  %v1243_v9 = vadd.f32 %v1242_v43, %v1096_v20  ;;  %v1109_v20 = vmul.f32 %v2549_v44, %v2549_v44  ;;  %v2551_v32 = vld [vmem:[#allocation19_spill] sm:$0xff] }
 0x1af   :  { %v899_v60 = vadd.f32 %v898_v34, %v2539_v59  ;;  %v1175_v5 = vadd.f32 %v1174_v3, %v1097_v41  ;;  %v1110_v41 = vmul.f32 %v2550_v56, %v2550_v56  ;;  %v2552_v59 = vld [vmem:[#allocation20_spill] sm:$0xff] }
 0x1b0   :  { %v968_v51 = vadd.f32 %v967_v47, %v2540_v45  ;;  %v1244_v25 = vadd.f32 %v1243_v9, %v1098_v54  ;;  %v1111_v47 = vmul.f32 %v2551_v32, %v2551_v32 }
 0x1b1   :  { %v900_v30 = vadd.f32 %v899_v60, %v2541_v49  ;;  %v1176_v14 = vadd.f32 %v1175_v5, %v1099_v36  ;;  %v1112_v60 = vmul.f32 %v2552_v59, %v2552_v59 }
 0x1b2   :  { %v969_v22 = vadd.f32 %v968_v51, %v2542_v42  ;;  %v1245_v62 = vadd.f32 %v1244_v25, %v1100_v11  ;;  %v2553_v11 = vld [vmem:[#allocation21_spill] sm:$0xff] }
 0x1b3   :  { %v901_v57 = vadd.f32 %v900_v30, %v2543_v48  ;;  %v1177_v18 = vadd.f32 %v1176_v14, %v1101_v40  ;;  %v1113_v25 = vmul.f32 %v2553_v11, %v2553_v11  ;;  %v2554_v40 = vld [vmem:[#allocation22_spill] sm:$0xff] }
 0x1b4   :  { %v970_v2 = vadd.f32 %v969_v22, %v2544_v61  ;;  %v1246_v8 = vadd.f32 %v1245_v62, %v1102_v58  ;;  %v1114_v14 = vmul.f32 %v2554_v40, %v2554_v40  ;;  %v1115_v22 = vmul.f32 %v2184_v52, %v2184_v52 }
 0x1b5   :  { %v902_v16 = vadd.f32 %v901_v57, %v2545_v53  ;;  %v1178_v15 = vadd.f32 %v1177_v18, %v1103_v33  ;;  %v1116_v33 = vmul.f32 %v2187_v38, %v2187_v38  ;;  %v1117_v61 = vmul.f32 %v2207_v4, %v2207_v4 }
 0x1b6   :  { %v971_v7 = vadd.f32 %v970_v2, %v2546_v6  ;;  %v1247_v24 = vadd.f32 %v1246_v8, %v1104_v46  ;;  %v1118_v8 = vmul.f32 %v2214_v17, %v2214_v17 }
 0x1b7   :  { %v903_v28 = vadd.f32 %v902_v16, %v2547_v21  ;;  %v1179_v50 = vadd.f32 %v1178_v15, %v1105_v29  ;;  %v1119_v29 = vmul.f32 %v2229_v1, %v2229_v1  ;;  %v1120_v15 = vmul.f32 %v2231_v26, %v2231_v26 }
 0x1b8   :  { %v972_v39 = vadd.f32 %v971_v7, %v2548_v37  ;;  %v1248_v35 = vadd.f32 %v1247_v24, %v1106_v31  ;;  %v1121_v31 = vmul.f32 %v2257_v23, %v2257_v23  ;;  %v1122_v24 = vmul.f32 %v2264_v55, %v2264_v55 }
 0x1b9   :  { %v904_v19 = vadd.f32 %v903_v28, %v2549_v44  ;;  %v1180_v43 = vadd.f32 %v1179_v50, %v1107_v27  ;;  %v1123_v27 = vmul.f32 %v2295_v13, %v2295_v13  ;;  %v1124_v50 = vmul.f32 %v2300_v63, %v2300_v63 }
 0x1ba   :  { %v973_v34 = vadd.f32 %v972_v39, %v2550_v56  ;;  %v1249_v3 = vadd.f32 %v1248_v35, %v1108_v10  ;;  %v1125_v10 = vmul.f32 %v2323_v12, %v2323_v12  ;;  %v1126_v35 = vmul.f32 %v2330_v0, %v2330_v0 }
 0x1bb   :  { %v905_v54 = vadd.f32 %v904_v19, %v2551_v32  ;;  %v1181_v9 = vadd.f32 %v1180_v43, %v1109_v20 }
 0x1bc   :  { %v974_v36 = vadd.f32 %v973_v34, %v2552_v59  ;;  %v1250_v5 = vadd.f32 %v1249_v3, %v1110_v41 }
 0x1bd   :  { %v1182_v45 = vadd.f32 %v1181_v9, %v1111_v47  ;;  %v906_v51 = vadd.f32 %v905_v54, %v2553_v11 }
 0x1be   :  { %v1251_v49 = vadd.f32 %v1250_v5, %v1112_v60  ;;  %v975_v30 = vadd.f32 %v974_v36, %v2554_v40 }
 0x1bf   :  { %v1183_v42 = vadd.f32 %v1182_v45, %v1113_v25  ;;  %v907_v58 = vadd.f32 %v906_v51, %v2184_v52 }
 0x1c0   :  { %v1252_v62 = vadd.f32 %v1251_v49, %v1114_v14  ;;  %v976_v48 = vadd.f32 %v975_v30, %v2187_v38 }
 0x1c1   :  { %v1184_v57 = vadd.f32 %v1183_v42, %v1115_v22  ;;  %v908_v18 = vadd.f32 %v907_v58, %v2207_v4 }
 0x1c2   :  { %v1253_v46 = vadd.f32 %v1252_v62, %v1116_v33  ;;  %v977_v2 = vadd.f32 %v976_v48, %v2214_v17 }
 0x1c3   :  { %v1185_v53 = vadd.f32 %v1184_v57, %v1117_v61  ;;  %v909_v52 = vadd.f32 %v908_v18, %v2229_v1 }
 0x1c4   :  { %v1254_v16 = vadd.f32 %v1253_v46, %v1118_v8  ;;  %v978_v38 = vadd.f32 %v977_v2, %v2231_v26 }
 0x1c5   :  { %v1186_v6 = vadd.f32 %v1185_v53, %v1119_v29  ;;  %v910_v4 = vadd.f32 %v909_v52, %v2257_v23 }
 0x1c6   :  { %v1255_v7 = vadd.f32 %v1254_v16, %v1120_v15  ;;  %v979_v17 = vadd.f32 %v978_v38, %v2264_v55 }
 0x1c7   :  { %v1187_v21 = vadd.f32 %v1186_v6, %v1121_v31  ;;  %v911_v1 = vadd.f32 %v910_v4, %v2295_v13 }
 0x1c8   :  { %v1256_v28 = vadd.f32 %v1255_v7, %v1122_v24  ;;  %v980_v26 = vadd.f32 %v979_v17, %v2300_v63 }
 0x1c9   :  { %v1188_v37 = vadd.f32 %v1187_v21, %v1123_v27  ;;  %v912_v23 = vadd.f32 %v911_v1, %v2323_v12 }
 0x1ca   :  { %v1257_v39 = vadd.f32 %v1256_v28, %v1124_v50  ;;  %v981_v55 = vadd.f32 %v980_v26, %v2330_v0  ;;  %v994_v0 = vlaneseq }
 0x1cb   :  { %v913_v44 = vrot.slane %v912_v23, 4  ;;  %v1189_v13 = vadd.f32 %v1188_v37, %v1125_v10 }
 0x1cc   :  { %v982_v20 = vrot.slane %v981_v55, 4  ;;  %v1258_v19 = vadd.f32 %v1257_v39, %v1126_v35  ;;  %vm996_vm2 = vcmp.lt.s32.totalorder %v994_v0, 256 }
 0x1cd   :  { %v914_v43 = vadd.f32 %v913_v44, %v912_v23  ;;  %v1190_v56 = vrot.slane %v1189_v13, 4 }
 0x1ce   :  { %v983_v41 = vadd.f32 %v982_v20, %v981_v55  ;;  %v1259_v63 = vrot.slane %v1258_v19, 4 }
 0x1cf   :  { %v915_v34 = vrot.slane %v914_v43, 2  ;;  %v1191_v3 = vadd.f32 %v1190_v56, %v1189_v13 }
 0x1d0   :  { %v984_v32 = vrot.slane %v983_v41, 2  ;;  %v1260_v54 = vadd.f32 %v1259_v63, %v1258_v19 }
 0x1d1   :  { %v916_v47 = vadd.f32 %v915_v34, %v914_v43  ;;  %v1192_v12 = vrot.slane %v1191_v3, 2 }
 0x1d2   :  { %v985_v9 = vadd.f32 %v984_v32, %v983_v41  ;;  %v1261_v59 = vrot.slane %v1260_v54, 2 }
 0x1d3   :  { %v1193_v36 = vadd.f32 %v1192_v12, %v1191_v3  ;;  %v917_v60 = vrot.slane %v916_v47, 1 }
 0x1d4   :  { %v986_v5 = vrot.slane %v985_v9, 1  ;;  %v1262_v45 = vadd.f32 %v1261_v59, %v1260_v54 }
 0x1d5   :  { %v1194_v11 = vrot.slane %v1193_v36, 1  ;;  %v918_v49 = vadd.f32 %v917_v60, %v916_v47 }
 0x1d6   :  { %v987_v51 = vadd.f32 %v986_v5, %v985_v9  ;;  %v1263_v25 = vrot.slane %v1262_v45, 1 }
 0x1d7   :  { %v1195_v14 = vadd.f32 %v1194_v11, %v1193_v36 }
 0x1d8   :  { %v990_v40 = vrot.slane %v987_v51, 7  ;;  %v1264_v30 = vadd.f32 %v1263_v25, %v1262_v45 }
 0x1da   :  { %v992_v42 = vsel %vm991_vm1, %v918_v49, %v990_v40  ;;  %v1267_v58 = vrot.slane %v1264_v30, 7 }
 0x1db   :  { %998 = vst.msk [vmem:[%s2469_s3] sm:$0x3] %vm996_vm2, %v992_v42 }
 0x1dc   :  { %v1268_v22 = vsel %vm991_vm1, %v1195_v14, %v1267_v58 }
 0x1dd   :  { %1270 = vst.msk [vmem:[%s2470_s4] sm:$0x3] %vm996_vm2, %v1268_v22 }

// kernel: _forward.8
= control target key start
LH: loop header
LB: loop body
LE: loop exit
PB: predicated region body
PF: predicated region fallthrough
CT: control target
= control target key end

     0   :  { %s6705_s15 = smov 0   ;;  %s8070_s0 = inlined_call_operand.vmem [shape: bf16[2,18,18,128], index: 0, kind: input, shape index: {}]   ;;  %s8071_s1 = inlined_call_operand.vmem [shape: bf16[9,128,128], index: 1, kind: input, shape index: {}]   ;;  %s8072_s2 = inlined_call_operand.vmem [shape: bf16[2,256,128], index: 2, kind: output, shape index: {0}]   ;;  %s8073_s3 = inlined_call_operand.vmem [shape: f32[2,1,128], index: 3, kind: output, shape index: {1}]   ;;  %s8074_s4 = inlined_call_operand.vmem [shape: f32[2,1,128], index: 4, kind: output, shape index: {2}]  }
   0x1 LB: > { %s5501_s16 = sadd.s32 4294967295, %s6678_s15   ;;  %p5505_p0 = scmp.ge.s32.totalorder %s6678_s15, 1  ;;  %s6678_s15 = sphi %s6705_s15, %s15_s15  }
   0x2   : > { %p167_p1 = scmp.lt.s32.totalorder %s6678_s15, 3 }
   0x4   : > { %p168_p2 = pnand %p5505_p0, %p167_p1 }
   0x6   : > { %171 = sbr.rel (%p168_p2) target bundleno = 766 (0x2fe), region = 28 }
   0xb   : > { %v6447_v0 = vld [vmem:[%s8071_s1 + $0x38] sm:$0xff]  ;;  %v6446_v1 = vld [vmem:[%s8071_s1 + $0x30] sm:$0xff]  ;;  %v6445_v2 = vld [vmem:[%s8071_s1 + $0x28] sm:$0xff]  ;;  %p199_p3 = scmp.lt.s32.totalorder %s5501_s16, 1  ;;  %vm672_vm0 = vsmask.f32 3328 }
   0xc   : > { %6639 = vmatpush.bf16.msra.mxu1 %v6447_v0  ;;  %6640 = vmatpush.bf16.msra.mxu2 %v6447_v0  ;;  %v6444_v3 = vld [vmem:[%s8071_s1 + $0x20] sm:$0xff]  ;;  %v6443_v4 = vld [vmem:[%s8071_s1 + $0x18] sm:$0xff]  ;;  %v6442_v5 = vld [vmem:[%s8071_s1 + $0x10] sm:$0xff]  ;;  %vm673_vm1 = vsmask.f32 7440  ;;  %vm1469_vm2 = vcmask 1042432  }
   0xd   : > { %6641 = vmatpush.bf16.msra.mxu3 %v6447_v0  ;;  %471 = vmatpush.bf16.msra.mxu0 %v6447_v0  ;;  %s8104_s16 = smov (!%p199_p3, %s5501_s16), 1  ;;  %v6441_v6 = vld [vmem:[%s8071_s1 + $0x8] sm:$0xff]  ;;  %v6440_v7 = vld [vmem:[%s8071_s1] sm:$0xff]  ;;  %v6463_v8 = vld [vmem:[%s8071_s1 + $0xb8] sm:$0xff]  ;;  %vm1470_vm3 = vcmask 1046532  }
   0xe   : > { %s6663_s5 = smul.u32 216, %s8104_s16  ;;  %v6487_v9 = vld [vmem:[%s8071_s1 + $0xf8] sm:$0xff]  ;;  %v6462_v16 = vld [vmem:[%s8071_s1 + $0xb0] sm:$0xff]  ;;  %v6461_v20 = vld [vmem:[%s8071_s1 + $0xa8] sm:$0xff]  ;;  %s6423_s26 = sshll.u32 %s8104_s16, 7 }
   0xf   : > { %v6455_v14 = vld [vmem:[%s8071_s1 + $0x78] sm:$0xff]  ;;  %v6486_v17 = vld [vmem:[%s8071_s1 + $0xf0] sm:$0xff]  ;;  %v6485_v21 = vld [vmem:[%s8071_s1 + $0xe8] sm:$0xff]  ;;  %s7868_s29 = scalar_lea.vmem %s8072_s2, %s6423_s26  ;;  %s214_s8 = scalar_lea.vmem %s8074_s4, %s8104_s16 }
  0x10   : > { %6642 = vmatpush.bf16.msra.mxu1 %v6446_v1  ;;  %6643 = vmatpush.bf16.msra.mxu2 %v6446_v1  ;;  %s6747_s10 = scalar_lea.vmem %s8070_s0, %s6663_s5  ;;  %v6495_v15 = vld [vmem:[%s8071_s1 + $0x138] sm:$0xff]  ;;  %v6454_v18 = vld [vmem:[%s8071_s1 + $0x70] sm:$0xff]  ;;  %v6453_v22 = vld [vmem:[%s8071_s1 + $0x68] sm:$0xff]  ;;  %s211_s5 = scalar_lea.vmem %s8073_s3, %s8104_s16 }
  0x11   : > { %6644 = vmatpush.bf16.msra.mxu3 %v6446_v1  ;;  %472 = vmatpush.bf16.msra.mxu0 %v6446_v1  ;;  %v6428_v10 = vld [vmem:[%s6747_s10 + $0x30] sm:$0xff]  ;;  %v6432_v11 = vld [vmem:[%s6747_s10 + $0x60] sm:$0xff]  ;;  %v6493_v23 = vld [vmem:[%s8071_s1 + $0x128] sm:$0xff] }
  0x12   : > { %v6436_v12 = vld [vmem:[%s6747_s10 + $0x90] sm:$0xff]  ;;  %v6424_v13 = vld [vmem:[%s6747_s10] sm:$0xff]  ;;  %v6459_v28 = vld [vmem:[%s8071_s1 + $0x98] sm:$0xff] }
  0x13   : > { %v6494_v19 = vld [vmem:[%s8071_s1 + $0x130] sm:$0xff]  ;;  %v6460_v24 = vld [vmem:[%s8071_s1 + $0xa0] sm:$0xff]  ;;  %v6483_v29 = vld [vmem:[%s8071_s1 + $0xd8] sm:$0xff] }
  0x14   : > { %6645 = vmatpush.bf16.msra.mxu1 %v6445_v2  ;;  %6646 = vmatpush.bf16.msra.mxu2 %v6445_v2  ;;  %v6484_v25 = vld [vmem:[%s8071_s1 + $0xe0] sm:$0xff]  ;;  %v6433_v31 = vld [vmem:[%s6747_s10 + $0x6c] sm:$0xff]  ;;  %v6451_v34 = vld [vmem:[%s8071_s1 + $0x58] sm:$0xff] }
  0x15   : > { %6647 = vmatpush.bf16.msra.mxu3 %v6445_v2  ;;  %473 = vmatpush.bf16.msra.mxu0 %v6445_v2  ;;  %v6452_v26 = vld [vmem:[%s8071_s1 + $0x60] sm:$0xff]  ;;  %v6425_v33 = vld [vmem:[%s6747_s10 + $0xc] sm:$0xff]  ;;  %v6491_v35 = vld [vmem:[%s8071_s1 + $0x118] sm:$0xff] }
  0x16   : > { %v6492_v27 = vld [vmem:[%s8071_s1 + $0x120] sm:$0xff]  ;;  %v6458_v36 = vld [vmem:[%s8071_s1 + $0x90] sm:$0xff]  ;;  %v6457_v40 = vld [vmem:[%s8071_s1 + $0x88] sm:$0xff] }
  0x17   : > { %v6429_v30 = vld [vmem:[%s6747_s10 + $0x3c] sm:$0xff]  ;;  %v6482_v37 = vld [vmem:[%s8071_s1 + $0xd0] sm:$0xff]  ;;  %v6481_v41 = vld [vmem:[%s8071_s1 + $0xc8] sm:$0xff] }
  0x18   : > { %6648 = vmatpush.bf16.msra.mxu1 %v6444_v3  ;;  %6649 = vmatpush.bf16.msra.mxu2 %v6444_v3  ;;  %v6437_v32 = vld [vmem:[%s6747_s10 + $0x9c] sm:$0xff]  ;;  %v6450_v38 = vld [vmem:[%s8071_s1 + $0x50] sm:$0xff]  ;;  %v6449_v42 = vld [vmem:[%s8071_s1 + $0x48] sm:$0xff] }
  0x19   : > { %6650 = vmatpush.bf16.msra.mxu3 %v6444_v3  ;;  %474 = vmatpush.bf16.msra.mxu0 %v6444_v3  ;;  %v6490_v39 = vld [vmem:[%s8071_s1 + $0x110] sm:$0xff]  ;;  %v6489_v43 = vld [vmem:[%s8071_s1 + $0x108] sm:$0xff]  ;;  %v6456_v44 = vld [vmem:[%s8071_s1 + $0x80] sm:$0xff] }
  0x1a   : > { %v6480_v45 = vld [vmem:[%s8071_s1 + $0xc0] sm:$0xff]  ;;  %v6430_v48 = vld [vmem:[%s6747_s10 + $0x48] sm:$0xff]  ;;  %v6434_v49 = vld [vmem:[%s6747_s10 + $0x78] sm:$0xff] }
  0x1b   : > { %v6448_v46 = vld [vmem:[%s8071_s1 + $0x40] sm:$0xff]  ;;  %v6438_v50 = vld [vmem:[%s6747_s10 + $0xa8] sm:$0xff]  ;;  %v6426_v51 = vld [vmem:[%s6747_s10 + $0x18] sm:$0xff] }
  0x1c   : > { %6651 = vmatpush.bf16.msra.mxu1 %v6443_v4  ;;  %6652 = vmatpush.bf16.msra.mxu2 %v6443_v4  ;;  %v6488_v47 = vld [vmem:[%s8071_s1 + $0x100] sm:$0xff]  ;;  %v5861_v54 = vld [vmem:[%s6747_s10 + $0xc] sm:$0xf]  ;;  %v5862_v55 = vld [vmem:[%s6747_s10 + $0x10] sm:$0xf] }
  0x1d   : > { %6653 = vmatpush.bf16.msra.mxu3 %v6443_v4  ;;  %475 = vmatpush.bf16.msra.mxu0 %v6443_v4  ;;  %v624_v52 = vld [vmem:[%s6747_s10] sm:$0xf]  ;;  %v625_v53 = vld [vmem:[%s6747_s10 + $0x4] sm:$0xf]  ;;  %v6527_v56 = vld [vmem:[%s8071_s1 + $0x1b8] sm:$0xff]  ;;  %v2326_v0 = vshrl.u32 %v5861_v54, 16 }
  0x1e   : > { %v6535_v57 = vld [vmem:[%s8071_s1 + $0x1f8] sm:$0xff]  ;;  %v676_v60 = vshrl.u32 %v624_v52, 16  ;;  %v679_v61 = vshll.u32 %v624_v52, 16  ;;  %v685_v62 = vshll.u32 %v625_v53, 16  ;;  %v689_v63 = vshrl.u32 %v625_v53, 16  ;;  %vm6891_vm4 = vmor %vm672_vm0, %vm673_vm1 }
  0x1f   : > { %v6503_v58 = vld [vmem:[%s8071_s1 + $0x178] sm:$0xff]  ;;  %v2329_v1 = vshll.u32 %v5861_v54, 16  ;;  %v2335_v2 = vshll.u32 %v5862_v55, 16  ;;  %v2339_v3 = vshrl.u32 %v5862_v55, 16  ;;  %v626_v4 = vld [vmem:[%s6747_s10 + $0x8] sm:$0x1]  ;;  %vm6895_vm5 = vmor %vm1469_vm2, %vm1470_vm3 }
  0x20   : > { %6654 = vmatpush.bf16.msra.mxu1 %v6442_v5  ;;  %6655 = vmatpush.bf16.msra.mxu2 %v6442_v5  ;;  %v6543_v59 = vld [vmem:[%s8071_s1 + $0x238] sm:$0xff]  ;;  %v629_v53 = vld [vmem:[%s6747_s10 + $0x14] sm:$0x1] }
  0x21   : > { %6656 = vmatpush.bf16.msra.mxu3 %v6442_v5  ;;  %476 = vmatpush.bf16.msra.mxu0 %v6442_v5  ;;  %v678_v5 = vrot.slane %v676_v60, 4 }
  0x24   : > { %6657 = vmatpush.bf16.msra.mxu1 %v6441_v6  ;;  %6658 = vmatpush.bf16.msra.mxu2 %v6441_v6 }
  0x25   : > { %6659 = vmatpush.bf16.msra.mxu3 %v6441_v6  ;;  %477 = vmatpush.bf16.msra.mxu0 %v6441_v6  ;;  %v681_v6 = vrot.slane %v679_v61, 5 }
  0x28   : > { %6660 = vmatpush.bf16.msra.mxu1 %v6440_v7  ;;  %6661 = vmatpush.bf16.msra.mxu2 %v6440_v7 }
  0x29   : > { %6662 = vmatpush.bf16.msra.mxu3 %v6440_v7  ;;  %478 = vmatpush.bf16.msra.mxu0 %v6440_v7  ;;  %v6874_v7 = vrot.slane %v685_v62, 5 }
  0x2b   : > { %499 = vmatmul.bf16.vlgmr.msra.gmra.mxu1 %v6428_v10  ;;  %519 = vmatmul.bf16.vlgmr.msra.gmra.mxu2 %v6432_v11  ;;  %v2328_v10 = vrot.slane %v2326_v0, 4  ;;  %v2331_v11 = vrot.slane %v2329_v1, 5 }
  0x2c   : > { %1745 = vmatpush.bf16.msrb.mxu2 %v6463_v8  ;;  %539 = vmatmul.bf16.vlgmr.msra.gmra.mxu3 %v6436_v12  ;;  %v691_v8 = vrot.slane %v689_v63, 4  ;;  %v6877_v12 = vrot.slane %v2335_v2, 5 }
  0x2d   : > { %2124 = vmatpush.bf16.msrb.mxu3 %v6487_v9  ;;  %479 = vmatmul.bf16.vlgmr.msra.gmra.mxu0 %v6424_v13  ;;  %v1374_v9 = vld [vmem:[%s6747_s10 + $0x4] sm:$0xf]  ;;  %v2341_v13 = vrot.slane %v2339_v3, 4 }
  0x2e   : > { %1220 = vmatpush.bf16.msrb.mxu1 %v6455_v14  ;;  %2870 = vmatpush.bf16.msrb.mxu0 %v6495_v15  ;;  %v5863_v14 = vld [vmem:[%s6747_s10 + $0x14] sm:$0x1]  ;;  %v695_v15 = vshll.u32 %v626_v4, 16 }
  0x30   : > { %1746 = vmatpush.bf16.msrb.mxu2 %v6462_v16  ;;  %v6431_v16 = vld [vmem:[%s6747_s10 + $0x54] sm:$0xff] }
  0x31   : > { %2125 = vmatpush.bf16.msrb.mxu3 %v6486_v17  ;;  %v682_v17 = vor.u32 %v681_v6, %v678_v5  ;;  %v719_v5 = vshll.u32 %v629_v53, 16 }
  0x32   : > { %1221 = vmatpush.bf16.msrb.mxu1 %v6454_v18  ;;  %2871 = vmatpush.bf16.msrb.mxu0 %v6494_v19  ;;  %v692_v18 = vor.u32 %v691_v8, %v6874_v7  ;;  %v1474_v19 = vrot.slane %v1374_v9, 5  ;;  %v1376_v9 = vld [vmem:[%s6747_s10 + $0xc] sm:$0xe] }
  0x34   : > { %1747 = vmatpush.bf16.msrb.mxu2 %v6461_v20  ;;  %v6435_v20 = vld [vmem:[%s6747_s10 + $0x84] sm:$0xff] }
  0x35   : > { %2126 = vmatpush.bf16.msrb.mxu3 %v6485_v21  ;;  %v1373_v21 = vld [vmem:[%s6747_s10] sm:$0xe] }
  0x36   : > { %1222 = vmatpush.bf16.msrb.mxu1 %v6453_v22  ;;  %2872 = vmatpush.bf16.msrb.mxu0 %v6493_v23  ;;  %v2332_v22 = vor.u32 %v2331_v11, %v2328_v10  ;;  %v2342_v23 = vor.u32 %v2341_v13, %v6877_v12 }
  0x38   : > { %1748 = vmatpush.bf16.msrb.mxu2 %v6460_v24  ;;  %v2345_v24 = vshll.u32 %v5863_v14, 16  ;;  %v1378_v14 = vld [vmem:[%s6747_s10 + $0x14] sm:$0x1] }
  0x39   : > { %2127 = vmatpush.bf16.msrb.mxu3 %v6484_v25  ;;  %v6439_v25 = vld [vmem:[%s6747_s10 + $0xb4] sm:$0xff] }
  0x3a   : > { %1223 = vmatpush.bf16.msrb.mxu1 %v6452_v26  ;;  %2873 = vmatpush.bf16.msrb.mxu0 %v6492_v27  ;;  %v6427_v26 = vld [vmem:[%s6747_s10 + $0x24] sm:$0xff] }
  0x3b   : > { %504 = vmatmul.bf16.gmra.mxu1 %v6429_v30  ;;  %524 = vmatmul.bf16.gmra.mxu2 %v6433_v31  ;;  %v1375_v27 = vld [vmem:[%s6747_s10 + $0x8] sm:$0x1]  ;;  %v628_v30 = vld [vmem:[%s6747_s10 + $0x10] sm:$0xf] }
  0x3c   : > { %1749 = vmatpush.bf16.msrb.mxu2 %v6459_v28  ;;  %544 = vmatmul.bf16.gmra.mxu3 %v6437_v32  ;;  %v697_v28 = vrot.slane %v695_v15, 5  ;;  %v683_v32 = vrot.slane %v682_v17, 4  ;;  %v5866_v15 = vld [vmem:[%s6747_s10 + $0x20] sm:$0x1] }
  0x3d   : > { %2128 = vmatpush.bf16.msrb.mxu3 %v6483_v29  ;;  %484 = vmatmul.bf16.gmra.mxu0 %v6425_v33  ;;  %v627_v29 = vld [vmem:[%s6747_s10 + $0xc] sm:$0xf]  ;;  %v693_v33 = vrot.slane %v692_v18, 4 }
  0x3e   : > { %1224 = vmatpush.bf16.msrb.mxu1 %v6451_v34  ;;  %2874 = vmatpush.bf16.msrb.mxu0 %v6491_v35  ;;  %v5653_v34 = vrot.slane %v1373_v21, 9  ;;  %v1476_v35 = vrot.slane %v1474_v19, 4 }
  0x40   : > { %1750 = vmatpush.bf16.msrb.mxu2 %v6458_v36 }
  0x41   : > { %2129 = vmatpush.bf16.msrb.mxu3 %v6482_v37  ;;  %v1477_v37 = vrot.slane %v1375_v27, 5 }
  0x42   : > { %1225 = vmatpush.bf16.msrb.mxu1 %v6450_v38  ;;  %2875 = vmatpush.bf16.msrb.mxu0 %v6490_v39  ;;  %v2333_v38 = vrot.slane %v2332_v22, 4  ;;  %v2343_v39 = vrot.slane %v2342_v23, 4  ;;  %v5654_v23 = vrot.slane %v1376_v9, 9 }
  0x44   : > { %1751 = vmatpush.bf16.msrb.mxu2 %v6457_v40  ;;  %v2347_v40 = vrot.slane %v2345_v24, 5 }
  0x45   : > { %2130 = vmatpush.bf16.msrb.mxu3 %v6481_v41  ;;  %v700_v41 = vshrl.u32 %v627_v29, 16 }
  0x46   : > { %1226 = vmatpush.bf16.msrb.mxu1 %v6449_v42  ;;  %2876 = vmatpush.bf16.msrb.mxu0 %v6489_v43  ;;  %v703_v42 = vshll.u32 %v627_v29, 16  ;;  %v709_v43 = vshll.u32 %v628_v30, 16  ;;  %v2348_v52 = vsel %vm6891_vm4, %v2343_v39, %v2347_v40  ;;  %v630_v29 = vld [vmem:[%s6747_s10 + $0x18] sm:$0xf]  ;;  %v6534_v39 = vld [vmem:[%s8071_s1 + $0x1f0] sm:$0xff] }
  0x47   : > { %v702_v54 = vrot.slane %v700_v41, 4  ;;  %v2759_v4 = vunpack.c.l.b16 %v2348_v52  ;;  %v6502_v40 = vld [vmem:[%s8071_s1 + $0x170] sm:$0xff] }
  0x48   : > { %1752 = vmatpush.bf16.msrb.mxu2 %v6456_v44  ;;  %v713_v44 = vshrl.u32 %v628_v30, 16  ;;  %v705_v55 = vrot.slane %v703_v42, 5  ;;  %v631_v30 = vld [vmem:[%s6747_s10 + $0x1c] sm:$0xf] }
  0x49   : > { %2131 = vmatpush.bf16.msrb.mxu3 %v6480_v45  ;;  %v688_v45 = vsel %vm6891_vm4, %v683_v32, %v6874_v7  ;;  %v5867_v32 = vld [vmem:[%s6747_s10 + $0x24] sm:$0xf] }
  0x4a   : > { %1227 = vmatpush.bf16.msrb.mxu1 %v6448_v46  ;;  %2877 = vmatpush.bf16.msrb.mxu0 %v6488_v47  ;;  %v1475_v46 = vsel %vm6895_vm5, %v5653_v34, %v1474_v19  ;;  %v5864_v47 = vld [vmem:[%s6747_s10 + $0x18] sm:$0xf]  ;;  %v1108_v63 = vunpack.c.l.b16 %v688_v45  ;;  %v706_v6 = vor.u32 %v705_v55, %v702_v54  ;;  %v721_v19 = vrot.slane %v719_v5, 5  ;;  %v6542_v45 = vld [vmem:[%s8071_s1 + $0x230] sm:$0xff] }
  0x4b   : > { %509 = vmatmul.bf16.gmra.mxu1 %v6430_v48  ;;  %529 = vmatmul.bf16.gmra.mxu2 %v6434_v49  ;;  %v5865_v48 = vld [vmem:[%s6747_s10 + $0x1c] sm:$0xf]  ;;  %v698_v49 = vsel %vm6891_vm4, %v693_v33, %v697_v28  ;;  %v2353_v60 = vshll.u32 %v5864_v47, 16  ;;  %v1633_v1 = vunpack.c.l.b16 %v1475_v46  ;;  %v2369_v28 = vshll.u32 %v5866_v15, 16  ;;  %v5868_v33 = vld [vmem:[%s6747_s10 + $0x28] sm:$0xf] }
  0x4c   : > { %549 = vmatmul.bf16.gmra.mxu3 %v6438_v50  ;;  %3771 = vmatpush.bf16.msra.mxu2 %v6527_v56  ;;  %v1478_v50 = vsel %vm6895_vm5, %v1476_v35, %v1477_v37  ;;  %v6916_v56 = vrot.slane %v709_v43, 5  ;;  %v2359_v61 = vshll.u32 %v5865_v48, 16  ;;  %v2363_v62 = vshrl.u32 %v5865_v48, 16  ;;  %v1379_v15 = vld [vmem:[%s6747_s10 + $0x18] sm:$0xe] }
  0x4d   : > { %489 = vmatmul.bf16.gmra.mxu0 %v6426_v51  ;;  %4517 = vmatpush.bf16.msra.mxu3 %v6535_v57  ;;  %v2338_v51 = vsel %vm6891_vm4, %v2333_v38, %v6877_v12  ;;  %v715_v57 = vrot.slane %v713_v44, 4  ;;  %v1109_v0 = vunpack.c.l.b16 %v698_v49  ;;  %v1634_v2 = vunpack.c.l.b16 %v1478_v50  ;;  %v6526_v38 = vld [vmem:[%s8071_s1 + $0x1b0] sm:$0xff] }
  0x4e   : > { %3392 = vmatpush.bf16.msra.mxu1 %v6503_v58  ;;  %5039 = vmatpush.bf16.msra.mxu0 %v6543_v59  ;;  %v1377_v58 = vld [vmem:[%s6747_s10 + $0x10] sm:$0xf]  ;;  %v2350_v59 = vshrl.u32 %v5864_v47, 16  ;;  %v2758_v3 = vunpack.c.l.b16 %v2338_v51  ;;  %v2355_v11 = vrot.slane %v2353_v60, 5  ;;  %v6921_v12 = vrot.slane %v2359_v61, 5 }
  0x4f   : > { %v716_v7 = vor.u32 %v715_v57, %v6916_v56  ;;  %v1481_v8 = vrot.slane %v1377_v58, 5  ;;  %v2365_v13 = vrot.slane %v2363_v62, 4  ;;  %v1665_v17 = vpack.c.b16 %v1634_v2, %v1633_v1  ;;  %v632_v60 = vld [vmem:[%s6747_s10 + $0x20] sm:$0x1]  ;;  %v1380_v1 = vld [vmem:[%s6747_s10 + $0x1c] sm:$0xf] }
  0x50   : > { %v2352_v10 = vrot.slane %v2350_v59, 4  ;;  %v2790_v18 = vpack.c.b16 %v2759_v4, %v2758_v3  ;;  %v707_v21 = vrot.slane %v706_v6, 4  ;;  %v2371_v44 = vrot.slane %v2369_v28, 5  ;;  %3772 = vmatpush.bf16.msra.mxu2 %v6526_v38 }
  0x51   : > { %v717_v22 = vrot.slane %v716_v7, 4  ;;  %v1483_v24 = vrot.slane %v1481_v8, 4  ;;  %v2366_v27 = vor.u32 %v2365_v13, %v6921_v12  ;;  %v1482_v37 = vsel %vm6895_vm5, %v5654_v23, %v1481_v8  ;;  %4518 = vmatpush.bf16.msra.mxu3 %v6534_v39  ;;  %v5869_v8 = vld [vmem:[%s6747_s10 + $0x2c] sm:$0x1]  ;;  %v633_v23 = vld [vmem:[%s6747_s10 + $0x24] sm:$0xf] }
  0x52   : > { %v712_v34 = vsel %vm6891_vm4, %v707_v21, %v6916_v56  ;;  %v724_v46 = vshrl.u32 %v630_v29, 16  ;;  %v727_v47 = vshll.u32 %v630_v29, 16  ;;  %v733_v48 = vshll.u32 %v631_v30, 16  ;;  %3393 = vmatpush.bf16.msra.mxu1 %v6502_v40  ;;  %5040 = vmatpush.bf16.msra.mxu0 %v6542_v45  ;;  %v1381_v21 = vld [vmem:[%s6747_s10 + $0x20] sm:$0x1] }
  0x53   : > { %v722_v35 = vsel %vm6891_vm4, %v717_v22, %v721_v19  ;;  %v2367_v43 = vrot.slane %v2366_v27, 4  ;;  %v737_v49 = vshrl.u32 %v631_v30, 16  ;;  %v2374_v50 = vshrl.u32 %v5867_v32, 16  ;;  %v6465_v19 = vld [vmem:[%s6747_s10 + $0x18] sm:$0xff] }
  0x54   : > { %v2377_v51 = vshll.u32 %v5867_v32, 16  ;;  %v2383_v52 = vshll.u32 %v5868_v33, 16  ;;  %v2387_v53 = vshrl.u32 %v5868_v33, 16  ;;  %v1110_v54 = vunpack.c.l.b16 %v712_v34 }
  0x55   : > { %v1111_v55 = vunpack.c.l.b16 %v722_v35  ;;  %v1635_v56 = vunpack.c.l.b16 %v1482_v37  ;;  %v2372_v59 = vsel %vm6891_vm4, %v2367_v43, %v2371_v44  ;;  %v726_v61 = vrot.slane %v724_v46, 4 }
  0x56   : > { %v729_v62 = vrot.slane %v727_v47, 5  ;;  %v2376_v2 = vrot.slane %v2374_v50, 4  ;;  %v2379_v3 = vrot.slane %v2377_v51, 5  ;;  %v2385_v4 = vrot.slane %v2383_v52, 5  ;;  %v635_v51 = vld [vmem:[%s6747_s10 + $0x2c] sm:$0x1] }
  0x57   : > { %v2389_v5 = vrot.slane %v2387_v53, 4  ;;  %v2761_v7 = vunpack.c.l.b16 %v2372_v59  ;;  %v743_v9 = vshll.u32 %v632_v60, 16  ;;  %v1488_v13 = vrot.slane %v1380_v1, 5  ;;  %v1383_v1 = vld [vmem:[%s6747_s10 + $0x28] sm:$0xf] }
  0x58   : > { %v5655_v27 = vrot.slane %v1379_v15, 9  ;;  %v1491_v29 = vrot.slane %v1381_v21, 5  ;;  %v748_v34 = vshrl.u32 %v633_v23, 16  ;;  %v751_v35 = vshll.u32 %v633_v23, 16  ;;  %v636_v21 = vld [vmem:[%s6747_s10 + $0x30] sm:$0xf] }
  0x59   : > { %v745_v22 = vrot.slane %v743_v9, 5  ;;  %v1490_v28 = vrot.slane %v1488_v13, 4  ;;  %v6466_v9 = vld [vmem:[%s6747_s10 + $0x24] sm:$0xff] }
  0x5a   : > { %v1489_v43 = vsel %vm6895_vm5, %v5655_v27, %v1488_v13  ;;  %v750_v47 = vrot.slane %v748_v34, 4  ;;  %v1382_v13 = vld [vmem:[%s6747_s10 + $0x24] sm:$0xe]  ;;  %v5873_v27 = vld [vmem:[%s6747_s10 + $0x3c] sm:$0xf]  ;;  %v772_v34 = vshrl.u32 %v636_v21, 16 }
  0x5b   : > { %514 = vmatmul.bf16.gmra.mxu1 %v6431_v16  ;;  %534 = vmatmul.bf16.gmra.mxu2 %v6435_v20  ;;  %v1140_v16 = vpack.c.b16 %v1109_v0, %v1108_v63  ;;  %v6464_v20 = vld [vmem:[%s6747_s10 + $0xc] sm:$0xff]  ;;  %v735_v63 = vrot.slane %v733_v48, 5  ;;  %v739_v0 = vrot.slane %v737_v49, 4  ;;  %v1492_v44 = vsel %vm6895_vm5, %v1490_v28, %v1491_v29 }
  0x5c   : > { %554 = vmatmul.bf16.gmra.mxu3 %v6439_v25  ;;  %v1484_v25 = vrot.slane %v1378_v14, 5  ;;  %v753_v48 = vrot.slane %v751_v35, 5  ;;  %v1638_v59 = vunpack.c.l.b16 %v1492_v44  ;;  %v6533_v28 = vld [vmem:[%s8071_s1 + $0x1e8] sm:$0xff]  ;;  %v775_v35 = vshll.u32 %v636_v21, 16 }
  0x5d   : > { %494 = vmatmul.bf16.gmra.mxu0 %v6427_v26  ;;  %v2356_v26 = vor.u32 %v2355_v11, %v2352_v10  ;;  %v1141_v10 = vpack.c.b16 %v1111_v55, %v1110_v54  ;;  %v730_v11 = vor.u32 %v729_v62, %v726_v61  ;;  %4519 = vmatpush.bf16.msra.mxu3 %v6533_v28 }
  0x5e   : > { %v1485_v41 = vsel %vm6895_vm5, %v1483_v24, %v1484_v25  ;;  %v634_v24 = vld [vmem:[%s6747_s10 + $0x28] sm:$0xf]  ;;  %v754_v62 = vor.u32 %v753_v48, %v750_v47 }
  0x5f   : > { %v2357_v42 = vrot.slane %v2356_v26, 4  ;;  %v1636_v57 = vunpack.c.l.b16 %v1485_v41  ;;  %v731_v25 = vrot.slane %v730_v11, 4  ;;  %v757_v37 = vshll.u32 %v634_v24, 16  ;;  %v5870_v41 = vld [vmem:[%s6747_s10 + $0x30] sm:$0xf] }
  0x60   : > { %v761_v38 = vshrl.u32 %v634_v24, 16  ;;  %v2398_v52 = vshrl.u32 %v5870_v41, 16  ;;  %v2401_v53 = vshll.u32 %v5870_v41, 16  ;;  %v755_v11 = vrot.slane %v754_v62, 4 }
  0x61   : > { %v2362_v58 = vsel %vm6891_vm4, %v2357_v42, %v6921_v12  ;;  %v740_v12 = vor.u32 %v739_v0, %v735_v63  ;;  %v1666_v14 = vpack.c.b16 %v1636_v57, %v1635_v56  ;;  %v736_v39 = vsel %vm6891_vm4, %v731_v25, %v735_v63  ;;  %v5871_v42 = vld [vmem:[%s6747_s10 + $0x34] sm:$0xf] }
  0x62   : > { %v2760_v6 = vunpack.c.l.b16 %v2362_v58  ;;  %v759_v49 = vrot.slane %v757_v37, 5  ;;  %v763_v50 = vrot.slane %v761_v38, 4  ;;  %v2407_v54 = vshll.u32 %v5871_v42, 16 }
  0x63   : > { %v741_v26 = vrot.slane %v740_v12, 4  ;;  %v2411_v55 = vshrl.u32 %v5871_v42, 16  ;;  %v1112_v56 = vunpack.c.l.b16 %v736_v39  ;;  %v1637_v58 = vunpack.c.l.b16 %v1489_v43  ;;  %v5874_v39 = vld [vmem:[%s6747_s10 + $0x40] sm:$0xf]  ;;  %v6501_v42 = vld [vmem:[%s8071_s1 + $0x168] sm:$0xff] }
  0x64   : > { %v764_v63 = vor.u32 %v763_v50, %v759_v49  ;;  %v767_v0 = vshll.u32 %v635_v51, 16  ;;  %v760_v23 = vsel %vm6891_vm4, %v755_v11, %v759_v49  ;;  %v2425_v41 = vshll.u32 %v5873_v27, 16  ;;  %3394 = vmatpush.bf16.msra.mxu1 %v6501_v42  ;;  %v6541_v51 = vld [vmem:[%s8071_s1 + $0x228] sm:$0xff] }
  0x65   : > { %v746_v40 = vsel %vm6891_vm4, %v741_v26, %v745_v22  ;;  %v637_v22 = vld [vmem:[%s6747_s10 + $0x34] sm:$0xf]  ;;  %v6525_v26 = vld [vmem:[%s8071_s1 + $0x1a8] sm:$0xff]  ;;  %v1114_v43 = vunpack.c.l.b16 %v760_v23  ;;  %v2431_v49 = vshll.u32 %v5874_v39, 16  ;;  %v2435_v50 = vshrl.u32 %v5874_v39, 16  ;;  %5041 = vmatpush.bf16.msra.mxu0 %v6541_v51 }
  0x66   : > { %v1113_v57 = vunpack.c.l.b16 %v746_v40  ;;  %v769_v12 = vrot.slane %v767_v0, 5  ;;  %v765_v15 = vrot.slane %v764_v63, 4  ;;  %v781_v37 = vshll.u32 %v637_v22, 16  ;;  %3773 = vmatpush.bf16.msra.mxu2 %v6525_v26  ;;  %v1386_v63 = vld [vmem:[%s6747_s10 + $0x34] sm:$0xf] }
  0x67   : > { %v785_v38 = vshrl.u32 %v637_v22, 16  ;;  %v2422_v40 = vshrl.u32 %v5873_v27, 16  ;;  %v2433_v0 = vrot.slane %v2431_v49, 5 }
  0x68   : > { %v770_v29 = vsel %vm6891_vm4, %v765_v15, %v769_v12  ;;  %v1385_v12 = vld [vmem:[%s6747_s10 + $0x30] sm:$0xe] }
  0x69   : > { %v1115_v44 = vunpack.c.l.b16 %v770_v29  ;;  %v5876_v29 = vld [vmem:[%s6747_s10 + $0x48] sm:$0xf] }
  0x6a   : > { %v2446_v42 = vshrl.u32 %v5876_v29, 16 }
  0x6b   : > { %1228 = vmatmul.bf16.vlgmr.msrb.gmra.mxu1 %v1140_v16  ;;  %1753 = vmatmul.bf16.vlgmr.msrb.gmra.mxu2 %v1665_v17  ;;  %v2380_v16 = vor.u32 %v2379_v3, %v2376_v2  ;;  %v2390_v17 = vor.u32 %v2389_v5, %v2385_v4  ;;  %v2400_v2 = vrot.slane %v2398_v52, 4  ;;  %v2403_v3 = vrot.slane %v2401_v53, 5 }
  0x6c   : > { %2132 = vmatmul.bf16.vlgmr.msrb.gmra.mxu3 %v6464_v20  ;;  %v2791_v20 = vpack.c.b16 %v2761_v7, %v2760_v6  ;;  %v2413_v5 = vrot.slane %v2411_v55, 4  ;;  %v5872_v6 = vld [vmem:[%s6747_s10 + $0x38] sm:$0x1]  ;;  %v1142_v7 = vpack.c.b16 %v1113_v57, %v1112_v56  ;;  %v774_v52 = vrot.slane %v772_v34, 4  ;;  %v5877_v34 = vld [vmem:[%s6747_s10 + $0x4c] sm:$0xf] }
  0x6d   : > { %2878 = vmatmul.bf16.vlgmr.msrb.gmra.mxu0 %v2790_v18  ;;  %v2393_v18 = vshll.u32 %v5869_v8, 16  ;;  %v2381_v30 = vrot.slane %v2380_v16, 4  ;;  %v2391_v32 = vrot.slane %v2390_v17, 4  ;;  %v1667_v8 = vpack.c.b16 %v1638_v59, %v1637_v58  ;;  %v1384_v16 = vld [vmem:[%s6747_s10 + $0x2c] sm:$0x1] }
  0x6e   : > { %v2404_v17 = vor.u32 %v2403_v3, %v2400_v2  ;;  %v1498_v25 = vrot.slane %v1384_v16, 5  ;;  %v777_v53 = vrot.slane %v775_v35, 5  ;;  %v787_v55 = vrot.slane %v785_v38, 4  ;;  %v638_v58 = vld [vmem:[%s6747_s10 + $0x38] sm:$0x1] }
  0x6f   : > { %v2395_v33 = vrot.slane %v2393_v18, 5  ;;  %v2386_v45 = vsel %vm6891_vm4, %v2381_v30, %v2385_v4  ;;  %v6981_v4 = vrot.slane %v2407_v54, 5  ;;  %v783_v54 = vrot.slane %v781_v37, 5  ;;  %v639_v16 = vld [vmem:[%s6747_s10 + $0x3c] sm:$0xf] }
  0x70   : > { %v2762_v60 = vunpack.c.l.b16 %v2386_v45  ;;  %v2405_v30 = vrot.slane %v2404_v17, 4  ;;  %v2424_v59 = vrot.slane %v2422_v40, 4  ;;  %v778_v2 = vor.u32 %v777_v53, %v774_v52 }
  0x71   : > { %v2396_v46 = vsel %vm6891_vm4, %v2391_v32, %v2395_v33  ;;  %v2414_v18 = vor.u32 %v2413_v5, %v6981_v4  ;;  %v788_v3 = vor.u32 %v787_v55, %v783_v54  ;;  %v5875_v5 = vld [vmem:[%s6747_s10 + $0x44] sm:$0x1]  ;;  %v799_v26 = vshll.u32 %v639_v16, 16  ;;  %v1389_v55 = vld [vmem:[%s6747_s10 + $0x40] sm:$0xf] }
  0x72   : > { %v2763_v61 = vunpack.c.l.b16 %v2396_v46  ;;  %v2410_v47 = vsel %vm6891_vm4, %v2405_v30, %v6981_v4  ;;  %v791_v4 = vshll.u32 %v638_v58, 16  ;;  %v2441_v15 = vshll.u32 %v5875_v5, 16  ;;  %v1390_v5 = vld [vmem:[%s6747_s10 + $0x44] sm:$0x1] }
  0x73   : > { %v2415_v32 = vrot.slane %v2414_v18, 4  ;;  %v779_v17 = vrot.slane %v778_v2, 4  ;;  %v789_v18 = vrot.slane %v788_v3, 4  ;;  %v2448_v58 = vrot.slane %v2446_v42, 4  ;;  %v5878_v2 = vld [vmem:[%s6747_s10 + $0x50] sm:$0x1] }
  0x74   : > { %v2443_v28 = vrot.slane %v2441_v15, 5 }
  0x75   : > { %v784_v30 = vsel %vm6891_vm4, %v779_v17, %v783_v54  ;;  %v641_v54 = vld [vmem:[%s6747_s10 + $0x44] sm:$0x1] }
  0x7b   : > { %1233 = vmatmul.bf16.gmra.mxu1 %v1141_v10  ;;  %1758 = vmatmul.bf16.gmra.mxu2 %v1666_v14  ;;  %v2792_v10 = vpack.c.b16 %v2763_v61, %v2762_v60  ;;  %v1495_v14 = vrot.slane %v1383_v1, 5  ;;  %v2427_v60 = vrot.slane %v2425_v41, 5  ;;  %v2764_v61 = vunpack.c.l.b16 %v2410_v47 }
  0x7c   : > { %2137 = vmatmul.bf16.gmra.mxu3 %v6465_v19  ;;  %v2417_v19 = vshll.u32 %v5872_v6, 16  ;;  %v2437_v1 = vrot.slane %v2435_v50, 4  ;;  %v1143_v6 = vpack.c.b16 %v1115_v44, %v1114_v43  ;;  %v801_v41 = vrot.slane %v799_v26, 5  ;;  %v5880_v26 = vld [vmem:[%s6747_s10 + $0x58] sm:$0xf] }
  0x7d   : > { %2883 = vmatmul.bf16.gmra.mxu0 %v2791_v20  ;;  %v5656_v20 = vrot.slane %v1382_v13, 9  ;;  %v1497_v24 = vrot.slane %v1495_v14, 4  ;;  %v1387_v13 = vld [vmem:[%s6747_s10 + $0x38] sm:$0x1]  ;;  %v2449_v43 = vshll.u32 %v5876_v29, 16  ;;  %v1116_v47 = vunpack.c.l.b16 %v784_v30 }
  0x7e   : > { %v2419_v33 = vrot.slane %v2417_v19, 5  ;;  %v793_v19 = vrot.slane %v791_v4, 5  ;;  %v1505_v22 = vrot.slane %v1387_v13, 5  ;;  %v2479_v42 = vshll.u32 %v5880_v26, 16 }
  0x7f   : > { %v1496_v45 = vsel %vm6895_vm5, %v5656_v20, %v1495_v14  ;;  %v1499_v46 = vsel %vm6895_vm5, %v1497_v24, %v1498_v25  ;;  %v2438_v14 = vor.u32 %v2437_v1, %v2433_v0  ;;  %v5657_v20 = vrot.slane %v1385_v12, 9  ;;  %v640_v24 = vld [vmem:[%s6747_s10 + $0x40] sm:$0xf] }
  0x80   : > { %v2420_v48 = vsel %vm6891_vm4, %v2415_v32, %v2419_v33  ;;  %v1639_v56 = vunpack.c.l.b16 %v1496_v45  ;;  %v1640_v57 = vunpack.c.l.b16 %v1499_v46  ;;  %v796_v25 = vshrl.u32 %v639_v16, 16 }
  0x81   : > { %v2765_v62 = vunpack.c.l.b16 %v2420_v48  ;;  %v2439_v27 = vrot.slane %v2438_v14, 4  ;;  %v805_v32 = vshll.u32 %v640_v24, 16  ;;  %v809_v33 = vshrl.u32 %v640_v24, 16 }
  0x82   : > { %v794_v35 = vsel %vm6891_vm4, %v789_v18, %v793_v19  ;;  %v798_v40 = vrot.slane %v796_v25, 4  ;;  %v2455_v45 = vshll.u32 %v5877_v34, 16  ;;  %v2459_v46 = vshrl.u32 %v5877_v34, 16  ;;  %v642_v19 = vld [vmem:[%s6747_s10 + $0x48] sm:$0xf]  ;;  %v6524_v25 = vld [vmem:[%s8071_s1 + $0x1a0] sm:$0xff] }
  0x83   : > { %v2793_v11 = vpack.c.b16 %v2765_v62, %v2764_v61  ;;  %v2444_v44 = vsel %vm6891_vm4, %v2439_v27, %v2443_v28  ;;  %v7039_v48 = vrot.slane %v805_v32, 5  ;;  %v811_v49 = vrot.slane %v809_v33, 4  ;;  %v6532_v27 = vld [vmem:[%s8071_s1 + $0x1e0] sm:$0xff]  ;;  %3774 = vmatpush.bf16.msra.mxu2 %v6524_v25 }
  0x84   : > { %v1117_v50 = vunpack.c.l.b16 %v794_v35  ;;  %v7044_v61 = vrot.slane %v2455_v45, 5  ;;  %v2461_v62 = vrot.slane %v2459_v46, 4  ;;  %v1509_v1 = vrot.slane %v1389_v55, 5  ;;  %4520 = vmatpush.bf16.msra.mxu3 %v6532_v27 }
  0x85   : > { %v2465_v14 = vshll.u32 %v5878_v2, 16  ;;  %v1512_v18 = vrot.slane %v1390_v5, 5  ;;  %v820_v30 = vshrl.u32 %v642_v19, 16  ;;  %v823_v32 = vshll.u32 %v642_v19, 16  ;;  %v5881_v2 = vld [vmem:[%s6747_s10 + $0x5c] sm:$0x1] }
  0x86   : > { %v1144_v3 = vpack.c.b16 %v1117_v50, %v1116_v47  ;;  %v2462_v13 = vor.u32 %v2461_v62, %v7044_v61  ;;  %v1511_v17 = vrot.slane %v1509_v1, 4  ;;  %v7097_v62 = vrot.slane %v2479_v42, 5  ;;  %v6469_v19 = vld [vmem:[%s6747_s10 + $0x48] sm:$0xff] }
  0x87   : > { %v2467_v29 = vrot.slane %v2465_v14, 5  ;;  %v1393_v14 = vld [vmem:[%s6747_s10 + $0x50] sm:$0x1] }
  0x88   : > { %v2463_v28 = vrot.slane %v2462_v13, 4  ;;  %v1513_v35 = vsel %vm6895_vm5, %v1511_v17, %v1512_v18  ;;  %v2489_v17 = vshll.u32 %v5881_v2, 16  ;;  %v1519_v27 = vrot.slane %v1393_v14, 5 }
  0x89   : > { %v1644_v55 = vunpack.c.l.b16 %v1513_v35 }
  0x8a   : > { %v2468_v50 = vsel %vm6891_vm4, %v2463_v28, %v2467_v29 }
  0x8b   : > { %1238 = vmatmul.bf16.gmra.mxu1 %v1142_v7  ;;  %1763 = vmatmul.bf16.gmra.mxu2 %v1667_v8  ;;  %v1668_v7 = vpack.c.b16 %v1640_v57, %v1639_v56  ;;  %v1502_v8 = vrot.slane %v1386_v63, 5  ;;  %v2767_v56 = vunpack.c.l.b16 %v2444_v44  ;;  %v802_v57 = vor.u32 %v801_v41, %v798_v40  ;;  %v6500_v44 = vld [vmem:[%s8071_s1 + $0x160] sm:$0xff] }
  0x8c   : > { %2142 = vmatmul.bf16.gmra.mxu3 %v6466_v9  ;;  %v2428_v9 = vor.u32 %v2427_v60, %v2424_v59  ;;  %v2451_v59 = vrot.slane %v2449_v43, 5  ;;  %v1388_v60 = vld [vmem:[%s6747_s10 + $0x3c] sm:$0xe]  ;;  %v812_v63 = vor.u32 %v811_v49, %v7039_v48  ;;  %v2483_v43 = vshrl.u32 %v5880_v26, 16  ;;  %3395 = vmatpush.bf16.msra.mxu1 %v6500_v44 }
  0x8d   : > { %2888 = vmatmul.bf16.gmra.mxu0 %v2792_v10  ;;  %v6467_v10 = vld [vmem:[%s6747_s10 + $0x30] sm:$0xff]  ;;  %v1504_v21 = vrot.slane %v1502_v8, 4  ;;  %v1503_v37 = vsel %vm6895_vm5, %v5657_v20, %v1502_v8  ;;  %v643_v20 = vld [vmem:[%s6747_s10 + $0x4c] sm:$0xf] }
  0x8e   : > { %v2429_v23 = vrot.slane %v2428_v9, 4  ;;  %v1641_v51 = vunpack.c.l.b16 %v1503_v37  ;;  %v803_v9 = vrot.slane %v802_v57, 4  ;;  %v813_v15 = vrot.slane %v812_v63, 4 }
  0x8f   : > { %v1506_v38 = vsel %vm6895_vm5, %v1504_v21, %v1505_v22  ;;  %v5879_v21 = vld [vmem:[%s6747_s10 + $0x54] sm:$0xf]  ;;  %v829_v37 = vshll.u32 %v643_v20, 16  ;;  %v2485_v63 = vrot.slane %v2483_v43, 4 }
  0x90   : > { %v2434_v39 = vsel %vm6891_vm4, %v2429_v23, %v2433_v0  ;;  %v1642_v52 = vunpack.c.l.b16 %v1506_v38  ;;  %v815_v0 = vshll.u32 %v641_v54, 16  ;;  %v808_v22 = vsel %vm6891_vm4, %v803_v9, %v7039_v48  ;;  %v1391_v9 = vld [vmem:[%s6747_s10 + $0x48] sm:$0xe] }
  0x91   : > { %v2766_v53 = vunpack.c.l.b16 %v2434_v39  ;;  %v833_v38 = vshrl.u32 %v643_v20, 16  ;;  %v2470_v40 = vshrl.u32 %v5879_v21, 16  ;;  %v2473_v41 = vshll.u32 %v5879_v21, 16 }
  0x92   : > { %v1669_v4 = vpack.c.b16 %v1642_v52, %v1641_v51  ;;  %v817_v16 = vrot.slane %v815_v0, 5  ;;  %v1118_v46 = vunpack.c.l.b16 %v808_v22  ;;  %v822_v51 = vrot.slane %v820_v30, 4 }
  0x93   : > { %v2794_v8 = vpack.c.b16 %v2767_v56, %v2766_v53  ;;  %v825_v52 = vrot.slane %v823_v32, 5  ;;  %v6540_v53 = vld [vmem:[%s8071_s1 + $0x220] sm:$0xff]  ;;  %v644_v56 = vld [vmem:[%s6747_s10 + $0x50] sm:$0x1]  ;;  %v7094_v57 = vrot.slane %v829_v37, 5  ;;  %v2491_v30 = vrot.slane %v2489_v17, 5 }
  0x94   : > { %v818_v34 = vsel %vm6891_vm4, %v813_v15, %v817_v16  ;;  %5042 = vmatpush.bf16.msra.mxu0 %v6540_v53  ;;  %v2486_v16 = vor.u32 %v2485_v63, %v7097_v62  ;;  %v645_v32 = vld [vmem:[%s6747_s10 + $0x54] sm:$0xf] }
  0x95   : > { %v1119_v54 = vunpack.c.l.b16 %v818_v34  ;;  %v646_v34 = vld [vmem:[%s6747_s10 + $0x58] sm:$0xf]  ;;  %v844_v44 = vshrl.u32 %v645_v32, 16 }
  0x96   : > { %v2487_v29 = vrot.slane %v2486_v16, 4 }
  0x97   : > { %v1145_v5 = vpack.c.b16 %v1119_v54, %v1118_v46  ;;  %v847_v46 = vshll.u32 %v645_v32, 16  ;;  %v846_v63 = vrot.slane %v844_v44, 4  ;;  %v1396_v32 = vld [vmem:[%s6747_s10 + $0x5c] sm:$0x1] }
  0x9b   : > { %1243 = vmatmul.bf16.gmra.mxu1 %v1143_v6  ;;  %1768 = vmatmul.bf16.gmra.mxu2 %v1668_v7  ;;  %v6468_v7 = vld [vmem:[%s6747_s10 + $0x3c] sm:$0xff] }
  0x9c   : > { %2147 = vmatmul.bf16.gmra.mxu3 %v6467_v10  ;;  %v5658_v10 = vrot.slane %v1388_v60, 9  ;;  %v2472_v60 = vrot.slane %v2470_v40, 4  ;;  %v5883_v40 = vld [vmem:[%s6747_s10 + $0x64] sm:$0xf] }
  0x9d   : > { %2893 = vmatmul.bf16.gmra.mxu0 %v2793_v11  ;;  %v2452_v11 = vor.u32 %v2451_v59, %v2448_v58  ;;  %v835_v58 = vrot.slane %v833_v38, 4  ;;  %v1392_v59 = vld [vmem:[%s6747_s10 + $0x4c] sm:$0xf]  ;;  %v5882_v38 = vld [vmem:[%s6747_s10 + $0x60] sm:$0xf] }
  0x9e   : > { %v1510_v23 = vsel %vm6895_vm5, %v5658_v10, %v1509_v1  ;;  %v2769_v1 = vunpack.c.l.b16 %v2468_v50  ;;  %v1516_v10 = vrot.slane %v1392_v59, 5  ;;  %v2492_v50 = vsel %vm6891_vm4, %v2487_v29, %v2491_v30  ;;  %v6470_v29 = vld [vmem:[%s6747_s10 + $0x54] sm:$0xff] }
  0x9f   : > { %v2453_v24 = vrot.slane %v2452_v11, 4  ;;  %v1643_v47 = vunpack.c.l.b16 %v1510_v23  ;;  %v5659_v23 = vrot.slane %v1391_v9, 9  ;;  %v2494_v54 = vshrl.u32 %v5882_v38, 16  ;;  %v5884_v9 = vld [vmem:[%s6747_s10 + $0x68] sm:$0x1] }
  0xa0   : > { %v1518_v26 = vrot.slane %v1516_v10, 4  ;;  %v2771_v2 = vunpack.c.l.b16 %v2492_v50 }
  0xa1   : > { %v2458_v49 = vsel %vm6891_vm4, %v2453_v24, %v7044_v61  ;;  %v2475_v61 = vrot.slane %v2473_v41, 5  ;;  %v1670_v13 = vpack.c.b16 %v1644_v55, %v1643_v47  ;;  %v1517_v37 = vsel %vm6895_vm5, %v5659_v23, %v1516_v10 }
  0xa2   : > { %v2768_v0 = vunpack.c.l.b16 %v2458_v49  ;;  %v1520_v43 = vsel %vm6895_vm5, %v1518_v26, %v1519_v27  ;;  %v2497_v55 = vshll.u32 %v5882_v38, 16  ;;  %v2496_v10 = vrot.slane %v2494_v54, 4  ;;  %v648_v38 = vld [vmem:[%s6747_s10 + $0x60] sm:$0xf] }
  0xa3   : > { %v2476_v15 = vor.u32 %v2475_v61, %v2472_v60  ;;  %v1645_v60 = vunpack.c.l.b16 %v1517_v37  ;;  %v2513_v27 = vshll.u32 %v5884_v9, 16 }
  0xa4   : > { %v2795_v20 = vpack.c.b16 %v2769_v1, %v2768_v0  ;;  %v849_v0 = vrot.slane %v847_v46, 5 }
  0xa5   : > { %v2477_v28 = vrot.slane %v2476_v15, 4  ;;  %v2515_v50 = vrot.slane %v2513_v27, 5 }
  0xa7   : > { %v2482_v49 = vsel %vm6891_vm4, %v2477_v28, %v7097_v62  ;;  %v1646_v62 = vunpack.c.l.b16 %v1520_v43 }
  0xa8   : > { %v7049_v6 = vpop.f32.mrf.mxu1  ;;  %v2770_v1 = vunpack.c.l.b16 %v2482_v49  ;;  %v1526_v49 = vrot.slane %v1396_v32, 5 }
  0xa9   : > { %v1671_v23 = vpack.c.b16 %v1646_v62, %v1645_v60 }
  0xaa   : > { %v7052_v12 = vpop.f32.mrf.mxu0  ;;  %v2796_v30 = vpack.c.b16 %v2771_v2, %v2770_v1 }
  0xab   : > { %1248 = vmatmul.bf16.gmra.mxu1 %v1144_v3  ;;  %1773 = vmatmul.bf16.gmra.mxu2 %v1669_v4  ;;  %v826_v3 = vor.u32 %v825_v52, %v822_v51  ;;  %v853_v51 = vshll.u32 %v646_v34, 16  ;;  %v857_v52 = vshrl.u32 %v646_v34, 16 }
  0xac   : > { %2152 = vmatmul.bf16.gmra.mxu3 %v6468_v7  ;;  %v836_v7 = vor.u32 %v835_v58, %v7094_v57 }
  0xad   : > { %2898 = vmatmul.bf16.gmra.mxu0 %v2794_v8  ;;  %v839_v8 = vshll.u32 %v644_v56, 16  ;;  %v827_v22 = vrot.slane %v826_v3, 4  ;;  %v2503_v56 = vshll.u32 %v5883_v40, 16  ;;  %v647_v3 = vld [vmem:[%s6747_s10 + $0x5c] sm:$0x1] }
  0xae   : > { %v7070_v33 = vpop.f32.mrf.mxu2  ;;  %v837_v24 = vrot.slane %v836_v7, 4  ;;  %v859_v7 = vrot.slane %v857_v52, 4 }
  0xaf   : > { %v7076_v39 = vpop.f32.mrf.mxu3  ;;  %v841_v25 = vrot.slane %v839_v8, 5  ;;  %v832_v35 = vsel %vm6891_vm4, %v827_v22, %v7094_v57  ;;  %v2507_v57 = vshrl.u32 %v5883_v40, 16  ;;  %v1395_v8 = vld [vmem:[%s6747_s10 + $0x58] sm:$0xf]  ;;  %v7144_v14 = vrot.slane %v2503_v56, 5 }
  0xb0   : > { %v7081_v45 = vpop.f32.mrf.mxu1  ;;  %v1120_v59 = vunpack.c.l.b16 %v832_v35  ;;  %v1523_v26 = vrot.slane %v1395_v8, 5  ;;  %v871_v56 = vshll.u32 %v648_v38, 16 }
  0xb1   : > { %v842_v42 = vsel %vm6891_vm4, %v837_v24, %v841_v25  ;;  %v2509_v15 = vrot.slane %v2507_v57, 4  ;;  %v1394_v25 = vld [vmem:[%s6747_s10 + $0x54] sm:$0xe]  ;;  %v6523_v57 = vld [vmem:[%s8071_s1 + $0x198] sm:$0xff] }
  0xb2   : > { %v7083_v48 = vpop.f32.mrf.mxu0  ;;  %v1121_v61 = vunpack.c.l.b16 %v842_v42  ;;  %v5660_v43 = vrot.slane %v1394_v25, 9  ;;  %v1525_v46 = vrot.slane %v1523_v26, 4  ;;  %3775 = vmatpush.bf16.msra.mxu2 %v6523_v57  ;;  %v6499_v25 = vld [vmem:[%s8071_s1 + $0x158] sm:$0xff] }
  0xb3   : > { %v2510_v35 = vor.u32 %v2509_v15, %v7144_v14  ;;  %v873_v15 = vrot.slane %v871_v56, 5  ;;  %3396 = vmatpush.bf16.msra.mxu1 %v6499_v25  ;;  %v651_v25 = vld [vmem:[%s6747_s10 + $0x6c] sm:$0xf] }
  0xb4   : > { %v1146_v17 = vpack.c.b16 %v1121_v61, %v1120_v59  ;;  %v6531_v59 = vld [vmem:[%s8071_s1 + $0x1d8] sm:$0xff]  ;;  %v1527_v8 = vsel %vm6895_vm5, %v1525_v46, %v1526_v49  ;;  %v5887_v46 = vld [vmem:[%s6747_s10 + $0x74] sm:$0x1] }
  0xb5   : > { %v2511_v54 = vrot.slane %v2510_v35, 4  ;;  %4521 = vmatpush.bf16.msra.mxu3 %v6531_v59  ;;  %v650_v35 = vld [vmem:[%s6747_s10 + $0x68] sm:$0x1] }
  0xb6   : > { %v7100_v4 = vpop.f32.mrf.mxu2  ;;  %v887_v56 = vshll.u32 %v650_v35, 16 }
  0xb7   : > { %v7104_v11 = vpop.f32.mrf.mxu3 }
  0xb8   : > { %v7108_v18 = vpop.f32.mrf.mxu1 }
  0xba   : > { %v7111_v21 = vpop.f32.mrf.mxu0 }
  0xbb   : > { %1253 = vmatmul.bf16.gmra.mxu1 %v1145_v5  ;;  %1778 = vmatmul.bf16.gmra.mxu2 %v1670_v13  ;;  %v7140_v5 = vrot.slane %v853_v51, 5  ;;  %v2499_v13 = vrot.slane %v2497_v55, 5  ;;  %v649_v51 = vld [vmem:[%s6747_s10 + $0x64] sm:$0xf]  ;;  %v868_v55 = vshrl.u32 %v648_v38, 16 }
  0xbc   : > { %2157 = vmatmul.bf16.gmra.mxu3 %v6469_v19  ;;  %v850_v19 = vor.u32 %v849_v0, %v846_v63  ;;  %v877_v61 = vshll.u32 %v649_v51, 16  ;;  %v881_v62 = vshrl.u32 %v649_v51, 16  ;;  %v5885_v63 = vld [vmem:[%s6747_s10 + $0x6c] sm:$0xf]  ;;  %v5886_v0 = vld [vmem:[%s6747_s10 + $0x70] sm:$0xf] }
  0xbd   : > { %2903 = vmatmul.bf16.gmra.mxu0 %v2795_v20  ;;  %v863_v20 = vshll.u32 %v647_v3, 16  ;;  %v860_v24 = vor.u32 %v859_v7, %v7140_v5  ;;  %v2500_v34 = vor.u32 %v2499_v13, %v2496_v10  ;;  %v1524_v7 = vsel %vm6895_vm5, %v5660_v43, %v1523_v26  ;;  %v1398_v38 = vld [vmem:[%s6747_s10 + $0x64] sm:$0xf] }
  0xbe   : > { %v7122_v41 = vpop.f32.mrf.mxu2  ;;  %v851_v40 = vrot.slane %v850_v19, 4  ;;  %v2516_v13 = vsel %vm6891_vm4, %v2511_v54, %v2515_v50  ;;  %v2518_v19 = vshrl.u32 %v5885_v63, 16  ;;  %v7197_v26 = vrot.slane %v877_v61, 5 }
  0xbf   : > { %v7128_v47 = vpop.f32.mrf.mxu3  ;;  %v865_v42 = vrot.slane %v863_v20, 5  ;;  %v861_v44 = vrot.slane %v860_v24, 4  ;;  %v2501_v52 = vrot.slane %v2500_v34, 4  ;;  %v2521_v20 = vshll.u32 %v5885_v63, 16  ;;  %v1399_v63 = vld [vmem:[%s6747_s10 + $0x68] sm:$0x1] }
  0xc0   : > { %8079 = vst [vmem:[#allocation3_spill] sm:$0xff] %v7128_v47  ;;  %v7135_v53 = vpop.f32.mrf.mxu1  ;;  %v856_v2 = vsel %vm6891_vm4, %v851_v40, %v7140_v5  ;;  %v870_v5 = vrot.slane %v868_v55, 4  ;;  %v2531_v24 = vshrl.u32 %v5886_v0, 16  ;;  %v883_v27 = vrot.slane %v881_v62, 4 }
  0xc1   : > { %v866_v3 = vsel %vm6891_vm4, %v861_v44, %v865_v42  ;;  %v2506_v10 = vsel %vm6891_vm4, %v2501_v52, %v7144_v14  ;;  %v6539_v14 = vld [vmem:[%s8071_s1 + $0x218] sm:$0xff]  ;;  %v1647_v32 = vunpack.c.l.b16 %v1524_v7  ;;  %v1648_v34 = vunpack.c.l.b16 %v1527_v8  ;;  %v1397_v44 = vld [vmem:[%s6747_s10 + $0x60] sm:$0xe] }
  0xc2   : > { %v7137_v58 = vpop.f32.mrf.mxu0  ;;  %5043 = vmatpush.bf16.msra.mxu0 %v6539_v14  ;;  %v2772_v40 = vunpack.c.l.b16 %v2506_v10  ;;  %v2773_v42 = vunpack.c.l.b16 %v2516_v13  ;;  %v874_v43 = vor.u32 %v873_v15, %v870_v5  ;;  %v2520_v49 = vrot.slane %v2518_v19, 4  ;;  %v652_v14 = vld [vmem:[%s6747_s10 + $0x70] sm:$0xf] }
  0xc3   : > { %v2523_v50 = vrot.slane %v2521_v20, 5  ;;  %v2533_v52 = vrot.slane %v2531_v24, 4  ;;  %v884_v55 = vor.u32 %v883_v27, %v7197_v26  ;;  %v1530_v57 = vrot.slane %v1398_v38, 5 }
  0xc4   : > { %v1672_v62 = vpack.c.b16 %v1648_v34, %v1647_v32  ;;  %v875_v7 = vrot.slane %v874_v43, 4  ;;  %v5661_v8 = vrot.slane %v1397_v44, 9  ;;  %v2537_v10 = vshll.u32 %v5887_v46, 16  ;;  %v5888_v32 = vld [vmem:[%s6747_s10 + $0x78] sm:$0xf] }
  0xc5   : > { %v2524_v5 = vor.u32 %v2523_v50, %v2520_v49  ;;  %v885_v19 = vrot.slane %v884_v55, 4  ;;  %v889_v20 = vrot.slane %v887_v56, 5  ;;  %v1533_v24 = vrot.slane %v1399_v63, 5  ;;  %v5889_v34 = vld [vmem:[%s6747_s10 + $0x7c] sm:$0xf] }
  0xc6   : > { %v7146_v16 = vpop.f32.mrf.mxu2  ;;  %v880_v27 = vsel %vm6891_vm4, %v875_v7, %v7197_v26  ;;  %v901_v49 = vshll.u32 %v652_v14, 16  ;;  %v905_v26 = vshrl.u32 %v652_v14, 16  ;;  %v2545_v55 = vshll.u32 %v5888_v32, 16 }
  0xc7   : > { %v7148_v22 = vpop.f32.mrf.mxu3  ;;  %v2525_v35 = vrot.slane %v2524_v5, 4  ;;  %v890_v44 = vsel %vm6891_vm4, %v885_v19, %v889_v20  ;;  %v2551_v56 = vshll.u32 %v5889_v34, 16  ;;  %v653_v19 = vld [vmem:[%s6747_s10 + $0x74] sm:$0x1] }
  0xc8   : > { %8080 = vst [vmem:[#allocation4_spill] sm:$0xff] %v7148_v22  ;;  %v7152_v28 = vpop.f32.mrf.mxu1  ;;  %v1125_v5 = vunpack.c.l.b16 %v890_v44  ;;  %v7244_v20 = vrot.slane %v901_v49, 5  ;;  %v2547_v14 = vrot.slane %v2545_v55, 5  ;;  %v1405_v22 = vld [vmem:[%s6747_s10 + $0x80] sm:$0x1] }
  0xca   : > { %v7157_v37 = vpop.f32.mrf.mxu0 }
  0xcb   : > { %1258 = vmatmul.bf16.gmra.mxu1 %v1146_v17  ;;  %1783 = vmatmul.bf16.gmra.mxu2 %v1671_v23  ;;  %v2527_v23 = vshll.u32 %v5886_v0, 16 }
  0xcc   : > { %2162 = vmatmul.bf16.gmra.mxu3 %v6470_v29  ;;  %v1122_v29 = vunpack.c.l.b16 %v856_v2  ;;  %v6471_v2 = vld [vmem:[%s6747_s10 + $0x60] sm:$0xff] }
  0xcd   : > { %2908 = vmatmul.bf16.gmra.mxu0 %v2796_v30  ;;  %v1123_v30 = vunpack.c.l.b16 %v866_v3  ;;  %v7203_v51 = vrot.slane %v2527_v23, 5  ;;  %v2797_v3 = vpack.c.b16 %v2773_v42, %v2772_v40  ;;  %v1532_v23 = vrot.slane %v1530_v57, 4 }
  0xce   : > { %v7167_v60 = vpop.f32.mrf.mxu2  ;;  %v892_v40 = vshrl.u32 %v651_v25, 16  ;;  %v895_v42 = vshll.u32 %v651_v25, 16 }
  0xcf   : > { %v7171_v1 = vpop.f32.mrf.mxu3  ;;  %v1147_v61 = vpack.c.b16 %v1123_v30, %v1122_v29  ;;  %v2534_v15 = vor.u32 %v2533_v52, %v7203_v51  ;;  %v1531_v29 = vsel %vm6895_vm5, %v5661_v8, %v1530_v57  ;;  %v2539_v30 = vrot.slane %v2537_v10, 5 }
  0xd0   : > { %8081 = vst [vmem:[#allocation5_spill] sm:$0xff] %v7171_v1  ;;  %v7182_v9 = vpop.f32.mrf.mxu1  ;;  %v1534_v46 = vsel %vm6895_vm5, %v1532_v23, %v1533_v24  ;;  %v2542_v52 = vshrl.u32 %v5888_v32, 16  ;;  %v2555_v57 = vshrl.u32 %v5889_v34, 16  ;;  %v1649_v63 = vunpack.c.l.b16 %v1531_v29  ;;  %v1401_v24 = vld [vmem:[%s6747_s10 + $0x70] sm:$0xf] }
  0xd1   : > { %v2535_v38 = vrot.slane %v2534_v15, 4  ;;  %v894_v8 = vrot.slane %v892_v40, 4  ;;  %v897_v10 = vrot.slane %v895_v42, 5  ;;  %v1650_v15 = vunpack.c.l.b16 %v1534_v46  ;;  %v5890_v34 = vld [vmem:[%s6747_s10 + $0x80] sm:$0x1] }
  0xd2   : > { %v7189_v17 = vpop.f32.mrf.mxu0  ;;  %v907_v23 = vrot.slane %v905_v26, 4  ;;  %v2544_v25 = vrot.slane %v2542_v52, 4  ;;  %v2557_v29 = vrot.slane %v2555_v57, 4  ;;  %v911_v42 = vshll.u32 %v653_v19, 16  ;;  %v1400_v26 = vld [vmem:[%s6747_s10 + $0x6c] sm:$0xe] }
  0xd3   : > { %v2540_v7 = vsel %vm6891_vm4, %v2535_v38, %v2539_v30  ;;  %v898_v30 = vor.u32 %v897_v10, %v894_v8  ;;  %v1537_v44 = vrot.slane %v1401_v24, 5  ;;  %v1673_v49 = vpack.c.b16 %v1650_v15, %v1649_v63  ;;  %v1402_v8 = vld [vmem:[%s6747_s10 + $0x74] sm:$0x1]  ;;  %v654_v15 = vld [vmem:[%s6747_s10 + $0x78] sm:$0xf] }
  0xd4   : > { %v2775_v32 = vunpack.c.l.b16 %v2540_v7  ;;  %v908_v40 = vor.u32 %v907_v23, %v7244_v20  ;;  %v2548_v52 = vor.u32 %v2547_v14, %v2544_v25  ;;  %v913_v23 = vrot.slane %v911_v42, 5  ;;  %v5891_v42 = vld [vmem:[%s6747_s10 + $0x84] sm:$0xf] }
  0xd5   : > { %v5662_v24 = vrot.slane %v1400_v26, 9  ;;  %v1539_v63 = vrot.slane %v1537_v44, 4  ;;  %v1540_v25 = vrot.slane %v1402_v8, 5 }
  0xd6   : > { %v7205_v54 = vpop.f32.mrf.mxu2  ;;  %v909_v19 = vrot.slane %v908_v40, 4  ;;  %v2549_v14 = vrot.slane %v2548_v52, 4  ;;  %v919_v40 = vshll.u32 %v654_v15, 16 }
  0xd7   : > { %v7208_v59 = vpop.f32.mrf.mxu3 }
  0xd8   : > { %8082 = vst [vmem:[#allocation6_spill] sm:$0xff] %v7208_v59  ;;  %v7211_v0 = vpop.f32.mrf.mxu1  ;;  %v914_v52 = vsel %vm6891_vm4, %v909_v19, %v913_v23  ;;  %v2566_v23 = vshrl.u32 %v5891_v42, 16 }
  0xda   : > { %v7214_v13 = vpop.f32.mrf.mxu0 }
  0xdb   : > { %1263 = vmatmul.bf16.gmra.mxu1 %v1147_v61  ;;  %1788 = vmatmul.bf16.gmra.mxu2 %v1672_v62  ;;  %v1124_v62 = vunpack.c.l.b16 %v880_v27  ;;  %v7247_v27 = vrot.slane %v2551_v56, 5  ;;  %v2561_v56 = vshll.u32 %v5890_v34, 16  ;;  %v6530_v34 = vld [vmem:[%s8071_s1 + $0x1d0] sm:$0xff] }
  0xdc   : > { %2167 = vmatmul.bf16.gmra.mxu3 %v6471_v2 }
  0xdd   : > { %2913 = vmatmul.bf16.gmra.mxu0 %v2797_v3  ;;  %v2530_v3 = vsel %vm6891_vm4, %v2525_v35, %v7203_v51  ;;  %v1148_v38 = vpack.c.b16 %v1125_v5, %v1124_v62  ;;  %v2558_v55 = vor.u32 %v2557_v29, %v7247_v27  ;;  %v899_v5 = vrot.slane %v898_v30, 4  ;;  %4522 = vmatpush.bf16.msra.mxu3 %v6530_v34 }
  0xde   : > { %v7226_v43 = vpop.f32.mrf.mxu2  ;;  %v2774_v51 = vunpack.c.l.b16 %v2530_v3  ;;  %v6472_v3 = vld [vmem:[%s6747_s10 + $0x6c] sm:$0xff]  ;;  %v2554_v8 = vsel %vm6891_vm4, %v2549_v14, %v7247_v27 }
  0xdf   : > { %v7232_v50 = vpop.f32.mrf.mxu3  ;;  %v2559_v29 = vrot.slane %v2558_v55, 4  ;;  %v904_v30 = vsel %vm6891_vm4, %v899_v5, %v7244_v20  ;;  %v1538_v55 = vsel %vm6895_vm5, %v5662_v24, %v1537_v44  ;;  %v1541_v20 = vsel %vm6895_vm5, %v1539_v63, %v1540_v25  ;;  %v6498_v27 = vld [vmem:[%s8071_s1 + $0x150] sm:$0xff] }
  0xe0   : > { %8083 = vst [vmem:[#allocation7_spill] sm:$0xff] %v7232_v50  ;;  %v7234_v61 = vpop.f32.mrf.mxu1  ;;  %v2798_v7 = vpack.c.b16 %v2775_v32, %v2774_v51  ;;  %v2563_v51 = vrot.slane %v2561_v56, 5  ;;  %v655_v32 = vld [vmem:[%s6747_s10 + $0x7c] sm:$0xf]  ;;  %v921_v63 = vrot.slane %v919_v40, 5  ;;  %v6538_v25 = vld [vmem:[%s8071_s1 + $0x210] sm:$0xff]  ;;  %v1126_v14 = vunpack.c.l.b16 %v904_v30  ;;  %3397 = vmatpush.bf16.msra.mxu1 %v6498_v27 }
  0xe1   : > { %v925_v56 = vshll.u32 %v655_v32, 16  ;;  %5044 = vmatpush.bf16.msra.mxu0 %v6538_v25  ;;  %v5893_v40 = vld [vmem:[%s6747_s10 + $0x8c] sm:$0x1]  ;;  %v1403_v25 = vld [vmem:[%s6747_s10 + $0x78] sm:$0xe] }
  0xe2   : > { %v7236_v2 = vpop.f32.mrf.mxu0  ;;  %v2564_v5 = vsel %vm6891_vm4, %v2559_v29, %v2563_v51  ;;  %v1651_v29 = vunpack.c.l.b16 %v1538_v55  ;;  %v2585_v1 = vshll.u32 %v5893_v40, 16  ;;  %v5895_v40 = vld [vmem:[%s6747_s10 + $0x94] sm:$0xf] }
  0xe3   : > { %v7293_v51 = vrot.slane %v925_v56, 5 }
  0xe6   : > { %v7250_v35 = vpop.f32.mrf.mxu2 }
  0xe7   : > { %v7253_v46 = vpop.f32.mrf.mxu3 }
  0xe8   : > { %8084 = vst [vmem:[#allocation8_spill] sm:$0xff] %v7253_v46  ;;  %v1229_v57 = vpop.f32.mrf.mxu1 }
  0xe9   : > { %v1309_v62 = vadd.f32 %v1229_v57, %v7052_v12  ;;  %v6522_v12 = vld [vmem:[%s8071_s1 + $0x190] sm:$0xff]  ;;  %v929_v57 = vshrl.u32 %v655_v32, 16 }
  0xea   : > { %v7260_v10 = vpop.f32.mrf.mxu0  ;;  %3776 = vmatpush.bf16.msra.mxu2 %v6522_v12 }
  0xeb   : > { %1268 = vmatmul.bf16.gmra.mxu1 %v1148_v38  ;;  %1793 = vmatmul.bf16.gmra.mxu2 %v1673_v49  ;;  %v916_v38 = vshrl.u32 %v654_v15, 16  ;;  %v5892_v49 = vld [vmem:[%s6747_s10 + $0x88] sm:$0xf]  ;;  %v2569_v15 = vshll.u32 %v5891_v42, 16  ;;  %v931_v42 = vrot.slane %v929_v57, 4 }
  0xec   : > { %2172 = vmatmul.bf16.gmra.mxu3 %v6472_v3  ;;  %v2575_v44 = vshll.u32 %v5892_v49, 16  ;;  %v2579_v24 = vshrl.u32 %v5892_v49, 16  ;;  %v1127_v49 = vunpack.c.l.b16 %v914_v52 }
  0xed   : > { %2918 = vmatmul.bf16.gmra.mxu0 %v2798_v7  ;;  %v918_v34 = vrot.slane %v916_v38, 4  ;;  %v656_v38 = vld [vmem:[%s6747_s10 + $0x80] sm:$0x1]  ;;  %v2571_v46 = vrot.slane %v2569_v15, 5  ;;  %v932_v52 = vor.u32 %v931_v42, %v7293_v51  ;;  %v6473_v15 = vld [vmem:[%s6747_s10 + $0x78] sm:$0xff] }
  0xee   : > { %v1754_v26 = vpop.f32.mrf.mxu2  ;;  %v7298_v50 = vrot.slane %v2575_v44, 5  ;;  %v2581_v30 = vrot.slane %v2579_v24, 4  ;;  %v935_v57 = vshll.u32 %v656_v38, 16  ;;  %v1149_v27 = vpack.c.b16 %v1127_v49, %v1126_v14  ;;  %v657_v14 = vld [vmem:[%s6747_s10 + $0x84] sm:$0xf] }
  0xef   : > { %v1834_v3 = vadd.f32 %v1754_v26, %v1309_v62  ;;  %v2133_v7 = vpop.f32.mrf.mxu3  ;;  %v1652_v26 = vunpack.c.l.b16 %v1541_v20  ;;  %v922_v55 = vor.u32 %v921_v63, %v918_v34 }
  0xf0   : > { %v1231_v19 = vpop.f32.mrf.mxu1  ;;  %v2582_v24 = vor.u32 %v2581_v30, %v7298_v50  ;;  %v937_v49 = vrot.slane %v935_v57, 5 }
  0xf1   : > { %v2213_v32 = vadd.f32 %v2133_v7, %v1834_v3  ;;  %v1310_v62 = vadd.f32 %v1231_v19, %v7083_v48  ;;  %v2776_v48 = vunpack.c.l.b16 %v2554_v8  ;;  %v2777_v3 = vunpack.c.l.b16 %v2564_v5  ;;  %v1404_v7 = vld [vmem:[%s6747_s10 + $0x7c] sm:$0xf] }
  0xf2   : > { %v2881_v12 = vpop.f32.mrf.mxu0  ;;  %v2568_v19 = vrot.slane %v2566_v23, 4  ;;  %v1544_v20 = vrot.slane %v1404_v7, 5  ;;  %v1674_v59 = vpack.c.b16 %v1652_v26, %v1651_v29  ;;  %v923_v42 = vrot.slane %v922_v55, 4  ;;  %v658_v7 = vld [vmem:[%s6747_s10 + $0x88] sm:$0xf] }
  0xf3   : > { %v2799_v44 = vpack.c.b16 %v2777_v3, %v2776_v48  ;;  %v933_v29 = vrot.slane %v932_v52, 4  ;;  %v5663_v26 = vrot.slane %v1403_v25, 9  ;;  %v1547_v48 = vrot.slane %v1405_v22, 5  ;;  %v5894_v3 = vld [vmem:[%s6747_s10 + $0x90] sm:$0xf] }
  0xf4   : > { %v2572_v47 = vor.u32 %v2571_v46, %v2568_v19  ;;  %v1546_v38 = vrot.slane %v1544_v20, 4  ;;  %v2587_v46 = vrot.slane %v2585_v1, 5  ;;  %v7313_v19 = vadd.f32 %v7260_v10, %v2213_v32 }
  0xf5   : > { %v2583_v55 = vrot.slane %v2582_v24, 4  ;;  %v943_v52 = vshll.u32 %v657_v14, 16  ;;  %v928_v57 = vsel %vm6891_vm4, %v923_v42, %v7293_v51  ;;  %v953_v22 = vshrl.u32 %v658_v7, 16 }
  0xf6   : > { %v1756_v56 = vpop.f32.mrf.mxu2  ;;  %8085 = vst [vmem:[#allocation9_spill] sm:$0xff] %v7313_v19  ;;  %v2599_v10 = vshll.u32 %v5895_v40, 16  ;;  %v2603_v32 = vshrl.u32 %v5895_v40, 16  ;;  %v1545_v25 = vsel %vm6895_vm5, %v5663_v26, %v1544_v20  ;;  %v659_v20 = vld [vmem:[%s6747_s10 + $0x8c] sm:$0x1] }
  0xf7   : > { %v1835_v8 = vadd.f32 %v1756_v56, %v1310_v62  ;;  %v2135_v5 = vpop.f32.mrf.mxu3  ;;  %v940_v56 = vshrl.u32 %v657_v14, 16 }
  0xf8   : > { %v1234_v23 = vpop.f32.mrf.mxu1 }
  0xf9   : > { %v2214_v34 = vadd.f32 %v2135_v5, %v1835_v8  ;;  %v1311_v63 = vadd.f32 %v1234_v23, %v7111_v21  ;;  %v2573_v21 = vrot.slane %v2572_v47, 4  ;;  %v2590_v8 = vshrl.u32 %v5894_v3, 16 }
  0xfa   : > { %v7306_v62 = vpop.f32.mrf.mxu0  ;;  %v2593_v5 = vshll.u32 %v5894_v3, 16  ;;  %v938_v47 = vsel %vm6891_vm4, %v933_v29, %v937_v49  ;;  %v1548_v23 = vsel %vm6895_vm5, %v1546_v38, %v1547_v48  ;;  %v942_v24 = vrot.slane %v940_v56, 4 }
  0xfb   : > { %1273 = vmatmul.bf16.gmra.mxu1 %v1149_v27  ;;  %1798 = vmatmul.bf16.gmra.mxu2 %v1674_v59  ;;  %v7315_v30 = vadd.f32 %v2881_v12, %v2214_v34  ;;  %v949_v59 = vshll.u32 %v658_v7, 16  ;;  %v945_v34 = vrot.slane %v943_v52, 5  ;;  %v955_v49 = vrot.slane %v953_v22, 4 }
  0xfc   : > { %2177 = vmatmul.bf16.gmra.mxu3 %v6473_v15  ;;  %v2578_v15 = vsel %vm6891_vm4, %v2573_v21, %v7298_v50  ;;  %v2592_v26 = vrot.slane %v2590_v8, 4  ;;  %v2595_v38 = vrot.slane %v2593_v5, 5  ;;  %v7335_v50 = vrot.slane %v2599_v10, 5  ;;  %v1407_v21 = vld [vmem:[%s6747_s10 + $0x88] sm:$0xf] }
  0xfd   : > { %8086 = vst [vmem:[#allocation10_spill] sm:$0xff] %v7315_v30  ;;  %2923 = vmatmul.bf16.gmra.mxu0 %v2799_v44  ;;  %v2588_v44 = vsel %vm6891_vm4, %v2583_v55, %v2587_v46  ;;  %v7333_v29 = vrot.slane %v949_v59, 5  ;;  %v2605_v7 = vrot.slane %v2603_v32, 4  ;;  %v1128_v48 = vunpack.c.l.b16 %v928_v57  ;;  %v5896_v55 = vld [vmem:[%s6747_s10 + $0x98] sm:$0x1] }
  0xfe   : > { %v1759_v1 = vpop.f32.mrf.mxu2  ;;  %v1129_v46 = vunpack.c.l.b16 %v938_v47  ;;  %v1653_v3 = vunpack.c.l.b16 %v1545_v25  ;;  %v1654_v40 = vunpack.c.l.b16 %v1548_v23  ;;  %v2778_v56 = vunpack.c.l.b16 %v2578_v15  ;;  %v1408_v8 = vld [vmem:[%s6747_s10 + $0x8c] sm:$0x1]  ;;  %v6474_v15 = vld [vmem:[%s6747_s10 + $0x84] sm:$0xff] }
  0xff   : > { %v1836_v12 = vadd.f32 %v1759_v1, %v1311_v63  ;;  %v2138_v27 = vpop.f32.mrf.mxu3  ;;  %v959_v52 = vshll.u32 %v659_v20, 16  ;;  %v946_v59 = vor.u32 %v945_v34, %v942_v24  ;;  %v956_v22 = vor.u32 %v955_v49, %v7333_v29  ;;  %v1406_v1 = vld [vmem:[%s6747_s10 + $0x84] sm:$0xe]  ;;  %v660_v49 = vld [vmem:[%s6747_s10 + $0x90] sm:$0xf] }
 0x100   : > { %v1236_v51 = vpop.f32.mrf.mxu1  ;;  %v1551_v10 = vrot.slane %v1407_v21, 5  ;;  %v2606_v57 = vor.u32 %v2605_v7, %v7335_v50  ;;  %v2609_v32 = vshll.u32 %v5896_v55, 16  ;;  %v1150_v25 = vpack.c.b16 %v1129_v46, %v1128_v48  ;;  %v661_v46 = vld [vmem:[%s6747_s10 + $0x94] sm:$0xf] }
 0x101   : > { %v2215_v63 = vadd.f32 %v2138_v27, %v1836_v12  ;;  %v1312_v42 = vadd.f32 %v1236_v51, %v7137_v58  ;;  %v2779_v58 = vunpack.c.l.b16 %v2588_v44  ;;  %v2596_v12 = vor.u32 %v2595_v38, %v2592_v26 }
 0x102   : > { %v2886_v14 = vpop.f32.mrf.mxu0  ;;  %v1675_v23 = vpack.c.b16 %v1654_v40, %v1653_v3  ;;  %v961_v24 = vrot.slane %v959_v52, 5  ;;  %v5664_v34 = vrot.slane %v1406_v1, 9  ;;  %v1554_v20 = vrot.slane %v1408_v8, 5  ;;  %v6529_v52 = vld [vmem:[%s8071_s1 + $0x1c8] sm:$0xff] }
 0x103   : > { %v2800_v44 = vpack.c.b16 %v2779_v58, %v2778_v56  ;;  %v947_v26 = vrot.slane %v946_v59, 4  ;;  %v957_v38 = vrot.slane %v956_v22, 4  ;;  %v1553_v7 = vrot.slane %v1551_v10, 4  ;;  %v5898_v22 = vld [vmem:[%s6747_s10 + $0xa0] sm:$0xf]  ;;  %4523 = vmatpush.bf16.msra.mxu3 %v6529_v52 }
 0x104   : > { %v2607_v55 = vrot.slane %v2606_v57, 4  ;;  %v2611_v48 = vrot.slane %v2609_v32, 5  ;;  %v964_v3 = vshrl.u32 %v660_v49, 16  ;;  %v967_v40 = vshll.u32 %v660_v49, 16  ;;  %v6497_v49 = vld [vmem:[%s8071_s1 + $0x148] sm:$0xff] }
 0x105   : > { %v7350_v56 = vadd.f32 %v7306_v62, %v2215_v63  ;;  %v952_v59 = vsel %vm6891_vm4, %v947_v26, %v7333_v29  ;;  %v1552_v62 = vsel %vm6895_vm5, %v5664_v34, %v1551_v10  ;;  %v973_v63 = vshll.u32 %v661_v46, 16  ;;  %v6537_v26 = vld [vmem:[%s8071_s1 + $0x208] sm:$0xff]  ;;  %3398 = vmatpush.bf16.msra.mxu1 %v6497_v49 }
 0x106   : > { %v1761_v5 = vpop.f32.mrf.mxu2  ;;  %v962_v8 = vsel %vm6891_vm4, %v957_v38, %v961_v24  ;;  %v2612_v57 = vsel %vm6891_vm4, %v2607_v55, %v2611_v48  ;;  %v966_v32 = vrot.slane %v964_v3, 4  ;;  %v1130_v38 = vunpack.c.l.b16 %v952_v59  ;;  %5045 = vmatpush.bf16.msra.mxu0 %v6537_v26  ;;  %v1410_v3 = vld [vmem:[%s6747_s10 + $0x94] sm:$0xf] }
 0x107   : > { %v1837_v27 = vadd.f32 %v1761_v5, %v1312_v42  ;;  %v2140_v47 = vpop.f32.mrf.mxu3  ;;  %v2597_v42 = vrot.slane %v2596_v12, 4  ;;  %v1555_v5 = vsel %vm6895_vm5, %v1553_v7, %v1554_v20  ;;  %v7378_v20 = vrot.slane %v973_v63, 5 }
 0x108   : > { %v1239_v51 = vpop.f32.mrf.mxu1  ;;  %v1131_v7 = vunpack.c.l.b16 %v962_v8  ;;  %v1656_v55 = vunpack.c.l.b16 %v1555_v5 }
 0x109   : > { %v2216_v30 = vadd.f32 %v2140_v47, %v1837_v27  ;;  %v1313_v19 = vadd.f32 %v1239_v51, %v7157_v37  ;;  %v6521_v37 = vld [vmem:[%s8071_s1 + $0x188] sm:$0xff]  ;;  %v2602_v12 = vsel %vm6891_vm4, %v2597_v42, %v7335_v50  ;;  %v969_v27 = vrot.slane %v967_v40, 5 }
 0x10a   : > { %v7346_v21 = vpop.f32.mrf.mxu0  ;;  %3777 = vmatpush.bf16.msra.mxu2 %v6521_v37  ;;  %v1655_v42 = vunpack.c.l.b16 %v1552_v62  ;;  %v2780_v48 = vunpack.c.l.b16 %v2602_v12 }
 0x10b   : > { %1278 = vmatmul.bf16.gmra.mxu1 %v1150_v25  ;;  %1803 = vmatmul.bf16.gmra.mxu2 %v1675_v23  ;;  %v7352_v58 = vadd.f32 %v2886_v14, %v2216_v30  ;;  %v977_v30 = vshrl.u32 %v661_v46, 16  ;;  %v5897_v14 = vld [vmem:[%s6747_s10 + $0x9c] sm:$0xf]  ;;  %v662_v25 = vld [vmem:[%s6747_s10 + $0x98] sm:$0x1] }
 0x10c   : > { %2182 = vmatmul.bf16.gmra.mxu3 %v6474_v15  ;;  %v2614_v23 = vshrl.u32 %v5897_v14, 16  ;;  %v2617_v51 = vshll.u32 %v5897_v14, 16  ;;  %v2623_v15 = vshll.u32 %v5898_v22, 16  ;;  %v983_v46 = vshll.u32 %v662_v25, 16  ;;  %v1409_v14 = vld [vmem:[%s6747_s10 + $0x90] sm:$0xe] }
 0x10d   : > { %2928 = vmatmul.bf16.gmra.mxu0 %v2800_v44  ;;  %v2627_v44 = vshrl.u32 %v5898_v22, 16  ;;  %v5899_v22 = vld [vmem:[%s6747_s10 + $0xa4] sm:$0x1]  ;;  %v1676_v8 = vpack.c.b16 %v1656_v55, %v1655_v42  ;;  %v6475_v25 = vld [vmem:[%s6747_s10 + $0x90] sm:$0xff]  ;;  %v664_v55 = vld [vmem:[%s6747_s10 + $0xa0] sm:$0xf] }
 0x10e   : > { %v1764_v1 = vpop.f32.mrf.mxu2  ;;  %v2616_v40 = vrot.slane %v2614_v23, 4  ;;  %v2619_v37 = vrot.slane %v2617_v51, 5  ;;  %v7387_v52 = vrot.slane %v2623_v15, 5  ;;  %v1411_v23 = vld [vmem:[%s6747_s10 + $0x98] sm:$0x1]  ;;  %v5665_v51 = vrot.slane %v1409_v14, 9 }
 0x10f   : > { %v1838_v29 = vadd.f32 %v1764_v1, %v1313_v19  ;;  %v2143_v10 = vpop.f32.mrf.mxu3  ;;  %v979_v19 = vrot.slane %v977_v30, 4  ;;  %v2629_v63 = vrot.slane %v2627_v44, 4  ;;  %v970_v30 = vor.u32 %v969_v27, %v966_v32 }
 0x110   : > { %v1241_v47 = vpop.f32.mrf.mxu1  ;;  %v1151_v1 = vpack.c.b16 %v1131_v7, %v1130_v38  ;;  %v2620_v32 = vor.u32 %v2619_v37, %v2616_v40  ;;  %v2633_v15 = vshll.u32 %v5899_v22, 16  ;;  %v663_v38 = vld [vmem:[%s6747_s10 + $0x9c] sm:$0xf]  ;;  %v1561_v42 = vrot.slane %v1411_v23, 5 }
 0x111   : > { %v2217_v24 = vadd.f32 %v2143_v10, %v1838_v29  ;;  %v1314_v34 = vadd.f32 %v1241_v47, %v7189_v17  ;;  %v2781_v17 = vunpack.c.l.b16 %v2612_v57  ;;  %v980_v59 = vor.u32 %v979_v19, %v7378_v20 }
 0x112   : > { %v2891_v50 = vpop.f32.mrf.mxu0  ;;  %v985_v10 = vrot.slane %v983_v46, 5  ;;  %v1558_v57 = vrot.slane %v1410_v3, 5  ;;  %v2630_v27 = vor.u32 %v2629_v63, %v7387_v52  ;;  %v2621_v3 = vrot.slane %v2620_v32, 4  ;;  %v5901_v63 = vld [vmem:[%s6747_s10 + $0xac] sm:$0xf] }
 0x113   : > { %v2801_v29 = vpack.c.b16 %v2781_v17, %v2780_v48  ;;  %v981_v26 = vrot.slane %v980_v59, 4  ;;  %v5900_v48 = vld [vmem:[%s6747_s10 + $0xa8] sm:$0xf]  ;;  %v7402_v17 = vadd.f32 %v7346_v21, %v2217_v24  ;;  %v2635_v37 = vrot.slane %v2633_v15, 5  ;;  %v665_v15 = vld [vmem:[%s6747_s10 + $0xa4] sm:$0x1] }
 0x114   : > { %v1560_v7 = vrot.slane %v1558_v57, 4  ;;  %v2631_v40 = vrot.slane %v2630_v27, 4  ;;  %v988_v21 = vshrl.u32 %v663_v38, 16  ;;  %v991_v24 = vshll.u32 %v663_v38, 16 }
 0x115   : > { %v986_v59 = vsel %vm6891_vm4, %v981_v26, %v985_v10  ;;  %v997_v14 = vshll.u32 %v664_v55, 16  ;;  %v1001_v22 = vshrl.u32 %v664_v55, 16  ;;  %v2626_v10 = vsel %vm6891_vm4, %v2621_v3, %v7387_v52  ;;  %v1413_v52 = vld [vmem:[%s6747_s10 + $0xa0] sm:$0xf] }
 0x116   : > { %v1766_v62 = vpop.f32.mrf.mxu2  ;;  %v2636_v23 = vsel %vm6891_vm4, %v2631_v40, %v2635_v37  ;;  %v2782_v40 = vunpack.c.l.b16 %v2626_v10  ;;  %v1007_v37 = vshll.u32 %v665_v15, 16 }
 0x117   : > { %v1839_v5 = vadd.f32 %v1766_v62, %v1314_v34  ;;  %v2145_v12 = vpop.f32.mrf.mxu3  ;;  %v971_v34 = vrot.slane %v970_v30, 4  ;;  %v2638_v62 = vshrl.u32 %v5900_v48, 16  ;;  %v1003_v26 = vrot.slane %v1001_v22, 4 }
 0x118   : > { %v1244_v47 = vpop.f32.mrf.mxu1  ;;  %v1009_v10 = vrot.slane %v1007_v37, 5  ;;  %v6528_v37 = vld [vmem:[%s8071_s1 + $0x1c0] sm:$0xff] }
 0x119   : > { %v2218_v44 = vadd.f32 %v2145_v12, %v1839_v5  ;;  %v1315_v19 = vadd.f32 %v1244_v47, %v7214_v13  ;;  %v1559_v13 = vsel %vm6895_vm5, %v5665_v51, %v1558_v57  ;;  %v976_v30 = vsel %vm6891_vm4, %v971_v34, %v7378_v20  ;;  %4524 = vmatpush.bf16.msra.mxu3 %v6528_v37 }
 0x11a   : > { %v7396_v49 = vpop.f32.mrf.mxu0  ;;  %v1562_v12 = vsel %vm6895_vm5, %v1560_v7, %v1561_v42  ;;  %v2651_v57 = vshrl.u32 %v5901_v63, 16  ;;  %v1132_v20 = vunpack.c.l.b16 %v976_v30  ;;  %v7423_v34 = vrot.slane %v997_v14, 5 }
 0x11b   : > { %1283 = vmatmul.bf16.gmra.mxu1 %v1151_v1  ;;  %1808 = vmatmul.bf16.gmra.mxu2 %v1676_v8  ;;  %v7404_v46 = vadd.f32 %v2891_v50, %v2218_v44  ;;  %v2641_v1 = vshll.u32 %v5900_v48, 16  ;;  %v990_v44 = vrot.slane %v988_v21, 4  ;;  %v2640_v38 = vrot.slane %v2638_v62, 4  ;;  %v5902_v48 = vld [vmem:[%s6747_s10 + $0xb0] sm:$0x1] }
 0x11c   : > { %2187 = vmatmul.bf16.gmra.mxu3 %v6475_v25  ;;  %v1657_v25 = vunpack.c.l.b16 %v1559_v13  ;;  %v1133_v42 = vunpack.c.l.b16 %v986_v59  ;;  %v1658_v55 = vunpack.c.l.b16 %v1562_v12  ;;  %v2653_v3 = vrot.slane %v2651_v57, 4  ;;  %v6476_v57 = vld [vmem:[%s6747_s10 + $0x9c] sm:$0xff] }
 0x11d   : > { %2933 = vmatmul.bf16.gmra.mxu0 %v2801_v29  ;;  %v2647_v29 = vshll.u32 %v5901_v63, 16  ;;  %v2643_v7 = vrot.slane %v2641_v1, 5  ;;  %v1004_v21 = vor.u32 %v1003_v26, %v7423_v34  ;;  %v1565_v14 = vrot.slane %v1413_v52, 5 }
 0x11e   : > { %v1769_v50 = vpop.f32.mrf.mxu2  ;;  %v2657_v59 = vshll.u32 %v5902_v48, 16 }
 0x11f   : > { %v1840_v8 = vadd.f32 %v1769_v50, %v1315_v19  ;;  %v2148_v5 = vpop.f32.mrf.mxu3  ;;  %v993_v19 = vrot.slane %v991_v24, 5  ;;  %v7427_v13 = vrot.slane %v2647_v29, 5  ;;  %v1412_v24 = vld [vmem:[%s6747_s10 + $0x9c] sm:$0xe]  ;;  %v1414_v50 = vld [vmem:[%s6747_s10 + $0xa4] sm:$0x1]  ;;  %v2644_v22 = vor.u32 %v2643_v7, %v2640_v38 }
 0x120   : > { %v1246_v47 = vpop.f32.mrf.mxu1  ;;  %v5666_v26 = vrot.slane %v1412_v24, 9  ;;  %v1568_v52 = vrot.slane %v1414_v50, 5  ;;  %v667_v38 = vld [vmem:[%s6747_s10 + $0xac] sm:$0xf]  ;;  %v1005_v7 = vrot.slane %v1004_v21, 4  ;;  %v1567_v48 = vrot.slane %v1565_v14, 4 }
 0x121   : > { %v2219_v51 = vadd.f32 %v2148_v5, %v1840_v8  ;;  %v1316_v32 = vadd.f32 %v1246_v47, %v7236_v2  ;;  %v2783_v2 = vunpack.c.l.b16 %v2636_v23  ;;  %v994_v63 = vor.u32 %v993_v19, %v990_v44  ;;  %v666_v23 = vld [vmem:[%s6747_s10 + $0xa8] sm:$0xf] }
 0x122   : > { %v2896_v27 = vpop.f32.mrf.mxu0  ;;  %v1152_v8 = vpack.c.b16 %v1133_v42, %v1132_v20  ;;  %v1677_v5 = vpack.c.b16 %v1658_v55, %v1657_v25  ;;  %v2654_v12 = vor.u32 %v2653_v3, %v7427_v13  ;;  %v1012_v25 = vshrl.u32 %v666_v23, 16 }
 0x123   : > { %v2802_v47 = vpack.c.b16 %v2783_v2, %v2782_v40  ;;  %v995_v19 = vrot.slane %v994_v63, 4  ;;  %v7439_v42 = vadd.f32 %v7396_v49, %v2219_v51  ;;  %v1015_v3 = vshll.u32 %v666_v23, 16  ;;  %v6520_v2 = vld [vmem:[%s8071_s1 + $0x180] sm:$0xff] }
 0x124   : > { %v2655_v20 = vrot.slane %v2654_v12, 4  ;;  %v1021_v40 = vshll.u32 %v667_v38, 16  ;;  %v1566_v49 = vsel %vm6895_vm5, %v5666_v26, %v1565_v14  ;;  %v1025_v51 = vshrl.u32 %v667_v38, 16  ;;  %3778 = vmatpush.bf16.msra.mxu2 %v6520_v2 }
 0x125   : > { %v1000_v24 = vsel %vm6891_vm4, %v995_v19, %v7423_v34  ;;  %v1010_v50 = vsel %vm6891_vm4, %v1005_v7, %v1009_v10  ;;  %v1017_v12 = vrot.slane %v1015_v3, 5 }
 0x126   : > { %v1771_v30 = vpop.f32.mrf.mxu2  ;;  %v1134_v38 = vunpack.c.l.b16 %v1000_v24  ;;  %v1135_v7 = vunpack.c.l.b16 %v1010_v50 }
 0x127   : > { %v1841_v62 = vadd.f32 %v1771_v30, %v1316_v32  ;;  %v2150_v1 = vpop.f32.mrf.mxu3  ;;  %v2645_v32 = vrot.slane %v2644_v22, 4  ;;  %v2659_v30 = vrot.slane %v2657_v59, 5  ;;  %v1569_v22 = vsel %vm6895_vm5, %v1567_v48, %v1568_v52  ;;  %v5904_v59 = vld [vmem:[%s6747_s10 + $0xb8] sm:$0xf]  ;;  %v6536_v52 = vld [vmem:[%s8071_s1 + $0x200] sm:$0xff] }
 0x128   : > { %v1249_v29 = vpop.f32.mrf.mxu1  ;;  %v2671_v19 = vshll.u32 %v5904_v59, 16  ;;  %v2675_v26 = vshrl.u32 %v5904_v59, 16  ;;  %v1659_v48 = vunpack.c.l.b16 %v1566_v49  ;;  %5046 = vmatpush.bf16.msra.mxu0 %v6536_v52  ;;  %v1153_v50 = vpack.c.b16 %v1135_v7, %v1134_v38 }
 0x129   : > { %v2220_v15 = vadd.f32 %v2150_v1, %v1841_v62  ;;  %v1317_v63 = vadd.f32 %v1249_v29, %v7049_v6  ;;  %v2650_v14 = vsel %vm6891_vm4, %v2645_v32, %v7427_v13  ;;  %v2660_v1 = vsel %vm6891_vm4, %v2655_v20, %v2659_v30  ;;  %v6496_v13 = vld [vmem:[%s8071_s1 + $0x140] sm:$0xff] }
 0x12a   : > { %v7435_v44 = vpop.f32.mrf.mxu0  ;;  %v7467_v29 = vrot.slane %v1021_v40, 5  ;;  %v1660_v32 = vunpack.c.l.b16 %v1569_v22  ;;  %v2784_v30 = vunpack.c.l.b16 %v2650_v14  ;;  %v2785_v20 = vunpack.c.l.b16 %v2660_v1  ;;  %3399 = vmatpush.bf16.msra.mxu1 %v6496_v13  ;;  %v1416_v40 = vld [vmem:[%s6747_s10 + $0xac] sm:$0xf]  ;;  %v5905_v22 = vld [vmem:[%s6747_s10 + $0xbc] sm:$0x1] }
 0x12b   : > { %1288 = vmatmul.bf16.gmra.mxu1 %v1152_v8  ;;  %1813 = vmatmul.bf16.gmra.mxu2 %v1677_v5  ;;  %v7441_v55 = vadd.f32 %v2896_v27, %v2220_v15  ;;  %v5903_v27 = vld [vmem:[%s6747_s10 + $0xb4] sm:$0xf]  ;;  %v1014_v8 = vrot.slane %v1012_v25, 4  ;;  %v668_v5 = vld [vmem:[%s6747_s10 + $0xb0] sm:$0x1]  ;;  %v1027_v15 = vrot.slane %v1025_v51, 4 }
 0x12c   : > { %2192 = vmatmul.bf16.gmra.mxu3 %v6476_v57  ;;  %v2662_v57 = vshrl.u32 %v5903_v27, 16  ;;  %v1031_v3 = vshll.u32 %v668_v5, 16  ;;  %v2677_v49 = vrot.slane %v2675_v26, 4  ;;  %v2803_v14 = vpack.c.b16 %v2785_v20, %v2784_v30  ;;  %v6477_v5 = vld [vmem:[%s6747_s10 + $0xa8] sm:$0xff] }
 0x12d   : > { %2938 = vmatmul.bf16.gmra.mxu0 %v2802_v47  ;;  %v2665_v47 = vshll.u32 %v5903_v27, 16  ;;  %v1018_v25 = vor.u32 %v1017_v12, %v1014_v8  ;;  %v1028_v51 = vor.u32 %v1027_v15, %v7467_v29  ;;  %v1415_v27 = vld [vmem:[%s6747_s10 + $0xa8] sm:$0xe]  ;;  %v1572_v1 = vrot.slane %v1416_v40, 5  ;;  %v1417_v12 = vld [vmem:[%s6747_s10 + $0xb0] sm:$0x1] }
 0x12e   : > { %v1774_v21 = vpop.f32.mrf.mxu2  ;;  %v2664_v2 = vrot.slane %v2662_v57, 4  ;;  %v5667_v57 = vrot.slane %v1415_v27, 9  ;;  %v2681_v52 = vshll.u32 %v5905_v22, 16  ;;  %v1575_v7 = vrot.slane %v1417_v12, 5 }
 0x12f   : > { %v1842_v6 = vadd.f32 %v1774_v21, %v1317_v63  ;;  %v2153_v62 = vpop.f32.mrf.mxu3  ;;  %v2667_v37 = vrot.slane %v2665_v47, 5  ;;  %v7479_v21 = vrot.slane %v2671_v19, 5  ;;  %v1029_v26 = vrot.slane %v1028_v51, 4 }
 0x130   : > { %v1251_v34 = vpop.f32.mrf.mxu1  ;;  %v1574_v38 = vrot.slane %v1572_v1, 4 }
 0x131   : > { %v2221_v10 = vadd.f32 %v2153_v62, %v1842_v6  ;;  %v1318_v63 = vadd.f32 %v1251_v34, %v7081_v45  ;;  %v1678_v62 = vpack.c.b16 %v1660_v32, %v1659_v48  ;;  %v1019_v45 = vrot.slane %v1018_v25, 4  ;;  %v669_v48 = vld [vmem:[%s6747_s10 + $0xb4] sm:$0xf]  ;;  %v670_v32 = vld [vmem:[%s6747_s10 + $0xb8] sm:$0xf] }
 0x132   : > { %v2901_v23 = vpop.f32.mrf.mxu0  ;;  %v1033_v34 = vrot.slane %v1031_v3, 5  ;;  %v2668_v47 = vor.u32 %v2667_v37, %v2664_v2  ;;  %v2678_v13 = vor.u32 %v2677_v49, %v7479_v21  ;;  %v1573_v3 = vsel %vm6895_vm5, %v5667_v57, %v1572_v1  ;;  %v5906_v2 = vld [vmem:[%s6747_s10 + $0xc0] sm:$0xf] }
 0x133   : > { %v7488_v30 = vadd.f32 %v7435_v44, %v2221_v10  ;;  %v1024_v25 = vsel %vm6891_vm4, %v1019_v45, %v7467_v29  ;;  %v2683_v10 = vrot.slane %v2681_v52, 5  ;;  %v1036_v27 = vshrl.u32 %v669_v48, 16 }
 0x134   : > { %v2669_v40 = vrot.slane %v2668_v47, 4  ;;  %v2679_v44 = vrot.slane %v2678_v13, 4  ;;  %v1039_v49 = vshll.u32 %v669_v48, 16  ;;  %v1136_v12 = vunpack.c.l.b16 %v1024_v25  ;;  %v671_v48 = vld [vmem:[%s6747_s10 + $0xbc] sm:$0x1] }
 0x136   : > { %v1776_v24 = vpop.f32.mrf.mxu2  ;;  %v2674_v1 = vsel %vm6891_vm4, %v2669_v40, %v7479_v21  ;;  %v2684_v47 = vsel %vm6891_vm4, %v2679_v44, %v2683_v10  ;;  %v1419_v40 = vld [vmem:[%s6747_s10 + $0xb8] sm:$0xf]  ;;  %v5908_v44 = vld [vmem:[%s6747_s10 + $0xc8] sm:$0x1] }
 0x137   : > { %v1843_v59 = vadd.f32 %v1776_v24, %v1318_v63  ;;  %v2155_v6 = vpop.f32.mrf.mxu3  ;;  %v1034_v63 = vsel %vm6891_vm4, %v1029_v26, %v1033_v34  ;;  %v1045_v24 = vshll.u32 %v670_v32, 16  ;;  %v1041_v26 = vrot.slane %v1039_v49, 5 }
 0x138   : > { %v1254_v8 = vpop.f32.mrf.mxu1  ;;  %v1137_v57 = vunpack.c.l.b16 %v1034_v63  ;;  %v1055_v49 = vshll.u32 %v671_v48, 16 }
 0x139   : > { %v2222_v15 = vadd.f32 %v2155_v6, %v1843_v59  ;;  %v1319_v37 = vadd.f32 %v1254_v8, %v7108_v18  ;;  %v1576_v59 = vsel %vm6895_vm5, %v1574_v38, %v1575_v7  ;;  %v2686_v6 = vshrl.u32 %v5906_v2, 16 }
 0x13a   : > { %v2904_v19 = vpop.f32.mrf.mxu0  ;;  %v1661_v18 = vunpack.c.l.b16 %v1573_v3  ;;  %v7509_v13 = vrot.slane %v1045_v24, 5  ;;  %v1662_v38 = vunpack.c.l.b16 %v1576_v59  ;;  %v2786_v7 = vunpack.c.l.b16 %v2674_v1  ;;  %v6478_v1 = vld [vmem:[%s6747_s10 + $0xb4] sm:$0xff] }
 0x13b   : > { %1293 = vmatmul.bf16.gmra.mxu1 %v1153_v50  ;;  %1818 = vmatmul.bf16.gmra.mxu2 %v1678_v62  ;;  %v7490_v20 = vadd.f32 %v2901_v23, %v2222_v15  ;;  %v5907_v23 = vld [vmem:[%s6747_s10 + $0xc4] sm:$0xf]  ;;  %v1049_v50 = vshrl.u32 %v670_v32, 16  ;;  %v2689_v62 = vshll.u32 %v5906_v2, 16  ;;  %v1038_v15 = vrot.slane %v1036_v27, 4 }
 0x13c   : > { %2197 = vmatmul.bf16.gmra.mxu3 %v6477_v5  ;;  %v2695_v8 = vshll.u32 %v5907_v23, 16  ;;  %v2699_v5 = vshrl.u32 %v5907_v23, 16  ;;  %v2688_v21 = vrot.slane %v2686_v6, 4  ;;  %v2787_v3 = vunpack.c.l.b16 %v2684_v47 }
 0x13d   : > { %2943 = vmatmul.bf16.gmra.mxu0 %v2803_v14  ;;  %v1051_v52 = vrot.slane %v1049_v50, 4  ;;  %v2691_v32 = vrot.slane %v2689_v62, 5  ;;  %v1154_v23 = vpack.c.b16 %v1137_v57, %v1136_v12  ;;  %v1579_v59 = vrot.slane %v1419_v40, 5 }
 0x13e   : > { %v1779_v51 = vpop.f32.mrf.mxu2  ;;  %v2697_v2 = vrot.slane %v2695_v8, 5  ;;  %v2701_v25 = vrot.slane %v2699_v5, 4  ;;  %v1420_v8 = vld [vmem:[%s6747_s10 + $0xbc] sm:$0x1]  ;;  %v1057_v47 = vrot.slane %v1055_v49, 5 }
 0x13f   : > { %v1844_v22 = vadd.f32 %v1779_v51, %v1319_v37  ;;  %v2158_v29 = vpop.f32.mrf.mxu3  ;;  %v1042_v51 = vor.u32 %v1041_v26, %v1038_v15  ;;  %v1052_v27 = vor.u32 %v1051_v52, %v7509_v13  ;;  %v2692_v6 = vor.u32 %v2691_v32, %v2688_v21  ;;  %v6213_v21 = vld [vmem:[%s6747_s10 + $0x18] sm:$0xf] }
 0x140   : > { %v1256_v14 = vpop.f32.mrf.mxu1  ;;  %v2702_v5 = vor.u32 %v2701_v25, %v2697_v2  ;;  %v1582_v26 = vrot.slane %v1420_v8, 5  ;;  %v3976_v49 = vshll.u32 %v6213_v21, 16 }
 0x141   : > { %v2223_v45 = vadd.f32 %v2158_v29, %v1844_v22  ;;  %v1320_v63 = vadd.f32 %v1256_v14, %v7135_v53  ;;  %v1679_v22 = vpack.c.b16 %v1662_v38, %v1661_v18  ;;  %v1418_v29 = vld [vmem:[%s6747_s10 + $0xb4] sm:$0xe]  ;;  %v2705_v53 = vshll.u32 %v5908_v44, 16 }
 0x142   : > { %v2906_v34 = vpop.f32.mrf.mxu0  ;;  %v1043_v12 = vrot.slane %v1042_v51, 4  ;;  %v1053_v57 = vrot.slane %v1052_v27, 4  ;;  %v5668_v15 = vrot.slane %v1418_v29, 9  ;;  %v1581_v18 = vrot.slane %v1579_v59, 4 }
 0x143   : > { %v7513_v37 = vadd.f32 %v2904_v19, %v2223_v45  ;;  %v2804_v19 = vpack.c.b16 %v2787_v3, %v2786_v7  ;;  %v2693_v52 = vrot.slane %v2692_v6, 4  ;;  %v2703_v7 = vrot.slane %v2702_v5, 4  ;;  %v6214_v3 = vld [vmem:[%s6747_s10 + $0x1c] sm:$0xf]  ;;  %v5958_v5 = vld [vmem:[%s6747_s10 + $0x10] sm:$0xf] }
 0x144   : > { %v2707_v48 = vrot.slane %v2705_v53, 5  ;;  %v1048_v25 = vsel %vm6891_vm4, %v1043_v12, %v7509_v13  ;;  %v3973_v51 = vshrl.u32 %v6213_v21, 16  ;;  %v3121_v21 = vrot.slane %v5958_v5, 5 }
 0x146   : > { %v1781_v10 = vpop.f32.mrf.mxu2  ;;  %v2708_v13 = vsel %vm6891_vm4, %v2703_v7, %v2707_v48  ;;  %v3975_v53 = vrot.slane %v3973_v51, 4  ;;  %v6309_v51 = vld [vmem:[%s6747_s10 + $0x18] sm:$0xe] }
 0x147   : > { %v1845_v24 = vadd.f32 %v1781_v10, %v1320_v63  ;;  %v2160_v50 = vpop.f32.mrf.mxu3  ;;  %v1058_v63 = vsel %vm6891_vm4, %v1053_v57, %v1057_v47  ;;  %v2789_v8 = vunpack.c.l.b16 %v2708_v13 }
 0x148   : > { %v1259_v62 = vpop.f32.mrf.mxu1  ;;  %v1139_v6 = vunpack.c.l.b16 %v1058_v63 }
 0x149   : > { %v2224_v14 = vadd.f32 %v2160_v50, %v1845_v24  ;;  %v1321_v32 = vadd.f32 %v1259_v62, %v7152_v28  ;;  %v2698_v28 = vsel %vm6891_vm4, %v2693_v52, %v2697_v2  ;;  %v3982_v24 = vshll.u32 %v6214_v3, 16 }
 0x14a   : > { %v2909_v45 = vpop.f32.mrf.mxu0  ;;  %v3986_v50 = vshrl.u32 %v6214_v3, 16  ;;  %v6479_v3 = vld [vmem:[%s6747_s10 + $0xc0] sm:$0xff] }
 0x14b   : > { %1298 = vmatmul.bf16.gmra.mxu1 %v1154_v23  ;;  %1823 = vmatmul.bf16.gmra.mxu2 %v1679_v22  ;;  %v7521_v38 = vadd.f32 %v2906_v34, %v2224_v14  ;;  %v1580_v34 = vsel %vm6895_vm5, %v5668_v15, %v1579_v59  ;;  %v1583_v23 = vsel %vm6895_vm5, %v1581_v18, %v1582_v26  ;;  %v1138_v59 = vunpack.c.l.b16 %v1048_v25  ;;  %v6215_v15 = vld [vmem:[%s6747_s10 + $0x20] sm:$0x1]  ;;  %v6310_v26 = vld [vmem:[%s6747_s10 + $0x1c] sm:$0xf]  ;;  %v5957_v25 = vld [vmem:[%s6747_s10 + $0xc] sm:$0xe] }
 0x14c   : > { %2202 = vmatmul.bf16.gmra.mxu3 %v6478_v1  ;;  %v1663_v62 = vunpack.c.l.b16 %v1580_v34  ;;  %v1664_v1 = vunpack.c.l.b16 %v1583_v23  ;;  %v3978_v14 = vrot.slane %v3976_v49, 5  ;;  %v7542_v12 = vrot.slane %v3982_v24, 5  ;;  %v5959_v23 = vld [vmem:[%s6747_s10 + $0x14] sm:$0x1]  ;;  %v6216_v24 = vld [vmem:[%s6747_s10 + $0x24] sm:$0xf] }
 0x14d   : > { %2948 = vmatmul.bf16.gmra.mxu0 %v2804_v19  ;;  %v2788_v19 = vunpack.c.l.b16 %v2698_v28  ;;  %v3988_v57 = vrot.slane %v3986_v50, 4  ;;  %v3992_v34 = vshll.u32 %v6215_v15, 16  ;;  %v4768_v28 = vrot.slane %v6310_v26, 5  ;;  %v6217_v50 = vld [vmem:[%s6747_s10 + $0x28] sm:$0xf] }
 0x14e   : > { %v1784_v40 = vpop.f32.mrf.mxu2  ;;  %v1680_v48 = vpack.c.b16 %v1664_v1, %v1663_v62  ;;  %v3979_v63 = vor.u32 %v3978_v14, %v3975_v53  ;;  %v6005_v13 = vrot.slane %v5957_v25, 9  ;;  %v3123_v49 = vrot.slane %v3121_v21, 4 }
 0x14f   : > { %v1846_v44 = vadd.f32 %v1784_v40, %v1321_v32  ;;  %v2163_v10 = vpop.f32.mrf.mxu3  ;;  %v2805_v40 = vpack.c.b16 %v2789_v8, %v2788_v19  ;;  %v3994_v1 = vrot.slane %v3992_v34, 5  ;;  %v6357_v8 = vrot.slane %v6309_v51, 9  ;;  %v6218_v51 = vld [vmem:[%s6747_s10 + $0x2c] sm:$0x1] }
 0x150   : > { %v1261_v27 = vpop.f32.mrf.mxu1  ;;  %v4770_v5 = vrot.slane %v4768_v28, 4  ;;  %v4006_v15 = vshll.u32 %v6217_v50, 16 }
 0x151   : > { %v2225_v22 = vadd.f32 %v2163_v10, %v1846_v44  ;;  %v1322_v47 = vadd.f32 %v1261_v27, %v7182_v9  ;;  %v3989_v9 = vor.u32 %v3988_v57, %v7542_v12  ;;  %v6311_v27 = vld [vmem:[%s6747_s10 + $0x20] sm:$0x1]  ;;  %v3997_v57 = vshrl.u32 %v6216_v24, 16 }
 0x152   : > { %v2911_v29 = vpop.f32.mrf.mxu0  ;;  %v4771_v53 = vrot.slane %v6311_v27, 5  ;;  %v7572_v34 = vrot.slane %v4006_v15, 5 }
 0x153   : > { %v7539_v2 = vadd.f32 %v2909_v45, %v2225_v22  ;;  %v1155_v45 = vpack.c.b16 %v1139_v6, %v1138_v59  ;;  %v3124_v59 = vrot.slane %v5959_v23, 5  ;;  %v3980_v6 = vrot.slane %v3979_v63, 4 }
 0x154   : > { %v3990_v62 = vrot.slane %v3989_v9, 4  ;;  %v4772_v25 = vsel %vm6895_vm5, %v4770_v5, %v4771_v53  ;;  %v3999_v63 = vrot.slane %v3997_v57, 4  ;;  %v4016_v5 = vshll.u32 %v6218_v51, 16  ;;  %v6504_v57 = vld [vmem:[%s6747_s10 + $0x18] sm:$0xff]  ;;  %v6219_v51 = vld [vmem:[%s6747_s10 + $0x30] sm:$0xf] }
 0x156   : > { %v1786_v18 = vpop.f32.mrf.mxu2 }
 0x157   : > { %v1847_v52 = vadd.f32 %v1786_v18, %v1322_v47  ;;  %v2165_v7 = vpop.f32.mrf.mxu3  ;;  %v4000_v47 = vshll.u32 %v6216_v24, 16  ;;  %v4010_v18 = vshrl.u32 %v6217_v50, 16  ;;  %v4928_v24 = vunpack.c.l.b16 %v4772_v25  ;;  %v6313_v50 = vld [vmem:[%s6747_s10 + $0x28] sm:$0xf] }
 0x158   : > { %v1264_v32 = vpop.f32.mrf.mxu1  ;;  %v4775_v15 = vrot.slane %v6313_v50, 5 }
 0x159   : > { %v2226_v44 = vadd.f32 %v2165_v7, %v1847_v52  ;;  %v1323_v19 = vadd.f32 %v1264_v32, %v7211_v0  ;;  %v3122_v7 = vsel %vm6895_vm5, %v6005_v13, %v3121_v21  ;;  %v3985_v0 = vsel %vm6891_vm4, %v3980_v6, %v7542_v12  ;;  %v5961_v21 = vld [vmem:[%s6747_s10 + $0x1c] sm:$0xf] }
 0x15a   : > { %v2914_v10 = vpop.f32.mrf.mxu0  ;;  %v4002_v9 = vrot.slane %v4000_v47, 5  ;;  %v3280_v12 = vunpack.c.l.b16 %v3122_v7  ;;  %v4405_v13 = vunpack.c.l.b16 %v3985_v0  ;;  %v3128_v6 = vrot.slane %v5961_v21, 5  ;;  %v5962_v47 = vld [vmem:[%s6747_s10 + $0x20] sm:$0x1]  ;;  %v6312_v7 = vld [vmem:[%s6747_s10 + $0x24] sm:$0xe] }
 0x15b   : > { %1303 = vmatmul.bf16.gmra.mxu1 %v1155_v45  ;;  %1828 = vmatmul.bf16.gmra.mxu2 %v1680_v48  ;;  %v7555_v22 = vadd.f32 %v2911_v29, %v2226_v44  ;;  %v3125_v45 = vsel %vm6895_vm5, %v3123_v49, %v3124_v59  ;;  %v4012_v44 = vrot.slane %v4010_v18, 4  ;;  %v4018_v21 = vrot.slane %v4016_v5, 5 }
 0x15c   : > { %2207 = vmatmul.bf16.gmra.mxu3 %v6479_v3  ;;  %v3995_v3 = vsel %vm6891_vm4, %v3990_v62, %v3994_v1  ;;  %v3281_v23 = vunpack.c.l.b16 %v3125_v45  ;;  %v5960_v1 = vld [vmem:[%s6747_s10 + $0x18] sm:$0xe] }
 0x15d   : > { %2953 = vmatmul.bf16.gmra.mxu0 %v2805_v40  ;;  %v4769_v40 = vsel %vm6895_vm5, %v6357_v8, %v4768_v28  ;;  %v4406_v49 = vunpack.c.l.b16 %v3995_v3  ;;  %v4013_v8 = vor.u32 %v4012_v44, %v7572_v34  ;;  %v6006_v0 = vrot.slane %v5960_v1, 9 }
 0x15e   : > { %v1789_v14 = vpop.f32.mrf.mxu2  ;;  %v4927_v28 = vunpack.c.l.b16 %v4769_v40  ;;  %v3131_v3 = vrot.slane %v5962_v47, 5 }
 0x15f   : > { %v1848_v26 = vadd.f32 %v1789_v14, %v1323_v19  ;;  %v2168_v29 = vpop.f32.mrf.mxu3  ;;  %v4003_v19 = vor.u32 %v4002_v9, %v3999_v63  ;;  %v3312_v14 = vpack.c.b16 %v3281_v23, %v3280_v12  ;;  %v4014_v25 = vrot.slane %v4013_v8, 4 }
 0x160   : > { %v1266_v52 = vpop.f32.mrf.mxu1  ;;  %v6358_v63 = vrot.slane %v6312_v7, 9  ;;  %v4777_v9 = vrot.slane %v4775_v15, 4  ;;  %v4024_v8 = vshll.u32 %v6219_v51, 16  ;;  %v5964_v7 = vld [vmem:[%s6747_s10 + $0x28] sm:$0xf] }
 0x161   : > { %v2227_v48 = vadd.f32 %v2168_v29, %v1848_v26  ;;  %v1324_v59 = vadd.f32 %v1266_v52, %v7234_v61  ;;  %v4437_v26 = vpack.c.b16 %v4406_v49, %v4405_v13  ;;  %v4959_v29 = vpack.c.b16 %v4928_v24, %v4927_v28  ;;  %v6314_v61 = vld [vmem:[%s6747_s10 + $0x2c] sm:$0x1]  ;;  %v6220_v13 = vld [vmem:[%s6747_s10 + $0x34] sm:$0xf] }
 0x162   : > { %v2916_v32 = vpop.f32.mrf.mxu0  ;;  %v4004_v40 = vrot.slane %v4003_v19, 4  ;;  %v4778_v44 = vrot.slane %v6314_v61, 5  ;;  %v3129_v28 = vsel %vm6895_vm5, %v6006_v0, %v3128_v6  ;;  %v4021_v19 = vshrl.u32 %v6219_v51, 16 }
 0x163   : > { %v7575_v27 = vadd.f32 %v2914_v10, %v2227_v48  ;;  %v3130_v48 = vrot.slane %v3128_v6, 4  ;;  %v4030_v5 = vshll.u32 %v6220_v13, 16  ;;  %v3135_v51 = vrot.slane %v5964_v7, 5 }
 0x164   : > { %v4009_v50 = vsel %vm6891_vm4, %v4004_v40, %v7572_v34  ;;  %v4779_v1 = vsel %vm6895_vm5, %v4777_v9, %v4778_v44  ;;  %v4023_v61 = vrot.slane %v4021_v19, 4  ;;  %v6221_v40 = vld [vmem:[%s6747_s10 + $0x38] sm:$0x1] }
 0x165   : > { %v3132_v24 = vsel %vm6895_vm5, %v3130_v48, %v3131_v3  ;;  %v4407_v47 = vunpack.c.l.b16 %v4009_v50  ;;  %v7606_v0 = vrot.slane %v4030_v5, 5  ;;  %v4040_v50 = vshll.u32 %v6221_v40, 16  ;;  %v6222_v5 = vld [vmem:[%s6747_s10 + $0x3c] sm:$0xf] }
 0x166   : > { %v1791_v62 = vpop.f32.mrf.mxu2 }
 0x167   : > { %v1849_v10 = vadd.f32 %v1791_v62, %v1324_v59  ;;  %v2170_v53 = vpop.f32.mrf.mxu3  ;;  %v4019_v62 = vsel %vm6891_vm4, %v4014_v25, %v4018_v21  ;;  %v6316_v21 = vld [vmem:[%s6747_s10 + $0x34] sm:$0xf] }
 0x168   : > { %v1269_v18 = vpop.f32.mrf.mxu1 }
 0x169   : > { %v2228_v52 = vadd.f32 %v2170_v53, %v1849_v10  ;;  %v1325_v23 = vadd.f32 %v1269_v18, %v7070_v33  ;;  %v4776_v33 = vsel %vm6895_vm5, %v6358_v63, %v4775_v15  ;;  %v4034_v10 = vshrl.u32 %v6220_v13, 16 }
 0x16a   : > { %v2919_v45 = vpop.f32.mrf.mxu0  ;;  %v4408_v18 = vunpack.c.l.b16 %v4019_v62  ;;  %v4930_v15 = vunpack.c.l.b16 %v4779_v1  ;;  %v5965_v62 = vld [vmem:[%s6747_s10 + $0x2c] sm:$0x1]  ;;  %v6315_v1 = vld [vmem:[%s6747_s10 + $0x30] sm:$0xe] }
 0x16b   : > { %3400 = vmatmul.bf16.vlgmr.msra.gmra.mxu1 %v3312_v14  ;;  %3779 = vmatmul.bf16.vlgmr.msra.gmra.mxu2 %v6504_v57  ;;  %v7585_v12 = vadd.f32 %v2916_v32, %v2228_v52  ;;  %v3282_v14 = vunpack.c.l.b16 %v3129_v28  ;;  %v3283_v57 = vunpack.c.l.b16 %v3132_v24  ;;  %v4026_v52 = vrot.slane %v4024_v8, 5  ;;  %v5963_v28 = vld [vmem:[%s6747_s10 + $0x24] sm:$0xe] }
 0x16c   : > { %4525 = vmatmul.bf16.vlgmr.msra.gmra.mxu3 %v4437_v26  ;;  %v4929_v26 = vunpack.c.l.b16 %v4776_v33  ;;  %v4036_v48 = vrot.slane %v4034_v10, 4  ;;  %v4782_v33 = vrot.slane %v6316_v21, 5  ;;  %v6007_v19 = vrot.slane %v5963_v28, 9  ;;  %v6223_v10 = vld [vmem:[%s6747_s10 + $0x40] sm:$0xf] }
 0x16d   : > { %5047 = vmatmul.bf16.vlgmr.msra.gmra.mxu0 %v4959_v29  ;;  %v3313_v44 = vpack.c.b16 %v3283_v57, %v3282_v14  ;;  %v4027_v24 = vor.u32 %v4026_v52, %v4023_v61  ;;  %v3137_v8 = vrot.slane %v3135_v51, 4  ;;  %v3138_v14 = vrot.slane %v5965_v62, 5 }
 0x16e   : > { %v1794_v49 = vpop.f32.mrf.mxu2  ;;  %v4784_v7 = vrot.slane %v4782_v33, 4  ;;  %v4054_v40 = vshll.u32 %v6223_v10, 16 }
 0x16f   : > { %v1850_v59 = vadd.f32 %v1794_v49, %v1325_v23  ;;  %v2173_v32 = vpop.f32.mrf.mxu3  ;;  %v4438_v23 = vpack.c.b16 %v4408_v18, %v4407_v47  ;;  %v4960_v49 = vpack.c.b16 %v4930_v15, %v4929_v26  ;;  %v4028_v57 = vrot.slane %v4027_v24, 4 }
 0x170   : > { %v1271_v6 = vpop.f32.mrf.mxu1  ;;  %v4042_v18 = vrot.slane %v4040_v50, 5  ;;  %v6359_v15 = vrot.slane %v6315_v1, 9  ;;  %v7636_v50 = vrot.slane %v4054_v40, 5  ;;  %v6224_v1 = vld [vmem:[%s6747_s10 + $0x44] sm:$0x1] }
 0x171   : > { %v2229_v53 = vadd.f32 %v2173_v32, %v1850_v59  ;;  %v1326_v3 = vadd.f32 %v1271_v6, %v7100_v4  ;;  %v4037_v4 = vor.u32 %v4036_v48, %v7606_v0  ;;  %v6317_v6 = vld [vmem:[%s6747_s10 + $0x38] sm:$0x1]  ;;  %v4045_v48 = vshrl.u32 %v6222_v5, 16 }
 0x172   : > { %v2921_v34 = vpop.f32.mrf.mxu0  ;;  %v4785_v61 = vrot.slane %v6317_v6, 5 }
 0x173   : > { %v7603_v29 = vadd.f32 %v2919_v45, %v2229_v53  ;;  %v6505_v45 = vld [vmem:[%s6747_s10 + $0x24] sm:$0xff]  ;;  %v4038_v47 = vrot.slane %v4037_v4, 4  ;;  %v4047_v24 = vrot.slane %v4045_v48, 4  ;;  %v6506_v48 = vld [vmem:[%s6747_s10 + $0x30] sm:$0xff] }
 0x174   : > { %v4786_v28 = vsel %vm6895_vm5, %v4784_v7, %v4785_v61  ;;  %v4064_v7 = vshll.u32 %v6224_v1, 16  ;;  %v6225_v1 = vld [vmem:[%s6747_s10 + $0x48] sm:$0xf] }
 0x176   : > { %v1796_v25 = vpop.f32.mrf.mxu2 }
 0x177   : > { %v1851_v63 = vadd.f32 %v1796_v25, %v1326_v3  ;;  %v2175_v9 = vpop.f32.mrf.mxu3  ;;  %v4048_v3 = vshll.u32 %v6222_v5, 16  ;;  %v4058_v25 = vshrl.u32 %v6223_v10, 16  ;;  %v4932_v5 = vunpack.c.l.b16 %v4786_v28  ;;  %v6319_v10 = vld [vmem:[%s6747_s10 + $0x40] sm:$0xf] }
 0x178   : > { %v1274_v13 = vpop.f32.mrf.mxu1  ;;  %v4789_v40 = vrot.slane %v6319_v10, 5 }
 0x179   : > { %v2230_v59 = vadd.f32 %v2175_v9, %v1851_v63  ;;  %v1327_v26 = vadd.f32 %v1274_v13, %v7122_v41  ;;  %v3136_v9 = vsel %vm6895_vm5, %v6007_v19, %v3135_v51  ;;  %v4033_v41 = vsel %vm6891_vm4, %v4028_v57, %v7606_v0  ;;  %v5967_v51 = vld [vmem:[%s6747_s10 + $0x34] sm:$0xf] }
 0x17a   : > { %v2924_v32 = vpop.f32.mrf.mxu0  ;;  %v4043_v13 = vsel %vm6891_vm4, %v4038_v47, %v4042_v18  ;;  %v4050_v4 = vrot.slane %v4048_v3, 5  ;;  %v3284_v0 = vunpack.c.l.b16 %v3136_v9  ;;  %v4409_v19 = vunpack.c.l.b16 %v4033_v41  ;;  %v5966_v18 = vld [vmem:[%s6747_s10 + $0x30] sm:$0xe]  ;;  %v5968_v3 = vld [vmem:[%s6747_s10 + $0x38] sm:$0x1] }
 0x17b   : > { %3405 = vmatmul.bf16.gmra.mxu1 %v3313_v44  ;;  %3784 = vmatmul.bf16.gmra.mxu2 %v6505_v45  ;;  %v7619_v53 = vadd.f32 %v2921_v34, %v2230_v59  ;;  %v3139_v44 = vsel %vm6895_vm5, %v3137_v8, %v3138_v14  ;;  %v4060_v59 = vrot.slane %v4058_v25, 4  ;;  %v4410_v8 = vunpack.c.l.b16 %v4043_v13  ;;  %v6318_v9 = vld [vmem:[%s6747_s10 + $0x3c] sm:$0xe] }
 0x17c   : > { %4530 = vmatmul.bf16.gmra.mxu3 %v4438_v23  ;;  %v3285_v62 = vunpack.c.l.b16 %v3139_v44  ;;  %v3142_v57 = vrot.slane %v5967_v51, 5  ;;  %v6008_v41 = vrot.slane %v5966_v18, 9  ;;  %v3145_v13 = vrot.slane %v5968_v3, 5 }
 0x17d   : > { %5052 = vmatmul.bf16.gmra.mxu0 %v4960_v49  ;;  %v4783_v49 = vsel %vm6895_vm5, %v6359_v15, %v4782_v33  ;;  %v4061_v15 = vor.u32 %v4060_v59, %v7636_v50  ;;  %v4066_v51 = vrot.slane %v4064_v7, 5 }
 0x17e   : > { %v1799_v52 = vpop.f32.mrf.mxu2  ;;  %v4931_v33 = vunpack.c.l.b16 %v4783_v49 }
 0x17f   : > { %v1852_v21 = vadd.f32 %v1799_v52, %v1327_v26  ;;  %v2178_v34 = vpop.f32.mrf.mxu3  ;;  %v4051_v26 = vor.u32 %v4050_v4, %v4047_v24  ;;  %v3314_v52 = vpack.c.b16 %v3285_v62, %v3284_v0  ;;  %v4062_v28 = vrot.slane %v4061_v15, 4 }
 0x180   : > { %v1276_v63 = vpop.f32.mrf.mxu1  ;;  %v6360_v24 = vrot.slane %v6318_v9, 9  ;;  %v4791_v4 = vrot.slane %v4789_v40, 4  ;;  %v4072_v15 = vshll.u32 %v6225_v1, 16  ;;  %v5970_v9 = vld [vmem:[%s6747_s10 + $0x40] sm:$0xf] }
 0x181   : > { %v2231_v45 = vadd.f32 %v2178_v34, %v1852_v21  ;;  %v1328_v14 = vadd.f32 %v1276_v63, %v7146_v16  ;;  %v4439_v21 = vpack.c.b16 %v4410_v8, %v4409_v19  ;;  %v4961_v34 = vpack.c.b16 %v4932_v5, %v4931_v33  ;;  %v6320_v16 = vld [vmem:[%s6747_s10 + $0x44] sm:$0x1]  ;;  %v6226_v19 = vld [vmem:[%s6747_s10 + $0x4c] sm:$0xf] }
 0x182   : > { %v2926_v23 = vpop.f32.mrf.mxu0  ;;  %v4052_v49 = vrot.slane %v4051_v26, 4  ;;  %v4792_v59 = vrot.slane %v6320_v16, 5  ;;  %v3143_v33 = vsel %vm6895_vm5, %v6008_v41, %v3142_v57  ;;  %v4069_v26 = vshrl.u32 %v6225_v1, 16 }
 0x183   : > { %v7639_v6 = vadd.f32 %v2924_v32, %v2231_v45  ;;  %v3144_v45 = vrot.slane %v3142_v57, 4  ;;  %v4078_v7 = vshll.u32 %v6226_v19, 16  ;;  %v3149_v1 = vrot.slane %v5970_v9, 5 }
 0x184   : > { %v4057_v10 = vsel %vm6891_vm4, %v4052_v49, %v7636_v50  ;;  %v4793_v18 = vsel %vm6895_vm5, %v4791_v4, %v4792_v59  ;;  %v4071_v16 = vrot.slane %v4069_v26, 4  ;;  %v6227_v49 = vld [vmem:[%s6747_s10 + $0x50] sm:$0x1] }
 0x185   : > { %v3146_v5 = vsel %vm6895_vm5, %v3144_v45, %v3145_v13  ;;  %v4411_v3 = vunpack.c.l.b16 %v4057_v10  ;;  %v7670_v41 = vrot.slane %v4078_v7, 5  ;;  %v4088_v10 = vshll.u32 %v6227_v49, 16  ;;  %v6228_v7 = vld [vmem:[%s6747_s10 + $0x54] sm:$0xf] }
 0x186   : > { %v1801_v47 = vpop.f32.mrf.mxu2 }
 0x187   : > { %v1853_v32 = vadd.f32 %v1801_v47, %v1328_v14  ;;  %v2180_v61 = vpop.f32.mrf.mxu3  ;;  %v4067_v47 = vsel %vm6891_vm4, %v4062_v28, %v4066_v51  ;;  %v6322_v51 = vld [vmem:[%s6747_s10 + $0x4c] sm:$0xf] }
 0x188   : > { %v1279_v25 = vpop.f32.mrf.mxu1 }
 0x189   : > { %v2232_v63 = vadd.f32 %v2180_v61, %v1853_v32  ;;  %v1329_v62 = vadd.f32 %v1279_v25, %v7167_v60  ;;  %v4790_v60 = vsel %vm6895_vm5, %v6360_v24, %v4789_v40  ;;  %v4082_v32 = vshrl.u32 %v6226_v19, 16 }
 0x18a   : > { %v2929_v44 = vpop.f32.mrf.mxu0  ;;  %v4412_v25 = vunpack.c.l.b16 %v4067_v47  ;;  %v4934_v40 = vunpack.c.l.b16 %v4793_v18  ;;  %v5971_v47 = vld [vmem:[%s6747_s10 + $0x44] sm:$0x1]  ;;  %v6321_v18 = vld [vmem:[%s6747_s10 + $0x48] sm:$0xe] }
 0x18b   : > { %3410 = vmatmul.bf16.gmra.mxu1 %v3314_v52  ;;  %3789 = vmatmul.bf16.gmra.mxu2 %v6506_v48  ;;  %v7649_v0 = vadd.f32 %v2926_v23, %v2232_v63  ;;  %v3286_v52 = vunpack.c.l.b16 %v3143_v33  ;;  %v3287_v48 = vunpack.c.l.b16 %v3146_v5  ;;  %v4074_v63 = vrot.slane %v4072_v15, 5  ;;  %v5969_v33 = vld [vmem:[%s6747_s10 + $0x3c] sm:$0xe] }
 0x18c   : > { %4535 = vmatmul.bf16.gmra.mxu3 %v4439_v21  ;;  %v4933_v21 = vunpack.c.l.b16 %v4790_v60  ;;  %v4084_v45 = vrot.slane %v4082_v32, 4  ;;  %v4796_v60 = vrot.slane %v6322_v51, 5  ;;  %v6009_v26 = vrot.slane %v5969_v33, 9  ;;  %v6229_v32 = vld [vmem:[%s6747_s10 + $0x58] sm:$0xf] }
 0x18d   : > { %5057 = vmatmul.bf16.gmra.mxu0 %v4961_v34  ;;  %v3315_v59 = vpack.c.b16 %v3287_v48, %v3286_v52  ;;  %v4075_v5 = vor.u32 %v4074_v63, %v4071_v16  ;;  %v3151_v15 = vrot.slane %v3149_v1, 4  ;;  %v3152_v52 = vrot.slane %v5971_v47, 5 }
 0x18e   : > { %v1804_v8 = vpop.f32.mrf.mxu2  ;;  %v4798_v9 = vrot.slane %v4796_v60, 4  ;;  %v4102_v49 = vshll.u32 %v6229_v32, 16 }
 0x18f   : > { %v1854_v14 = vadd.f32 %v1804_v8, %v1329_v62  ;;  %v2183_v23 = vpop.f32.mrf.mxu3  ;;  %v4440_v62 = vpack.c.b16 %v4412_v25, %v4411_v3  ;;  %v4962_v8 = vpack.c.b16 %v4934_v40, %v4933_v21  ;;  %v4076_v48 = vrot.slane %v4075_v5, 4 }
 0x190   : > { %v1281_v57 = vpop.f32.mrf.mxu1  ;;  %v4090_v25 = vrot.slane %v4088_v10, 5  ;;  %v6361_v40 = vrot.slane %v6321_v18, 9  ;;  %v7700_v10 = vrot.slane %v4102_v49, 5  ;;  %v6230_v18 = vld [vmem:[%s6747_s10 + $0x5c] sm:$0x1] }
 0x191   : > { %v2233_v61 = vadd.f32 %v2183_v23, %v1854_v14  ;;  %v1330_v13 = vadd.f32 %v1281_v57, %v7205_v54  ;;  %v4085_v54 = vor.u32 %v4084_v45, %v7670_v41  ;;  %v6323_v57 = vld [vmem:[%s6747_s10 + $0x50] sm:$0x1]  ;;  %v4093_v45 = vshrl.u32 %v6228_v7, 16 }
 0x192   : > { %v2931_v50 = vpop.f32.mrf.mxu0  ;;  %v4799_v16 = vrot.slane %v6323_v57, 5 }
 0x193   : > { %v7667_v34 = vadd.f32 %v2929_v44, %v2233_v61  ;;  %v6507_v44 = vld [vmem:[%s6747_s10 + $0x3c] sm:$0xff]  ;;  %v4086_v3 = vrot.slane %v4085_v54, 4  ;;  %v4095_v5 = vrot.slane %v4093_v45, 4  ;;  %v6508_v45 = vld [vmem:[%s6747_s10 + $0x48] sm:$0xff] }
 0x194   : > { %v4800_v33 = vsel %vm6895_vm5, %v4798_v9, %v4799_v16  ;;  %v4112_v9 = vshll.u32 %v6230_v18, 16  ;;  %v6231_v18 = vld [vmem:[%s6747_s10 + $0x60] sm:$0xf] }
 0x196   : > { %v1806_v28 = vpop.f32.mrf.mxu2 }
 0x197   : > { %v1855_v24 = vadd.f32 %v1806_v28, %v1330_v13  ;;  %v2185_v4 = vpop.f32.mrf.mxu3  ;;  %v4096_v13 = vshll.u32 %v6228_v7, 16  ;;  %v4106_v28 = vshrl.u32 %v6229_v32, 16  ;;  %v4936_v7 = vunpack.c.l.b16 %v4800_v33  ;;  %v6325_v32 = vld [vmem:[%s6747_s10 + $0x58] sm:$0xf] }
 0x198   : > { %v1284_v19 = vpop.f32.mrf.mxu1  ;;  %v4803_v49 = vrot.slane %v6325_v32, 5 }
 0x199   : > { %v2234_v14 = vadd.f32 %v2185_v4, %v1855_v24  ;;  %v1331_v21 = vadd.f32 %v1284_v19, %v7226_v43  ;;  %v3150_v4 = vsel %vm6895_vm5, %v6009_v26, %v3149_v1  ;;  %v4081_v43 = vsel %vm6891_vm4, %v4076_v48, %v7670_v41  ;;  %v5973_v1 = vld [vmem:[%s6747_s10 + $0x4c] sm:$0xf] }
 0x19a   : > { %v2934_v23 = vpop.f32.mrf.mxu0  ;;  %v4091_v19 = vsel %vm6891_vm4, %v4086_v3, %v4090_v25  ;;  %v4098_v54 = vrot.slane %v4096_v13, 5  ;;  %v3288_v41 = vunpack.c.l.b16 %v3150_v4  ;;  %v4413_v26 = vunpack.c.l.b16 %v4081_v43  ;;  %v5972_v25 = vld [vmem:[%s6747_s10 + $0x48] sm:$0xe]  ;;  %v5974_v13 = vld [vmem:[%s6747_s10 + $0x50] sm:$0x1] }
 0x19b   : > { %3415 = vmatmul.bf16.gmra.mxu1 %v3315_v59  ;;  %3794 = vmatmul.bf16.gmra.mxu2 %v6507_v44  ;;  %v7683_v61 = vadd.f32 %v2931_v50, %v2234_v14  ;;  %v3153_v59 = vsel %vm6895_vm5, %v3151_v15, %v3152_v52  ;;  %v4108_v14 = vrot.slane %v4106_v28, 4  ;;  %v4414_v15 = vunpack.c.l.b16 %v4091_v19  ;;  %v6324_v4 = vld [vmem:[%s6747_s10 + $0x54] sm:$0xe] }
 0x19c   : > { %4540 = vmatmul.bf16.gmra.mxu3 %v4440_v62  ;;  %v3289_v47 = vunpack.c.l.b16 %v3153_v59  ;;  %v3156_v48 = vrot.slane %v5973_v1, 5  ;;  %v6010_v43 = vrot.slane %v5972_v25, 9  ;;  %v3159_v19 = vrot.slane %v5974_v13, 5 }
 0x19d   : > { %5062 = vmatmul.bf16.gmra.mxu0 %v4962_v8  ;;  %v4797_v8 = vsel %vm6895_vm5, %v6361_v40, %v4796_v60  ;;  %v4109_v40 = vor.u32 %v4108_v14, %v7700_v10  ;;  %v4114_v1 = vrot.slane %v4112_v9, 5 }
 0x19e   : > { %v1809_v63 = vpop.f32.mrf.mxu2  ;;  %v4935_v60 = vunpack.c.l.b16 %v4797_v8 }
 0x19f   : > { %v1856_v51 = vadd.f32 %v1809_v63, %v1331_v21  ;;  %v2188_v50 = vpop.f32.mrf.mxu3  ;;  %v4099_v21 = vor.u32 %v4098_v54, %v4095_v5  ;;  %v3316_v63 = vpack.c.b16 %v3289_v47, %v3288_v41  ;;  %v4110_v33 = vrot.slane %v4109_v40, 4 }
 0x1a0   : > { %v1286_v24 = vpop.f32.mrf.mxu1  ;;  %v6362_v5 = vrot.slane %v6324_v4, 9  ;;  %v4805_v54 = vrot.slane %v4803_v49, 4  ;;  %v4120_v40 = vshll.u32 %v6231_v18, 16  ;;  %v5976_v4 = vld [vmem:[%s6747_s10 + $0x58] sm:$0xf] }
 0x1a1   : > { %v2235_v44 = vadd.f32 %v2188_v50, %v1856_v51  ;;  %v1332_v52 = vadd.f32 %v1286_v24, %v7250_v35  ;;  %v4441_v51 = vpack.c.b16 %v4414_v15, %v4413_v26  ;;  %v4963_v50 = vpack.c.b16 %v4936_v7, %v4935_v60  ;;  %v6326_v35 = vld [vmem:[%s6747_s10 + $0x5c] sm:$0x1]  ;;  %v6232_v26 = vld [vmem:[%s6747_s10 + $0x64] sm:$0xf] }
 0x1a2   : > { %v2936_v62 = vpop.f32.mrf.mxu0  ;;  %v4100_v8 = vrot.slane %v4099_v21, 4  ;;  %v4806_v14 = vrot.slane %v6326_v35, 5  ;;  %v3157_v60 = vsel %vm6895_vm5, %v6010_v43, %v3156_v48  ;;  %v4117_v21 = vshrl.u32 %v6231_v18, 16 }
 0x1a3   : > { %v7703_v57 = vadd.f32 %v2934_v23, %v2235_v44  ;;  %v3158_v44 = vrot.slane %v3156_v48, 4  ;;  %v4126_v9 = vshll.u32 %v6232_v26, 16  ;;  %v3163_v18 = vrot.slane %v5976_v4, 5 }
 0x1a4   : > { %v4105_v32 = vsel %vm6891_vm4, %v4100_v8, %v7700_v10  ;;  %v4807_v25 = vsel %vm6895_vm5, %v4805_v54, %v4806_v14  ;;  %v4119_v35 = vrot.slane %v4117_v21, 4  ;;  %v6233_v8 = vld [vmem:[%s6747_s10 + $0x68] sm:$0x1] }
 0x1a5   : > { %v3160_v7 = vsel %vm6895_vm5, %v3158_v44, %v3159_v19  ;;  %v4415_v13 = vunpack.c.l.b16 %v4105_v32  ;;  %v7734_v43 = vrot.slane %v4126_v9, 5  ;;  %v4136_v32 = vshll.u32 %v6233_v8, 16  ;;  %v6234_v9 = vld [vmem:[%s6747_s10 + $0x6c] sm:$0xf] }
 0x1a6   : > { %v1811_v3 = vpop.f32.mrf.mxu2  ;;  %v4144_v8 = vshll.u32 %v6234_v9, 16 }
 0x1a7   : > { %v1857_v23 = vadd.f32 %v1811_v3, %v1332_v52  ;;  %v2190_v16 = vpop.f32.mrf.mxu3  ;;  %v4115_v3 = vsel %vm6891_vm4, %v4110_v33, %v4114_v1  ;;  %v6328_v1 = vld [vmem:[%s6747_s10 + $0x64] sm:$0xf] }
 0x1a8   : > { %v1289_v28 = vpop.f32.mrf.mxu1 }
 0x1a9   : > { %v2236_v24 = vadd.f32 %v2190_v16, %v1857_v23  ;;  %v1333_v47 = vadd.f32 %v1289_v28, %v7076_v39  ;;  %v4804_v39 = vsel %vm6895_vm5, %v6362_v5, %v4803_v49  ;;  %v4130_v23 = vshrl.u32 %v6232_v26, 16 }
 0x1aa   : > { %v2939_v59 = vpop.f32.mrf.mxu0  ;;  %v4416_v28 = vunpack.c.l.b16 %v4115_v3  ;;  %v4938_v49 = vunpack.c.l.b16 %v4807_v25  ;;  %v5977_v3 = vld [vmem:[%s6747_s10 + $0x5c] sm:$0x1]  ;;  %v6327_v25 = vld [vmem:[%s6747_s10 + $0x60] sm:$0xe] }
 0x1ab   : > { %3420 = vmatmul.bf16.gmra.mxu1 %v3316_v63  ;;  %3799 = vmatmul.bf16.gmra.mxu2 %v6508_v45  ;;  %v7713_v41 = vadd.f32 %v2936_v62, %v2236_v24  ;;  %v3290_v63 = vunpack.c.l.b16 %v3157_v60  ;;  %v3291_v45 = vunpack.c.l.b16 %v3160_v7  ;;  %v4122_v24 = vrot.slane %v4120_v40, 5  ;;  %v5975_v60 = vld [vmem:[%s6747_s10 + $0x54] sm:$0xe] }
 0x1ac   : > { %4545 = vmatmul.bf16.gmra.mxu3 %v4441_v51  ;;  %v4937_v51 = vunpack.c.l.b16 %v4804_v39  ;;  %v4132_v44 = vrot.slane %v4130_v23, 4  ;;  %v4810_v39 = vrot.slane %v6328_v1, 5  ;;  %v6011_v21 = vrot.slane %v5975_v60, 9  ;;  %v6235_v23 = vld [vmem:[%s6747_s10 + $0x70] sm:$0xf] }
 0x1ad   : > { %5067 = vmatmul.bf16.gmra.mxu0 %v4963_v50  ;;  %v3317_v14 = vpack.c.b16 %v3291_v45, %v3290_v63  ;;  %v4123_v7 = vor.u32 %v4122_v24, %v4119_v35  ;;  %v3165_v40 = vrot.slane %v3163_v18, 4  ;;  %v3166_v63 = vrot.slane %v5977_v3, 5 }
 0x1ae   : > { %v1814_v15 = vpop.f32.mrf.mxu2  ;;  %v6363_v4 = vrot.slane %v6327_v25, 9  ;;  %v4812_v35 = vrot.slane %v4810_v39, 4  ;;  %v4154_v1 = vshrl.u32 %v6235_v23, 16 }
 0x1af   : > { %v1858_v52 = vadd.f32 %v1814_v15, %v1333_v47  ;;  %v2193_v62 = vpop.f32.mrf.mxu3  ;;  %v4442_v47 = vpack.c.b16 %v4416_v28, %v4415_v13  ;;  %v4964_v15 = vpack.c.b16 %v4938_v49, %v4937_v51  ;;  %v4124_v45 = vrot.slane %v4123_v7, 4  ;;  %v8087_v51 = vld [vmem:[#allocation3_spill] sm:$0xff] }
 0x1b0   : > { %v1291_v48 = vpop.f32.mrf.mxu1  ;;  %v4138_v28 = vrot.slane %v4136_v32, 5  ;;  %v4811_v7 = vsel %vm6895_vm5, %v6363_v4, %v4810_v39  ;;  %v4156_v25 = vrot.slane %v4154_v1, 4  ;;  %v5978_v4 = vld [vmem:[%s6747_s10 + $0x60] sm:$0xe]  ;;  %v5980_v1 = vld [vmem:[%s6747_s10 + $0x68] sm:$0x1] }
 0x1b1   : > { %v2237_v16 = vadd.f32 %v2193_v62, %v1858_v52  ;;  %v1334_v19 = vadd.f32 %v1291_v48, %v7104_v11  ;;  %v4133_v11 = vor.u32 %v4132_v44, %v7734_v43  ;;  %v6329_v48 = vld [vmem:[%s6747_s10 + $0x68] sm:$0x1]  ;;  %v4939_v39 = vunpack.c.l.b16 %v4811_v7 }
 0x1b2   : > { %v2941_v10 = vpop.f32.mrf.mxu0  ;;  %v4813_v24 = vrot.slane %v6329_v48, 5  ;;  %v6012_v7 = vrot.slane %v5978_v4, 9 }
 0x1b3   : > { %v7731_v50 = vadd.f32 %v2939_v59, %v2237_v16  ;;  %v6509_v59 = vld [vmem:[%s6747_s10 + $0x54] sm:$0xff]  ;;  %v4134_v13 = vrot.slane %v4133_v11, 4 }
 0x1b4   : > { %v4814_v11 = vsel %vm6895_vm5, %v4812_v35, %v4813_v24 }
 0x1b5   : > { %v4139_v60 = vsel %vm6891_vm4, %v4134_v13, %v4138_v28  ;;  %v8088_v13 = vld [vmem:[#allocation4_spill] sm:$0xff] }
 0x1b6   : > { %v1816_v33 = vpop.f32.mrf.mxu2 }
 0x1b7   : > { %v1859_v5 = vadd.f32 %v1816_v33, %v1334_v19  ;;  %v2195_v54 = vpop.f32.mrf.mxu3  ;;  %v4141_v19 = vshrl.u32 %v6234_v9, 16  ;;  %v4150_v33 = vshll.u32 %v6235_v23, 16  ;;  %v4418_v23 = vunpack.c.l.b16 %v4139_v60 }
 0x1b8   : > { %v1294_v26 = vpop.f32.mrf.mxu1 }
 0x1b9   : > { %v2238_v52 = vadd.f32 %v2195_v54, %v1859_v5  ;;  %v1335_v49 = vadd.f32 %v1294_v26, %v8087_v51  ;;  %v4143_v32 = vrot.slane %v4141_v19, 4  ;;  %v7764_v3 = vrot.slane %v4150_v33, 5  ;;  %v6510_v33 = vld [vmem:[%s6747_s10 + $0x60] sm:$0xff] }
 0x1ba   : > { %v2944_v62 = vpop.f32.mrf.mxu0 }
 0x1bb   : > { %3425 = vmatmul.bf16.gmra.mxu1 %v3317_v14  ;;  %3804 = vmatmul.bf16.gmra.mxu2 %v6509_v59  ;;  %v7747_v16 = vadd.f32 %v2941_v10, %v2238_v52  ;;  %v3164_v14 = vsel %vm6895_vm5, %v6011_v21, %v3163_v18  ;;  %v3167_v59 = vsel %vm6895_vm5, %v3165_v40, %v3166_v63  ;;  %v5979_v18 = vld [vmem:[%s6747_s10 + $0x64] sm:$0xf]  ;;  %v4146_v52 = vrot.slane %v4144_v8, 5  ;;  %v6236_v21 = vld [vmem:[%s6747_s10 + $0x74] sm:$0x1] }
 0x1bc   : > { %4550 = vmatmul.bf16.gmra.mxu3 %v4442_v47  ;;  %v4129_v47 = vsel %vm6891_vm4, %v4124_v45, %v7734_v43  ;;  %v3292_v43 = vunpack.c.l.b16 %v3164_v14  ;;  %v3293_v48 = vunpack.c.l.b16 %v3167_v59  ;;  %v4940_v63 = vunpack.c.l.b16 %v4814_v11  ;;  %v6331_v45 = vld [vmem:[%s6747_s10 + $0x70] sm:$0xf] }
 0x1bd   : > { %5072 = vmatmul.bf16.gmra.mxu0 %v4964_v15  ;;  %v4417_v9 = vunpack.c.l.b16 %v4129_v47  ;;  %v3170_v51 = vrot.slane %v5979_v18, 5  ;;  %v4147_v35 = vor.u32 %v4146_v52, %v4143_v32  ;;  %v4157_v24 = vor.u32 %v4156_v25, %v7764_v3  ;;  %v6330_v47 = vld [vmem:[%s6747_s10 + $0x6c] sm:$0xe] }
 0x1be   : > { %v1819_v44 = vpop.f32.mrf.mxu2  ;;  %v3318_v8 = vpack.c.b16 %v3293_v48, %v3292_v43  ;;  %v4965_v59 = vpack.c.b16 %v4940_v63, %v4939_v39  ;;  %v3173_v18 = vrot.slane %v5980_v1, 5  ;;  %v6364_v43 = vrot.slane %v6330_v47, 9  ;;  %v6237_v39 = vld [vmem:[%s6747_s10 + $0x78] sm:$0xf]  ;;  %v6238_v63 = vld [vmem:[%s6747_s10 + $0x7c] sm:$0xf] }
 0x1bf   : > { %v1860_v5 = vadd.f32 %v1819_v44, %v1335_v49  ;;  %v2198_v10 = vpop.f32.mrf.mxu3  ;;  %v4160_v44 = vshll.u32 %v6236_v21, 16  ;;  %v4443_v14 = vpack.c.b16 %v4418_v23, %v4417_v9  ;;  %v3172_v11 = vrot.slane %v3170_v51, 4  ;;  %v8089_v9 = vld [vmem:[#allocation5_spill] sm:$0xff] }
 0x1c0   : > { %v1296_v54 = vpop.f32.mrf.mxu1  ;;  %v4148_v32 = vrot.slane %v4147_v35, 4  ;;  %v4158_v52 = vrot.slane %v4157_v24, 4  ;;  %v4178_v1 = vshrl.u32 %v6238_v63, 16 }
 0x1c1   : > { %v2239_v26 = vadd.f32 %v2198_v10, %v1860_v5  ;;  %v1336_v28 = vadd.f32 %v1296_v54, %v8088_v13  ;;  %v4817_v5 = vrot.slane %v6331_v45, 5  ;;  %v6332_v54 = vld [vmem:[%s6747_s10 + $0x74] sm:$0x1]  ;;  %v4162_v25 = vrot.slane %v4160_v44, 5 }
 0x1c2   : > { %v2946_v15 = vpop.f32.mrf.mxu0  ;;  %v4820_v21 = vrot.slane %v6332_v54, 5  ;;  %v4153_v4 = vsel %vm6891_vm4, %v4148_v32, %v7764_v3 }
 0x1c3   : > { %v7767_v40 = vadd.f32 %v2944_v62, %v2239_v26  ;;  %v4819_v48 = vrot.slane %v4817_v5, 4  ;;  %v4163_v24 = vsel %vm6891_vm4, %v4158_v52, %v4162_v25  ;;  %v4818_v44 = vsel %vm6895_vm5, %v6364_v43, %v4817_v5  ;;  %v8091_v43 = vld [vmem:[#allocation6_spill] sm:$0xff] }
 0x1c4   : > { %v4419_v47 = vunpack.c.l.b16 %v4153_v4  ;;  %v4420_v54 = vunpack.c.l.b16 %v4163_v24  ;;  %v4180_v25 = vrot.slane %v4178_v1, 4  ;;  %v5983_v24 = vld [vmem:[%s6747_s10 + $0x74] sm:$0x1]  ;;  %v6333_v1 = vld [vmem:[%s6747_s10 + $0x78] sm:$0xe] }
 0x1c6   : > { %v1821_v49 = vpop.f32.mrf.mxu2 }
 0x1c7   : > { %v1861_v62 = vadd.f32 %v1821_v49, %v1336_v28  ;;  %v2200_v19 = vpop.f32.mrf.mxu3  ;;  %v3171_v28 = vsel %vm6895_vm5, %v6012_v7, %v3170_v51  ;;  %v3174_v49 = vsel %vm6895_vm5, %v3172_v11, %v3173_v18  ;;  %v5982_v11 = vld [vmem:[%s6747_s10 + $0x70] sm:$0xf] }
 0x1c8   : > { %v1299_v10 = vpop.f32.mrf.mxu1 }
 0x1c9   : > { %v2240_v26 = vadd.f32 %v2200_v19, %v1861_v62  ;;  %v1337_v23 = vadd.f32 %v1299_v10, %v8089_v9  ;;  %v4821_v62 = vsel %vm6895_vm5, %v4819_v48, %v4820_v21  ;;  %v4165_v19 = vshrl.u32 %v6237_v39, 16  ;;  %v6239_v21 = vld [vmem:[%s6747_s10 + $0x80] sm:$0x1] }
 0x1ca   : > { %v2949_v60 = vpop.f32.mrf.mxu0  ;;  %v4942_v5 = vunpack.c.l.b16 %v4821_v62 }
 0x1cb   : > { %3430 = vmatmul.bf16.gmra.mxu1 %v3318_v8  ;;  %3809 = vmatmul.bf16.gmra.mxu2 %v6510_v33  ;;  %v7777_v45 = vadd.f32 %v2946_v15, %v2240_v26  ;;  %v4168_v8 = vshll.u32 %v6237_v39, 16  ;;  %v4174_v33 = vshll.u32 %v6238_v63, 16  ;;  %v4941_v26 = vunpack.c.l.b16 %v4818_v44 }
 0x1cc   : > { %4555 = vmatmul.bf16.gmra.mxu3 %v4443_v14  ;;  %v3294_v14 = vunpack.c.l.b16 %v3171_v28  ;;  %v4167_v18 = vrot.slane %v4165_v19, 4  ;;  %v6511_v28 = vld [vmem:[%s6747_s10 + $0x6c] sm:$0xff]  ;;  %v4184_v19 = vshll.u32 %v6239_v21, 16 }
 0x1cd   : > { %5077 = vmatmul.bf16.gmra.mxu0 %v4965_v59  ;;  %v3295_v59 = vunpack.c.l.b16 %v3174_v49  ;;  %v4170_v32 = vrot.slane %v4168_v8, 5  ;;  %v4176_v52 = vrot.slane %v4174_v33, 5  ;;  %v3177_v49 = vrot.slane %v5982_v11, 5 }
 0x1ce   : > { %v1824_v13 = vpop.f32.mrf.mxu2 }
 0x1cf   : > { %v1862_v35 = vadd.f32 %v1824_v13, %v1337_v23  ;;  %v2203_v15 = vpop.f32.mrf.mxu3  ;;  %v6334_v23 = vld [vmem:[%s6747_s10 + $0x7c] sm:$0xf]  ;;  %v3319_v13 = vpack.c.b16 %v3295_v59, %v3294_v14  ;;  %v4171_v44 = vor.u32 %v4170_v32, %v4167_v18  ;;  %v4181_v62 = vor.u32 %v4180_v25, %v4176_v52  ;;  %v8093_v32 = vld [vmem:[#allocation7_spill] sm:$0xff] }
 0x1d0   : > { %v1301_v51 = vpop.f32.mrf.mxu1  ;;  %v4824_v33 = vrot.slane %v6334_v23, 5  ;;  %v3179_v59 = vrot.slane %v3177_v49, 4  ;;  %v4186_v18 = vrot.slane %v4184_v19, 5 }
 0x1d1   : > { %v2241_v10 = vadd.f32 %v2203_v15, %v1862_v35  ;;  %v1338_v48 = vadd.f32 %v1301_v51, %v8091_v43  ;;  %v4966_v35 = vpack.c.b16 %v4942_v5, %v4941_v26  ;;  %v5981_v15 = vld [vmem:[%s6747_s10 + $0x6c] sm:$0xe]  ;;  %v4172_v26 = vrot.slane %v4171_v44, 4 }
 0x1d2   : > { %v2951_v3 = vpop.f32.mrf.mxu0  ;;  %v6013_v14 = vrot.slane %v5981_v15, 9  ;;  %v4182_v5 = vrot.slane %v4181_v62, 4  ;;  %v6365_v43 = vrot.slane %v6333_v1, 9 }
 0x1d3   : > { %v7795_v7 = vadd.f32 %v2949_v60, %v2241_v10  ;;  %v4444_v60 = vpack.c.b16 %v4420_v54, %v4419_v47  ;;  %v6335_v10 = vld [vmem:[%s6747_s10 + $0x80] sm:$0x1]  ;;  %v3180_v47 = vrot.slane %v5983_v24, 5  ;;  %v6240_v54 = vld [vmem:[%s6747_s10 + $0x84] sm:$0xf] }
 0x1d4   : > { %v4827_v21 = vrot.slane %v6335_v10, 5  ;;  %v4187_v15 = vsel %vm6891_vm4, %v4182_v5, %v4186_v18  ;;  %v5985_v10 = vld [vmem:[%s6747_s10 + $0x7c] sm:$0xf] }
 0x1d5   : > { %8090 = vst [vmem:[#allocation3_spill] sm:$0xff] %v7795_v7 }
 0x1d6   : > { %v1826_v9 = vpop.f32.mrf.mxu2 }
 0x1d7   : > { %v1863_v39 = vadd.f32 %v1826_v9, %v1338_v48  ;;  %v2205_v63 = vpop.f32.mrf.mxu3  ;;  %v4826_v48 = vrot.slane %v4824_v33, 4  ;;  %v6241_v9 = vld [vmem:[%s6747_s10 + $0x88] sm:$0xf] }
 0x1d8   : > { %v1304_v4 = vpop.f32.mrf.mxu1  ;;  %v4198_v24 = vshll.u32 %v6241_v9, 16  ;;  %v4202_v44 = vshrl.u32 %v6241_v9, 16 }
 0x1d9   : > { %v2242_v51 = vadd.f32 %v2205_v63, %v1863_v39  ;;  %v1339_v25 = vadd.f32 %v1304_v4, %v8093_v32  ;;  %v4189_v39 = vshrl.u32 %v6240_v54, 16  ;;  %v4192_v63 = vshll.u32 %v6240_v54, 16 }
 0x1da   : > { %v2954_v8 = vpop.f32.mrf.mxu0  ;;  %v4177_v4 = vsel %vm6891_vm4, %v4172_v26, %v4176_v52  ;;  %v4422_v54 = vunpack.c.l.b16 %v4187_v15  ;;  %v4204_v32 = vrot.slane %v4202_v44, 4 }
 0x1db   : > { %3435 = vmatmul.bf16.gmra.mxu1 %v3319_v13  ;;  %3814 = vmatmul.bf16.gmra.mxu2 %v6511_v28  ;;  %v7807_v11 = vadd.f32 %v2951_v3, %v2242_v51  ;;  %v3178_v3 = vsel %vm6895_vm5, %v6013_v14, %v3177_v49  ;;  %v4825_v51 = vsel %vm6895_vm5, %v6365_v43, %v4824_v33  ;;  %v4191_v14 = vrot.slane %v4189_v39, 4 }
 0x1dc   : > { %4560 = vmatmul.bf16.gmra.mxu3 %v4444_v60  ;;  %v3181_v60 = vsel %vm6895_vm5, %v3179_v59, %v3180_v47  ;;  %v4828_v49 = vsel %vm6895_vm5, %v4826_v48, %v4827_v21  ;;  %v3296_v1 = vunpack.c.l.b16 %v3178_v3  ;;  %v4194_v52 = vrot.slane %v4192_v63, 5  ;;  %v6242_v21 = vld [vmem:[%s6747_s10 + $0x8c] sm:$0x1] }
 0x1dd   : > { %8092 = vst [vmem:[#allocation4_spill] sm:$0xff] %v7807_v11  ;;  %5082 = vmatmul.bf16.gmra.mxu0 %v4966_v35  ;;  %v3297_v59 = vunpack.c.l.b16 %v3181_v60  ;;  %v4421_v47 = vunpack.c.l.b16 %v4177_v4  ;;  %v4943_v5 = vunpack.c.l.b16 %v4825_v51  ;;  %v4944_v18 = vunpack.c.l.b16 %v4828_v49  ;;  %v5986_v60 = vld [vmem:[%s6747_s10 + $0x80] sm:$0x1] }
 0x1de   : > { %v1829_v23 = vpop.f32.mrf.mxu2  ;;  %v4200_v33 = vrot.slane %v4198_v24, 5  ;;  %v3184_v48 = vrot.slane %v5985_v10, 5  ;;  %v4195_v39 = vor.u32 %v4194_v52, %v4191_v14  ;;  %v4208_v44 = vshll.u32 %v6242_v21, 16 }
 0x1df   : > { %v1864_v13 = vadd.f32 %v1829_v23, %v1339_v25  ;;  %v2208_v28 = vpop.f32.mrf.mxu3  ;;  %v8095_v25 = vld [vmem:[#allocation8_spill] sm:$0xff]  ;;  %v5984_v23 = vld [vmem:[%s6747_s10 + $0x78] sm:$0xe]  ;;  %v3320_v3 = vpack.c.b16 %v3297_v59, %v3296_v1  ;;  %v4445_v15 = vpack.c.b16 %v4422_v54, %v4421_v47  ;;  %v3187_v52 = vrot.slane %v5986_v60, 5  ;;  %v6243_v47 = vld [vmem:[%s6747_s10 + $0x90] sm:$0xf] }
 0x1e0   : > { %v1306_v35 = vpop.f32.mrf.mxu1  ;;  %v4205_v24 = vor.u32 %v4204_v32, %v4200_v33  ;;  %v6014_v49 = vrot.slane %v5984_v23, 9  ;;  %v3186_v10 = vrot.slane %v3184_v48, 4  ;;  %v6244_v54 = vld [vmem:[%s6747_s10 + $0x94] sm:$0xf]  ;;  %v4216_v60 = vshll.u32 %v6243_v47, 16 }
 0x1e1   : > { %v2243_v62 = vadd.f32 %v2208_v28, %v1864_v13  ;;  %v1340_v43 = vadd.f32 %v1306_v35, %v8095_v25  ;;  %v6337_v13 = vld [vmem:[%s6747_s10 + $0x88] sm:$0xf]  ;;  %v4196_v25 = vrot.slane %v4195_v39, 4  ;;  %v8097_v23 = vld [vmem:[#allocation9_spill] sm:$0xff] }
 0x1e2   : > { %v2956_v19 = vpop.f32.mrf.mxu0  ;;  %v4831_v14 = vrot.slane %v6337_v13, 5  ;;  %v4206_v59 = vrot.slane %v4205_v24, 4  ;;  %v3185_v39 = vsel %vm6895_vm5, %v6014_v49, %v3184_v48 }
 0x1e3   : > { %v7824_v26 = vadd.f32 %v2954_v8, %v2243_v62  ;;  %v6512_v8 = vld [vmem:[%s6747_s10 + $0x78] sm:$0xff]  ;;  %v4967_v62 = vpack.c.b16 %v4944_v18, %v4943_v5  ;;  %v4210_v5 = vrot.slane %v4208_v44, 5 }
 0x1e4   : > { %v4833_v32 = vrot.slane %v4831_v14, 4 }
 0x1e5   : > { %8094 = vst [vmem:[#allocation5_spill] sm:$0xff] %v7824_v26 }
 0x1e6   : > { %v1831_v9 = vpop.f32.mrf.mxu2 }
 0x1e7   : > { %v1865_v63 = vadd.f32 %v1831_v9, %v1340_v43  ;;  %v2210_v28 = vpop.f32.mrf.mxu3  ;;  %v6336_v43 = vld [vmem:[%s6747_s10 + $0x84] sm:$0xe]  ;;  %v6338_v9 = vld [vmem:[%s6747_s10 + $0x8c] sm:$0x1] }
 0x1e8   : > { %v3401_v4 = vpop.f32.mrf.mxu1  ;;  %v6366_v18 = vrot.slane %v6336_v43, 9  ;;  %v4834_v21 = vrot.slane %v6338_v9, 5  ;;  %v4218_v9 = vrot.slane %v4216_v60, 5  ;;  %v6513_v60 = vld [vmem:[%s6747_s10 + $0x84] sm:$0xff] }
 0x1e9   : > { %v2244_v35 = vadd.f32 %v2210_v28, %v1865_v63  ;;  %v3481_v63 = vadd.f32 %v3401_v4, %v8097_v23  ;;  %v3188_v28 = vsel %vm6895_vm5, %v3186_v10, %v3187_v52  ;;  %v4211_v4 = vsel %vm6891_vm4, %v4206_v59, %v4210_v5 }
 0x1ea   : > { %v5048_v51 = vpop.f32.mrf.mxu0  ;;  %v4832_v48 = vsel %vm6895_vm5, %v6366_v18, %v4831_v14  ;;  %v4835_v49 = vsel %vm6895_vm5, %v4833_v32, %v4834_v21  ;;  %v3299_v10 = vunpack.c.l.b16 %v3188_v28  ;;  %v4424_v5 = vunpack.c.l.b16 %v4211_v4  ;;  %v6245_v18 = vld [vmem:[%s6747_s10 + $0x98] sm:$0x1]  ;;  %v6340_v32 = vld [vmem:[%s6747_s10 + $0x94] sm:$0xf] }
 0x1eb   : > { %3440 = vmatmul.bf16.gmra.mxu1 %v3320_v3  ;;  %3819 = vmatmul.bf16.gmra.mxu2 %v6512_v8  ;;  %v7834_v1 = vadd.f32 %v2956_v19, %v2244_v35  ;;  %v4201_v19 = vsel %vm6891_vm4, %v4196_v25, %v4200_v33  ;;  %v4213_v8 = vshrl.u32 %v6243_v47, 16  ;;  %v3298_v33 = vunpack.c.l.b16 %v3185_v39  ;;  %v5988_v25 = vld [vmem:[%s6747_s10 + $0x88] sm:$0xf] }
 0x1ec   : > { %4565 = vmatmul.bf16.gmra.mxu3 %v4445_v15  ;;  %v4222_v15 = vshll.u32 %v6244_v54, 16  ;;  %v4423_v52 = vunpack.c.l.b16 %v4201_v19  ;;  %v4945_v23 = vunpack.c.l.b16 %v4832_v48  ;;  %v4946_v14 = vunpack.c.l.b16 %v4835_v49 }
 0x1ed   : > { %8096 = vst [vmem:[#allocation6_spill] sm:$0xff] %v7834_v1  ;;  %5087 = vmatmul.bf16.gmra.mxu0 %v4967_v62  ;;  %v4226_v62 = vshrl.u32 %v6244_v54, 16  ;;  %v4215_v43 = vrot.slane %v4213_v8, 4  ;;  %v3321_v39 = vpack.c.b16 %v3299_v10, %v3298_v33  ;;  %v3191_v28 = vrot.slane %v5988_v25, 5  ;;  %v5989_v1 = vld [vmem:[%s6747_s10 + $0x8c] sm:$0x1] }
 0x1ee   : > { %v3780_v13 = vpop.f32.mrf.mxu2  ;;  %v7852_v47 = vrot.slane %v4222_v15, 5  ;;  %v5987_v15 = vld [vmem:[%s6747_s10 + $0x84] sm:$0xe]  ;;  %v4446_v49 = vpack.c.b16 %v4424_v5, %v4423_v52  ;;  %v6339_v25 = vld [vmem:[%s6747_s10 + $0x90] sm:$0xe]  ;;  %v3194_v11 = vrot.slane %v5989_v1, 5 }
 0x1ef   : > { %v4526_v3 = vpop.f32.mrf.mxu3  ;;  %v3860_v24 = vadd.f32 %v3780_v13, %v3481_v63  ;;  %v4228_v54 = vrot.slane %v4226_v62, 4  ;;  %v8098_v63 = vld [vmem:[#allocation10_spill] sm:$0xff]  ;;  %v4219_v62 = vor.u32 %v4218_v9, %v4215_v43  ;;  %v3193_v26 = vrot.slane %v3191_v28, 4  ;;  %v6247_v1 = vld [vmem:[%s6747_s10 + $0xa0] sm:$0xf] }
 0x1f0   : > { %v3403_v44 = vpop.f32.mrf.mxu1 }
 0x1f1   : > { %v4606_v59 = vadd.f32 %v4526_v3, %v3860_v24  ;;  %v3482_v13 = vadd.f32 %v3403_v44, %v8098_v63  ;;  %v4229_v3 = vor.u32 %v4228_v54, %v7852_v47  ;;  %v4232_v24 = vshll.u32 %v6245_v18, 16  ;;  %v6246_v54 = vld [vmem:[%s6747_s10 + $0x9c] sm:$0xf] }
 0x1f2   : > { %v5050_v35 = vpop.f32.mrf.mxu0  ;;  %v4968_v44 = vpack.c.b16 %v4946_v14, %v4945_v23  ;;  %v4838_v63 = vrot.slane %v6340_v32, 5  ;;  %v4220_v43 = vrot.slane %v4219_v62, 4 }
 0x1f3   : > { %v5128_v4 = vadd.f32 %v5048_v51, %v4606_v59  ;;  %v4230_v9 = vrot.slane %v4229_v3, 4  ;;  %v4234_v51 = vrot.slane %v4232_v24, 5  ;;  %v6367_v59 = vrot.slane %v6339_v25, 9 }
 0x1f4   : > { %v4840_v5 = vrot.slane %v4838_v63, 4 }
 0x1f5   : > { %v5326_v52 = vmul.f32 %v5128_v4, %v5128_v4 }
 0x1f6   : > { %v3782_v21 = vpop.f32.mrf.mxu2 }
 0x1f7   : > { %v3861_v19 = vadd.f32 %v3782_v21, %v3482_v13  ;;  %v4528_v8 = vpop.f32.mrf.mxu3  ;;  %v6341_v13 = vld [vmem:[%s6747_s10 + $0x98] sm:$0x1]  ;;  %v6015_v21 = vrot.slane %v5987_v15, 9  ;;  %v4240_v15 = vshll.u32 %v6246_v54, 16 }
 0x1f8   : > { %v3406_v48 = vpop.f32.mrf.mxu1  ;;  %v4841_v23 = vrot.slane %v6341_v13, 5 }
 0x1f9   : > { %v4607_v33 = vadd.f32 %v4528_v8, %v3861_v19  ;;  %v3483_v32 = vadd.f32 %v3406_v48, %v7350_v56  ;;  %v3192_v19 = vsel %vm6895_vm5, %v6015_v21, %v3191_v28  ;;  %v3195_v8 = vsel %vm6895_vm5, %v3193_v26, %v3194_v11 }
 0x1fa   : > { %v5053_v10 = vpop.f32.mrf.mxu0  ;;  %v4225_v56 = vsel %vm6891_vm4, %v4220_v43, %v7852_v47  ;;  %v4235_v28 = vsel %vm6891_vm4, %v4230_v9, %v4234_v51  ;;  %v4839_v11 = vsel %vm6895_vm5, %v6367_v59, %v4838_v63  ;;  %v4842_v26 = vsel %vm6895_vm5, %v4840_v5, %v4841_v23 }
 0x1fb   : > { %v5129_v7 = vadd.f32 %v5050_v35, %v4607_v33  ;;  %3445 = vmatmul.bf16.gmra.mxu1 %v3321_v39  ;;  %3824 = vmatmul.bf16.gmra.mxu2 %v6513_v60  ;;  %v4237_v60 = vshrl.u32 %v6246_v54, 16  ;;  %v3300_v33 = vunpack.c.l.b16 %v3192_v19  ;;  %v3301_v25 = vunpack.c.l.b16 %v3195_v8  ;;  %v5991_v54 = vld [vmem:[%s6747_s10 + $0x94] sm:$0xf] }
 0x1fc   : > { %4570 = vmatmul.bf16.gmra.mxu3 %v4446_v49  ;;  %v4246_v49 = vshll.u32 %v6247_v1, 16  ;;  %v4426_v9 = vunpack.c.l.b16 %v4235_v28  ;;  %v4947_v63 = vunpack.c.l.b16 %v4839_v11  ;;  %v4948_v51 = vunpack.c.l.b16 %v4842_v26  ;;  %v6342_v26 = vld [vmem:[%s6747_s10 + $0x9c] sm:$0xe] }
 0x1fd   : > { %5092 = vmatmul.bf16.gmra.mxu0 %v4968_v44  ;;  %v6547_v35 = vpack.c.bf16 %v5129_v7, %v5128_v4  ;;  %v5288_v14 = vadd.f32 %v5129_v7, %v5128_v4  ;;  %v5327_v18 = vmul.f32 %v5129_v7, %v5129_v7  ;;  %v4250_v44 = vshrl.u32 %v6247_v1, 16 }
 0x1fe   : > { %v3785_v39 = vpop.f32.mrf.mxu2  ;;  %v4239_v13 = vrot.slane %v4237_v60, 4  ;;  %v7887_v47 = vrot.slane %v4246_v49, 5  ;;  %v4425_v1 = vunpack.c.l.b16 %v4225_v56 }
 0x1ff   : > { %6548 = vst [vmem:[%s7868_s29] sm:$0xff] %v6547_v35   ;;  %v5358_v62 = vadd.f32 %v5327_v18, %v5326_v52  ;;  %v3862_v3 = vadd.f32 %v3785_v39, %v3483_v32  ;;  %v4531_v24 = vpop.f32.mrf.mxu3  ;;  %v4242_v52 = vrot.slane %v4240_v15, 5  ;;  %v4252_v43 = vrot.slane %v4250_v44, 4  ;;  %v6248_v35 = vld [vmem:[%s6747_s10 + $0xa4] sm:$0x1]  ;;  %v6343_v18 = vld [vmem:[%s6747_s10 + $0xa0] sm:$0xf] }
 0x200   : > { %v3408_v4 = vpop.f32.mrf.mxu1  ;;  %v3198_v39 = vrot.slane %v5991_v54, 5  ;;  %v6514_v15 = vld [vmem:[%s6747_s10 + $0x90] sm:$0xff]  ;;  %v4447_v56 = vpack.c.b16 %v4426_v9, %v4425_v1  ;;  %v6368_v9 = vrot.slane %v6342_v26, 9 }
 0x201   : > { %v4608_v7 = vadd.f32 %v4531_v24, %v3862_v3  ;;  %v3484_v23 = vadd.f32 %v3408_v4, %v7352_v58  ;;  %v5990_v3 = vld [vmem:[%s6747_s10 + $0x90] sm:$0xe]  ;;  %v5992_v24 = vld [vmem:[%s6747_s10 + $0x98] sm:$0x1]  ;;  %v4243_v49 = vor.u32 %v4242_v52, %v4239_v13  ;;  %v4253_v44 = vor.u32 %v4252_v43, %v7887_v47  ;;  %v6249_v43 = vld [vmem:[%s6747_s10 + $0xa8] sm:$0xf] }
 0x202   : > { %v5055_v48 = vpop.f32.mrf.mxu0  ;;  %v4969_v58 = vpack.c.b16 %v4948_v51, %v4947_v63  ;;  %v4256_v4 = vshll.u32 %v6248_v35, 16  ;;  %v3201_v54 = vrot.slane %v5992_v24, 5 }
 0x203   : > { %v5130_v21 = vadd.f32 %v5053_v10, %v4608_v7  ;;  %v3322_v10 = vpack.c.b16 %v3301_v25, %v3300_v33  ;;  %v4845_v7 = vrot.slane %v6343_v18, 5  ;;  %v6344_v33 = vld [vmem:[%s6747_s10 + $0xa4] sm:$0x1]  ;;  %v3200_v25 = vrot.slane %v3198_v39, 4 }
 0x204   : > { %v4244_v13 = vrot.slane %v4243_v49, 4  ;;  %v4254_v52 = vrot.slane %v4253_v44, 4  ;;  %v4258_v1 = vrot.slane %v4256_v4, 5  ;;  %v4848_v51 = vrot.slane %v6344_v33, 5 }
 0x205   : > { %v5289_v59 = vadd.f32 %v5288_v14, %v5130_v21  ;;  %v5328_v5 = vmul.f32 %v5130_v21, %v5130_v21  ;;  %v4847_v63 = vrot.slane %v4845_v7, 4  ;;  %v4846_v4 = vsel %vm6895_vm5, %v6368_v9, %v4845_v7 }
 0x206   : > { %v3787_v32 = vpop.f32.mrf.mxu2  ;;  %v4949_v7 = vunpack.c.l.b16 %v4846_v4  ;;  %v6347_v4 = vld [vmem:[%s6747_s10 + $0xb0] sm:$0x1] }
 0x207   : > { %v5359_v19 = vadd.f32 %v5358_v62, %v5328_v5  ;;  %v3863_v8 = vadd.f32 %v3787_v32, %v3484_v23  ;;  %v4533_v60 = vpop.f32.mrf.mxu3  ;;  %v6016_v62 = vrot.slane %v5990_v3, 9  ;;  %v6250_v23 = vld [vmem:[%s6747_s10 + $0xac] sm:$0xf]  ;;  %v4264_v3 = vshll.u32 %v6249_v43, 16 }
 0x208   : > { %v3411_v14 = vpop.f32.mrf.mxu1 }
 0x209   : > { %v4609_v28 = vadd.f32 %v4533_v60, %v3863_v8  ;;  %v3485_v8 = vadd.f32 %v3411_v14, %v7402_v17  ;;  %v4249_v17 = vsel %vm6891_vm4, %v4244_v13, %v7887_v47 }
 0x20a   : > { %v5058_v11 = vpop.f32.mrf.mxu0  ;;  %v4427_v13 = vunpack.c.l.b16 %v4249_v17 }
 0x20b   : > { %v5131_v5 = vadd.f32 %v5055_v48, %v4609_v28  ;;  %3450 = vmatmul.bf16.gmra.mxu1 %v3322_v10  ;;  %3829 = vmatmul.bf16.gmra.mxu2 %v6514_v15  ;;  %v3199_v48 = vsel %vm6895_vm5, %v6016_v62, %v3198_v39  ;;  %v3202_v10 = vsel %vm6895_vm5, %v3200_v25, %v3201_v54  ;;  %v4261_v15 = vshrl.u32 %v6249_v43, 16  ;;  %v5994_v25 = vld [vmem:[%s6747_s10 + $0xa0] sm:$0xf] }
 0x20c   : > { %4575 = vmatmul.bf16.gmra.mxu3 %v4447_v56  ;;  %v4270_v56 = vshll.u32 %v6250_v23, 16  ;;  %v4259_v39 = vsel %vm6891_vm4, %v4254_v52, %v4258_v1  ;;  %v3302_v28 = vunpack.c.l.b16 %v3199_v48  ;;  %v3303_v26 = vunpack.c.l.b16 %v3202_v10  ;;  %v6515_v10 = vld [vmem:[%s6747_s10 + $0x9c] sm:$0xff] }
 0x20d   : > { %5097 = vmatmul.bf16.gmra.mxu0 %v4969_v58  ;;  %v6552_v35 = vpack.c.bf16 %v5131_v5, %v5130_v21  ;;  %v5290_v18 = vadd.f32 %v5289_v59, %v5131_v5  ;;  %v5329_v32 = vmul.f32 %v5131_v5, %v5131_v5  ;;  %v4274_v21 = vshrl.u32 %v6250_v23, 16  ;;  %v6346_v23 = vld [vmem:[%s6747_s10 + $0xac] sm:$0xf] }
 0x20e   : > { %v3790_v60 = vpop.f32.mrf.mxu2  ;;  %v4263_v33 = vrot.slane %v4261_v15, 4  ;;  %v4266_v54 = vrot.slane %v4264_v3, 5  ;;  %v7916_v47 = vrot.slane %v4270_v56, 5  ;;  %v4428_v52 = vunpack.c.l.b16 %v4259_v39  ;;  %v5993_v15 = vld [vmem:[%s6747_s10 + $0x9c] sm:$0xe] }
 0x20f   : > { %6624 = vst [vmem:[%s7868_s29 + $0x8] sm:$0xff] %v6552_v35   ;;  %v5360_v24 = vadd.f32 %v5359_v19, %v5329_v32  ;;  %v3864_v49 = vadd.f32 %v3790_v60, %v3485_v8  ;;  %v4536_v44 = vpop.f32.mrf.mxu3  ;;  %v4849_v19 = vsel %vm6895_vm5, %v4847_v63, %v4848_v51  ;;  %v4276_v5 = vrot.slane %v4274_v21, 4  ;;  %v6251_v51 = vld [vmem:[%s6747_s10 + $0xb0] sm:$0x1]  ;;  %v5995_v3 = vld [vmem:[%s6747_s10 + $0xa4] sm:$0x1] }
 0x210   : > { %v3413_v59 = vpop.f32.mrf.mxu1  ;;  %v4950_v43 = vunpack.c.l.b16 %v4849_v19  ;;  %v3205_v32 = vrot.slane %v5994_v25, 5  ;;  %v4448_v56 = vpack.c.b16 %v4428_v52, %v4427_v13  ;;  %v4280_v21 = vshll.u32 %v6251_v51, 16  ;;  %v6345_v39 = vld [vmem:[%s6747_s10 + $0xa8] sm:$0xe] }
 0x211   : > { %v4610_v14 = vadd.f32 %v4536_v44, %v3864_v49  ;;  %v3486_v63 = vadd.f32 %v3413_v59, %v7404_v46  ;;  %v4267_v49 = vor.u32 %v4266_v54, %v4263_v33  ;;  %v4277_v44 = vor.u32 %v4276_v5, %v7916_v47  ;;  %v6252_v54 = vld [vmem:[%s6747_s10 + $0xb4] sm:$0xf] }
 0x212   : > { %v5060_v58 = vpop.f32.mrf.mxu0  ;;  %v4970_v46 = vpack.c.b16 %v4950_v43, %v4949_v7  ;;  %v4852_v59 = vrot.slane %v6346_v23, 5  ;;  %v3207_v19 = vrot.slane %v3205_v32, 4  ;;  %v4282_v5 = vrot.slane %v4280_v21, 5  ;;  %v6253_v43 = vld [vmem:[%s6747_s10 + $0xb8] sm:$0xf] }
 0x213   : > { %v5132_v62 = vadd.f32 %v5058_v11, %v4610_v14  ;;  %v3323_v11 = vpack.c.b16 %v3303_v26, %v3302_v28  ;;  %v3208_v28 = vrot.slane %v5995_v3, 5  ;;  %v4268_v33 = vrot.slane %v4267_v49, 4 }
 0x214   : > { %v4278_v25 = vrot.slane %v4277_v44, 4  ;;  %v6369_v13 = vrot.slane %v6345_v39, 9  ;;  %v4854_v52 = vrot.slane %v4852_v59, 4  ;;  %v4855_v7 = vrot.slane %v6347_v4, 5  ;;  %v5997_v4 = vld [vmem:[%s6747_s10 + $0xac] sm:$0xf] }
 0x215   : > { %v5291_v1 = vadd.f32 %v5290_v18, %v5132_v62  ;;  %v5330_v9 = vmul.f32 %v5132_v62, %v5132_v62  ;;  %v4294_v49 = vshll.u32 %v6253_v43, 16 }
 0x216   : > { %v3792_v35 = vpop.f32.mrf.mxu2 }
 0x217   : > { %v5361_v8 = vadd.f32 %v5360_v24, %v5330_v9  ;;  %v3865_v60 = vadd.f32 %v3792_v35, %v3486_v63  ;;  %v4538_v48 = vpop.f32.mrf.mxu3  ;;  %v6017_v24 = vrot.slane %v5993_v15, 9 }
 0x218   : > { %v3416_v18 = vpop.f32.mrf.mxu1 }
 0x219   : > { %v4611_v17 = vadd.f32 %v4538_v48, %v3865_v60  ;;  %v3487_v23 = vadd.f32 %v3416_v18, %v7439_v42  ;;  %v4285_v60 = vshrl.u32 %v6252_v54, 16  ;;  %v4288_v48 = vshll.u32 %v6252_v54, 16 }
 0x21a   : > { %v5063_v14 = vpop.f32.mrf.mxu0  ;;  %v4273_v42 = vsel %vm6891_vm4, %v4268_v33, %v7916_v47  ;;  %v7945_v47 = vrot.slane %v4294_v49, 5 }
 0x21b   : > { %v5133_v26 = vadd.f32 %v5060_v58, %v4611_v17  ;;  %3455 = vmatmul.bf16.gmra.mxu1 %v3323_v11  ;;  %3834 = vmatmul.bf16.gmra.mxu2 %v6515_v10  ;;  %v3206_v58 = vsel %vm6895_vm5, %v6017_v24, %v3205_v32  ;;  %v3209_v11 = vsel %vm6895_vm5, %v3207_v19, %v3208_v28  ;;  %v4287_v17 = vrot.slane %v4285_v60, 4 }
 0x21c   : > { %4580 = vmatmul.bf16.gmra.mxu3 %v4448_v56  ;;  %v4283_v32 = vsel %vm6891_vm4, %v4278_v25, %v4282_v5  ;;  %v4853_v56 = vsel %vm6895_vm5, %v6369_v13, %v4852_v59  ;;  %v3305_v21 = vunpack.c.l.b16 %v3209_v11  ;;  %v4290_v24 = vrot.slane %v4288_v48, 5  ;;  %v6254_v13 = vld [vmem:[%s6747_s10 + $0xbc] sm:$0x1]  ;;  %v5998_v11 = vld [vmem:[%s6747_s10 + $0xb0] sm:$0x1] }
 0x21d   : > { %5102 = vmatmul.bf16.gmra.mxu0 %v4970_v46  ;;  %v6557_v9 = vpack.c.bf16 %v5133_v26, %v5132_v62  ;;  %v5292_v63 = vadd.f32 %v5291_v1, %v5133_v26  ;;  %v5331_v51 = vmul.f32 %v5133_v26, %v5133_v26  ;;  %v4298_v62 = vshrl.u32 %v6253_v43, 16 }
 0x21e   : > { %v3795_v35 = vpop.f32.mrf.mxu2  ;;  %v3304_v46 = vunpack.c.l.b16 %v3206_v58  ;;  %v4429_v28 = vunpack.c.l.b16 %v4273_v42  ;;  %v4430_v26 = vunpack.c.l.b16 %v4283_v32  ;;  %v4951_v59 = vunpack.c.l.b16 %v4853_v56  ;;  %v5996_v58 = vld [vmem:[%s6747_s10 + $0xa8] sm:$0xe]  ;;  %v6348_v42 = vld [vmem:[%s6747_s10 + $0xb4] sm:$0xe] }
 0x21f   : > { %6625 = vst [vmem:[%s7868_s29 + $0x10] sm:$0xff] %v6557_v9   ;;  %v5362_v10 = vadd.f32 %v5361_v8, %v5331_v51  ;;  %v3866_v15 = vadd.f32 %v3795_v35, %v3487_v23  ;;  %v4541_v3 = vpop.f32.mrf.mxu3  ;;  %v4856_v8 = vsel %vm6895_vm5, %v4854_v52, %v4855_v7  ;;  %v4300_v19 = vrot.slane %v4298_v62, 4  ;;  %v6349_v52 = vld [vmem:[%s6747_s10 + $0xb8] sm:$0xf]  ;;  %v6516_v35 = vld [vmem:[%s6747_s10 + $0xa8] sm:$0xff] }
 0x220   : > { %v3418_v1 = vpop.f32.mrf.mxu1  ;;  %v4952_v33 = vunpack.c.l.b16 %v4856_v8  ;;  %v3212_v43 = vrot.slane %v5997_v4, 5  ;;  %v4291_v60 = vor.u32 %v4290_v24, %v4287_v17  ;;  %v4859_v49 = vrot.slane %v6349_v52, 5  ;;  %v6255_v17 = vld [vmem:[%s6747_s10 + $0xc0] sm:$0xf] }
 0x221   : > { %v4612_v44 = vadd.f32 %v4541_v3, %v3866_v15  ;;  %v3488_v5 = vadd.f32 %v3418_v1, %v7441_v55  ;;  %v4301_v48 = vor.u32 %v4300_v19, %v7945_v47  ;;  %v4449_v15 = vpack.c.b16 %v4430_v26, %v4429_v28  ;;  %v6256_v26 = vld [vmem:[%s6747_s10 + $0xc4] sm:$0xf] }
 0x222   : > { %v5065_v18 = vpop.f32.mrf.mxu0  ;;  %v4971_v55 = vpack.c.b16 %v4952_v33, %v4951_v59  ;;  %v4304_v3 = vshll.u32 %v6254_v13, 16  ;;  %v3214_v32 = vrot.slane %v3212_v43, 4  ;;  %v3215_v56 = vrot.slane %v5998_v11, 5 }
 0x223   : > { %v5134_v39 = vadd.f32 %v5063_v14, %v4612_v44  ;;  %v3324_v14 = vpack.c.b16 %v3305_v21, %v3304_v46  ;;  %v6350_v44 = vld [vmem:[%s6747_s10 + $0xbc] sm:$0x1]  ;;  %v4292_v46 = vrot.slane %v4291_v60, 4  ;;  %v4302_v21 = vrot.slane %v4301_v48, 4 }
 0x224   : > { %v4306_v4 = vrot.slane %v4304_v3, 5  ;;  %v6370_v24 = vrot.slane %v6348_v42, 9  ;;  %v4861_v19 = vrot.slane %v4859_v49, 4  ;;  %v4862_v28 = vrot.slane %v6350_v44, 5 }
 0x225   : > { %v5293_v25 = vadd.f32 %v5292_v63, %v5134_v39  ;;  %v5332_v54 = vmul.f32 %v5134_v39, %v5134_v39  ;;  %v3216_v52 = vsel %vm6895_vm5, %v3214_v32, %v3215_v56 }
 0x226   : > { %v3797_v7 = vpop.f32.mrf.mxu2  ;;  %v4860_v48 = vsel %vm6895_vm5, %v6370_v24, %v4859_v49 }
 0x227   : > { %v5363_v9 = vadd.f32 %v5362_v10, %v5332_v54  ;;  %v3867_v51 = vadd.f32 %v3797_v7, %v3488_v5  ;;  %v4543_v23 = vpop.f32.mrf.mxu3  ;;  %v6018_v10 = vrot.slane %v5996_v58, 9  ;;  %v4309_v7 = vshrl.u32 %v6255_v17, 16 }
 0x228   : > { %v3421_v63 = vpop.f32.mrf.mxu1  ;;  %v4318_v58 = vshll.u32 %v6256_v26, 16  ;;  %v4953_v49 = vunpack.c.l.b16 %v4860_v48 }
 0x229   : > { %v4613_v62 = vadd.f32 %v4543_v23, %v3867_v51  ;;  %v3489_v5 = vadd.f32 %v3421_v63, %v7488_v30  ;;  %v4297_v30 = vsel %vm6891_vm4, %v4292_v46, %v7945_v47 }
 0x22a   : > { %v5068_v1 = vpop.f32.mrf.mxu0  ;;  %v7974_v47 = vrot.slane %v4318_v58, 5 }
 0x22b   : > { %v5135_v8 = vadd.f32 %v5065_v18, %v4613_v62  ;;  %3460 = vmatmul.bf16.gmra.mxu1 %v3324_v14  ;;  %3839 = vmatmul.bf16.gmra.mxu2 %v6516_v35  ;;  %v3213_v18 = vsel %vm6895_vm5, %v6018_v10, %v3212_v43  ;;  %v4312_v14 = vshll.u32 %v6255_v17, 16  ;;  %v4307_v43 = vsel %vm6891_vm4, %v4302_v21, %v4306_v4  ;;  %v6000_v62 = vld [vmem:[%s6747_s10 + $0xb8] sm:$0xf]  ;;  %v6257_v17 = vld [vmem:[%s6747_s10 + $0xc8] sm:$0x1] }
 0x22c   : > { %4585 = vmatmul.bf16.gmra.mxu3 %v4449_v15  ;;  %v3306_v63 = vunpack.c.l.b16 %v3213_v18  ;;  %v3307_v15 = vunpack.c.l.b16 %v3216_v52  ;;  %v4431_v10 = vunpack.c.l.b16 %v4297_v30  ;;  %v4432_v32 = vunpack.c.l.b16 %v4307_v43  ;;  %v6352_v4 = vld [vmem:[%s6747_s10 + $0xc4] sm:$0xf] }
 0x22d   : > { %5107 = vmatmul.bf16.gmra.mxu0 %v4971_v55  ;;  %v6562_v59 = vpack.c.bf16 %v5135_v8, %v5134_v39  ;;  %v5294_v33 = vadd.f32 %v5293_v25, %v5135_v8  ;;  %v5333_v54 = vmul.f32 %v5135_v8, %v5135_v8  ;;  %v4322_v39 = vshrl.u32 %v6256_v26, 16 }
 0x22e   : > { %v3800_v13 = vpop.f32.mrf.mxu2  ;;  %v4311_v55 = vrot.slane %v4309_v7, 4  ;;  %v4314_v42 = vrot.slane %v4312_v14, 5  ;;  %v4450_v7 = vpack.c.b16 %v4432_v32, %v4431_v10  ;;  %v4328_v14 = vshll.u32 %v6257_v17, 16 }
 0x22f   : > { %6626 = vst [vmem:[%s7868_s29 + $0x18] sm:$0xff] %v6562_v59   ;;  %v5364_v51 = vadd.f32 %v5363_v9, %v5333_v54  ;;  %v3868_v23 = vadd.f32 %v3800_v13, %v3489_v5  ;;  %v4546_v35 = vpop.f32.mrf.mxu3  ;;  %v4863_v9 = vsel %vm6895_vm5, %v4861_v19, %v4862_v28  ;;  %v4324_v44 = vrot.slane %v4322_v39, 4  ;;  %v6517_v54 = vld [vmem:[%s6747_s10 + $0xb4] sm:$0xff]  ;;  %v6001_v13 = vld [vmem:[%s6747_s10 + $0xbc] sm:$0x1] }
 0x230   : > { %v3423_v25 = vpop.f32.mrf.mxu1  ;;  %v4954_v56 = vunpack.c.l.b16 %v4863_v9  ;;  %v3219_v19 = vrot.slane %v6000_v62, 5  ;;  %v5999_v5 = vld [vmem:[%s6747_s10 + $0xb4] sm:$0xe]  ;;  %v4315_v18 = vor.u32 %v4314_v42, %v4311_v55  ;;  %v6351_v39 = vld [vmem:[%s6747_s10 + $0xc0] sm:$0xe] }
 0x231   : > { %v4614_v11 = vadd.f32 %v4546_v35, %v3868_v23  ;;  %v3490_v21 = vadd.f32 %v3423_v25, %v7490_v20  ;;  %v4325_v52 = vor.u32 %v4324_v44, %v7974_v47  ;;  %v4866_v23 = vrot.slane %v6352_v4, 5  ;;  %v6353_v25 = vld [vmem:[%s6747_s10 + $0xc8] sm:$0x1]  ;;  %v6259_v44 = vld [vmem:[%s6747_s10 + $0xd0] sm:$0xf] }
 0x232   : > { %v5070_v60 = vpop.f32.mrf.mxu0  ;;  %v4972_v20 = vpack.c.b16 %v4954_v56, %v4953_v49  ;;  %v3221_v30 = vrot.slane %v3219_v19, 4  ;;  %v4316_v48 = vrot.slane %v4315_v18, 4  ;;  %v6371_v55 = vrot.slane %v6351_v39, 9 }
 0x233   : > { %v5136_v3 = vadd.f32 %v5068_v1, %v4614_v11  ;;  %v3325_v1 = vpack.c.b16 %v3307_v15, %v3306_v63  ;;  %v3222_v11 = vrot.slane %v6001_v13, 5  ;;  %v4326_v9 = vrot.slane %v4325_v52, 4  ;;  %v6258_v63 = vld [vmem:[%s6747_s10 + $0xcc] sm:$0xf] }
 0x234   : > { %v4330_v15 = vrot.slane %v4328_v14, 5  ;;  %v4868_v62 = vrot.slane %v4866_v23, 4  ;;  %v4869_v42 = vrot.slane %v6353_v25, 5  ;;  %v4333_v17 = vshrl.u32 %v6258_v63, 16 }
 0x235   : > { %v5295_v8 = vadd.f32 %v5294_v33, %v5136_v3  ;;  %v5334_v46 = vmul.f32 %v5136_v3, %v5136_v3  ;;  %v4336_v4 = vshll.u32 %v6258_v63, 16  ;;  %v4867_v13 = vsel %vm6895_vm5, %v6371_v55, %v4866_v23 }
 0x236   : > { %v3802_v24 = vpop.f32.mrf.mxu2 }
 0x237   : > { %v5365_v28 = vadd.f32 %v5364_v51, %v5334_v46  ;;  %v3869_v26 = vadd.f32 %v3802_v24, %v3490_v21  ;;  %v4548_v59 = vpop.f32.mrf.mxu3  ;;  %v6019_v51 = vrot.slane %v5999_v5, 9  ;;  %v3223_v21 = vsel %vm6895_vm5, %v3221_v30, %v3222_v11 }
 0x238   : > { %v3426_v33 = vpop.f32.mrf.mxu1  ;;  %v3309_v52 = vunpack.c.l.b16 %v3223_v21  ;;  %v4338_v14 = vrot.slane %v4336_v4, 5 }
 0x239   : > { %v4615_v35 = vadd.f32 %v4548_v59, %v3869_v26  ;;  %v3491_v56 = vadd.f32 %v3426_v33, %v7513_v37  ;;  %v4342_v59 = vshll.u32 %v6259_v44, 16  ;;  %v4321_v37 = vsel %vm6891_vm4, %v4316_v48, %v7974_v47  ;;  %v6260_v48 = vld [vmem:[%s6747_s10 + $0xd4] sm:$0x1] }
 0x23a   : > { %v5073_v58 = vpop.f32.mrf.mxu0  ;;  %v4335_v33 = vrot.slane %v4333_v17, 4  ;;  %v4433_v39 = vunpack.c.l.b16 %v4321_v37  ;;  %v4352_v21 = vshll.u32 %v6260_v48, 16 }
 0x23b   : > { %v5137_v43 = vadd.f32 %v5070_v60, %v4615_v35  ;;  %3465 = vmatmul.bf16.gmra.mxu1 %v3325_v1  ;;  %3844 = vmatmul.bf16.gmra.mxu2 %v6517_v54  ;;  %v3220_v60 = vsel %vm6895_vm5, %v6019_v51, %v3219_v19  ;;  %v4331_v19 = vsel %vm6891_vm4, %v4326_v9, %v4330_v15  ;;  %v8003_v47 = vrot.slane %v4342_v59, 5  ;;  %v6355_v9 = vld [vmem:[%s6747_s10 + $0xd0] sm:$0xf]  ;;  %v6356_v59 = vld [vmem:[%s6747_s10 + $0xd4] sm:$0x1] }
 0x23c   : > { %4590 = vmatmul.bf16.gmra.mxu3 %v4450_v7  ;;  %v3308_v18 = vunpack.c.l.b16 %v3220_v60  ;;  %v4434_v25 = vunpack.c.l.b16 %v4331_v19  ;;  %v4955_v51 = vunpack.c.l.b16 %v4867_v13  ;;  %v4873_v17 = vrot.slane %v6355_v9, 5 }
 0x23d   : > { %5112 = vmatmul.bf16.gmra.mxu0 %v4972_v20  ;;  %v6567_v10 = vpack.c.bf16 %v5137_v43, %v5136_v3  ;;  %v5296_v32 = vadd.f32 %v5295_v8, %v5137_v43  ;;  %v5335_v49 = vmul.f32 %v5137_v43, %v5137_v43  ;;  %v4346_v3 = vshrl.u32 %v6259_v44, 16  ;;  %v6003_v20 = vld [vmem:[%s6747_s10 + $0xc4] sm:$0xf] }
 0x23e   : > { %v3805_v46 = vpop.f32.mrf.mxu2  ;;  %v3226_v15 = vrot.slane %v6003_v20, 5  ;;  %v6518_v44 = vld [vmem:[%s6747_s10 + $0xc0] sm:$0xff]  ;;  %v4354_v13 = vrot.slane %v4352_v21, 5  ;;  %v6519_v21 = vld [vmem:[%s6747_s10 + $0xcc] sm:$0xff] }
 0x23f   : > { %6627 = vst [vmem:[%s7868_s29 + $0x20] sm:$0xff] %v6567_v10   ;;  %v5366_v24 = vadd.f32 %v5365_v28, %v5335_v49  ;;  %v3870_v1 = vadd.f32 %v3805_v46, %v3491_v56  ;;  %v4551_v26 = vpop.f32.mrf.mxu3  ;;  %v4870_v28 = vsel %vm6895_vm5, %v4868_v62, %v4869_v42  ;;  %v4348_v35 = vrot.slane %v4346_v3, 4  ;;  %v6002_v10 = vld [vmem:[%s6747_s10 + $0xc0] sm:$0xe] }
 0x240   : > { %v3428_v8 = vpop.f32.mrf.mxu1  ;;  %v4956_v23 = vunpack.c.l.b16 %v4870_v28  ;;  %v4339_v49 = vor.u32 %v4338_v14, %v4335_v33  ;;  %v4451_v46 = vpack.c.b16 %v4434_v25, %v4433_v39  ;;  %v6020_v3 = vrot.slane %v6002_v10, 9 }
 0x241   : > { %v4616_v54 = vadd.f32 %v4551_v26, %v3870_v1  ;;  %v3492_v43 = vadd.f32 %v3428_v8, %v7521_v38  ;;  %v4349_v56 = vor.u32 %v4348_v35, %v8003_v47  ;;  %v6004_v38 = vld [vmem:[%s6747_s10 + $0xc8] sm:$0x1]  ;;  %v6354_v26 = vld [vmem:[%s6747_s10 + $0xcc] sm:$0xe] }
 0x242   : > { %v5075_v5 = vpop.f32.mrf.mxu0  ;;  %v4973_v60 = vpack.c.b16 %v4956_v23, %v4955_v51  ;;  %v3229_v37 = vrot.slane %v6004_v38, 5  ;;  %v6372_v28 = vrot.slane %v6354_v26, 9 }
 0x243   : > { %v5138_v7 = vadd.f32 %v5073_v58, %v4616_v54  ;;  %v3326_v58 = vpack.c.b16 %v3309_v52, %v3308_v18  ;;  %v4340_v54 = vrot.slane %v4339_v49, 4  ;;  %v4350_v19 = vrot.slane %v4349_v56, 4 }
 0x244   : > { %v4875_v18 = vrot.slane %v4873_v17, 4  ;;  %v4876_v52 = vrot.slane %v6356_v59, 5  ;;  %v4874_v9 = vsel %vm6895_vm5, %v6372_v28, %v4873_v17 }
 0x245   : > { %v5297_v30 = vadd.f32 %v5296_v32, %v5138_v7  ;;  %v5336_v11 = vmul.f32 %v5138_v7, %v5138_v7 }
 0x246   : > { %v3807_v63 = vpop.f32.mrf.mxu2 }
 0x247   : > { %v5367_v55 = vadd.f32 %v5366_v24, %v5336_v11  ;;  %v3871_v62 = vadd.f32 %v3807_v63, %v3492_v43  ;;  %v4553_v42 = vpop.f32.mrf.mxu3  ;;  %v3228_v24 = vrot.slane %v3226_v15, 4  ;;  %v3227_v11 = vsel %vm6895_vm5, %v6020_v3, %v3226_v15 }
 0x248   : > { %v3431_v32 = vpop.f32.mrf.mxu1  ;;  %v4877_v63 = vsel %vm6895_vm5, %v4875_v18, %v4876_v52  ;;  %v3310_v15 = vunpack.c.l.b16 %v3227_v11 }
 0x249   : > { %v4617_v4 = vadd.f32 %v4553_v42, %v3871_v62  ;;  %v3493_v35 = vadd.f32 %v3431_v32, %v7539_v2  ;;  %v3230_v43 = vsel %vm6895_vm5, %v3228_v24, %v3229_v37  ;;  %v4355_v2 = vsel %vm6891_vm4, %v4350_v19, %v4354_v13 }
 0x24a   : > { %v5078_v1 = vpop.f32.mrf.mxu0  ;;  %v4436_v42 = vunpack.c.l.b16 %v4355_v2  ;;  %v4958_v10 = vunpack.c.l.b16 %v4877_v63 }
 0x24b   : > { %v5139_v8 = vadd.f32 %v5075_v5, %v4617_v4  ;;  %3470 = vmatmul.bf16.gmra.mxu1 %v3326_v58  ;;  %3849 = vmatmul.bf16.gmra.mxu2 %v6518_v44  ;;  %v4957_v44 = vunpack.c.l.b16 %v4874_v9 }
 0x24c   : > { %4595 = vmatmul.bf16.gmra.mxu3 %v4451_v46 }
 0x24d   : > { %5117 = vmatmul.bf16.gmra.mxu0 %v4973_v60  ;;  %v6572_v33 = vpack.c.bf16 %v5139_v8, %v5138_v7  ;;  %v5298_v20 = vadd.f32 %v5297_v30, %v5139_v8  ;;  %v5337_v14 = vmul.f32 %v5139_v8, %v5139_v8  ;;  %v4345_v7 = vsel %vm6891_vm4, %v4340_v54, %v8003_v47 }
 0x24e   : > { %v3810_v39 = vpop.f32.mrf.mxu2  ;;  %v4435_v62 = vunpack.c.l.b16 %v4345_v7  ;;  %v4974_v4 = vpack.c.b16 %v4958_v10, %v4957_v44 }
 0x24f   : > { %6628 = vst [vmem:[%s7868_s29 + $0x28] sm:$0xff] %v6572_v33   ;;  %v5368_v5 = vadd.f32 %v5367_v55, %v5337_v14  ;;  %v3872_v25 = vadd.f32 %v3810_v39, %v3493_v35  ;;  %v4556_v51 = vpop.f32.mrf.mxu3  ;;  %v3311_v55 = vunpack.c.l.b16 %v3230_v43 }
 0x250   : > { %v3433_v23 = vpop.f32.mrf.mxu1  ;;  %v4452_v17 = vpack.c.b16 %v4436_v42, %v4435_v62 }
 0x251   : > { %v4618_v30 = vadd.f32 %v4556_v51, %v3872_v25  ;;  %v3494_v56 = vadd.f32 %v3433_v23, %v7555_v22  ;;  %v3327_v38 = vpack.c.b16 %v3311_v55, %v3310_v15 }
 0x252   : > { %v5080_v48 = vpop.f32.mrf.mxu0 }
 0x253   : > { %v5140_v58 = vadd.f32 %v5078_v1, %v4618_v30 }
 0x255   : > { %v5299_v47 = vadd.f32 %v5298_v20, %v5140_v58  ;;  %v5338_v49 = vmul.f32 %v5140_v58, %v5140_v58 }
 0x256   : > { %v3812_v31 = vpop.f32.mrf.mxu2 }
 0x257   : > { %v5369_v32 = vadd.f32 %v5368_v5, %v5338_v49  ;;  %v3873_v46 = vadd.f32 %v3812_v31, %v3494_v56  ;;  %v4558_v60 = vpop.f32.mrf.mxu3 }
 0x258   : > { %v3436_v36 = vpop.f32.mrf.mxu1 }
 0x259   : > { %v4619_v1 = vadd.f32 %v4558_v60, %v3873_v46  ;;  %v3495_v8 = vadd.f32 %v3436_v36, %v7575_v27 }
 0x25a   : > { %v5083_v26 = vpop.f32.mrf.mxu0 }
 0x25b   : > { %v5141_v59 = vadd.f32 %v5080_v48, %v4619_v1  ;;  %3475 = vmatmul.bf16.gmra.mxu1 %v3327_v38  ;;  %3854 = vmatmul.bf16.gmra.mxu2 %v6519_v21 }
 0x25c   : > { %4600 = vmatmul.bf16.gmra.mxu3 %v4452_v17 }
 0x25d   : > { %5122 = vmatmul.bf16.gmra.mxu0 %v4974_v4  ;;  %v6577_v3 = vpack.c.bf16 %v5141_v59, %v5140_v58  ;;  %v5300_v24 = vadd.f32 %v5299_v47, %v5141_v59  ;;  %v5339_v22 = vmul.f32 %v5141_v59, %v5141_v59 }
 0x25e   : > { %v3815_v37 = vpop.f32.mrf.mxu2 }
 0x25f   : > { %6629 = vst [vmem:[%s7868_s29 + $0x30] sm:$0xff] %v6577_v3   ;;  %v5370_v54 = vadd.f32 %v5369_v32, %v5339_v22  ;;  %v3874_v19 = vadd.f32 %v3815_v37, %v3495_v8  ;;  %v4561_v13 = vpop.f32.mrf.mxu3 }
 0x260   : > { %v3438_v28 = vpop.f32.mrf.mxu1 }
 0x261   : > { %v4620_v18 = vadd.f32 %v4561_v13, %v3874_v19  ;;  %v3496_v35 = vadd.f32 %v3438_v28, %v7585_v12 }
 0x262   : > { %v5085_v52 = vpop.f32.mrf.mxu0 }
 0x263   : > { %v5142_v33 = vadd.f32 %v5083_v26, %v4620_v18 }
 0x265   : > { %v5301_v20 = vadd.f32 %v5300_v24, %v5142_v33  ;;  %v5340_v14 = vmul.f32 %v5142_v33, %v5142_v33 }
 0x266   : > { %v3817_v39 = vpop.f32.mrf.mxu2 }
 0x267   : > { %v5371_v5 = vadd.f32 %v5370_v54, %v5340_v14  ;;  %v3875_v25 = vadd.f32 %v3817_v39, %v3496_v35  ;;  %v4563_v51 = vpop.f32.mrf.mxu3 }
 0x268   : > { %v3441_v23 = vpop.f32.mrf.mxu1 }
 0x269   : > { %v4621_v27 = vadd.f32 %v4563_v51, %v3875_v25  ;;  %v3497_v2 = vadd.f32 %v3441_v23, %v7603_v29 }
 0x26a   : > { %v5088_v11 = vpop.f32.mrf.mxu0 }
 0x26b   : > { %v5143_v43 = vadd.f32 %v5085_v52, %v4621_v27 }
 0x26d   : > { %v6582_v7 = vpack.c.bf16 %v5143_v43, %v5142_v33  ;;  %v5302_v30 = vadd.f32 %v5301_v20, %v5143_v43  ;;  %v5341_v48 = vmul.f32 %v5143_v43, %v5143_v43 }
 0x26e   : > { %v3820_v9 = vpop.f32.mrf.mxu2 }
 0x26f   : > { %6630 = vst [vmem:[%s7868_s29 + $0x38] sm:$0xff] %v6582_v7   ;;  %v5372_v63 = vadd.f32 %v5371_v5, %v5341_v48  ;;  %v3876_v58 = vadd.f32 %v3820_v9, %v3497_v2  ;;  %v4566_v15 = vpop.f32.mrf.mxu3 }
 0x270   : > { %v3443_v55 = vpop.f32.mrf.mxu1 }
 0x271   : > { %v4622_v12 = vadd.f32 %v4566_v15, %v3876_v58  ;;  %v3498_v47 = vadd.f32 %v3443_v55, %v7619_v53 }
 0x272   : > { %v5090_v62 = vpop.f32.mrf.mxu0 }
 0x273   : > { %v5144_v42 = vadd.f32 %v5088_v11, %v4622_v12 }
 0x275   : > { %v5303_v44 = vadd.f32 %v5302_v30, %v5144_v42  ;;  %v5342_v10 = vmul.f32 %v5144_v42, %v5144_v42 }
 0x276   : > { %v3822_v49 = vpop.f32.mrf.mxu2 }
 0x277   : > { %v5373_v56 = vadd.f32 %v5372_v63, %v5342_v10  ;;  %v3877_v31 = vadd.f32 %v3822_v49, %v3498_v47  ;;  %v4568_v32 = vpop.f32.mrf.mxu3 }
 0x278   : > { %v3446_v46 = vpop.f32.mrf.mxu1 }
 0x279   : > { %v4623_v29 = vadd.f32 %v4568_v32, %v3877_v31  ;;  %v3499_v4 = vadd.f32 %v3446_v46, %v7639_v6 }
 0x27a   : > { %v5093_v60 = vpop.f32.mrf.mxu0 }
 0x27b   : > { %v5145_v38 = vadd.f32 %v5090_v62, %v4623_v29 }
 0x27d   : > { %v6587_v21 = vpack.c.bf16 %v5145_v38, %v5144_v42  ;;  %v5304_v36 = vadd.f32 %v5303_v44, %v5145_v38  ;;  %v5343_v17 = vmul.f32 %v5145_v38, %v5145_v38 }
 0x27e   : > { %v3825_v1 = vpop.f32.mrf.mxu2 }
 0x27f   : > { %6631 = vst [vmem:[%s7868_s29 + $0x40] sm:$0xff] %v6587_v21   ;;  %v5374_v26 = vadd.f32 %v5373_v56, %v5343_v17  ;;  %v3878_v59 = vadd.f32 %v3825_v1, %v3499_v4  ;;  %v4571_v3 = vpop.f32.mrf.mxu3 }
 0x280   : > { %v3448_v24 = vpop.f32.mrf.mxu1 }
 0x281   : > { %v4624_v53 = vadd.f32 %v4571_v3, %v3878_v59  ;;  %v3500_v19 = vadd.f32 %v3448_v24, %v7649_v0 }
 0x282   : > { %v5095_v22 = vpop.f32.mrf.mxu0 }
 0x283   : > { %v5146_v8 = vadd.f32 %v5093_v60, %v4624_v53 }
 0x285   : > { %v5305_v37 = vadd.f32 %v5304_v36, %v5146_v8  ;;  %v5344_v54 = vmul.f32 %v5146_v8, %v5146_v8 }
 0x286   : > { %v3827_v13 = vpop.f32.mrf.mxu2 }
 0x287   : > { %v5375_v28 = vadd.f32 %v5374_v26, %v5344_v54  ;;  %v3879_v18 = vadd.f32 %v3827_v13, %v3500_v19  ;;  %v4573_v52 = vpop.f32.mrf.mxu3 }
 0x288   : > { %v3451_v33 = vpop.f32.mrf.mxu1 }
 0x289   : > { %v4625_v6 = vadd.f32 %v4573_v52, %v3879_v18  ;;  %v3501_v25 = vadd.f32 %v3451_v33, %v7667_v34 }
 0x28a   : > { %v5098_v20 = vpop.f32.mrf.mxu0 }
 0x28b   : > { %v5147_v14 = vadd.f32 %v5095_v22, %v4625_v6 }
 0x28d   : > { %v6592_v35 = vpack.c.bf16 %v5147_v14, %v5146_v8  ;;  %v5306_v39 = vadd.f32 %v5305_v37, %v5147_v14  ;;  %v5345_v5 = vmul.f32 %v5147_v14, %v5147_v14 }
 0x28e   : > { %v3830_v51 = vpop.f32.mrf.mxu2 }
 0x28f   : > { %6632 = vst [vmem:[%s7868_s29 + $0x48] sm:$0xff] %v6592_v35   ;;  %v5376_v23 = vadd.f32 %v5375_v28, %v5345_v5  ;;  %v3880_v27 = vadd.f32 %v3830_v51, %v3501_v25  ;;  %v4576_v11 = vpop.f32.mrf.mxu3 }
 0x290   : > { %v3453_v43 = vpop.f32.mrf.mxu1 }
 0x291   : > { %v4626_v0 = vadd.f32 %v4576_v11, %v3880_v27  ;;  %v3502_v9 = vadd.f32 %v3453_v43, %v7683_v61 }
 0x292   : > { %v5100_v7 = vpop.f32.mrf.mxu0 }
 0x293   : > { %v5148_v30 = vadd.f32 %v5098_v20, %v4626_v0 }
 0x295   : > { %v5307_v48 = vadd.f32 %v5306_v39, %v5148_v30  ;;  %v5346_v2 = vmul.f32 %v5148_v30, %v5148_v30 }
 0x296   : > { %v3832_v63 = vpop.f32.mrf.mxu2 }
 0x297   : > { %v5377_v58 = vadd.f32 %v5376_v23, %v5346_v2  ;;  %v3881_v15 = vadd.f32 %v3832_v63, %v3502_v9  ;;  %v4578_v55 = vpop.f32.mrf.mxu3 }
 0x298   : > { %v3456_v12 = vpop.f32.mrf.mxu1 }
 0x299   : > { %v4627_v34 = vadd.f32 %v4578_v55, %v3881_v15  ;;  %v3503_v49 = vadd.f32 %v3456_v12, %v7703_v57 }
 0x29a   : > { %v5103_v62 = vpop.f32.mrf.mxu0 }
 0x29b   : > { %v5149_v42 = vadd.f32 %v5100_v7, %v4627_v34 }
 0x29d   : > { %v6597_v44 = vpack.c.bf16 %v5149_v42, %v5148_v30  ;;  %v5308_v10 = vadd.f32 %v5307_v48, %v5149_v42  ;;  %v5347_v47 = vmul.f32 %v5149_v42, %v5149_v42 }
 0x29e   : > { %v3835_v56 = vpop.f32.mrf.mxu2 }
 0x29f   : > { %6633 = vst [vmem:[%s7868_s29 + $0x50] sm:$0xff] %v6597_v44   ;;  %v5378_v31 = vadd.f32 %v5377_v58, %v5347_v47  ;;  %v3882_v32 = vadd.f32 %v3835_v56, %v3503_v49  ;;  %v4581_v46 = vpop.f32.mrf.mxu3 }
 0x2a0   : > { %v3458_v29 = vpop.f32.mrf.mxu1 }
 0x2a1   : > { %v4628_v61 = vadd.f32 %v4581_v46, %v3882_v32  ;;  %v3504_v17 = vadd.f32 %v3458_v29, %v7713_v41 }
 0x2a2   : > { %v5105_v60 = vpop.f32.mrf.mxu0 }
 0x2a3   : > { %v5150_v38 = vadd.f32 %v5103_v62, %v4628_v61  ;;  %v8099_v61 = vld [vmem:[#allocation3_spill] sm:$0xff] }
 0x2a5   : > { %v5309_v21 = vadd.f32 %v5308_v10, %v5150_v38  ;;  %v5348_v36 = vmul.f32 %v5150_v38, %v5150_v38 }
 0x2a6   : > { %v3837_v4 = vpop.f32.mrf.mxu2 }
 0x2a7   : > { %v5379_v1 = vadd.f32 %v5378_v31, %v5348_v36  ;;  %v3883_v26 = vadd.f32 %v3837_v4, %v3504_v17  ;;  %v4583_v59 = vpop.f32.mrf.mxu3 }
 0x2a8   : > { %v3461_v3 = vpop.f32.mrf.mxu1 }
 0x2a9   : > { %v4629_v57 = vadd.f32 %v4583_v59, %v3883_v26  ;;  %v3505_v54 = vadd.f32 %v3461_v3, %v7731_v50  ;;  %v8100_v3 = vld [vmem:[#allocation4_spill] sm:$0xff] }
 0x2aa   : > { %v5108_v24 = vpop.f32.mrf.mxu0 }
 0x2ab   : > { %v5151_v53 = vadd.f32 %v5105_v60, %v4629_v57 }
 0x2ad   : > { %v6602_v22 = vpack.c.bf16 %v5151_v53, %v5150_v38  ;;  %v5310_v8 = vadd.f32 %v5309_v21, %v5151_v53  ;;  %v5349_v37 = vmul.f32 %v5151_v53, %v5151_v53 }
 0x2ae   : > { %v3840_v19 = vpop.f32.mrf.mxu2 }
 0x2af   : > { %6634 = vst [vmem:[%s7868_s29 + $0x58] sm:$0xff] %v6602_v22   ;;  %v5380_v13 = vadd.f32 %v5379_v1, %v5349_v37  ;;  %v3884_v28 = vadd.f32 %v3840_v19, %v3505_v54  ;;  %v4586_v18 = vpop.f32.mrf.mxu3 }
 0x2b0   : > { %v3463_v52 = vpop.f32.mrf.mxu1 }
 0x2b1   : > { %v4630_v41 = vadd.f32 %v4586_v18, %v3884_v28  ;;  %v3506_v35 = vadd.f32 %v3463_v52, %v7747_v16 }
 0x2b2   : > { %v5110_v33 = vpop.f32.mrf.mxu0 }
 0x2b3   : > { %v5152_v6 = vadd.f32 %v5108_v24, %v4630_v41  ;;  %v8101_v41 = vld [vmem:[#allocation5_spill] sm:$0xff] }
 0x2b5   : > { %v5311_v20 = vadd.f32 %v5310_v8, %v5152_v6  ;;  %v5350_v14 = vmul.f32 %v5152_v6, %v5152_v6 }
 0x2b6   : > { %v3842_v39 = vpop.f32.mrf.mxu2 }
 0x2b7   : > { %v5381_v5 = vadd.f32 %v5380_v13, %v5350_v14  ;;  %v3885_v25 = vadd.f32 %v3842_v39, %v3506_v35  ;;  %v4588_v51 = vpop.f32.mrf.mxu3 }
 0x2b8   : > { %v3466_v23 = vpop.f32.mrf.mxu1 }
 0x2b9   : > { %v4631_v50 = vadd.f32 %v4588_v51, %v3885_v25  ;;  %v3507_v30 = vadd.f32 %v3466_v23, %v7767_v40 }
 0x2ba   : > { %v5113_v27 = vpop.f32.mrf.mxu0 }
 0x2bb   : > { %v5153_v11 = vadd.f32 %v5110_v33, %v4631_v50 }
 0x2bd   : > { %v6607_v43 = vpack.c.bf16 %v5153_v11, %v5152_v6  ;;  %v5312_v0 = vadd.f32 %v5311_v20, %v5153_v11  ;;  %v5351_v7 = vmul.f32 %v5153_v11, %v5153_v11 }
 0x2be   : > { %v3845_v48 = vpop.f32.mrf.mxu2 }
 0x2bf   : > { %6635 = vst [vmem:[%s7868_s29 + $0x60] sm:$0xff] %v6607_v43   ;;  %v5382_v2 = vadd.f32 %v5381_v5, %v5351_v7  ;;  %v3886_v9 = vadd.f32 %v3845_v48, %v3507_v30  ;;  %v4591_v63 = vpop.f32.mrf.mxu3 }
 0x2c0   : > { %v3468_v58 = vpop.f32.mrf.mxu1 }
 0x2c1   : > { %v4632_v16 = vadd.f32 %v4591_v63, %v3886_v9  ;;  %v3508_v62 = vadd.f32 %v3468_v58, %v7777_v45 }
 0x2c2   : > { %v5115_v15 = vpop.f32.mrf.mxu0 }
 0x2c3   : > { %v5154_v55 = vadd.f32 %v5113_v27, %v4632_v16  ;;  %v8102_v27 = vld [vmem:[#allocation6_spill] sm:$0xff] }
 0x2c5   : > { %v5313_v12 = vadd.f32 %v5312_v0, %v5154_v55  ;;  %v5352_v34 = vmul.f32 %v5154_v55, %v5154_v55 }
 0x2c6   : > { %v3847_v42 = vpop.f32.mrf.mxu2 }
 0x2c7   : > { %v5383_v44 = vadd.f32 %v5382_v2, %v5352_v34  ;;  %v3887_v10 = vadd.f32 %v3847_v42, %v3508_v62  ;;  %v4593_v47 = vpop.f32.mrf.mxu3 }
 0x2c8   : > { %v3471_v49 = vpop.f32.mrf.mxu1 }
 0x2c9   : > { %v4633_v40 = vadd.f32 %v4593_v47, %v3887_v10  ;;  %v3509_v60 = vadd.f32 %v3471_v49, %v8099_v61 }
 0x2ca   : > { %v5118_v31 = vpop.f32.mrf.mxu0 }
 0x2cb   : > { %v5155_v56 = vadd.f32 %v5115_v15, %v4633_v40 }
 0x2cd   : > { %v6612_v32 = vpack.c.bf16 %v5155_v56, %v5154_v55  ;;  %v5314_v46 = vadd.f32 %v5313_v12, %v5155_v56  ;;  %v5353_v29 = vmul.f32 %v5155_v56, %v5155_v56 }
 0x2ce   : > { %v3850_v38 = vpop.f32.mrf.mxu2 }
 0x2cf   : > { %6636 = vst [vmem:[%s7868_s29 + $0x68] sm:$0xff] %v6612_v32   ;;  %v5384_v21 = vadd.f32 %v5383_v44, %v5353_v29  ;;  %v3888_v36 = vadd.f32 %v3850_v38, %v3509_v60  ;;  %v4596_v17 = vpop.f32.mrf.mxu3 }
 0x2d0   : > { %v3473_v4 = vpop.f32.mrf.mxu1 }
 0x2d1   : > { %v4634_v45 = vadd.f32 %v4596_v17, %v3888_v36  ;;  %v3510_v57 = vadd.f32 %v3473_v4, %v8100_v3 }
 0x2d2   : > { %v5120_v24 = vpop.f32.mrf.mxu0 }
 0x2d3   : > { %v5156_v1 = vadd.f32 %v5118_v31, %v4634_v45 }
 0x2d5   : > { %v5315_v26 = vadd.f32 %v5314_v46, %v5156_v1  ;;  %v5354_v59 = vmul.f32 %v5156_v1, %v5156_v1 }
 0x2d6   : > { %v3852_v53 = vpop.f32.mrf.mxu2 }
 0x2d7   : > { %v5385_v22 = vadd.f32 %v5384_v21, %v5354_v59  ;;  %v3889_v8 = vadd.f32 %v3852_v53, %v3510_v57  ;;  %v4598_v37 = vpop.f32.mrf.mxu3 }
 0x2d8   : > { %v3476_v54 = vpop.f32.mrf.mxu1 }
 0x2d9   : > { %v4635_v19 = vadd.f32 %v4598_v37, %v3889_v8  ;;  %v3511_v33 = vadd.f32 %v3476_v54, %v8101_v41 }
 0x2da   : > { %v5123_v39 = vpop.f32.mrf.mxu0 }
 0x2db   : > { %v5157_v13 = vadd.f32 %v5120_v24, %v4635_v19 }
 0x2dd   : > { %v6617_v28 = vpack.c.bf16 %v5157_v13, %v5156_v1  ;;  %v5316_v18 = vadd.f32 %v5315_v26, %v5157_v13  ;;  %v5355_v52 = vmul.f32 %v5157_v13, %v5157_v13 }
 0x2de   : > { %v3855_v6 = vpop.f32.mrf.mxu2 }
 0x2df   : > { %6637 = vst [vmem:[%s7868_s29 + $0x70] sm:$0xff] %v6617_v28   ;;  %v5386_v20 = vadd.f32 %v5385_v22, %v5355_v52  ;;  %v3890_v14 = vadd.f32 %v3855_v6, %v3511_v33  ;;  %v4601_v35 = vpop.f32.mrf.mxu3 }
 0x2e0   : > { %v3478_v25 = vpop.f32.mrf.mxu1 }
 0x2e1   : > { %v4636_v5 = vadd.f32 %v4601_v35, %v3890_v14  ;;  %v3512_v11 = vadd.f32 %v3478_v25, %v8102_v27 }
 0x2e2   : > { %v5125_v2 = vpop.f32.mrf.mxu0 }
 0x2e3   : > { %v5158_v51 = vadd.f32 %v5123_v39, %v4636_v5 }
 0x2e5   : > { %v5317_v23 = vadd.f32 %v5316_v18, %v5158_v51  ;;  %v5356_v50 = vmul.f32 %v5158_v51, %v5158_v51 }
 0x2e6   : > { %v3857_v43 = vpop.f32.mrf.mxu2 }
 0x2e7   : > { %v5387_v0 = vadd.f32 %v5386_v20, %v5356_v50  ;;  %v3891_v7 = vadd.f32 %v3857_v43, %v3512_v11  ;;  %v4603_v30 = vpop.f32.mrf.mxu3 }
 0x2e9   : > { %v4637_v48 = vadd.f32 %v4603_v30, %v3891_v7 }
 0x2eb   : > { %v5159_v9 = vadd.f32 %v5125_v2, %v4637_v48 }
 0x2ed   : > { %v6622_v63 = vpack.c.bf16 %v5159_v9, %v5158_v51  ;;  %v5318_v58 = vadd.f32 %v5317_v23, %v5159_v9  ;;  %v5357_v16 = vmul.f32 %v5159_v9, %v5159_v9 }
 0x2ef   : > { %6638 = vst [vmem:[%s7868_s29 + $0x78] sm:$0xff] %v6622_v63   ;;  %v5319_v15 = vrot.slane %v5318_v58, 4  ;;  %v5388_v55 = vadd.f32 %v5387_v0, %v5357_v16 }
 0x2f1   : > { %v5320_v12 = vadd.f32 %v5319_v15, %v5318_v58  ;;  %v5389_v34 = vrot.slane %v5388_v55, 4 }
 0x2f3   : > { %v5321_v62 = vrot.slane %v5320_v12, 2  ;;  %v5390_v42 = vadd.f32 %v5389_v34, %v5388_v55 }
 0x2f5   : > { %v5322_v44 = vadd.f32 %v5321_v62, %v5320_v12  ;;  %v5391_v10 = vrot.slane %v5390_v42, 2 }
 0x2f7   : > { %v5323_v47 = vrot.slane %v5322_v44, 1  ;;  %v5392_v49 = vadd.f32 %v5391_v10, %v5390_v42 }
 0x2f9   : > { %v5324_v40 = vadd.f32 %v5323_v47, %v5322_v44  ;;  %v5393_v56 = vrot.slane %v5392_v49, 1 }
 0x2fb   : > { %5325 = vst [vmem:[%s211_s5] sm:$0x1] %v5324_v40  ;;  %v5394_v31 = vadd.f32 %v5393_v56, %v5392_v49 }
 0x2fd   : > { %5395 = vst [vmem:[%s214_s8] sm:$0x1] %v5394_v31 }
 0x2fe PF: > { %s15_s15 = sadd.s32 1, %s6678_s15  }
 0x2ff   : > { %p12_p4 = scmp.ge.s32.totalorder %s15_s15, 4  }
 0x301   :  { %14 = sbr.rel (!%p12_p4) target bundleno = 1 (0x1), region = 92 }

</bundles_post_ra>
